<compile_context>
chip_gen: v5e
topology: v5e:2x2
jax: 0.10.0
libtpu: 0.0.40
codegen_flags: <defaults>
</compile_context>

<pallas_src>
import functools

import jax
import jax.numpy as jnp
from jax import lax
from jax.experimental import pallas as pl
from jax.experimental.pallas import tpu as pltpu


def _tensorcores_per_device():
    """Best-effort TC-per-device count. Only used to pick the grid split;
    correctness does not depend on it (worst case: a minor perf delta)."""
    try:
        kind = jax.devices()[0].device_kind.lower()
    except Exception:
        return 1
    if "v7" in kind or "7x" in kind:
        return 2                       # v7x: 2 TensorCores per chip
    if "lite" in kind or "v5e" in kind or "v6e" in kind:
        return 1                       # v5e / v6e: single TensorCore
    if "v4" in kind or "v5" in kind:
        return 2                       # v4 / v5p megacore
    return 1


_NUM_TC = _tensorcores_per_device()


# ---------------------------------------------------------------------------
# Kernel: one fused GEMM (8 convs + conv biases) + per-gate math + state update.
# ---------------------------------------------------------------------------
def convlstm_gate_kernel(p_ref, c_ref, w_ref, wc_ref, out_ref, *, K, bb):
    """
    p_ref  : (RB, KCp)  bf16  im2col patches (+ all-ones bias column, zero pad)
    c_ref  : (PB, K)    f32   previous cell state C (batch-1, broadcast over batch)
    w_ref  : (KCp, 4K)  bf16  packed conv weights (+ bias row); gates i,f,c,o on lanes
    wc_ref : (PB, 3K)   bf16  Hadamard weights [W_ci | W_cf | W_co]
    out_ref: (RB, 2K)   f32   lanes [0:K] = H_t, lanes [K:2K] = C_t
    RB = bb * PB rows (bb whole batch elements, or a row sub-block when bb == 1).
    """
    PB = c_ref.shape[0]

    # All 8 3x3 convolutions + conv biases as a single MXU matmul, f32 accumulation.
    acc = jnp.dot(p_ref[...], w_ref[...],
                  preferred_element_type=jnp.float32)          # (RB, 4K)

    c = c_ref[...]                                             # (PB, K) f32
    wc = wc_ref[...].astype(jnp.float32)                       # (PB, 3K)

    # Batch-invariant Hadamard terms, computed once per grid step (PB rows only).
    had_i = wc[:, 0 * K:1 * K] * c
    had_f = wc[:, 1 * K:2 * K] * c
    had_o = wc[:, 2 * K:3 * K] * c

    # Per batch sub-block gate math (bb is a tiny static count: 1 or B on 1-TC
    # chips). Adding the (PB, K) state terms to (PB, K) slices of acc avoids
    # materializing any (RB, 4K) broadcast copy.
    for b in range(bb):
        a = acc[b * PB:(b + 1) * PB]                           # (PB, 4K) row slice

        i_t = jax.nn.sigmoid(a[:, 0 * K:1 * K] + had_i)
        f_t = jax.nn.sigmoid(a[:, 1 * K:2 * K] + had_f)
        g_t = jnp.tanh(a[:, 2 * K:3 * K])
        o_t = jax.nn.sigmoid(a[:, 3 * K:4 * K] + had_o)

        c_t = f_t * c + i_t * g_t
        # TODO(synk): Dropout2d (C_drop / H_drop) is identity for p=0 / eval mode;
        # channel-dropout RNG is intentionally not modeled in the kernel.
        h_t = o_t * jnp.tanh(c_t)

        out_ref[pl.ds(b * PB, PB), :] = jnp.concatenate(
            [h_t, c_t], axis=1).astype(out_ref.dtype)


# ---------------------------------------------------------------------------
# Wrapper-side packing (parameters: done once; reusable across time steps).
# ---------------------------------------------------------------------------
def pack_params(wx_g, wh_g, bx, bh, w_had, D, Cin, K):
    """Packs per-gate conv weights/biases and Hadamard weights into kernel operands.

    wx_g: (4,3,3,Cin,K) HWIO per gate (i,f,c,o);  wh_g: (4,3,3,K,K)
    bx, bh: (4,K) conv biases;  w_had: (3,D,D,K) = W_ci, W_cf, W_co
    """
    C = Cin + K
    KC = 9 * C
    KCp = ((KC + 1 + 127) // 128) * 128   # lane-dense contraction width (e.g. 324+1 -> 384)

    # (gate,kh,kw,in,out) -> (kh,kw,in,gate,out) -> (kh,kw,in,4K) gate-major lanes.
    wxr = jnp.transpose(wx_g, (1, 2, 3, 0, 4)).reshape(3, 3, Cin, 4 * K)
    whr = jnp.transpose(wh_g, (1, 2, 3, 0, 4)).reshape(3, 3, K, 4 * K)
    w = jnp.concatenate([wxr, whr], axis=2).reshape(KC, 4 * K)         # (9C, 4K)

    # Conv biases folded into the GEMM: one extra contraction row matched by an
    # all-ones patch column. Remaining rows are zero padding to KCp.
    bias_row = (bx + bh).reshape(1, 4 * K)                             # gate-major
    pad = jnp.zeros((KCp - KC - 1, 4 * K), jnp.float32)
    w_slab = jnp.concatenate([w, bias_row, pad], axis=0).astype(jnp.bfloat16)

    # TODO(synk): the module's per-position b_i/b_f/b_c/b_o are torch.zeros (never
    # initialized, not nn.Parameters); they are folded out here. A nonzero version
    # would need one extra (D*D, 4K) additive operand.
    wc3 = jnp.concatenate([w_had[0].reshape(D * D, K),
                           w_had[1].reshape(D * D, K),
                           w_had[2].reshape(D * D, K)], axis=1).astype(jnp.bfloat16)
    return w_slab, wc3


def build_patches(x_nhwc, h_nhwc, D, Cin, K, KCp):
    """im2col: (B,D,D,Cin)+(1,D,D,K) -> (B*D*D, KCp) bf16 patch matrix.

    Column layout: 9*(Cin+K) shifted-window channels, then one all-ones column
    (drives the packed conv-bias row of w_slab), then zero padding to KCp.
    """
    # TODO(synk): for a recurrent rollout this pad + shifted-slice plumbing could
    # reuse a persistent padded (B, D+2, D+2, C) buffer instead of rebuilding.
    B = x_nhwc.shape[0]
    C = Cin + K
    h_b = jnp.broadcast_to(h_nhwc, (B, D, D, K))
    xh = jnp.concatenate([x_nhwc, h_b], axis=-1)                       # (B, D, D, C)
    xh_p = jnp.pad(xh, ((0, 0), (1, 1), (1, 1), (0, 0)))
    cols = [xh_p[:, dh:dh + D, dw:dw + D, :]
            for dh in range(3) for dw in range(3)]
    cols.append(jnp.ones((B, D, D, 1), xh.dtype))                      # bias column
    npad = KCp - 9 * C - 1
    if npad:
        cols.append(jnp.zeros((B, D, D, npad), xh.dtype))              # lane padding
    patches = jnp.concatenate(cols, axis=-1)                           # (B, D, D, KCp)
    return patches.reshape(B * D * D, KCp).astype(jnp.bfloat16)


@jax.jit
def conv_lstm_cell(x_nhwc, h_state, c_state, w_slab, wc3):
    """Runs the ConvLSTM cell forward pass; returns (H_t, C_t) in NHWC."""
    B, D, _, Cin = x_nhwc.shape
    K = c_state.shape[-1]
    DD = D * D
    KCp = w_slab.shape[0]

    patches = build_patches(x_nhwc, h_state, D, Cin, K, KCp)          # (B*DD, KCp) bf16
    c_flat = c_state.reshape(DD, K)                                   # batch-1 state

    # Grid selection (TensorCore-aware):
    #  * 1-TC chips (v5e/v6e): one step, one M=B*DD GEMM (no per-step overhead).
    #  * 2-TC chips (v7x): 2 parallel steps — batch split, or a DD row split when
    #    B == 1 — so both cores get work.
    if _NUM_TC >= 2 and B == 1 and DD % 16 == 0:
        nsteps, bb, PB, nrb = 2, 1, DD // 2, 2
    elif _NUM_TC >= 2 and B % 2 == 0:
        nsteps, bb, PB, nrb = 2, B // 2, DD, 1
    elif _NUM_TC >= 2:
        nsteps, bb, PB, nrb = B, 1, DD, 1
    else:
        nsteps, bb, PB, nrb = 1, B, DD, 1
    RB = bb * PB

    # Per-position operands (C state, Hadamard weights) follow the row split when
    # nrb > 1; otherwise they are the full batch-1 slab at block index 0.
    pos_index = (lambda t: (0, 0)) if nrb == 1 else (lambda t: (t, 0))

    kernel = functools.partial(convlstm_gate_kernel, K=K, bb=bb)

    grid_spec = pltpu.PrefetchScalarGridSpec(
        num_scalar_prefetch=0,
        grid=(nsteps,),
        in_specs=[
            pl.BlockSpec((RB, KCp),      lambda t: (t, 0)),   # im2col patches
            pl.BlockSpec((PB, K),        pos_index),          # C state (batch-1)
            pl.BlockSpec((KCp, 4 * K),   lambda t: (0, 0)),   # packed conv weights + bias row
            pl.BlockSpec((PB, 3 * K),    pos_index),          # Hadamard weights (bf16)
        ],
        out_specs=pl.BlockSpec((RB, 2 * K), lambda t: (t, 0)),  # [H_t | C_t]
    )

    hc = pl.pallas_call(
        kernel,
        grid_spec=grid_spec,
        out_shape=jax.ShapeDtypeStruct((B * DD, 2 * K), jnp.float32),
        compiler_params=pltpu.CompilerParams(
            dimension_semantics=("parallel",)),
    )(patches, c_flat, w_slab, wc3)

    hc = hc.reshape(B, D, D, 2 * K)
    return hc[..., :K], hc[..., K:]


# ---------------------------------------------------------------------------
# Pure-JAX reference (NHWC), mirroring the PyTorch forward exactly.
# ---------------------------------------------------------------------------
def ref_forward(x, h, c, wx_g, wh_g, bx, bh, b_state, w_had):
    def conv(inp, w, b):
        y = lax.conv_general_dilated(
            inp, w, window_strides=(1, 1), padding="SAME",
            dimension_numbers=("NHWC", "HWIO", "NHWC"))
        return y + b

    gi = conv(x, wx_g[0], bx[0]) + conv(h, wh_g[0], bh[0])
    gf = conv(x, wx_g[1], bx[1]) + conv(h, wh_g[1], bh[1])
    gc = conv(x, wx_g[2], bx[2]) + conv(h, wh_g[2], bh[2])
    go = conv(x, wx_g[3], bx[3]) + conv(h, wh_g[3], bh[3])

    i_t = jax.nn.sigmoid(gi + w_had[0] * c + b_state[0])
    f_t = jax.nn.sigmoid(gf + w_had[1] * c + b_state[1])
    c_t = f_t * c + i_t * jnp.tanh(gc + b_state[2])
    o_t = jax.nn.sigmoid(go + w_had[2] * c + b_state[3])
    h_t = o_t * jnp.tanh(c_t)
    return h_t, c_t


if __name__ == "__main__":
    # Module config: input_channels=4, input_dim=16, n_kernels=32, dropout=0.0
    B, Cin, D, K = 2, 4, 16, 32

    key = jax.random.PRNGKey(0)
    ks = jax.random.split(key, 8)

    # x in PyTorch NCHW, transposed to NHWC for the kernel.
    x_nchw = jax.random.normal(ks[0], (B, Cin, D, D), jnp.float32)
    x = jnp.transpose(x_nchw, (0, 2, 3, 1))

    # Cell state (state_shape = (1, K, D, D) in PyTorch -> (1, D, D, K) here).
    h_state = jax.random.normal(ks[1], (1, D, D, K), jnp.float32) * 0.1
    c_state = jax.random.normal(ks[2], (1, D, D, K), jnp.float32) * 0.1

    # Conv weights in HWIO per gate (i,f,c,o), deterministic init.
    wx_g = jax.random.normal(ks[3], (4, 3, 3, Cin, K), jnp.float32) * 0.1
    wh_g = jax.random.normal(ks[4], (4, 3, 3, K, K), jnp.float32) * 0.05
    bx = jax.random.normal(ks[5], (4, K), jnp.float32) * 0.1
    bh = jax.random.normal(ks[6], (4, K), jnp.float32) * 0.1

    # Hadamard weights W_ci, W_cf, W_co; b_i..b_o are zeros in the module.
    w_had = jax.random.normal(ks[7], (3, D, D, K), jnp.float32) * 0.1
    b_state = jnp.zeros((4, D, D, K), jnp.float32)

    # Pack parameters once (reusable across time steps).
    w_slab, wc3 = pack_params(wx_g, wh_g, bx, bh, w_had, D, Cin, K)

    h_t, c_t = conv_lstm_cell(x, h_state, c_state, w_slab, wc3)
    jax.block_until_ready((h_t, c_t))

    # Verify against the pure-JAX f32 reference. bf16 matmul operands (+ bf16
    # bias row / Hadamard weights) give ~1e-3 absolute error, hence the 2e-2 tol.
    h_ref, c_ref = ref_forward(x, h_state, c_state, wx_g, wh_g, bx, bh, b_state, w_had)
    assert jnp.allclose(h_t, h_ref, atol=2e-2, rtol=2e-2), "H_t mismatch"
    assert jnp.allclose(c_t, c_ref, atol=2e-2, rtol=2e-2), "C_t mismatch"

    # Results are returned NHWC; PyTorch callers would transpose back to NCHW:
    _h_nchw = jnp.transpose(h_t, (0, 3, 1, 2))
    _c_nchw = jnp.transpose(c_t, (0, 3, 1, 2))

    print("KERNEL_OK")
</pallas_src>

<mosaic_0001>
module attributes {stable_mosaic.version = 11 : i64} {
  func.func @convlstm_gate_kernel(%arg0: i32, %arg1: memref<512x384xbf16, #tpu.memory_space<vmem>>, %arg2: memref<256x32xf32, #tpu.memory_space<vmem>>, %arg3: memref<384x128xbf16, #tpu.memory_space<vmem>>, %arg4: memref<256x96xbf16, #tpu.memory_space<vmem>>, %arg5: memref<512x64xf32, #tpu.memory_space<vmem>>) attributes {dimension_semantics = [#tpu.dimension_semantics<parallel>], iteration_bounds = array<i64: 1>, scalar_prefetch = 0 : i64, scratch_operands = 0 : i64, tpu.core_type = #tpu.core_type<tc>, window_params = [{transform_indices = @transform_0, window_bounds = array<i64: 512, 384>}, {pipeline_mode = #tpu.pipeline_mode<synchronous>, transform_indices = @transform_1, window_bounds = array<i64: 256, 32>}, {pipeline_mode = #tpu.pipeline_mode<synchronous>, transform_indices = @transform_2, window_bounds = array<i64: 384, 128>}, {pipeline_mode = #tpu.pipeline_mode<synchronous>, transform_indices = @transform_3, window_bounds = array<i64: 256, 96>}, {transform_indices = @transform_4, window_bounds = array<i64: 512, 64>}]} {
    %c0 = arith.constant 0 : index
    %c0_0 = arith.constant 0 : index
    %0 = vector.load %arg1[%c0, %c0_0] : memref<512x384xbf16, #tpu.memory_space<vmem>>, vector<512x384xbf16>
    %c0_1 = arith.constant 0 : index
    %c0_2 = arith.constant 0 : index
    %1 = vector.load %arg3[%c0_1, %c0_2] : memref<384x128xbf16, #tpu.memory_space<vmem>>, vector<384x128xbf16>
    %cst = arith.constant dense<0.000000e+00> : vector<512x128xf32>
    %2 = tpu.matmul %0, %1, %cst {dimension_numbers = #tpu.dot_dimension_numbers<[1], [0], [0], [1], [0, 0, 1, 1], [], []>} : vector<512x384xbf16>, vector<384x128xbf16>, vector<512x128xf32> -> vector<512x128xf32>
    %c0_3 = arith.constant 0 : index
    %c0_4 = arith.constant 0 : index
    %3 = vector.load %arg2[%c0_3, %c0_4] : memref<256x32xf32, #tpu.memory_space<vmem>>, vector<256x32xf32>
    %c0_5 = arith.constant 0 : index
    %c0_6 = arith.constant 0 : index
    %4 = vector.load %arg4[%c0_5, %c0_6] : memref<256x96xbf16, #tpu.memory_space<vmem>>, vector<256x96xbf16>
    %5 = arith.extf %4 : vector<256x96xbf16> to vector<256x96xf32>
    %6 = vector.extract_strided_slice %5 {offsets = [0, 0], sizes = [256, 32], strides = [1, 1]} : vector<256x96xf32> to vector<256x32xf32>
    %7 = arith.mulf %6, %3 : vector<256x32xf32>
    %8 = vector.extract_strided_slice %5 {offsets = [0, 32], sizes = [256, 32], strides = [1, 1]} : vector<256x96xf32> to vector<256x32xf32>
    %9 = arith.mulf %8, %3 : vector<256x32xf32>
    %10 = vector.extract_strided_slice %5 {offsets = [0, 64], sizes = [256, 32], strides = [1, 1]} : vector<256x96xf32> to vector<256x32xf32>
    %11 = arith.mulf %10, %3 : vector<256x32xf32>
    %12 = vector.extract_strided_slice %2 {offsets = [0, 0], sizes = [256, 128], strides = [1, 1]} : vector<512x128xf32> to vector<256x128xf32>
    %13 = vector.extract_strided_slice %12 {offsets = [0, 0], sizes = [256, 32], strides = [1, 1]} : vector<256x128xf32> to vector<256x32xf32>
    %14 = arith.addf %13, %7 : vector<256x32xf32>
    %15 = arith.negf %14 : vector<256x32xf32>
    %16 = math.exp %15 : vector<256x32xf32>
    %cst_7 = arith.constant 1.000000e+00 : f32
    %17 = vector.broadcast %cst_7 : f32 to vector<256x32xf32>
    %18 = arith.addf %17, %16 : vector<256x32xf32>
    %19 = arith.divf %17, %18 : vector<256x32xf32>
    %20 = vector.extract_strided_slice %12 {offsets = [0, 32], sizes = [256, 32], strides = [1, 1]} : vector<256x128xf32> to vector<256x32xf32>
    %21 = arith.addf %20, %9 : vector<256x32xf32>
    %22 = arith.negf %21 : vector<256x32xf32>
    %23 = math.exp %22 : vector<256x32xf32>
    %cst_8 = arith.constant 1.000000e+00 : f32
    %24 = vector.broadcast %cst_8 : f32 to vector<256x32xf32>
    %25 = arith.addf %24, %23 : vector<256x32xf32>
    %26 = arith.divf %24, %25 : vector<256x32xf32>
    %27 = vector.extract_strided_slice %12 {offsets = [0, 64], sizes = [256, 32], strides = [1, 1]} : vector<256x128xf32> to vector<256x32xf32>
    %28 = math.tanh %27 : vector<256x32xf32>
    %29 = vector.extract_strided_slice %12 {offsets = [0, 96], sizes = [256, 32], strides = [1, 1]} : vector<256x128xf32> to vector<256x32xf32>
    %30 = arith.addf %29, %11 : vector<256x32xf32>
    %31 = arith.negf %30 : vector<256x32xf32>
    %32 = math.exp %31 : vector<256x32xf32>
    %cst_9 = arith.constant 1.000000e+00 : f32
    %33 = vector.broadcast %cst_9 : f32 to vector<256x32xf32>
    %34 = arith.addf %33, %32 : vector<256x32xf32>
    %35 = arith.divf %33, %34 : vector<256x32xf32>
    %36 = arith.mulf %26, %3 : vector<256x32xf32>
    %37 = arith.mulf %19, %28 : vector<256x32xf32>
    %38 = arith.addf %36, %37 : vector<256x32xf32>
    %39 = math.tanh %38 : vector<256x32xf32>
    %40 = arith.mulf %35, %39 : vector<256x32xf32>
    %41 = tpu.concatenate %40, %38 in 1 : vector<256x32xf32>, vector<256x32xf32> -> vector<256x64xf32>
    %c0_10 = arith.constant 0 : index
    %c0_11 = arith.constant 0 : index
    %42 = vector.load %arg5[%c0_10, %c0_11] : memref<512x64xf32, #tpu.memory_space<vmem>>, vector<256x64xf32>
    tpu.vector_store %arg5[%c0_10, %c0_11], %41 {strides = array<i32>} : memref<512x64xf32, #tpu.memory_space<vmem>>, vector<256x64xf32>,
    %43 = vector.extract_strided_slice %2 {offsets = [256, 0], sizes = [256, 128], strides = [1, 1]} : vector<512x128xf32> to vector<256x128xf32>
    %44 = vector.extract_strided_slice %43 {offsets = [0, 0], sizes = [256, 32], strides = [1, 1]} : vector<256x128xf32> to vector<256x32xf32>
    %45 = arith.addf %44, %7 : vector<256x32xf32>
    %46 = arith.negf %45 : vector<256x32xf32>
    %47 = math.exp %46 : vector<256x32xf32>
    %cst_12 = arith.constant 1.000000e+00 : f32
    %48 = vector.broadcast %cst_12 : f32 to vector<256x32xf32>
    %49 = arith.addf %48, %47 : vector<256x32xf32>
    %50 = arith.divf %48, %49 : vector<256x32xf32>
    %51 = vector.extract_strided_slice %43 {offsets = [0, 32], sizes = [256, 32], strides = [1, 1]} : vector<256x128xf32> to vector<256x32xf32>
    %52 = arith.addf %51, %9 : vector<256x32xf32>
    %53 = arith.negf %52 : vector<256x32xf32>
    %54 = math.exp %53 : vector<256x32xf32>
    %cst_13 = arith.constant 1.000000e+00 : f32
    %55 = vector.broadcast %cst_13 : f32 to vector<256x32xf32>
    %56 = arith.addf %55, %54 : vector<256x32xf32>
    %57 = arith.divf %55, %56 : vector<256x32xf32>
    %58 = vector.extract_strided_slice %43 {offsets = [0, 64], sizes = [256, 32], strides = [1, 1]} : vector<256x128xf32> to vector<256x32xf32>
    %59 = math.tanh %58 : vector<256x32xf32>
    %60 = vector.extract_strided_slice %43 {offsets = [0, 96], sizes = [256, 32], strides = [1, 1]} : vector<256x128xf32> to vector<256x32xf32>
    %61 = arith.addf %60, %11 : vector<256x32xf32>
    %62 = arith.negf %61 : vector<256x32xf32>
    %63 = math.exp %62 : vector<256x32xf32>
    %cst_14 = arith.constant 1.000000e+00 : f32
    %64 = vector.broadcast %cst_14 : f32 to vector<256x32xf32>
    %65 = arith.addf %64, %63 : vector<256x32xf32>
    %66 = arith.divf %64, %65 : vector<256x32xf32>
    %67 = arith.mulf %57, %3 : vector<256x32xf32>
    %68 = arith.mulf %50, %59 : vector<256x32xf32>
    %69 = arith.addf %67, %68 : vector<256x32xf32>
    %70 = math.tanh %69 : vector<256x32xf32>
    %71 = arith.mulf %66, %70 : vector<256x32xf32>
    %72 = tpu.concatenate %71, %69 in 1 : vector<256x32xf32>, vector<256x32xf32> -> vector<256x64xf32>
    %c256 = arith.constant 256 : index
    %c0_15 = arith.constant 0 : index
    %73 = vector.load %arg5[%c256, %c0_15] : memref<512x64xf32, #tpu.memory_space<vmem>>, vector<256x64xf32>
    tpu.vector_store %arg5[%c256, %c0_15], %72 {strides = array<i32>} : memref<512x64xf32, #tpu.memory_space<vmem>>, vector<256x64xf32>,
    return
  }
  func.func @transform_0(%arg0: i32) -> (i32, i32) {
    %c0_i32 = arith.constant 0 : i32
    %c0_i32_0 = arith.constant 0 : i32
    return %arg0, %c0_i32 : i32, i32
  }
  func.func @transform_1(%arg0: i32) -> (i32, i32) {
    %c0_i32 = arith.constant 0 : i32
    %c0_i32_0 = arith.constant 0 : i32
    %c0_i32_1 = arith.constant 0 : i32
    return %c0_i32, %c0_i32_0 : i32, i32
  }
  func.func @transform_2(%arg0: i32) -> (i32, i32) {
    %c0_i32 = arith.constant 0 : i32
    %c0_i32_0 = arith.constant 0 : i32
    %c0_i32_1 = arith.constant 0 : i32
    return %c0_i32, %c0_i32_0 : i32, i32
  }
  func.func @transform_3(%arg0: i32) -> (i32, i32) {
    %c0_i32 = arith.constant 0 : i32
    %c0_i32_0 = arith.constant 0 : i32
    %c0_i32_1 = arith.constant 0 : i32
    return %c0_i32, %c0_i32_0 : i32, i32
  }
  func.func @transform_4(%arg0: i32) -> (i32, i32) {
    %c0_i32 = arith.constant 0 : i32
    %c0_i32_0 = arith.constant 0 : i32
    return %arg0, %c0_i32 : i32, i32
  }
}

</mosaic_0001>

<bundles_post_ra>
// kernel: conv_lstm_cell.1
= control target key start
LH: loop header
LB: loop body
LE: loop exit
PB: predicated region body
PF: predicated region fallthrough
CT: control target
= control target key end

     0   :  { %s9212_s19 = smov 32   ;;  %s9213_s12 = smov 64   ;;  %s18416_s1 = inlined_call_operand.vmem [shape: f32[256,32], index: 1, kind: input, shape index: {}]   ;;  %s18417_s2 = inlined_call_operand.vmem [shape: bf16[384,128], index: 2, kind: input, shape index: {}]   ;;  %s18418_s0 = inlined_call_operand.vmem [shape: bf16[512,384], index: 0, kind: input, shape index: {}]   ;;  %s18419_s3 = inlined_call_operand.vmem [shape: bf16[256,96], index: 3, kind: input, shape index: {}]   ;;  %s18420_s4 = inlined_call_operand.vmem [shape: f32[512,64], index: 4, kind: output, shape index: {}]  }
   0x1   :  { %v9242_v0 = vld [vmem:[%s18416_s1 + $0x20] sm:$0xff]  ;;  %v9247_v1 = vld [vmem:[%s18416_s1 + $0x10] sm:$0xff]  ;;  %v8057_v3 = vld [vmem:[%s18417_s2 + $0x38] sm:$0xff] }
   0x2   :  { %1524 = vrot.lane.b32.xlu2 %v9242_v0, %s9212_s19  ;;  %1520 = vrot.lane.b32.xlu1 %v9247_v1, %s9212_s19  ;;  %v9256_v2 = vld [vmem:[%s18416_s1] sm:$0xff]  ;;  %v9266_v4 = vld [vmem:[%s18417_s2 + $0xb8] sm:$0xff] }
   0x3   :  { %1516 = vrot.lane.b32.xlu0 %v9256_v2, %s9212_s19  ;;  %v9271_v5 = vld [vmem:[%s18417_s2 + $0x78] sm:$0xff]  ;;  %8153 = vmatpush.bf16.msra.mxu3 %v8057_v3  ;;  %v8056_v6 = vld [vmem:[%s18417_s2 + $0x30] sm:$0xff]  ;;  %v9286_v8 = vld [vmem:[%s18416_s1 + $0x28] sm:$0xff] }
   0x4   :  { %1187 = vmatpush.bf16.msra.mxu2 %v9266_v4  ;;  %v9280_v7 = vld [vmem:[%s18417_s2 + $0xb0] sm:$0xff]  ;;  %849 = vmatpush.bf16.msra.mxu0 %v8057_v3  ;;  %v9291_v9 = vld [vmem:[%s18416_s1 + $0x18] sm:$0xff]  ;;  %v9296_v10 = vld [vmem:[%s18416_s1 + $0x8] sm:$0xff] }
   0x5   :  { %1018 = vmatpush.bf16.msra.mxu1 %v9271_v5  ;;  %v9301_v11 = vld [vmem:[%s18417_s2 + $0x70] sm:$0xff]  ;;  %v8055_v12 = vld [vmem:[%s18417_s2 + $0x28] sm:$0xff]  ;;  %v8054_v15 = vld [vmem:[%s18417_s2 + $0x20] sm:$0xff] }
   0x6   :  { %v9310_v13 = vld [vmem:[%s18417_s2 + $0xa8] sm:$0xff]  ;;  %v9331_v16 = vld [vmem:[%s18417_s2 + $0xa0] sm:$0xff]  ;;  %v9341_v18 = vld [vmem:[%s18416_s1 + $0x38] sm:$0xff] }
   0x7   :  { %8154 = vmatpush.bf16.msra.mxu3 %v8056_v6  ;;  %v9322_v14 = vld [vmem:[%s18417_s2 + $0x68] sm:$0xff]  ;;  %v9336_v17 = vld [vmem:[%s18416_s1 + $0x40] sm:$0xff]  ;;  %v9347_v19 = vld [vmem:[%s18416_s1 + $0x30] sm:$0xff] }
   0x8   :  { %1188 = vmatpush.bf16.msra.mxu2 %v9280_v7  ;;  %850 = vmatpush.bf16.msra.mxu0 %v8056_v6  ;;  %v9352_v20 = vld [vmem:[%s18417_s2 + $0x60] sm:$0xff]  ;;  %v8053_v21 = vld [vmem:[%s18417_s2 + $0x18] sm:$0xff]  ;;  %v8052_v24 = vld [vmem:[%s18417_s2 + $0x10] sm:$0xff] }
   0x9   :  { %1019 = vmatpush.bf16.msra.mxu1 %v9301_v11  ;;  %v9361_v22 = vld [vmem:[%s18417_s2 + $0x98] sm:$0xff]  ;;  %v9382_v25 = vld [vmem:[%s18417_s2 + $0x90] sm:$0xff]  ;;  %v9398_v28 = vld [vmem:[%s18416_s1 + $0x48] sm:$0xff] }
   0xa   :  { %1526 = vrot.lane.b32.xlu2 %v9286_v8, %s9212_s19  ;;  %1522 = vrot.lane.b32.xlu1 %v9291_v9, %s9212_s19  ;;  %v9373_v23 = vld [vmem:[%s18417_s2 + $0x58] sm:$0xff]  ;;  %v9392_v27 = vld [vmem:[%s18416_s1 + $0x50] sm:$0xff] }
   0xb   :  { %1518 = vrot.lane.b32.xlu0 %v9296_v10, %s9212_s19  ;;  %8155 = vmatpush.bf16.msra.mxu3 %v8055_v12  ;;  %v9387_v26 = vld [vmem:[%s18416_s1 + $0x58] sm:$0xff]  ;;  %v9403_v29 = vld [vmem:[%s18417_s2 + $0x50] sm:$0xff]  ;;  %v8051_v30 = vld [vmem:[%s18417_s2 + $0x8] sm:$0xff] }
   0xc   :  { %1189 = vmatpush.bf16.msra.mxu2 %v9310_v13  ;;  %851 = vmatpush.bf16.msra.mxu0 %v8055_v12  ;;  %v9412_v31 = vld [vmem:[%s18417_s2 + $0x88] sm:$0xff]  ;;  %v8050_v32 = vld [vmem:[%s18417_s2] sm:$0xff]  ;;  %v7956_v38 = vld [vmem:[%s18418_s0 + $0x10] sm:$0xf0] }
   0xd   :  { %1020 = vmatpush.bf16.msra.mxu1 %v9322_v14  ;;  %v9427_v33 = vld [vmem:[%s18417_s2 + $0x48] sm:$0xff]  ;;  %v9432_v34 = vld [vmem:[%s18417_s2 + $0x80] sm:$0xff]  ;;  %v9450_v39 = vld [vmem:[%s18416_s1 + $0x70] sm:$0xff] }
   0xe   :  { %v7572_v35 = vld [vmem:[%s18418_s0 + $0x240] sm:$0xf]  ;;  %v8027_v36 = vld [vmem:[%s18418_s0 + $0x248] sm:$0xf0]  ;;  %v7292_v37 = vld [vmem:[%s18418_s0 + $0x8] sm:$0xf] }
   0xf   :  { %8156 = vmatpush.bf16.msra.mxu3 %v8054_v15  ;;  %v9455_v40 = vld [vmem:[%s18416_s1 + $0x68] sm:$0xff]  ;;  %v7284_v41 = vld [vmem:[%s18418_s0] sm:$0xf]  ;;  %v7573_v44 = vor.u32 %v8027_v36, %v7572_v35  ;;  %v7293_v45 = vor.u32 %v7956_v38, %v7292_v37  ;;  %v7954_v47 = vld [vmem:[%s18418_s0 + $0x4] sm:$0xf] }
  0x10   :  { %1190 = vmatpush.bf16.msra.mxu2 %v9331_v16  ;;  %852 = vmatpush.bf16.msra.mxu0 %v8054_v15  ;;  %v7955_v42 = vld [vmem:[%s18418_s0 + $0x8] sm:$0xf0]  ;;  %v9467_v43 = vld [vmem:[%s18416_s1 + $0x60] sm:$0xff]  ;;  %v7286_v48 = vld [vmem:[%s18418_s0 + $0xc] sm:$0xf0] }
  0x11   :  { %1021 = vmatpush.bf16.msra.mxu1 %v9352_v20  ;;  %v9473_v46 = vld [vmem:[%s18417_s2 + $0x40] sm:$0xff]  ;;  %v7285_v49 = vor.u32 %v7955_v42, %v7284_v41  ;;  %v7289_v50 = vor.u32 %v7954_v47, %v7286_v48  ;;  %v9492_v51 = vld [vmem:[%s18416_s1 + $0x88] sm:$0xff]  ;;  %v9502_v53 = vld [vmem:[%s18416_s1 + $0x78] sm:$0xff] }
  0x12   :  { %1532 = vrot.lane.b32.xlu2 %v9336_v17, %s9212_s19  ;;  %1530 = vrot.lane.b32.xlu1 %v9341_v18, %s9212_s19  ;;  %v9497_v52 = vld [vmem:[%s18416_s1 + $0x80] sm:$0xff]  ;;  %v7584_v54 = vld [vmem:[%s18418_s0 + $0x258] sm:$0xf] }
  0x13   :  { %1528 = vrot.lane.b32.xlu0 %v9347_v19, %s9212_s19  ;;  %8157 = vmatpush.bf16.msra.mxu3 %v8053_v21  ;;  %v8030_v55 = vld [vmem:[%s18418_s0 + $0x260] sm:$0xf0]  ;;  %v7304_v56 = vld [vmem:[%s18418_s0 + $0x20] sm:$0xf]  ;;  %v7959_v57 = vld [vmem:[%s18418_s0 + $0x28] sm:$0xf0] }
  0x14   :  { %1191 = vmatpush.bf16.msra.mxu2 %v9361_v22  ;;  %853 = vmatpush.bf16.msra.mxu0 %v8053_v21  ;;  %v9527_v58 = vld [vmem:[%s18416_s1 + $0xa0] sm:$0xff]  ;;  %v9532_v59 = vld [vmem:[%s18416_s1 + $0x98] sm:$0xff]  ;;  %v9543_v62 = vld [vmem:[%s18416_s1 + $0x90] sm:$0xff]  ;;  %v7585_v63 = vor.u32 %v8030_v55, %v7584_v54  ;;  %v7305_v3 = vor.u32 %v7959_v57, %v7304_v56 }
  0x15   :  { %1022 = vmatpush.bf16.msra.mxu1 %v9373_v23  ;;  %v7296_v60 = vld [vmem:[%s18418_s0 + $0x18] sm:$0xf]  ;;  %v7958_v61 = vld [vmem:[%s18418_s0 + $0x20] sm:$0xf0]  ;;  %v7298_v6 = vld [vmem:[%s18418_s0 + $0x24] sm:$0xf0] }
  0x16   :  { %v9567_v15 = vld [vmem:[%s18416_s1 + $0xb0] sm:$0xff]  ;;  %v7961_v36 = vld [vmem:[%s18418_s0 + $0x38] sm:$0xf0]  ;;  %v7310_v42 = vld [vmem:[%s18418_s0 + $0x3c] sm:$0xf0] }
  0x17   :  { %8158 = vmatpush.bf16.msra.mxu3 %v8052_v24  ;;  %v7596_v21 = vld [vmem:[%s18418_s0 + $0x270] sm:$0xf]  ;;  %v7960_v41 = vld [vmem:[%s18418_s0 + $0x34] sm:$0xf]  ;;  %v9637_v47 = vld [vmem:[%s18416_s1 + $0xe0] sm:$0xff] }
  0x18   :  { %1192 = vmatpush.bf16.msra.mxu2 %v9382_v25  ;;  %854 = vmatpush.bf16.msra.mxu0 %v8052_v24  ;;  %v7316_v24 = vld [vmem:[%s18418_s0 + $0x38] sm:$0xf]  ;;  %v7308_v35 = vld [vmem:[%s18418_s0 + $0x30] sm:$0xf]  ;;  %v8036_v48 = vld [vmem:[%s18418_s0 + $0x290] sm:$0xf0] }
  0x19   :  { %1023 = vmatpush.bf16.msra.mxu1 %v9403_v29  ;;  %v7320_v54 = vld [vmem:[%s18418_s0 + $0x48] sm:$0xf]  ;;  %v7964_v55 = vld [vmem:[%s18418_s0 + $0x50] sm:$0xf0] }
  0x1a   :  { %1538 = vrot.lane.b32.xlu2 %v9387_v26, %s9212_s19  ;;  %1536 = vrot.lane.b32.xlu1 %v9392_v27, %s9212_s19  ;;  %v9679_v56 = vld [vmem:[%s18416_s1 + $0xf0] sm:$0xff] }
  0x1b   :  { %1534 = vrot.lane.b32.xlu0 %v9398_v28, %s9212_s19  ;;  %8159 = vmatpush.bf16.msra.mxu3 %v8051_v30 }
  0x1c   :  { %1193 = vmatpush.bf16.msra.mxu2 %v9412_v31  ;;  %855 = vmatpush.bf16.msra.mxu0 %v8051_v30  ;;  %v9597_v30 = vld [vmem:[%s18416_s1 + $0xd0] sm:$0xff] }
  0x1d   :  { %1024 = vmatpush.bf16.msra.mxu1 %v9427_v33 }
  0x1f   :  { %8160 = vmatpush.bf16.msra.mxu3 %v8050_v32 }
  0x20   :  { %1194 = vmatpush.bf16.msra.mxu2 %v9432_v34  ;;  %856 = vmatpush.bf16.msra.mxu0 %v8050_v32  ;;  %v9602_v32 = vld [vmem:[%s18416_s1 + $0xc8] sm:$0xff] }
  0x21   :  { %1025 = vmatpush.bf16.msra.mxu1 %v9473_v46 }
  0x22   :  { %1544 = vrot.lane.b32.xlu2 %v9450_v39, %s9212_s19  ;;  %1542 = vrot.lane.b32.xlu1 %v9455_v40, %s9212_s19 }
  0x23   :  { %1540 = vrot.lane.b32.xlu0 %v9467_v43, %s9212_s19  ;;  %977 = vmatmul.bf16.vlgmr.msra.gmra.mxu3 %v7573_v44  ;;  %v7309_v44 = vor.u32 %v7961_v36, %v7308_v35 }
  0x24   :  { %1195 = vmatmul.bf16.vlgmr.msra.gmra.mxu2 %v7293_v45  ;;  %8161 = vmatpush.bf16.msrb.mxu3 %v9271_v5  ;;  %v7957_v5 = vld [vmem:[%s18418_s0 + $0x1c] sm:$0xf]  ;;  %v7313_v45 = vor.u32 %v7960_v41, %v7310_v42  ;;  %v8042_v41 = vld [vmem:[%s18418_s0 + $0x2c0] sm:$0xf0]  ;;  %v7352_v42 = vld [vmem:[%s18418_s0 + $0x80] sm:$0xf] }
  0x25   :  { %857 = vmatmul.bf16.vlgmr.msra.gmra.mxu0 %v7285_v49  ;;  %1026 = vmatmul.bf16.vlgmr.msra.gmra.mxu1 %v7289_v50  ;;  %v7301_v12 = vor.u32 %v7957_v5, %v7298_v6  ;;  %v7328_v49 = vld [vmem:[%s18418_s0 + $0x50] sm:$0xf]  ;;  %v7965_v50 = vld [vmem:[%s18418_s0 + $0x58] sm:$0xf0]  ;;  %v7340_v6 = vld [vmem:[%s18418_s0 + $0x68] sm:$0xf] }
  0x28   :  { %8162 = vmatpush.bf16.msrb.mxu3 %v9301_v11  ;;  %v7297_v11 = vor.u32 %v7958_v61, %v7296_v60  ;;  %v7329_v60 = vor.u32 %v7965_v50, %v7328_v49  ;;  %v7963_v61 = vld [vmem:[%s18418_s0 + $0x4c] sm:$0xf]  ;;  %v7969_v50 = vld [vmem:[%s18418_s0 + $0x7c] sm:$0xf] }
  0x2a   :  { %1550 = vrot.lane.b32.xlu2 %v9492_v51, %s9212_s19  ;;  %1548 = vrot.lane.b32.xlu1 %v9497_v52, %s9212_s19 }
  0x2b   :  { %1546 = vrot.lane.b32.xlu0 %v9502_v53, %s9212_s19 }
  0x2c   :  { %8163 = vmatpush.bf16.msrb.mxu3 %v9322_v14  ;;  %v9562_v14 = vld [vmem:[%s18416_s1 + $0xb8] sm:$0xff] }
  0x2d   :  { %19139 = vst [vmem:[#allocation2_spill] sm:$0xff] %v9562_v14 }
  0x30   :  { %8164 = vmatpush.bf16.msrb.mxu3 %v9352_v20  ;;  %v9572_v20 = vld [vmem:[%s18416_s1 + $0xa8] sm:$0xff] }
  0x31   :  { %19140 = vst [vmem:[#allocation3_spill] sm:$0xff] %v9572_v20 }
  0x32   :  { %1556 = vrot.lane.b32.xlu2 %v9527_v58, %s9212_s19  ;;  %1554 = vrot.lane.b32.xlu1 %v9532_v59, %s9212_s19 }
  0x33   :  { %1552 = vrot.lane.b32.xlu0 %v9543_v62, %s9212_s19  ;;  %982 = vmatmul.bf16.gmra.mxu3 %v7585_v63  ;;  %v7322_v63 = vld [vmem:[%s18418_s0 + $0x54] sm:$0xf0] }
  0x34   :  { %1200 = vmatmul.bf16.gmra.mxu2 %v7305_v3  ;;  %8165 = vmatpush.bf16.msrb.mxu3 %v9373_v23  ;;  %v8033_v23 = vld [vmem:[%s18418_s0 + $0x278] sm:$0xf0]  ;;  %v7325_v3 = vor.u32 %v7963_v61, %v7322_v63 }
  0x35   :  { %862 = vmatmul.bf16.gmra.mxu0 %v7297_v11  ;;  %1031 = vmatmul.bf16.gmra.mxu1 %v7301_v12  ;;  %v7597_v37 = vor.u32 %v8033_v23, %v7596_v21  ;;  %v7968_v11 = vld [vmem:[%s18418_s0 + $0x70] sm:$0xf0]  ;;  %v7967_v12 = vld [vmem:[%s18418_s0 + $0x68] sm:$0xf0] }
  0x36   :  { %v7341_v23 = vor.u32 %v7968_v11, %v7340_v6  ;;  %v8045_v6 = vld [vmem:[%s18418_s0 + $0x2d8] sm:$0xf0]  ;;  %v7364_v11 = vld [vmem:[%s18418_s0 + $0x98] sm:$0xf] }
  0x38   :  { %8166 = vmatpush.bf16.msrb.mxu3 %v9403_v29  ;;  %v7962_v29 = vld [vmem:[%s18418_s0 + $0x40] sm:$0xf0] }
  0x39   :  { %v7317_v38 = vor.u32 %v7962_v29, %v7316_v24  ;;  %v7966_v24 = vld [vmem:[%s18418_s0 + $0x64] sm:$0xf]  ;;  %v7334_v29 = vld [vmem:[%s18418_s0 + $0x6c] sm:$0xf0] }
  0x3a   :  { %1562 = vrot.lane.b32.xlu2 %v9562_v14, %s9212_s19  ;;  %1560 = vrot.lane.b32.xlu1 %v9567_v15, %s9212_s19  ;;  %v7337_v36 = vor.u32 %v7966_v24, %v7334_v29  ;;  %v7972_v29 = vld [vmem:[%s18418_s0 + $0x94] sm:$0xf] }
  0x3b   :  { %1558 = vrot.lane.b32.xlu0 %v9572_v20, %s9212_s19 }
  0x3c   :  { %8167 = vmatpush.bf16.msrb.mxu3 %v9427_v33  ;;  %v9613_v33 = vld [vmem:[%s18416_s1 + $0xc0] sm:$0xff] }
  0x40   :  { %8168 = vmatpush.bf16.msrb.mxu3 %v9473_v46  ;;  %v9632_v46 = vld [vmem:[%s18416_s1 + $0xe8] sm:$0xff] }
  0x42   :  { %1568 = vrot.lane.b32.xlu2 %v9597_v30, %s9212_s19  ;;  %1566 = vrot.lane.b32.xlu1 %v9602_v32, %s9212_s19 }
  0x43   :  { %1564 = vrot.lane.b32.xlu0 %v9613_v33, %s9212_s19  ;;  %987 = vmatmul.bf16.gmra.mxu3 %v7597_v37 }
  0x44   :  { %8169 = vmatpush.bf16.msra.mxu3 %v9266_v4  ;;  %1205 = vmatmul.bf16.gmra.mxu2 %v7317_v38  ;;  %v9643_v4 = vld [vmem:[%s18416_s1 + $0xd8] sm:$0xff] }
  0x45   :  { %867 = vmatmul.bf16.gmra.mxu0 %v7309_v44  ;;  %1036 = vmatmul.bf16.gmra.mxu1 %v7313_v45  ;;  %v7632_v38 = vld [vmem:[%s18418_s0 + $0x2b8] sm:$0xf]  ;;  %v7971_v44 = vld [vmem:[%s18418_s0 + $0x88] sm:$0xf0] }
  0x46   :  { %v7344_v45 = vld [vmem:[%s18418_s0 + $0x78] sm:$0xf]  ;;  %v7353_v49 = vor.u32 %v7971_v44, %v7352_v42 }
  0x48   :  { %8170 = vmatpush.bf16.msra.mxu3 %v9280_v7  ;;  %v7608_v7 = vld [vmem:[%s18418_s0 + $0x288] sm:$0xf] }
  0x49   :  { %v7609_v57 = vor.u32 %v8036_v48, %v7608_v7  ;;  %v7970_v7 = vld [vmem:[%s18418_s0 + $0x80] sm:$0xf0]  ;;  %v7633_v48 = vor.u32 %v8042_v41, %v7632_v38 }
  0x4a   :  { %1574 = vrot.lane.b32.xlu2 %v9632_v46, %s9212_s19  ;;  %1572 = vrot.lane.b32.xlu1 %v9637_v47, %s9212_s19 }
  0x4b   :  { %1570 = vrot.lane.b32.xlu0 %v9643_v4, %s9212_s19 }
  0x4c   :  { %8171 = vmatpush.bf16.msra.mxu3 %v9310_v13  ;;  %v9667_v13 = vld [vmem:[%s18416_s1 + $0xf8] sm:$0xff] }
  0x50   :  { %8172 = vmatpush.bf16.msra.mxu3 %v9331_v16  ;;  %v7321_v16 = vor.u32 %v7964_v55, %v7320_v54  ;;  %v7346_v54 = vld [vmem:[%s18418_s0 + $0x84] sm:$0xf0]  ;;  %v7345_v55 = vor.u32 %v7970_v7, %v7344_v45 }
  0x51   :  { %v7349_v61 = vor.u32 %v7969_v50, %v7346_v54  ;;  %v8048_v50 = vld [vmem:[%s18418_s0 + $0x2f0] sm:$0xf0]  ;;  %v7376_v54 = vld [vmem:[%s18418_s0 + $0xb0] sm:$0xf] }
  0x52   :  { %1578 = vrot.lane.b32.xlu1 %v9667_v13, %s9212_s19  ;;  %1644 = vrot.lane.b32.xlu2 %v9256_v2, %s9213_s12 }
  0x53   :  { %1576 = vrot.lane.b32.xlu0 %v9679_v56, %s9212_s19  ;;  %992 = vmatmul.bf16.gmra.mxu3 %v7609_v57 }
  0x54   :  { %8173 = vmatpush.bf16.msra.mxu3 %v9361_v22  ;;  %1210 = vmatmul.bf16.gmra.mxu2 %v7329_v60  ;;  %v7620_v22 = vld [vmem:[%s18418_s0 + $0x2a0] sm:$0xf] }
  0x55   :  { %872 = vmatmul.bf16.gmra.mxu0 %v7321_v16  ;;  %1041 = vmatmul.bf16.gmra.mxu1 %v7325_v3 }
  0x58   :  { %8174 = vmatpush.bf16.msra.mxu3 %v9382_v25  ;;  %v8039_v25 = vld [vmem:[%s18418_s0 + $0x2a8] sm:$0xf0] }
  0x59   :  { %v7621_v21 = vor.u32 %v8039_v25, %v7620_v22  ;;  %v7644_v22 = vld [vmem:[%s18418_s0 + $0x2d0] sm:$0xf] }
  0x5a   :  { %1648 = vrot.lane.b32.xlu1 %v9247_v1, %s9213_s12  ;;  %1650 = vrot.lane.b32.xlu2 %v9291_v9, %s9213_s12 }
  0x5b   :  { %1646 = vrot.lane.b32.xlu0 %v9296_v10, %s9213_s12 }
  0x5c   :  { %8175 = vmatpush.bf16.msra.mxu3 %v9412_v31  ;;  %v9702_v5 = vpop.permute.xlu2 %1524  ;;  %v7332_v31 = vld [vmem:[%s18418_s0 + $0x60] sm:$0xf] }
  0x5d   :  { %19141 = vst [vmem:[#allocation4_spill] sm:$0xff] %v9702_v5  ;;  %v7333_v35 = vor.u32 %v7967_v12, %v7332_v31  ;;  %v7974_v31 = vld [vmem:[%s18418_s0 + $0xa0] sm:$0xf0]  ;;  %v7356_v12 = vld [vmem:[%s18418_s0 + $0x90] sm:$0xf] }
  0x5e   :  { %v7365_v24 = vor.u32 %v7974_v31, %v7364_v11  ;;  %v7975_v31 = vld [vmem:[%s18418_s0 + $0xac] sm:$0xf] }
  0x60   :  { %8176 = vmatpush.bf16.msra.mxu3 %v9432_v34 }
  0x62   :  { %1654 = vrot.lane.b32.xlu1 %v9286_v8, %s9213_s12  ;;  %1656 = vrot.lane.b32.xlu2 %v9347_v19, %s9213_s12 }
  0x63   :  { %1652 = vrot.lane.b32.xlu0 %v9242_v0, %s9213_s12  ;;  %997 = vmatmul.bf16.gmra.mxu3 %v7621_v21  ;;  %v7973_v21 = vld [vmem:[%s18418_s0 + $0x98] sm:$0xf0] }
  0x64   :  { %1215 = vmatmul.bf16.gmra.mxu2 %v7341_v23  ;;  %v9735_v34 = vpop.permute.xlu2 %1526  ;;  %v7645_v23 = vor.u32 %v8045_v6, %v7644_v22  ;;  %v7976_v22 = vld [vmem:[%s18418_s0 + $0xb0] sm:$0xf0] }
  0x65   :  { %19142 = vst [vmem:[#allocation5_spill] sm:$0xff] %v9735_v34  ;;  %877 = vmatmul.bf16.gmra.mxu0 %v7333_v35  ;;  %1046 = vmatmul.bf16.gmra.mxu1 %v7337_v36  ;;  %v7358_v35 = vld [vmem:[%s18418_s0 + $0x9c] sm:$0xf0]  ;;  %v7357_v36 = vor.u32 %v7973_v21, %v7356_v12  ;;  %v7370_v12 = vld [vmem:[%s18418_s0 + $0xb4] sm:$0xf0] }
  0x66   :  { %v7361_v42 = vor.u32 %v7972_v29, %v7358_v35  ;;  %v7373_v29 = vor.u32 %v7975_v31, %v7370_v12 }
  0x6a   :  { %1660 = vrot.lane.b32.xlu1 %v9336_v17, %s9213_s12  ;;  %1662 = vrot.lane.b32.xlu2 %v9398_v28, %s9213_s12 }
  0x6b   :  { %1658 = vrot.lane.b32.xlu0 %v9341_v18, %s9213_s12 }
  0x6c   :  { %v9743_v37 = vpop.permute.xlu2 %1532 }
  0x6d   :  { %19143 = vst [vmem:[#allocation6_spill] sm:$0xff] %v9743_v37 }
  0x72   :  { %1666 = vrot.lane.b32.xlu1 %v9387_v26, %s9213_s12  ;;  %1668 = vrot.lane.b32.xlu2 %v9467_v43, %s9213_s12 }
  0x73   :  { %1664 = vrot.lane.b32.xlu0 %v9392_v27, %s9213_s12  ;;  %1002 = vmatmul.bf16.gmra.mxu3 %v7633_v48  ;;  %v7656_v48 = vld [vmem:[%s18418_s0 + $0x2e8] sm:$0xf] }
  0x74   :  { %1220 = vmatmul.bf16.gmra.mxu2 %v7353_v49  ;;  %v9775_v57 = vpop.permute.xlu2 %1538  ;;  %v9777_v60 = vpop.permute.xlu1 %1520  ;;  %v7657_v6 = vor.u32 %v8048_v50, %v7656_v48  ;;  %v7380_v48 = vld [vmem:[%s18418_s0 + $0xc0] sm:$0xf]  ;;  %v7979_v50 = vld [vmem:[%s18418_s0 + $0xc8] sm:$0xf0] }
  0x75   :  { %19144 = vst [vmem:[#allocation7_spill] sm:$0xff] %v9775_v57  ;;  %v9779_v63 = vpop.permute.xlu0 %1516  ;;  %882 = vmatmul.bf16.gmra.mxu0 %v7345_v55  ;;  %1051 = vmatmul.bf16.gmra.mxu1 %v7349_v61  ;;  %v7977_v55 = vld [vmem:[%s18418_s0 + $0xb8] sm:$0xf0]  ;;  %v7368_v61 = vld [vmem:[%s18418_s0 + $0xa8] sm:$0xf] }
  0x76   :  { %19145 = vst [vmem:[#allocation8_spill] sm:$0xff] %v9777_v60  ;;  %v7377_v11 = vor.u32 %v7977_v55, %v7376_v54  ;;  %v7369_v21 = vor.u32 %v7976_v22, %v7368_v61  ;;  %v7978_v61 = vld [vmem:[%s18418_s0 + $0xc4] sm:$0xf]  ;;  %v7382_v22 = vld [vmem:[%s18418_s0 + $0xcc] sm:$0xf0] }
  0x77   :  { %19146 = vst [vmem:[#allocation9_spill] sm:$0xff] %v9779_v63  ;;  %v7988_v57 = vld [vmem:[%s18418_s0 + $0x110] sm:$0xf0] }
  0x7a   :  { %1672 = vrot.lane.b32.xlu1 %v9450_v39, %s9213_s12  ;;  %1674 = vrot.lane.b32.xlu2 %v9502_v53, %s9213_s12 }
  0x7b   :  { %1670 = vrot.lane.b32.xlu0 %v9455_v40, %s9213_s12 }
  0x7c   :  { %v9787_v16 = vpop.permute.xlu2 %1544  ;;  %v9789_v3 = vpop.permute.xlu1 %1522 }
  0x7d   :  { %19147 = vst [vmem:[#allocation10_spill] sm:$0xff] %v9787_v16  ;;  %v9794_v25 = vpop.permute.xlu0 %1518  ;;  %v7416_v16 = vld [vmem:[%s18418_s0 + $0x108] sm:$0xf] }
  0x7e   :  { %19148 = vst [vmem:[#allocation11_spill] sm:$0xff] %v9789_v3 }
  0x7f   :  { %19149 = vst [vmem:[#allocation12_spill] sm:$0xff] %v9794_v25 }
  0x82   :  { %1678 = vrot.lane.b32.xlu1 %v9492_v51, %s9213_s12  ;;  %1680 = vrot.lane.b32.xlu2 %v9543_v62, %s9213_s12 }
  0x83   :  { %1676 = vrot.lane.b32.xlu0 %v9497_v52, %s9213_s12  ;;  %1007 = vmatmul.bf16.gmra.mxu3 %v7645_v23 }
  0x84   :  { %1225 = vmatmul.bf16.gmra.mxu2 %v7365_v24  ;;  %v9823_v38 = vpop.permute.xlu2 %1550  ;;  %v9825_v41 = vpop.permute.xlu1 %1530 }
  0x85   :  { %19150 = vst [vmem:[#allocation13_spill] sm:$0xff] %v9823_v38  ;;  %v9827_v44 = vpop.permute.xlu0 %1528  ;;  %887 = vmatmul.bf16.gmra.mxu0 %v7357_v36  ;;  %1056 = vmatmul.bf16.gmra.mxu1 %v7361_v42  ;;  %v8026_v36 = vld [vmem:[%s18418_s0 + $0x244] sm:$0xf] }
  0x86   :  { %19151 = vst [vmem:[#allocation14_spill] sm:$0xff] %v9825_v41 }
  0x87   :  { %19152 = vst [vmem:[#allocation15_spill] sm:$0xff] %v9827_v44 }
  0x8a   :  { %1684 = vrot.lane.b32.xlu1 %v9527_v58, %s9213_s12  ;;  %1686 = vrot.lane.b32.xlu2 %v9572_v20, %s9213_s12 }
  0x8b   :  { %1682 = vrot.lane.b32.xlu0 %v9532_v59, %s9213_s12 }
  0x8c   :  { %v9835_v45 = vpop.permute.xlu2 %1556  ;;  %v9837_v7 = vpop.permute.xlu1 %1536 }
  0x8d   :  { %19153 = vst [vmem:[#allocation16_spill] sm:$0xff] %v9835_v45  ;;  %v9842_v49 = vpop.permute.xlu0 %1534 }
  0x8e   :  { %19154 = vst [vmem:[#allocation17_spill] sm:$0xff] %v9837_v7  ;;  %v7989_v7 = vld [vmem:[%s18418_s0 + $0x118] sm:$0xf0] }
  0x8f   :  { %19155 = vst [vmem:[#allocation18_spill] sm:$0xff] %v9842_v49 }
  0x92   :  { %1690 = vrot.lane.b32.xlu1 %v9562_v14, %s9213_s12  ;;  %1692 = vrot.lane.b32.xlu2 %v9613_v33, %s9213_s12 }
  0x93   :  { %1688 = vrot.lane.b32.xlu0 %v9567_v15, %s9213_s12  ;;  %1012 = vmatmul.bf16.gmra.mxu3 %v7657_v6  ;;  %v7381_v6 = vor.u32 %v7979_v50, %v7380_v48 }
  0x94   :  { %1230 = vmatmul.bf16.gmra.mxu2 %v7377_v11  ;;  %v9871_v23 = vpop.permute.xlu2 %1562  ;;  %v9873_v24 = vpop.permute.xlu1 %1542 }
  0x95   :  { %19156 = vst [vmem:[#allocation19_spill] sm:$0xff] %v9871_v23  ;;  %v9875_v35 = vpop.permute.xlu0 %1540  ;;  %892 = vmatmul.bf16.gmra.mxu0 %v7369_v21  ;;  %1061 = vmatmul.bf16.gmra.mxu1 %v7373_v29  ;;  %v7385_v21 = vor.u32 %v7978_v61, %v7382_v22 }
  0x96   :  { %19157 = vst [vmem:[#allocation20_spill] sm:$0xff] %v9873_v24 }
  0x97   :  { %19158 = vst [vmem:[#allocation21_spill] sm:$0xff] %v9875_v35 }
  0x9a   :  { %1696 = vrot.lane.b32.xlu1 %v9597_v30, %s9213_s12  ;;  %1698 = vrot.lane.b32.xlu2 %v9643_v4, %s9213_s12  ;;  %v7574_v30 = vld [vmem:[%s18418_s0 + $0x24c] sm:$0xf0]  ;;  %v7388_v4 = vld [vmem:[%s18418_s0 + $0xc8] sm:$0xf] }
  0x9b   :  { %1694 = vrot.lane.b32.xlu0 %v9602_v32, %s9213_s12  ;;  %v7980_v32 = vld [vmem:[%s18418_s0 + $0xd0] sm:$0xf0]  ;;  %v7577_v54 = vor.u32 %v8026_v36, %v7574_v30 }
  0x9c   :  { %v9883_v15 = vpop.permute.xlu2 %1568  ;;  %v9885_v33 = vpop.permute.xlu1 %1548  ;;  %v7389_v55 = vor.u32 %v7980_v32, %v7388_v4 }
  0x9d   :  { %19159 = vst [vmem:[#allocation22_spill] sm:$0xff] %v9883_v15  ;;  %v9890_v42 = vpop.permute.xlu0 %1546 }
  0x9e   :  { %19160 = vst [vmem:[#allocation23_spill] sm:$0xff] %v9885_v33 }
  0x9f   :  { %19161 = vst [vmem:[#allocation24_spill] sm:$0xff] %v9890_v42 }
  0xa2   :  { %1702 = vrot.lane.b32.xlu1 %v9632_v46, %s9213_s12  ;;  %1704 = vrot.lane.b32.xlu2 %v9679_v56, %s9213_s12  ;;  %v858_v11 = vpop.f32.mrf.mxu0  ;;  %v1027_v36 = vpop.f32.mrf.mxu1 }
  0xa3   :  { %1700 = vrot.lane.b32.xlu0 %v9637_v47, %s9213_s12  ;;  %1146 = vmatmul.bf16.vlgmr.msrb.gmra.mxu3 %v7577_v54  ;;  %v1028_v30 = vadd.f32 %v1027_v36, %v858_v11  ;;  %v9930_v47 = vld [vmem:[%s18419_s3] sm:$0xff]   ;;  %v7586_v11 = vld [vmem:[%s18418_s0 + $0x264] sm:$0xf0] }
  0xa4   :  { %1235 = vmatmul.bf16.gmra.mxu2 %v7389_v55  ;;  %v9919_v31 = vpop.permute.xlu2 %1574  ;;  %v9921_v12 = vpop.permute.xlu1 %1554  ;;  %v9935_v32 = vunpack.c.l.bf16 %v9930_v47  ;;  %v8029_v55 = vld [vmem:[%s18418_s0 + $0x25c] sm:$0xf] }
  0xa5   :  { %19162 = vst [vmem:[#allocation25_spill] sm:$0xff] %v9919_v31  ;;  %v9923_v29 = vpop.permute.xlu0 %1552  ;;  %897 = vmatmul.bf16.gmra.mxu0 %v7381_v6  ;;  %1066 = vmatmul.bf16.gmra.mxu1 %v7385_v21  ;;  %v7983_v21 = vld [vmem:[%s18418_s0 + $0xe8] sm:$0xf0] }
  0xa6   :  { %19163 = vst [vmem:[#allocation26_spill] sm:$0xff] %v9921_v12  ;;  %v9925_v46 = vpop.f32.mrf.mxu3  ;;  %v10122_v14 = vmul.f32 %v9935_v32, %v9779_v63 }
  0xa7   :  { %19164 = vst [vmem:[#allocation27_spill] sm:$0xff] %v9923_v29  ;;  %v1196_v56 = vpop.f32.mrf.mxu2 }
  0xa8   :  { %19165 = vst [vmem:[#allocation28_spill] sm:$0xff] %v9925_v46  ;;  %v9932_v4 = vadd.f32 %v1196_v56, %v1028_v30  ;;  %v7982_v46 = vld [vmem:[%s18418_s0 + $0xe0] sm:$0xf0] }
  0xa9   :  { %19185 = vst [vmem:[#allocation48_spill] sm:$0xff] %v10122_v14 }
  0xaa   :  { %19166 = vst [vmem:[#allocation29_spill] sm:$0xff] %v9932_v4  ;;  %v860_v48 = vpop.f32.mrf.mxu0  ;;  %v1029_v6 = vpop.f32.mrf.mxu1 }
  0xab   :  { %1706 = vrot.lane.b32.xlu0 %v9667_v13, %s9213_s12  ;;  %v7400_v13 = vld [vmem:[%s18418_s0 + $0xe0] sm:$0xf]  ;;  %v1030_v36 = vadd.f32 %v1029_v6, %v860_v48  ;;  %v7981_v48 = vld [vmem:[%s18418_s0 + $0xdc] sm:$0xf]  ;;  %v8138_v6 = vld [vmem:[%s18419_s3 + $0x8] sm:$0xff]  }
  0xac   :  { %v9939_v50 = vpop.permute.xlu1 %1560  ;;  %v1645_v54 = vpop.permute.xlu2 %1644  ;;  %v7401_v29 = vor.u32 %v7983_v21, %v7400_v13  ;;  %v9976_v12 = vunpack.c.h.bf16 %v8138_v6 }
  0xad   :  { %19167 = vst [vmem:[#allocation30_spill] sm:$0xff] %v9939_v50  ;;  %v1740_v61 = vmul.f32 %v9935_v32, %v1645_v54  ;;  %v9945_v22 = vpop.permute.xlu0 %1558  ;;  %v7392_v54 = vld [vmem:[%s18418_s0 + $0xd8] sm:$0xf]  ;;  %v7589_v50 = vor.u32 %v8029_v55, %v7586_v11 }
  0xae   :  { %19168 = vst [vmem:[#allocation31_spill] sm:$0xff] %v9945_v22  ;;  %v9956_v30 = vpop.f32.mrf.mxu3 }
  0xaf   :  { %19169 = vst [vmem:[#allocation32_spill] sm:$0xff] %v9956_v30  ;;  %v1198_v56 = vpop.f32.mrf.mxu2  ;;  %3116 = vrot.lane.b32.xlu1 %v1740_v61, %s9212_s19  ;;  %v7394_v61 = vld [vmem:[%s18418_s0 + $0xe4] sm:$0xf0]  ;;  %v7393_v30 = vor.u32 %v7982_v46, %v7392_v54 }
  0xb0   :  { %v9965_v22 = vadd.f32 %v1198_v56, %v1030_v36  ;;  %v7397_v13 = vor.u32 %v7981_v48, %v7394_v61 }
  0xb2   :  { %19170 = vst [vmem:[#allocation33_spill] sm:$0xff] %v9965_v22  ;;  %v863_v31 = vpop.f32.mrf.mxu0  ;;  %v1032_v56 = vpop.f32.mrf.mxu1 }
  0xb3   :  { %1151 = vmatmul.bf16.gmra.mxu3 %v7589_v50  ;;  %v1033_v42 = vadd.f32 %v1032_v56, %v863_v31 }
  0xb4   :  { %1240 = vmatmul.bf16.gmra.mxu2 %v7401_v29  ;;  %v9978_v55 = vpop.permute.xlu1 %1566  ;;  %v1651_v11 = vpop.permute.xlu2 %1650  ;;  %v9991_v29 = vld [vmem:[%s18419_s3 + $0x18] sm:$0xff]  }
  0xb5   :  { %19171 = vst [vmem:[#allocation34_spill] sm:$0xff] %v9978_v55  ;;  %v1743_v21 = vmul.f32 %v9976_v12, %v1651_v11  ;;  %v9981_v36 = vpop.permute.xlu0 %1564  ;;  %902 = vmatmul.bf16.gmra.mxu0 %v7393_v30  ;;  %1071 = vmatmul.bf16.gmra.mxu1 %v7397_v13  ;;  %v9994_v50 = vunpack.c.l.bf16 %v9991_v29  ;;  %v8032_v30 = vld [vmem:[%s18418_s0 + $0x274] sm:$0xf]  ;;  %v7598_v11 = vld [vmem:[%s18418_s0 + $0x27c] sm:$0xf0] }
  0xb6   :  { %19172 = vst [vmem:[#allocation35_spill] sm:$0xff] %v9981_v36  ;;  %v9983_v33 = vpop.f32.mrf.mxu3  ;;  %v7412_v13 = vld [vmem:[%s18418_s0 + $0xf8] sm:$0xf]  ;;  %v7601_v55 = vor.u32 %v8032_v30, %v7598_v11 }
  0xb7   :  { %19173 = vst [vmem:[#allocation36_spill] sm:$0xff] %v9983_v33  ;;  %v1201_v15 = vpop.f32.mrf.mxu2  ;;  %3122 = vrot.lane.b32.xlu1 %v1743_v21, %s9212_s19  ;;  %v7986_v21 = vld [vmem:[%s18418_s0 + $0x100] sm:$0xf0]  ;;  %v10212_v63 = vmul.f32 %v9994_v50, %v9347_v19  ;;  %v7991_v19 = vld [vmem:[%s18418_s0 + $0x128] sm:$0xf0] }
  0xb8   :  { %v9986_v46 = vadd.f32 %v1201_v15, %v1033_v42  ;;  %v7413_v35 = vor.u32 %v7986_v21, %v7412_v13 }
  0xb9   :  { %19197 = vst [vmem:[#allocation60_spill] sm:$0xff] %v10212_v63 }
  0xba   :  { %19174 = vst [vmem:[#allocation37_spill] sm:$0xff] %v9986_v46  ;;  %v865_v54 = vpop.f32.mrf.mxu0  ;;  %v1034_v61 = vpop.f32.mrf.mxu1 }
  0xbb   :  { %v1035_v56 = vadd.f32 %v1034_v61, %v865_v54  ;;  %v7984_v54 = vld [vmem:[%s18418_s0 + $0xf4] sm:$0xf]  ;;  %v10033_v61 = vld [vmem:[%s18419_s3 + $0x20] sm:$0xff]  }
  0xbc   :  { %v9996_v48 = vpop.permute.xlu1 %1572  ;;  %v1657_v31 = vpop.permute.xlu2 %1656  ;;  %v10036_v24 = vunpack.c.h.bf16 %v10033_v61 }
  0xbd   :  { %19175 = vst [vmem:[#allocation38_spill] sm:$0xff] %v9996_v48  ;;  %v1746_v15 = vmul.f32 %v9994_v50, %v1657_v31  ;;  %v10002_v42 = vpop.permute.xlu0 %1570  ;;  %v7404_v31 = vld [vmem:[%s18418_s0 + $0xf0] sm:$0xf] }
  0xbe   :  { %19176 = vst [vmem:[#allocation39_spill] sm:$0xff] %v10002_v42  ;;  %v10013_v33 = vpop.f32.mrf.mxu3  ;;  %v7985_v42 = vld [vmem:[%s18418_s0 + $0xf8] sm:$0xf0] }
  0xbf   :  { %19177 = vst [vmem:[#allocation40_spill] sm:$0xff] %v10013_v33  ;;  %v1203_v48 = vpop.f32.mrf.mxu2  ;;  %3128 = vrot.lane.b32.xlu1 %v1746_v15, %s9212_s19  ;;  %v7406_v15 = vld [vmem:[%s18418_s0 + $0xfc] sm:$0xf0]  ;;  %v7405_v33 = vor.u32 %v7985_v42, %v7404_v31 }
  0xc0   :  { %v10022_v36 = vadd.f32 %v1203_v48, %v1035_v56  ;;  %v7409_v13 = vor.u32 %v7984_v54, %v7406_v15 }
  0xc2   :  { %19178 = vst [vmem:[#allocation41_spill] sm:$0xff] %v10022_v36  ;;  %v10038_v48 = vpop.f32.mrf.mxu0  ;;  %v10045_v23 = vpop.f32.mrf.mxu1 }
  0xc3   :  { %1156 = vmatmul.bf16.gmra.mxu3 %v7601_v55  ;;  %v10057_v55 = vunpack.c.l.bf16 %v8138_v6 }
  0xc4   :  { %1245 = vmatmul.bf16.gmra.mxu2 %v7413_v35  ;;  %v10040_v30 = vpop.permute.xlu1 %1578  ;;  %v1663_v11 = vpop.permute.xlu2 %1662  ;;  %v10055_v35 = vld [vmem:[%s18419_s3 + $0x30] sm:$0xff]  }
  0xc5   :  { %19179 = vst [vmem:[#allocation42_spill] sm:$0xff] %v10040_v30  ;;  %v1749_v21 = vmul.f32 %v10036_v24, %v1663_v11  ;;  %v10043_v56 = vpop.permute.xlu0 %1576  ;;  %907 = vmatmul.bf16.gmra.mxu0 %v7405_v33  ;;  %1076 = vmatmul.bf16.gmra.mxu1 %v7409_v13  ;;  %v10060_v31 = vunpack.c.l.bf16 %v10055_v35  ;;  %v10063_v33 = vunpack.c.h.bf16 %v9930_v47  ;;  %v8035_v13 = vld [vmem:[%s18418_s0 + $0x28c] sm:$0xf]  ;;  %v7610_v30 = vld [vmem:[%s18418_s0 + $0x294] sm:$0xf0] }
  0xc6   :  { %19180 = vst [vmem:[#allocation43_spill] sm:$0xff] %v10043_v56  ;;  %v10047_v49 = vpop.f32.mrf.mxu3  ;;  %v7424_v47 = vld [vmem:[%s18418_s0 + $0x110] sm:$0xf] }
  0xc7   :  { %19181 = vst [vmem:[#allocation44_spill] sm:$0xff] %v10047_v49  ;;  %v10049_v42 = vpop.f32.mrf.mxu2  ;;  %3134 = vrot.lane.b32.xlu1 %v1749_v21, %s9212_s19 }
  0xca   :  { %v870_v54 = vpop.f32.mrf.mxu0  ;;  %v1039_v6 = vpop.f32.mrf.mxu1 }
  0xcb   :  { %v1040_v38 = vadd.f32 %v1039_v6, %v870_v54  ;;  %v7425_v54 = vor.u32 %v7989_v7, %v7424_v47  ;;  %v7418_v6 = vld [vmem:[%s18418_s0 + $0x114] sm:$0xf0] }
  0xcc   :  { %v1649_v15 = vpop.permute.xlu1 %1648  ;;  %v1669_v11 = vpop.permute.xlu2 %1668 }
  0xcd   :  { %v1742_v21 = vmul.f32 %v10057_v55, %v1649_v15  ;;  %v1752_v49 = vmul.f32 %v10060_v31, %v1669_v11  ;;  %v1647_v56 = vpop.permute.xlu0 %1646 }
  0xce   :  { %v1741_v45 = vmul.f32 %v10063_v33, %v1647_v56  ;;  %v10080_v15 = vpop.f32.mrf.mxu3  ;;  %v7613_v56 = vor.u32 %v8035_v13, %v7610_v30 }
  0xcf   :  { %19182 = vst [vmem:[#allocation45_spill] sm:$0xff] %v10080_v15  ;;  %v1208_v11 = vpop.f32.mrf.mxu2  ;;  %3140 = vrot.lane.b32.xlu1 %v1752_v49, %s9212_s19  ;;  %3120 = vrot.lane.b32.xlu0 %v1742_v21, %s9212_s19  ;;  %v8139_v49 = vld [vmem:[%s18419_s3 + $0x10] sm:$0xff]   ;;  %v7987_v21 = vld [vmem:[%s18418_s0 + $0x10c] sm:$0xf] }
  0xd0   :  { %v10090_v37 = vadd.f32 %v1208_v11, %v1040_v38  ;;  %3118 = vrot.lane.b32.xlu2 %v1741_v45, %s9212_s19  ;;  %v10105_v38 = vld [vmem:[%s18419_s3 + $0x38] sm:$0xff]   ;;  %v7417_v45 = vor.u32 %v7988_v57, %v7416_v16  ;;  %v10107_v30 = vunpack.c.h.bf16 %v8139_v49  ;;  %v10112_v47 = vunpack.c.l.bf16 %v8139_v49 }
  0xd1   :  { %v10110_v7 = vunpack.c.h.bf16 %v10105_v38  ;;  %v10116_v11 = vmul.f32 %v9935_v32, %v9256_v2  ;;  %v7421_v44 = vor.u32 %v7987_v21, %v7418_v6 }
  0xd2   :  { %19183 = vst [vmem:[#allocation46_spill] sm:$0xff] %v10090_v37  ;;  %v873_v13 = vpop.f32.mrf.mxu0  ;;  %v1042_v34 = vpop.f32.mrf.mxu1  ;;  %v10142_v32 = vmul.f32 %v10112_v47, %v9242_v0  ;;  %v8142_v0 = vld [vmem:[%s18419_s3 + $0x28] sm:$0xff]  }
  0xd3   :  { %19184 = vst [vmem:[#allocation47_spill] sm:$0xff] %v10116_v11  ;;  %1161 = vmatmul.bf16.gmra.mxu3 %v7613_v56  ;;  %v1043_v20 = vadd.f32 %v1042_v34, %v873_v13  ;;  %v10138_v34 = vmul.f32 %v10063_v33, %v9296_v10  ;;  %v10158_v10 = vunpack.c.l.bf16 %v10033_v61 }
  0xd4   :  { %1250 = vmatmul.bf16.gmra.mxu2 %v7425_v54  ;;  %v1655_v15 = vpop.permute.xlu1 %1654  ;;  %v1675_v41 = vpop.permute.xlu2 %1674  ;;  %19189 = vst [vmem:[#allocation52_spill] sm:$0xff] %v10142_v32 }
  0xd5   :  { %v1745_v37 = vmul.f32 %v10107_v30, %v1655_v15  ;;  %v1755_v57 = vmul.f32 %v10110_v7, %v1675_v41  ;;  %v1653_v16 = vpop.permute.xlu0 %1652  ;;  %912 = vmatmul.bf16.gmra.mxu0 %v7417_v45  ;;  %v1772_v41 = vadd.f32 %v10116_v11, %v9932_v4  ;;  %v2412_v15 = vadd.f32 %v10122_v14, %v9932_v4  ;;  %v7436_v11 = vld [vmem:[%s18418_s0 + $0x128] sm:$0xf] }
  0xd6   :  { %v1744_v49 = vmul.f32 %v10112_v47, %v1653_v16  ;;  %v10125_v2 = vpop.f32.mrf.mxu3  ;;  %1081 = vmatmul.bf16.gmra.mxu1 %v7421_v44  ;;  %19188 = vst [vmem:[#allocation51_spill] sm:$0xff] %v10138_v34  ;;  %v10155_v44 = vmul.f32 %v10107_v30, %v9286_v8  ;;  %v10169_v45 = vunpack.c.h.bf16 %v9991_v29  ;;  %v8038_v16 = vld [vmem:[%s18418_s0 + $0x2a4] sm:$0xf]  ;;  %v1773_v29 = vadd.f32 %v10138_v34, %v9965_v22 }
  0xd7   :  { %19186 = vst [vmem:[#allocation49_spill] sm:$0xff] %v10125_v2  ;;  %v1211_v56 = vpop.f32.mrf.mxu2  ;;  %3146 = vrot.lane.b32.xlu1 %v1755_v57, %s9212_s19  ;;  %3126 = vrot.lane.b32.xlu0 %v1745_v37, %s9212_s19  ;;  %v10147_v37 = vld [vmem:[%s18419_s3 + $0x48] sm:$0xff]   ;;  %v7762_v8 = vmul.f32 -1.442695, %v1772_v41  ;;  %v7794_v13 = vmul.f32 -1.442695, %v2412_v15 }
  0xd8   :  { %v10133_v54 = vadd.f32 %v1211_v56, %v1043_v20  ;;  %3124 = vrot.lane.b32.xlu2 %v1744_v49, %s9212_s19  ;;  %v10151_v20 = vmul.f32 %v10057_v55, %v9247_v1  ;;  %19191 = vst [vmem:[#allocation54_spill] sm:$0xff] %v10155_v44  ;;  %v10164_v21 = vunpack.c.l.bf16 %v10147_v37  ;;  %v10173_v1 = vmul.f32 %v10063_v33, %v9794_v25  ;;  %v7622_v15 = vld [vmem:[%s18418_s0 + $0x2ac] sm:$0xf0] }
  0xd9   :  { %19192 = vst [vmem:[#allocation55_spill] sm:$0xff] %v10158_v10  ;;  %v10180_v49 = vmul.f32 %v9976_v12, %v9291_v9  ;;  %v7992_v9 = vld [vmem:[%s18418_s0 + $0x130] sm:$0xf0]  ;;  %v10208_v25 = vmul.f32 %v10169_v45, %v9341_v18  ;;  %v7428_v18 = vld [vmem:[%s18418_s0 + $0x120] sm:$0xf]  ;;  %8179 = vpow2.f32 %v7762_v8 }
  0xda   :  { %19187 = vst [vmem:[#allocation50_spill] sm:$0xff] %v10133_v54  ;;  %v10166_v6 = vpop.f32.mrf.mxu0  ;;  %v10186_v41 = vpop.f32.mrf.mxu1  ;;  %v2413_v34 = vadd.f32 %v10173_v1, %v9965_v22  ;;  %v10214_v54 = vunpack.c.l.bf16 %v8142_v0  ;;  %8181 = vpow2.f32 %v7794_v13  ;;  %v7429_v8 = vor.u32 %v7991_v19, %v7428_v18 }
  0xdb   :  { %19190 = vst [vmem:[#allocation53_spill] sm:$0xff] %v10151_v20 }
  0xdc   :  { %19193 = vst [vmem:[#allocation56_spill] sm:$0xff] %v10173_v1  ;;  %v1661_v61 = vpop.permute.xlu1 %1660  ;;  %v1681_v57 = vpop.permute.xlu2 %1680  ;;  %v7763_v1 = vmul.f32 -1.442695, %v1773_v29  ;;  %v10260_v13 = vmul.f32 %v10214_v54, %v9392_v27  ;;  %v8145_v27 = vld [vmem:[%s18419_s3 + $0x40] sm:$0xff]  }
  0xdd   :  { %19194 = vst [vmem:[#allocation57_spill] sm:$0xff] %v10180_v49  ;;  %v1748_v56 = vmul.f32 %v10158_v10, %v1661_v61  ;;  %v1758_v33 = vmul.f32 %v10164_v21, %v1681_v57  ;;  %v1659_v14 = vpop.permute.xlu0 %1658  ;;  %v10199_v61 = vmul.f32 %v10158_v10, %v9336_v17  ;;  %v10201_v57 = vunpack.c.h.bf16 %v8142_v0 }
  0xde   :  { %v1747_v2 = vmul.f32 %v10169_v45, %v1659_v14  ;;  %19196 = vst [vmem:[#allocation59_spill] sm:$0xff] %v10208_v25  ;;  %v10218_v17 = vmul.f32 %v10036_v24, %v9398_v28  ;;  %v10220_v10 = vpop.f32.mrf.mxu3  ;;  %v7625_v14 = vor.u32 %v8038_v16, %v7622_v15  ;;  %v7437_v0 = vor.u32 %v7992_v9, %v7436_v11 }
  0xdf   :  { %19195 = vst [vmem:[#allocation58_spill] sm:$0xff] %v10199_v61  ;;  %v10222_v61 = vpop.f32.mrf.mxu2  ;;  %3152 = vrot.lane.b32.xlu1 %v1758_v33, %s9212_s19  ;;  %3132 = vrot.lane.b32.xlu0 %v1748_v56, %s9212_s19  ;;  %v10234_v28 = vmul.f32 %v10201_v57, %v9387_v26  ;;  %v10238_v33 = vunpack.c.l.bf16 %v10105_v38  ;;  %v10242_v56 = vmul.f32 %v10057_v55, %v9777_v60  ;;  %v7430_v26 = vld [vmem:[%s18418_s0 + $0x12c] sm:$0xf0]  ;;  %v7795_v11 = vmul.f32 -1.442695, %v2413_v34 }
  0xe0   :  { %19198 = vst [vmem:[#allocation61_spill] sm:$0xff] %v10218_v17  ;;  %3130 = vrot.lane.b32.xlu2 %v1747_v2, %s9212_s19  ;;  %v10251_v2 = vunpack.c.h.bf16 %v10055_v35  ;;  %v8147_v38 = vld [vmem:[%s18419_s3 + $0x50] sm:$0xff]   ;;  %v1774_v55 = vadd.f32 %v10151_v20, %v9986_v46  ;;  %v10276_v9 = vmul.f32 %v10060_v31, %v9467_v43  ;;  %8183 = vpow2.f32 %v7763_v1 }
  0xe1   :  { %19199 = vst [vmem:[#allocation62_spill] sm:$0xff] %v10220_v10  ;;  %v7990_v10 = vld [vmem:[%s18418_s0 + $0x124] sm:$0xf]  ;;  %v10264_v16 = vmul.f32 %v10238_v33, %v9450_v39  ;;  %v10266_v29 = vunpack.c.h.bf16 %v8147_v38  ;;  %v2414_v35 = vadd.f32 %v10242_v56, %v9986_v46  ;;  %8185 = vpow2.f32 %v7795_v11 }
  0xe2   :  { %19200 = vst [vmem:[#allocation63_spill] sm:$0xff] %v10234_v28  ;;  %v878_v15 = vpop.f32.mrf.mxu0  ;;  %v10272_v34 = vmul.f32 %v10251_v2, %v9455_v40  ;;  %v7433_v19 = vor.u32 %v7990_v10, %v7430_v26  ;;  %v1047_v60 = vpop.f32.mrf.mxu1  ;;  %v10288_v10 = vunpack.c.h.bf16 %v8145_v27  ;;  %v1038_v26 = vadd.f32 %v10045_v23, %v10038_v48 }
  0xe3   :  { %19201 = vst [vmem:[#allocation64_spill] sm:$0xff] %v10242_v56  ;;  %1166 = vmatmul.bf16.gmra.mxu3 %v7625_v14  ;;  %v10283_v56 = vmul.f32 %v9976_v12, %v9789_v3  ;;  %v10292_v12 = vmul.f32 %v10110_v7, %v9502_v53  ;;  %v7796_v1 = vmul.f32 -1.442695, %v2414_v35  ;;  %v1775_v11 = vadd.f32 %v10180_v49, %v10022_v36  ;;  %v7995_v3 = vld [vmem:[%s18418_s0 + $0x148] sm:$0xf0] }
  0xe4   :  { %19202 = vst [vmem:[#allocation65_spill] sm:$0xff] %v10260_v13  ;;  %1255 = vmatmul.bf16.gmra.mxu2 %v7437_v0  ;;  %v1667_v39 = vpop.permute.xlu1 %1666  ;;  %v1687_v18 = vpop.permute.xlu2 %1686  ;;  %v1048_v0 = vadd.f32 %v1047_v60, %v878_v15  ;;  %v10300_v60 = vunpack.c.l.bf16 %v8145_v27  ;;  %v10311_v23 = vmul.f32 %v10288_v10, %v9492_v51  ;;  %v10313_v48 = vunpack.c.l.bf16 %v8147_v38  ;;  %v10328_v15 = vld [vmem:[%s18419_s3 + $0x60] sm:$0xff]  }
  0xe5   :  { %19203 = vst [vmem:[#allocation66_spill] sm:$0xff] %v10264_v16  ;;  %v1751_v40 = vmul.f32 %v10201_v57, %v1667_v39  ;;  %v1761_v20 = vmul.f32 %v10266_v29, %v1687_v18  ;;  %v1665_v43 = vpop.permute.xlu0 %1664  ;;  %v8180_v16 = vpop.eup %8179  ;;  %917 = vmatmul.bf16.gmra.mxu0 %v7429_v8  ;;  %v2415_v53 = vadd.f32 %v10283_v56, %v10022_v36  ;;  %8187 = vtanh.f32 %v9932_v4 }
  0xe6   :  { %19204 = vst [vmem:[#allocation67_spill] sm:$0xff] %v10272_v34  ;;  %v7764_v34 = vmul.f32 -1.442695, %v1774_v55  ;;  %v1750_v14 = vmul.f32 %v10214_v54, %v1665_v43  ;;  %v10296_v39 = vpop.f32.mrf.mxu3  ;;  %1086 = vmatmul.bf16.gmra.mxu1 %v7433_v19  ;;  %v10320_v8 = vmul.f32 %v10300_v60, %v9497_v52  ;;  %v10323_v35 = vunpack.c.h.bf16 %v10147_v37  ;;  %v8148_v52 = vld [vmem:[%s18419_s3 + $0x58] sm:$0xff]  }
  0xe7   :  { %19205 = vst [vmem:[#allocation68_spill] sm:$0xff] %v10276_v9  ;;  %v8182_v9 = vpop.eup %8181  ;;  %v1216_v18 = vpop.f32.mrf.mxu2  ;;  %3158 = vrot.lane.b32.xlu1 %v1761_v20, %s9212_s19  ;;  %3138 = vrot.lane.b32.xlu0 %v1751_v40, %s9212_s19  ;;  %v10315_v20 = vadd.f32 1.0, %v8180_v16  ;;  %v10334_v16 = vmul.f32 %v10313_v48, %v9527_v58  ;;  %v10340_v37 = vunpack.c.l.bf16 %v10328_v15  ;;  %v10343_v27 = vadd.f32 %v10049_v42, %v1038_v26 }
  0xe8   :  { %19206 = vst [vmem:[#allocation69_spill] sm:$0xff] %v10283_v56  ;;  %v10306_v55 = vadd.f32 %v1216_v18, %v1048_v0  ;;  %3136 = vrot.lane.b32.xlu2 %v1750_v14, %s9212_s19  ;;  %v10330_v51 = vadd.f32 1.0, %v8182_v9  ;;  %8189 = vpow2.f32 %v7764_v34  ;;  %v8184_v38 = vpop.eup %8183  ;;  %v10349_v34 = vmul.f32 %v10112_v47, %v9702_v5  ;;  %v8041_v0 = vld [vmem:[%s18418_s0 + $0x2bc] sm:$0xf] }
  0xe9   :  { %19207 = vst [vmem:[#allocation70_spill] sm:$0xff] %v10292_v12  ;;  %8191 = vpow2.f32 %v7796_v1  ;;  %v8186_v9 = vpop.eup %8185  ;;  %v7765_v58 = vmul.f32 -1.442695, %v1775_v11  ;;  %v7797_v40 = vmul.f32 -1.442695, %v2415_v53  ;;  %v1776_v42 = vadd.f32 %v10142_v32, %v10343_v27 }
  0xea   :  { %19208 = vst [vmem:[#allocation71_spill] sm:$0xff] %v10296_v39  ;;  %v10345_v19 = vpop.f32.mrf.mxu0  ;;  %8193 = vtanh.f32 %v9965_v22  ;;  %v10360_v18 = vpop.f32.mrf.mxu1  ;;  %v7634_v11 = vld [vmem:[%s18418_s0 + $0x2c4] sm:$0xf0]  ;;  %v7448_v53 = vld [vmem:[%s18418_s0 + $0x140] sm:$0xf]  ;;  %v10383_v49 = vmul.f32 %v10164_v21, %v9543_v62  ;;  %v10385_v5 = vadd.f32 1.0, %v8186_v9  ;;  %vm2577_vm9 = vweird.f32 %v10330_v51 }
  0xeb   :  { %19209 = vst [vmem:[#allocation72_spill] sm:$0xff] %v10306_v55  ;;  %8195 = vrcp.f32 %v10315_v20  ;;  %v10379_v56 = vpop.eup %8187  ;;  %v7440_v62 = vld [vmem:[%s18418_s0 + $0x138] sm:$0xf] }
  0xec   :  { %19210 = vst [vmem:[#allocation73_spill] sm:$0xff] %v10311_v23  ;;  %v1673_v43 = vpop.permute.xlu1 %1672  ;;  %v1693_v14 = vpop.permute.xlu2 %1692  ;;  %8197 = vrcp.f32 %v10330_v51  ;;  %v7993_v23 = vld [vmem:[%s18418_s0 + $0x13c] sm:$0xf]  ;;  %vm2592_vm15 = vweird.f32 %v10385_v5 }
  0xed   :  { %19211 = vst [vmem:[#allocation74_spill] sm:$0xff] %v10315_v20  ;;  %v1754_v1 = vmul.f32 %v10238_v33, %v1673_v43  ;;  %v1764_v47 = vmul.f32 %v10340_v37, %v1693_v14  ;;  %v1671_v26 = vpop.permute.xlu0 %1670  ;;  %v10373_v43 = vmul.f32 %v10323_v35, %v9532_v59  ;;  %v10376_v14 = vadd.f32 1.0, %v8184_v38  ;;  %v7994_v38 = vld [vmem:[%s18418_s0 + $0x140] sm:$0xf0] }
  0xee   :  { %19212 = vst [vmem:[#allocation75_spill] sm:$0xff] %v10320_v8  ;;  %v1753_v32 = vmul.f32 %v10251_v2, %v1671_v26  ;;  %8199 = vtanh.f32 %v9986_v46  ;;  %v2416_v59 = vadd.f32 %v10349_v34, %v10343_v27  ;;  %v10390_v39 = vpop.f32.mrf.mxu3  ;;  %v8190_v9 = vpop.eup %8189  ;;  %v10402_v26 = vunpack.c.h.bf16 %v8148_v52 }
  0xef   :  { %19213 = vst [vmem:[#allocation76_spill] sm:$0xff] %v10334_v16  ;;  %v10392_v16 = vpop.f32.mrf.mxu2  ;;  %3164 = vrot.lane.b32.xlu1 %v1764_v47, %s9212_s19  ;;  %3144 = vrot.lane.b32.xlu0 %v1754_v1, %s9212_s19  ;;  %8201 = vpow2.f32 %v7765_v58  ;;  %v8192_v46 = vpop.eup %8191  ;;  %v10405_v47 = vunpack.c.l.bf16 %v8148_v52  ;;  %v19220_v1 = vld [vmem:[#allocation3_spill] sm:$0xff]  ;;  %v10442_v4 = vadd.f32 1.0, %v8190_v9  ;;  %vm1952_vm0 = vweird.f32 %v10376_v14 }
  0xf0   :  { %19214 = vst [vmem:[#allocation77_spill] sm:$0xff] %v10343_v27  ;;  %3142 = vrot.lane.b32.xlu2 %v1753_v32, %s9212_s19  ;;  %8203 = vpow2.f32 %v7797_v40  ;;  %v7442_v58 = vld [vmem:[%s18418_s0 + $0x144] sm:$0xf0]  ;;  %v10417_v32 = vpop.eup %8193  ;;  %v19224_v40 = vld [vmem:[#allocation5_spill] sm:$0xff] }
  0xf1   :  { %19215 = vst [vmem:[#allocation78_spill] sm:$0xff] %v10349_v34  ;;  %v7637_v34 = vor.u32 %v8041_v0, %v7634_v11  ;;  %v8150_v0 = vld [vmem:[%s18419_s3 + $0x68] sm:$0xff]   ;;  %8205 = vrcp.f32 %v10376_v14  ;;  %v7441_v11 = vor.u32 %v7994_v38, %v7440_v62  ;;  %v7445_v12 = vor.u32 %v7993_v23, %v7442_v58 }
  0xf2   :  { %19216 = vst [vmem:[#allocation79_spill] sm:$0xff] %v10373_v43  ;;  %v10409_v43 = vmul.f32 %v10266_v29, %v19220_v1  ;;  %v10433_v1 = vunpack.c.h.bf16 %v8150_v0  ;;  %8207 = vrcp.f32 %v10385_v5  ;;  %v10438_v22 = vpop.f32.mrf.mxu0  ;;  %v10454_v28 = vpop.f32.mrf.mxu1  ;;  %v10468_v58 = vunpack.c.l.bf16 %v8150_v0 }
  0xf3   :  { %19217 = vst [vmem:[#allocation80_spill] sm:$0xff] %v10379_v56  ;;  %1171 = vmatmul.bf16.gmra.mxu3 %v7637_v34  ;;  %v19232_v34 = vld [vmem:[#allocation15_spill] sm:$0xff] }
  0xf4   :  { %19218 = vst [vmem:[#allocation81_spill] sm:$0xff] %v10383_v49  ;;  %v7766_v49 = vmul.f32 -1.442695, %v1776_v42  ;;  %v10428_v42 = vmul.f32 %v10107_v30, %v19224_v40  ;;  %v10444_v30 = vadd.f32 1.0, %v8192_v46  ;;  %v1679_v38 = vpop.permute.xlu1 %1678  ;;  %v1699_v40 = vpop.permute.xlu2 %1698 }
  0xf5   :  { %19219 = vst [vmem:[#allocation82_spill] sm:$0xff] %v10390_v39  ;;  %v7449_v39 = vor.u32 %v7995_v3, %v7448_v53  ;;  %v19222_v3 = vld [vmem:[#allocation2_spill] sm:$0xff]  ;;  %v10431_v53 = vpop.eup %8195  ;;  %v1757_v56 = vmul.f32 %v10288_v10, %v1679_v38  ;;  %v1767_v9 = vmul.f32 %v10433_v1, %v1699_v40  ;;  %v1677_v46 = vpop.permute.xlu0 %1676  ;;  %922 = vmatmul.bf16.gmra.mxu0 %v7441_v11  ;;  %v10481_v11 = vunpack.c.h.bf16 %v10328_v15  ;;  %v8151_v15 = vld [vmem:[%s18419_s3 + $0x70] sm:$0xff]  }
  0xf6   :  { %19221 = vst [vmem:[#allocation3_spill] sm:$0xff] %v10409_v43  ;;  %v10421_v52 = vmul.f32 %v10402_v26, %v19222_v3  ;;  %v7798_v43 = vmul.f32 -1.442695, %v2416_v59  ;;  %v19227_v3 = vld [vmem:[#allocation46_spill] sm:$0xff]  ;;  %v10440_v8 = vpop.eup %8197  ;;  %8209 = vpow2.f32 %v7766_v49  ;;  %v10464_v49 = vmul.f32 %v9994_v50, %v19232_v34  ;;  %1091 = vmatmul.bf16.gmra.mxu1 %v7445_v12  ;;  %v9205_v12 = vld [vmem:[%s18416_s1 + $0xc8] sm:$0xff] }
  0xf7   :  { %19225 = vst [vmem:[#allocation83_spill] sm:$0xff] %v10428_v42  ;;  %v2417_v62 = vadd.f32 %v10428_v42, %v19227_v3  ;;  %1260 = vmatmul.bf16.gmra.mxu2 %v7449_v39  ;;  %v10448_v59 = vpop.eup %8199  ;;  %v9203_v39 = vld [vmem:[%s18416_s1 + $0xb0] sm:$0xff]  ;;  %8211 = vtanh.f32 %v10022_v36  ;;  %v19234_v38 = vld [vmem:[#allocation50_spill] sm:$0xff]  ;;  %3170 = vrot.lane.b32.xlu1 %v1767_v9, %s9212_s19  ;;  %vm2578_vm6 = vweird.f32 %v10440_v8 }
  0xf8   :  { %19223 = vst [vmem:[#allocation2_spill] sm:$0xff] %v10421_v52  ;;  %v1777_v52 = vadd.f32 %v10155_v44, %v19227_v3  ;;  %v1045_v44 = vadd.f32 %v10186_v41, %v10166_v6  ;;  %v10460_v23 = vmul.f32 %v9203_v39, %v10405_v47  ;;  %v1756_v6 = vmul.f32 %v10300_v60, %v1677_v46  ;;  %v10474_v39 = vpop.f32.mrf.mxu2 }
  0xf9   :  { %19226 = vst [vmem:[#allocation84_spill] sm:$0xff] %v10431_v53  ;;  %v8202_v53 = vpop.eup %8201  ;;  %8213 = vpow2.f32 %v7798_v43  ;;  %v1778_v42 = vadd.f32 %v10212_v63, %v19234_v38  ;;  %3150 = vrot.lane.b32.xlu0 %v1757_v56, %s9212_s19  ;;  %v7799_v43 = vmul.f32 -1.442695, %v2417_v62  ;;  %v9204_v56 = vld [vmem:[%s18416_s1 + $0xd0] sm:$0xff] }
  0xfa   :  { %19228 = vst [vmem:[#allocation85_spill] sm:$0xff] %v10442_v4  ;;  %v8204_v41 = vpop.eup %8203  ;;  %v7767_v40 = vmul.f32 -1.442695, %v1777_v52  ;;  %8215 = vrcp.f32 %v10442_v4  ;;  %v2418_v52 = vadd.f32 %v10464_v49, %v19234_v38  ;;  %3148 = vrot.lane.b32.xlu2 %v1756_v6, %s9212_s19  ;;  %v10493_v9 = vmul.f32 %v9204_v56, %v10468_v58  ;;  %v9206_v56 = vld [vmem:[%s18416_s1 + $0xc0] sm:$0xff] }
  0xfb   :  { %19229 = vst [vmem:[#allocation86_spill] sm:$0xff] %v10444_v30  ;;  %v10478_v50 = vpop.eup %8205  ;;  %8217 = vrcp.f32 %v10444_v30  ;;  %v10499_v62 = vadd.f32 1.0, %v8202_v53  ;;  %v10502_v46 = vadd.f32 %v10222_v61, %v1045_v44  ;;  %v10508_v6 = vmul.f32 %v9205_v12, %v10481_v11  ;;  %v8152_v53 = vld [vmem:[%s18419_s3 + $0x78] sm:$0xff]  }
  0xfc   :  { %19230 = vst [vmem:[#allocation87_spill] sm:$0xff] %v10448_v59  ;;  %v10472_v59 = vpop.f32.mrf.mxu3  ;;  %v10487_v0 = vpop.eup %8207  ;;  %v10519_v44 = vadd.f32 1.0, %v8204_v41  ;;  %8219 = vtanh.f32 %v10343_v27  ;;  %v10522_v63 = vunpack.c.l.bf16 %v8152_v53  ;;  %v7768_v12 = vmul.f32 -1.442695, %v1778_v42  ;;  %v8044_v42 = vld [vmem:[%s18418_s0 + $0x2d4] sm:$0xf] }
  0xfd   :  { %19231 = vst [vmem:[#allocation88_spill] sm:$0xff] %v10460_v23  ;;  %v8210_v61 = vpop.eup %8209  ;;  %8221 = vpow2.f32 %v7767_v40  ;;  %v1779_v34 = vadd.f32 %v10208_v25, %v10502_v46  ;;  %v1685_v23 = vpop.permute.xlu1 %1684  ;;  %v10539_v25 = vunpack.c.l.bf16 %v8151_v15  ;;  %vm1953_vm1 = vweird.f32 %v10478_v50 }
  0xfe   :  { %19233 = vst [vmem:[#allocation89_spill] sm:$0xff] %v10464_v49  ;;  %v10514_v49 = vmul.f32 %v9206_v56, %v10340_v37  ;;  %v10528_v56 = vpop.eup %8211  ;;  %8223 = vpow2.f32 %v7799_v43  ;;  %v1705_v27 = vpop.permute.xlu2 %1704  ;;  %v1760_v36 = vmul.f32 %v10313_v48, %v1685_v23  ;;  %v7646_v43 = vld [vmem:[%s18418_s0 + $0x2dc] sm:$0xf0]  ;;  %vm10936_vm2 = vmor %vm1952_vm0, %vm1953_vm1 }
  0xff   :  { %19235 = vst [vmem:[#allocation50_spill] sm:$0xff] %v10472_v59  ;;  %v10526_v59 = vpop.f32.mrf.mxu0  ;;  %v8214_v40 = vpop.eup %8213  ;;  %8225 = vrcp.f32 %v10499_v62  ;;  %v1770_v30 = vmul.f32 %v10522_v63, %v1705_v27  ;;  %v10558_v27 = vadd.f32 1.0, %v8210_v61  ;;  %vm11164_vm0 = vmor %vm2577_vm9, %vm2578_vm6 }
 0x100   :  { %19236 = vst [vmem:[#allocation90_spill] sm:$0xff] %v10487_v0  ;;  %8227 = vrcp.f32 %v10519_v44  ;;  %v9207_v0 = vld [vmem:[%s18416_s1 + $0xe8] sm:$0xff] }
 0x101   :  { %19237 = vst [vmem:[#allocation91_spill] sm:$0xff] %v10493_v9  ;;  %v10530_v9 = vunpack.c.h.bf16 %v8151_v15  ;;  %v7998_v15 = vld [vmem:[%s18418_s0 + $0x160] sm:$0xf0]  ;;  %8229 = vpow2.f32 %v7768_v12  ;;  %3176 = vrot.lane.b32.xlu1 %v1770_v30, %s9212_s19  ;;  %3156 = vrot.lane.b32.xlu0 %v1760_v36, %s9212_s19  ;;  %v10591_v12 = vadd.f32 1.0, %v8214_v40  ;;  %v9209_v36 = vld [vmem:[%s18416_s1 + $0xd8] sm:$0xff]  ;;  %v1050_v40 = vadd.f32 %v10360_v18, %v10345_v19 }
 0x102   :  { %19238 = vst [vmem:[#allocation92_spill] sm:$0xff] %v10499_v62  ;;  %8231 = vtanh.f32 %v19227_v3  ;;  %v9210_v19 = vld [vmem:[%s18416_s1 + $0xf8] sm:$0xff] }
 0x103   :  { %19239 = vst [vmem:[#allocation93_spill] sm:$0xff] %v10502_v46  ;;  %v10569_v20 = vmul.f32 %v9207_v0, %v10530_v9  ;;  %v7452_v0 = vld [vmem:[%s18418_s0 + $0x150] sm:$0xf] }
 0x104   :  { %19240 = vst [vmem:[#allocation94_spill] sm:$0xff] %v10508_v6  ;;  %v19244_v6 = vld [vmem:[#allocation14_spill] sm:$0xff] }
 0x105   :  { %19241 = vst [vmem:[#allocation95_spill] sm:$0xff] %v10514_v49  ;;  %v10534_v41 = vmul.f32 %v10169_v45, %v19244_v6  ;;  %v7800_v49 = vmul.f32 -1.442695, %v2418_v52  ;;  %v10544_v45 = vpop.f32.mrf.mxu1  ;;  %v7460_v52 = vld [vmem:[%s18418_s0 + $0x158] sm:$0xf]  ;;  %v10555_v6 = vpop.eup %8215 }
 0x106   :  { %19242 = vst [vmem:[#allocation96_spill] sm:$0xff] %v10519_v44  ;;  %v10563_v4 = vpop.eup %8217  ;;  %v9208_v44 = vld [vmem:[%s18416_s1 + $0xe0] sm:$0xff]  ;;  %v7461_v30 = vor.u32 %v7998_v15, %v7460_v52 }
 0x107   :  { %19243 = vst [vmem:[#allocation97_spill] sm:$0xff] %v10528_v56  ;;  %v1683_v56 = vpop.permute.xlu0 %1682  ;;  %v2419_v23 = vadd.f32 %v10534_v41, %v10502_v46  ;;  %v10575_v61 = vmul.f32 %v9208_v44, %v10539_v25  ;;  %v10589_v44 = vpop.eup %8219  ;;  %8233 = vpow2.f32 %v7800_v49  ;;  %v19255_v15 = vld [vmem:[#allocation58_spill] sm:$0xff] }
 0x108   :  { %19245 = vst [vmem:[#allocation98_spill] sm:$0xff] %v10534_v41  ;;  %v1759_v62 = vmul.f32 %v10323_v35, %v1683_v56  ;;  %v7769_v41 = vmul.f32 -1.442695, %v1779_v34  ;;  %v10579_v56 = vpop.f32.mrf.mxu2  ;;  %v7649_v34 = vor.u32 %v8044_v42, %v7646_v43  ;;  %v7454_v42 = vld [vmem:[%s18418_s0 + $0x15c] sm:$0xf0]  ;;  %8235 = vrcp.f32 %v10558_v27  ;;  %1265 = vmatmul.bf16.gmra.mxu2 %v7461_v30 }
 0x109   :  { %19246 = vst [vmem:[#allocation99_spill] sm:$0xff] %v10555_v6  ;;  %v10577_v6 = vpop.f32.mrf.mxu3  ;;  %v7801_v52 = vmul.f32 -1.442695, %v2419_v23  ;;  %v19259_v23 = vld [vmem:[#allocation6_spill] sm:$0xff]  ;;  %3918 = vrot.lane.b32.xlu1 %v10417_v32, %s9213_s12 }
 0x10a   :  { %19247 = vst [vmem:[#allocation100_spill] sm:$0xff] %v10558_v27  ;;  %3154 = vrot.lane.b32.xlu2 %v1759_v62, %s9212_s19  ;;  %v7996_v62 = vld [vmem:[%s18418_s0 + $0x154] sm:$0xf]  ;;  %v19260_v27 = vld [vmem:[#allocation55_spill] sm:$0xff]  ;;  %8237 = vpow2.f32 %v7769_v41  ;;  %1176 = vmatmul.bf16.gmra.mxu3 %v7649_v34  ;;  %v19266_v34 = vld [vmem:[#allocation10_spill] sm:$0xff] }
 0x10b   :  { %19248 = vst [vmem:[#allocation101_spill] sm:$0xff] %v10563_v4  ;;  %v10601_v4 = vunpack.c.h.bf16 %v8152_v53  ;;  %v1780_v53 = vadd.f32 %v19255_v15, %v10306_v55  ;;  %v10630_v15 = vmul.f32 %v19260_v27, %v19259_v23  ;;  %8239 = vrcp.f32 %v10591_v12 }
 0x10c   :  { %19249 = vst [vmem:[#allocation102_spill] sm:$0xff] %v10569_v20  ;;  %v7997_v20 = vld [vmem:[%s18418_s0 + $0x158] sm:$0xf0]  ;;  %v10648_v23 = vadd.f32 %v10392_v16, %v1050_v40  ;;  %v10657_v30 = vmul.f32 %v10238_v33, %v19266_v34  ;;  %8241 = vpow2.f32 %v7801_v52  ;;  %v19270_v40 = vld [vmem:[#allocation16_spill] sm:$0xff] }
 0x10d   :  { %19250 = vst [vmem:[#allocation103_spill] sm:$0xff] %v10575_v61  ;;  %v8222_v61 = vpop.eup %8221  ;;  %v10620_v18 = vmul.f32 %v9210_v19, %v10601_v4  ;;  %v2420_v41 = vadd.f32 %v10630_v15, %v10306_v55  ;;  %8243 = vtanh.f32 %v19234_v38 }
 0x10e   :  { %19251 = vst [vmem:[#allocation104_spill] sm:$0xff] %v10577_v6  ;;  %v10599_v6 = vmul.f32 %v9209_v36, %v10433_v1  ;;  %v8224_v43 = vpop.eup %8223  ;;  %v7453_v36 = vor.u32 %v7997_v20, %v7452_v0  ;;  %v10632_v20 = vpop.f32.mrf.mxu0  ;;  %v1781_v33 = vadd.f32 %v10218_v17, %v10648_v23  ;;  %v19280_v17 = vld [vmem:[#allocation20_spill] sm:$0xff] }
 0x10f   :  { %19252 = vst [vmem:[#allocation105_spill] sm:$0xff] %v10579_v56  ;;  %v10614_v49 = vpop.eup %8225  ;;  %v10643_v27 = vadd.f32 1.0, %v8224_v43 }
 0x110   :  { %19253 = vst [vmem:[#allocation106_spill] sm:$0xff] %v10591_v12  ;;  %v10634_v0 = vpop.eup %8227  ;;  %927 = vmatmul.bf16.gmra.mxu0 %v7453_v36  ;;  %v10673_v52 = vpop.f32.mrf.mxu2  ;;  %v19275_v36 = vld [vmem:[#allocation18_spill] sm:$0xff]  ;;  %v7658_v12 = vld [vmem:[%s18418_s0 + $0x2f4] sm:$0xf0] }
 0x111   :  { %19254 = vst [vmem:[#allocation107_spill] sm:$0xff] %v10599_v6  ;;  %v9211_v6 = vld [vmem:[%s18416_s1 + $0xf0] sm:$0xff]  ;;  %v8230_v56 = vpop.eup %8229  ;;  %v10671_v34 = vpop.f32.mrf.mxu3  ;;  %3924 = vrot.lane.b32.xlu1 %v10589_v44, %s9213_s12 }
 0x112   :  { %19256 = vst [vmem:[#allocation108_spill] sm:$0xff] %v10614_v49  ;;  %v10626_v3 = vmul.f32 %v9211_v6, %v10522_v63  ;;  %v19263_v49 = vld [vmem:[#allocation7_spill] sm:$0xff]  ;;  %v1691_v6 = vpop.permute.xlu1 %1690 }
 0x113   :  { %19257 = vst [vmem:[#allocation109_spill] sm:$0xff] %v10620_v18  ;;  %v10638_v19 = vmul.f32 %v10201_v57, %v19263_v49  ;;  %v10641_v18 = vadd.f32 1.0, %v8222_v61  ;;  %v1763_v57 = vmul.f32 %v10402_v26, %v1691_v6  ;;  %v1689_v49 = vpop.permute.xlu0 %1688  ;;  %v10653_v61 = vpop.eup %8231  ;;  %v10666_v6 = vmul.f32 %v10313_v48, %v19270_v40 }
 0x114   :  { %19258 = vst [vmem:[#allocation110_spill] sm:$0xff] %v10626_v3  ;;  %v7457_v3 = vor.u32 %v7996_v62, %v7454_v42  ;;  %v7770_v62 = vmul.f32 -1.442695, %v1780_v53  ;;  %v1762_v42 = vmul.f32 %v10405_v47, %v1689_v49  ;;  %v8234_v43 = vpop.eup %8233  ;;  %v19273_v53 = vld [vmem:[#allocation17_spill] sm:$0xff]  ;;  %v10686_v49 = vmul.f32 %v10036_v24, %v19275_v36 }
 0x115   :  { %19261 = vst [vmem:[#allocation55_spill] sm:$0xff] %v10630_v15  ;;  %v19268_v15 = vld [vmem:[#allocation13_spill] sm:$0xff]  ;;  %3162 = vrot.lane.b32.xlu0 %v1763_v57, %s9212_s19  ;;  %v10682_v48 = vmul.f32 %v10214_v54, %v19273_v53  ;;  %8245 = vrcp.f32 %v10641_v18  ;;  %v10689_v40 = vadd.f32 1.0, %v8230_v56  ;;  %v10698_v54 = vmul.f32 %v10251_v2, %v19280_v17 }
 0x116   :  { %19262 = vst [vmem:[#allocation111_spill] sm:$0xff] %v10634_v0  ;;  %v10651_v0 = vpop.f32.mrf.mxu1  ;;  %v10662_v16 = vmul.f32 %v10288_v10, %v19268_v15  ;;  %v10678_v10 = vpop.eup %8235  ;;  %3160 = vrot.lane.b32.xlu2 %v1762_v42, %s9212_s19  ;;  %1096 = vmatmul.bf16.gmra.mxu1 %v7457_v3  ;;  %v19278_v15 = vld [vmem:[#allocation19_spill] sm:$0xff]  ;;  %8247 = vrcp.f32 %v10643_v27  ;;  %v7802_v24 = vmul.f32 -1.442695, %v2420_v41  ;;  %v19283_v53 = vld [vmem:[#allocation21_spill] sm:$0xff]  ;;  %v10707_v42 = vadd.f32 1.0, %v8234_v43 }
 0x117   :  { %19264 = vst [vmem:[#allocation112_spill] sm:$0xff] %v10638_v19  ;;  %v8238_v57 = vpop.eup %8237  ;;  %v10694_v32 = vmul.f32 %v10402_v26, %v19278_v15  ;;  %v10705_v56 = vmul.f32 %v10060_v31, %v19283_v53  ;;  %8249 = vpow2.f32 %v7770_v62  ;;  %v2421_v26 = vadd.f32 %v10686_v49, %v10648_v23  ;;  %v19286_v3 = vld [vmem:[#allocation22_spill] sm:$0xff]  ;;  %v10718_v17 = vpop.f32.mrf.mxu0  ;;  %v19288_v53 = vld [vmem:[#allocation23_spill] sm:$0xff]  ;;  %v19290_v62 = vld [vmem:[#allocation24_spill] sm:$0xff] }
 0x118   :  { %19265 = vst [vmem:[#allocation113_spill] sm:$0xff] %v10643_v27  ;;  %v10701_v36 = vpop.eup %8239  ;;  %v10713_v15 = vmul.f32 %v10468_v58, %v19286_v3  ;;  %8251 = vtanh.f32 %v10502_v46  ;;  %v7771_v2 = vmul.f32 -1.442695, %v1781_v33  ;;  %v1053_v41 = vadd.f32 %v10454_v28, %v10438_v22  ;;  %v8047_v22 = vld [vmem:[%s18418_s0 + $0x2ec] sm:$0xf]  ;;  %v19293_v33 = vld [vmem:[#allocation25_spill] sm:$0xff] }
 0x119   :  { %19267 = vst [vmem:[#allocation114_spill] sm:$0xff] %v10657_v30  ;;  %v8242_v31 = vpop.eup %8241  ;;  %v10722_v43 = vmul.f32 %v10300_v60, %v19288_v53  ;;  %8253 = vrcp.f32 %v10689_v40  ;;  %v10729_v3 = vadd.f32 1.0, %v8238_v57  ;;  %v19295_v60 = vld [vmem:[#allocation26_spill] sm:$0xff] }
 0x11a   :  { %19269 = vst [vmem:[#allocation115_spill] sm:$0xff] %v10662_v16  ;;  %v1697_v27 = vpop.permute.xlu1 %1696  ;;  %v10734_v28 = vpop.eup %8243  ;;  %v10742_v53 = vmul.f32 %v10323_v35, %v19295_v60  ;;  %8255 = vpow2.f32 %v7802_v24  ;;  %v19297_v24 = vld [vmem:[#allocation27_spill] sm:$0xff] }
 0x11b   :  { %19271 = vst [vmem:[#allocation116_spill] sm:$0xff] %v10666_v6  ;;  %v1695_v57 = vpop.permute.xlu0 %1694  ;;  %v10756_v35 = vpop.eup %8245  ;;  %8257 = vrcp.f32 %v10707_v42  ;;  %v10770_v6 = vadd.f32 1.0, %v8242_v31  ;;  %v7661_v31 = vor.u32 %v8047_v22, %v7658_v12  ;;  %v1948_v12 = vmul.f32 %v10478_v50, %v10376_v14 }
 0x11c   :  { %19272 = vst [vmem:[#allocation117_spill] sm:$0xff] %v10671_v34  ;;  %v7472_v34 = vld [vmem:[%s18418_s0 + $0x170] sm:$0xf]  ;;  %v1765_v60 = vmul.f32 %v10481_v11, %v1695_v57  ;;  %8259 = vpow2.f32 %v7771_v2  ;;  %v19307_v57 = vld [vmem:[#allocation34_spill] sm:$0xff] }
 0x11d   :  { %19274 = vst [vmem:[#allocation118_spill] sm:$0xff] %v10682_v48  ;;  %8261 = vtanh.f32 %v10306_v55  ;;  %1181 = vmatmul.bf16.gmra.mxu3 %v7661_v31  ;;  %v19340_v55 = vld [vmem:[#allocation80_spill] sm:$0xff] }
 0x11e   :  { %19276 = vst [vmem:[#allocation119_spill] sm:$0xff] %v10686_v49  ;;  %v10726_v49 = vmul.f32 %v10110_v7, %v19290_v62  ;;  %v1766_v7 = vmul.f32 %v10468_v58, %v1697_v27  ;;  %v10745_v62 = vpop.f32.mrf.mxu1  ;;  %v10760_v58 = vmul.f32 %v10164_v21, %v19297_v24  ;;  %v7803_v27 = vmul.f32 -1.442695, %v2421_v26  ;;  %v10777_v21 = vpop.f32.mrf.mxu2  ;;  %v8000_v26 = vld [vmem:[%s18418_s0 + $0x170] sm:$0xf0]  ;;  %3166 = vrot.lane.b32.xlu2 %v1765_v60, %s9212_s19 }
 0x11f   :  { %19277 = vst [vmem:[#allocation120_spill] sm:$0xff] %v10689_v40  ;;  %v10773_v40 = vadd.f32 %v10474_v39, %v1053_v41  ;;  %v19305_v39 = vld [vmem:[#allocation31_spill] sm:$0xff]  ;;  %8263 = vrcp.f32 %v10729_v3  ;;  %v7466_v60 = vld [vmem:[%s18418_s0 + $0x174] sm:$0xf0] }
 0x120   :  { %19279 = vst [vmem:[#allocation121_spill] sm:$0xff] %v10694_v32  ;;  %3168 = vrot.lane.b32.xlu0 %v1766_v7, %s9212_s19  ;;  %v10790_v41 = vmul.f32 %v10266_v29, %v19305_v39  ;;  %v7999_v29 = vld [vmem:[%s18418_s0 + $0x16c] sm:$0xf]  ;;  %8265 = vpow2.f32 %v7803_v27 }
 0x121   :  { %19281 = vst [vmem:[#allocation122_spill] sm:$0xff] %v10698_v54  ;;  %v1782_v24 = vadd.f32 %v10260_v13, %v10773_v40  ;;  %8267 = vrcp.f32 %v10770_v6  ;;  %v2422_v27 = vadd.f32 %v10682_v48, %v10773_v40 }
 0x122   :  { %19282 = vst [vmem:[#allocation123_spill] sm:$0xff] %v10701_v36  ;;  %v10738_v36 = vmul.f32 %v10530_v9, %v19293_v33  ;;  %v8001_v33 = vld [vmem:[%s18418_s0 + $0x178] sm:$0xf0]  ;;  %8269 = vtanh.f32 %v10648_v23 }
 0x123   :  { %19284 = vst [vmem:[#allocation124_spill] sm:$0xff] %v10705_v56  ;;  %v7473_v7 = vor.u32 %v8001_v33, %v7472_v34  ;;  %v19312_v33 = vld [vmem:[#allocation38_spill] sm:$0xff]  ;;  %8271 = vtanh.f32 %v10773_v40 }
 0x124   :  { %19285 = vst [vmem:[#allocation125_spill] sm:$0xff] %v10707_v42  ;;  %v19314_v42 = vld [vmem:[#allocation39_spill] sm:$0xff] }
 0x125   :  { %19287 = vst [vmem:[#allocation126_spill] sm:$0xff] %v10713_v15  ;;  %v19300_v15 = vld [vmem:[#allocation30_spill] sm:$0xff]  ;;  %1270 = vmatmul.bf16.gmra.mxu2 %v7473_v7 }
 0x126   :  { %19289 = vst [vmem:[#allocation127_spill] sm:$0xff] %v10722_v43  ;;  %v10768_v32 = vmul.f32 %v10405_v47, %v19300_v15  ;;  %v7464_v47 = vld [vmem:[%s18418_s0 + $0x168] sm:$0xf]  ;;  %v10796_v15 = vmul.f32 %v10481_v11, %v19307_v57  ;;  %v10817_v57 = vmul.f32 %v10539_v25, %v19312_v33  ;;  %v7772_v33 = vmul.f32 -1.442695, %v1782_v24 }
 0x127   :  { %19291 = vst [vmem:[#allocation128_spill] sm:$0xff] %v10726_v49  ;;  %v19310_v11 = vld [vmem:[#allocation35_spill] sm:$0xff]  ;;  %v7465_v39 = vor.u32 %v8000_v26, %v7464_v47  ;;  %v7469_v47 = vor.u32 %v7999_v29, %v7466_v60  ;;  %v2583_v26 = vand.u32 2147483648, %v10330_v51  ;;  %v10851_v24 = vmul.f32 %v10440_v8, %v10330_v51 }
 0x128   :  { %19292 = vst [vmem:[#allocation129_spill] sm:$0xff] %v10729_v3  ;;  %v10813_v22 = vmul.f32 %v10340_v37, %v19310_v11  ;;  %v10830_v37 = vpop.f32.mrf.mxu0  ;;  %v7804_v60 = vmul.f32 -1.442695, %v2422_v27 }
 0x129   :  { %19294 = vst [vmem:[#allocation130_spill] sm:$0xff] %v10738_v36  ;;  %v10764_v36 = vpop.eup %8247  ;;  %932 = vmatmul.bf16.gmra.mxu0 %v7465_v39  ;;  %1101 = vmatmul.bf16.gmra.mxu1 %v7469_v47  ;;  %v10888_v47 = vor.u32 1.1754944e-38, %v2583_v26 }
 0x12a   :  { %19296 = vst [vmem:[#allocation131_spill] sm:$0xff] %v10742_v53  ;;  %v10775_v53 = vpop.f32.mrf.mxu3  ;;  %v8250_v2 = vpop.eup %8249 }
 0x12b   :  { %19298 = vst [vmem:[#allocation132_spill] sm:$0xff] %v10760_v58  ;;  %v8252_v44 = vpop.eup %8251 }
 0x12c   :  { %19299 = vst [vmem:[#allocation133_spill] sm:$0xff] %v10764_v36  ;;  %v10809_v34 = vpop.eup %8253  ;;  %v10821_v36 = vmul.f32 %v10433_v1, %v19314_v42  ;;  %v1703_v1 = vpop.permute.xlu1 %1702  ;;  %3930 = vrot.lane.b32.xlu1 %v8252_v44, %s9213_s12  ;;  %v19329_v44 = vld [vmem:[#allocation105_spill] sm:$0xff] }
 0x12d   :  { %19301 = vst [vmem:[#allocation134_spill] sm:$0xff] %v10768_v32  ;;  %v8256_v13 = vpop.eup %8255  ;;  %v10828_v32 = vadd.f32 1.0, %v8250_v2  ;;  %v1055_v2 = vadd.f32 %v10544_v45, %v10526_v59  ;;  %v1769_v42 = vmul.f32 %v10530_v9, %v1703_v1  ;;  %v19322_v9 = vld [vmem:[#allocation43_spill] sm:$0xff]  ;;  %v19327_v1 = vld [vmem:[#allocation84_spill] sm:$0xff] }
 0x12e   :  { %19302 = vst [vmem:[#allocation135_spill] sm:$0xff] %v10770_v6  ;;  %v10832_v11 = vpop.eup %8257  ;;  %v1701_v6 = vpop.permute.xlu0 %1700  ;;  %v10845_v48 = vadd.f32 1.0, %v8256_v13  ;;  %v10857_v45 = vmul.f32 %v10522_v63, %v19322_v9  ;;  %v1060_v63 = vadd.f32 %v10745_v62, %v10718_v17  ;;  %v2574_v62 = vsub.f32 1.0, %v10851_v24 }
 0x12f   :  { %19303 = vst [vmem:[#allocation136_spill] sm:$0xff] %v10773_v40  ;;  %v1768_v31 = vmul.f32 %v10539_v25, %v1701_v6  ;;  %8273 = vrcp.f32 %v10828_v32  ;;  %v10862_v13 = vpop.f32.mrf.mxu2  ;;  %3174 = vrot.lane.b32.xlu0 %v1769_v42, %s9212_s19  ;;  %v2598_v25 = vand.u32 2147483648, %v10385_v5  ;;  %vm1938_vm5 = vweird.f32 %v19327_v1 }
 0x130   :  { %19304 = vst [vmem:[#allocation137_spill] sm:$0xff] %v10775_v53  ;;  %v19316_v53 = vld [vmem:[#allocation42_spill] sm:$0xff]  ;;  %8275 = vpow2.f32 %v7772_v33  ;;  %v19332_v33 = vld [vmem:[#allocation63_spill] sm:$0xff] }
 0x131   :  { %19306 = vst [vmem:[#allocation138_spill] sm:$0xff] %v10790_v41  ;;  %3172 = vrot.lane.b32.xlu2 %v1768_v31, %s9212_s19  ;;  %8277 = vrcp.f32 %v10845_v48  ;;  %v10905_v24 = vor.u32 1.1754944e-38, %v2598_v25 }
 0x132   :  { %19308 = vst [vmem:[#allocation139_spill] sm:$0xff] %v10796_v15  ;;  %v10825_v15 = vmul.f32 %v10601_v4, %v19316_v53  ;;  %v8260_v53 = vpop.eup %8259  ;;  %v10860_v7 = vpop.f32.mrf.mxu3 }
 0x133   :  { %19309 = vst [vmem:[#allocation140_spill] sm:$0xff] %v10809_v34  ;;  %v10868_v29 = vadd.f32 1.0, %v8260_v53  ;;  %v1058_v53 = vadd.f32 %v10651_v0, %v10632_v20  ;;  %v10900_v20 = vadd.f32 %v10777_v21, %v1060_v63  ;;  %v7484_v0 = vld [vmem:[%s18418_s0 + $0x188] sm:$0xf]  ;;  %v8004_v21 = vld [vmem:[%s18418_s0 + $0x190] sm:$0xf0] }
 0x134   :  { %19311 = vst [vmem:[#allocation141_spill] sm:$0xff] %v10813_v22  ;;  %v7580_v63 = vld [vmem:[%s18418_s0 + $0x248] sm:$0xf]  ;;  %v10967_v34 = vpop.permute.xlu1 %3116 }
 0x135   :  { %19313 = vst [vmem:[#allocation142_spill] sm:$0xff] %v10817_v57  ;;  %v10843_v57 = vpop.eup %8261  ;;  %8279 = vrcp.f32 %v10868_v29  ;;  %v10910_v17 = vadd.f32 %v10673_v52, %v1058_v53  ;;  %v19336_v52 = vld [vmem:[#allocation90_spill] sm:$0xff] }
 0x136   :  { %19315 = vst [vmem:[#allocation143_spill] sm:$0xff] %v10821_v36  ;;  %v10853_v59 = vpop.eup %8263  ;;  %8281 = vpow2.f32 %v7804_v60  ;;  %v10928_v60 = vmul.f32 %v19336_v52, %v10385_v5  ;;  %vm2593_vm13 = vweird.f32 %v19336_v52 }
 0x137   :  { %19317 = vst [vmem:[#allocation144_spill] sm:$0xff] %v10825_v15  ;;  %v1949_v15 = vsub.f32 1.0, %v1948_v12  ;;  %v8266_v39 = vpop.eup %8265  ;;  %v19326_v12 = vld [vmem:[#allocation74_spill] sm:$0xff]  ;;  %8283 = vtanh.f32 %v10900_v20  ;;  %3916 = vrot.lane.b32.xlu0 %v19340_v55, %s9213_s12 }
 0x138   :  { %19318 = vst [vmem:[#allocation145_spill] sm:$0xff] %v10828_v32  ;;  %v1933_v9 = vmul.f32 %v19327_v1, %v19326_v12  ;;  %v10875_v42 = vpop.eup %8267  ;;  %v10890_v31 = vadd.f32 1.0, %v8266_v39  ;;  %v2424_v32 = vadd.f32 %v10705_v56, %v10910_v17  ;;  %vm1937_vm3 = vweird.f32 %v19326_v12 }
 0x139   :  { %19319 = vst [vmem:[#allocation146_spill] sm:$0xff] %v10832_v11  ;;  %v10841_v11 = vpop.f32.mrf.mxu1  ;;  %v1950_v27 = vmul.f32 %v10478_v50, %v1949_v15  ;;  %v10883_v6 = vpop.eup %8269  ;;  %vm11049_vm8 = vmor %vm1937_vm3, %vm1938_vm5 }
 0x13a   :  { %19320 = vst [vmem:[#allocation147_spill] sm:$0xff] %v10845_v48  ;;  %v8272_v15 = vpop.eup %8271  ;;  %v1934_v26 = vsub.f32 1.0, %v1933_v9  ;;  %v8028_v9 = vld [vmem:[%s18418_s0 + $0x250] sm:$0xf0]  ;;  %8285 = vrcp.f32 %v10890_v31  ;;  %vm11278_vm5 = vmor %vm2592_vm15, %vm2593_vm13  ;;  %vm2013_vm13 = vweird.f32 %v10756_v35 }
 0x13b   :  { %19321 = vst [vmem:[#allocation148_spill] sm:$0xff] %v10853_v59  ;;  %v10907_v39 = vpop.eup %8273  ;;  %v10924_v25 = vadd.f32 %v10478_v50, %v1950_v27  ;;  %v1958_v27 = vand.u32 2147483648, %v10376_v14  ;;  %3936 = vrot.lane.b32.xlu1 %v8272_v15, %s9213_s12  ;;  %v7485_v15 = vor.u32 %v8004_v21, %v7484_v0  ;;  %v19344_v21 = vld [vmem:[#allocation85_spill] sm:$0xff] }
 0x13c   :  { %19323 = vst [vmem:[#allocation149_spill] sm:$0xff] %v10857_v45  ;;  %v1956_v45 = vand.u32 2147483647, %v10376_v14  ;;  %v7476_v14 = vld [vmem:[%s18418_s0 + $0x180] sm:$0xf]  ;;  %v1935_v55 = vmul.f32 %v19327_v1, %v1934_v26  ;;  %v19345_v26 = vld [vmem:[#allocation99_spill] sm:$0xff]  ;;  %vm1967_vm7 = vweird.f32 %v19344_v21 }
 0x13d   :  { %19324 = vst [vmem:[#allocation150_spill] sm:$0xff] %v10860_v7  ;;  %v10878_v7 = vadd.f32 %v19329_v44, %v1055_v2  ;;  %v10894_v44 = vpop.f32.mrf.mxu0  ;;  %v1955_v0 = vsel %vm10936_vm2, %v10478_v50, %v10924_v25  ;;  %v1063_v50 = vadd.f32 %v10841_v11, %v10830_v37  ;;  %v1959_v59 = vor.u32 1.1754944e-38, %v1958_v27  ;;  %1275 = vmatmul.bf16.gmra.mxu2 %v7485_v15 }
 0x13e   :  { %19325 = vst [vmem:[#allocation151_spill] sm:$0xff] %v10868_v29  ;;  %v8276_v29 = vpop.eup %8275  ;;  %vm10987_vm4 = vcmp.eq.f32.partialorder %v1956_v45, 8.507059e+37  ;;  %v10996_v45 = vadd.f32 %v19327_v1, %v1935_v55  ;;  %v1941_v11 = vand.u32 2147483647, %v19326_v12  ;;  %vm1968_vm10 = vweird.f32 %v19345_v26 }
 0x13f   :  { %19328 = vst [vmem:[#allocation74_spill] sm:$0xff] %v10875_v42  ;;  %v1783_v2 = vadd.f32 %v19332_v33, %v10878_v7  ;;  %v1707_v33 = vpop.permute.xlu0 %1706  ;;  %v2423_v22 = vadd.f32 %v10638_v19, %v10878_v7  ;;  %v10959_v19 = vpop.eup %8277  ;;  %8287 = vtanh.f32 %v10878_v7  ;;  %vm11097_vm12 = vmor %vm1967_vm7, %vm1968_vm10 }
 0x140   :  { %19330 = vst [vmem:[#allocation84_spill] sm:$0xff] %v10878_v7  ;;  %v1771_v53 = vmul.f32 %v10601_v4, %v1707_v33  ;;  %v10945_v4 = vpop.f32.mrf.mxu3  ;;  %v10947_v33 = vpop.f32.mrf.mxu2  ;;  %vm11059_vm11 = vcmp.eq.f32.partialorder %v1941_v11, 8.507059e+37 }
 0x141   :  { %19331 = vst [vmem:[#allocation105_spill] sm:$0xff] %v10890_v31  ;;  %v10912_v48 = vpop.f32.mrf.mxu1  ;;  %v7773_v36 = vmul.f32 -1.442695, %v1783_v2  ;;  %v8003_v2 = vld [vmem:[%s18418_s0 + $0x188] sm:$0xf0]  ;;  %v2575_v31 = vmul.f32 %v10440_v8, %v2574_v62 }
 0x142   :  { %19333 = vst [vmem:[#allocation152_spill] sm:$0xff] %v10900_v20  ;;  %3178 = vrot.lane.b32.xlu2 %v1771_v53, %s9212_s19  ;;  %v8002_v62 = vld [vmem:[%s18418_s0 + $0x184] sm:$0xf]  ;;  %v10984_v53 = vadd.f32 1.0, %v8276_v29  ;;  %v7477_v56 = vor.u32 %v8003_v2, %v7476_v14  ;;  %v7805_v42 = vmul.f32 -1.442695, %v2423_v22 }
 0x143   :  { %19334 = vst [vmem:[#allocation153_spill] sm:$0xff] %v10907_v39  ;;  %v7581_v39 = vor.u32 %v8028_v9, %v7580_v63  ;;  %v1963_v63 = vmul.f32 %v19345_v26, %v19344_v21  ;;  %v10982_v9 = vpop.eup %8279  ;;  %8289 = vpow2.f32 %v7773_v36  ;;  %v19350_v29 = vld [vmem:[#allocation67_spill] sm:$0xff]  ;;  %v7806_v36 = vmul.f32 -1.442695, %v2424_v32 }
 0x144   :  { %19335 = vst [vmem:[#allocation154_spill] sm:$0xff] %v10910_v17  ;;  %v8282_v40 = vpop.eup %8281  ;;  %8291 = vrcp.f32 %v10984_v53  ;;  %937 = vmatmul.bf16.gmra.mxu0 %v7477_v56  ;;  %v11011_v32 = vadd.f32 %v10862_v13, %v1063_v50  ;;  %v11020_v56 = vsel %vm10987_vm4, %v1959_v59, %v1955_v0  ;;  %v19357_v13 = vld [vmem:[#allocation87_spill] sm:$0xff]  ;;  %v1065_v59 = vadd.f32 %v10912_v48, %v10894_v44  ;;  %v19359_v0 = vld [vmem:[#allocation92_spill] sm:$0xff]  ;;  %v19361_v50 = vld [vmem:[#allocation66_spill] sm:$0xff] }
 0x145   :  { %19339 = vst [vmem:[#allocation90_spill] sm:$0xff] %v10945_v4  ;;  %v19342_v4 = vld [vmem:[#allocation68_spill] sm:$0xff]  ;;  %v898_v25 = vpop.f32.mrf.mxu0  ;;  %v8284_v3 = vpop.eup %8283  ;;  %1315 = vmatmul.bf16.vlgmr.msra.gmra.mxu3 %v7581_v39  ;;  %v1964_v7 = vsub.f32 1.0, %v1963_v63  ;;  %8293 = vpow2.f32 %v7805_v42  ;;  %v2425_v39 = vadd.f32 %v10698_v54, %v10900_v20  ;;  %v1943_v63 = vand.u32 2147483648, %v19326_v12 }
 0x146   :  { %19341 = vst [vmem:[#allocation80_spill] sm:$0xff] %v10959_v19  ;;  %v1784_v41 = vadd.f32 %v19342_v4, %v10910_v17  ;;  %v7478_v19 = vld [vmem:[%s18418_s0 + $0x18c] sm:$0xf0]  ;;  %v10998_v2 = vpop.eup %8285  ;;  %3942 = vrot.lane.b32.xlu1 %v8284_v3, %s9213_s12  ;;  %v11032_v4 = vpop.permute.xlu1 %3122  ;;  %v11075_v11 = vadd.f32 %v10947_v33, %v1065_v59  ;;  %v19370_v33 = vld [vmem:[#allocation70_spill] sm:$0xff]  ;;  %vm1982_vm2 = vweird.f32 %v19359_v0 }
 0x147   :  { %19343 = vst [vmem:[#allocation155_spill] sm:$0xff] %v10967_v34  ;;  %v7481_v14 = vor.u32 %v8002_v62, %v7478_v19  ;;  %v11006_v19 = vadd.f32 %v10440_v8, %v2575_v31  ;;  %v11022_v31 = vpop.eup %8287  ;;  %v7807_v44 = vmul.f32 -1.442695, %v2425_v39  ;;  %v1973_v39 = vand.u32 2147483648, %v19344_v21 }
 0x148   :  { %19346 = vst [vmem:[#allocation85_spill] sm:$0xff] %v10982_v9  ;;  %v7774_v46 = vmul.f32 -1.442695, %v1784_v41  ;;  %v1785_v9 = vadd.f32 %v19350_v29, %v10900_v20  ;;  %v11003_v41 = vadd.f32 1.0, %v8282_v40  ;;  %v11013_v27 = vpop.f32.mrf.mxu3  ;;  %v1236_v15 = vpop.f32.mrf.mxu2  ;;  %v19355_v40 = vld [vmem:[#allocation97_spill] sm:$0xff] }
 0x149   :  { %19347 = vst [vmem:[#allocation99_spill] sm:$0xff] %v10984_v53  ;;  %v1067_v22 = vpop.f32.mrf.mxu1  ;;  %3922 = vrot.lane.b32.xlu0 %v19355_v40, %s9213_s12  ;;  %1106 = vmatmul.bf16.gmra.mxu1 %v7481_v14  ;;  %v8290_v3 = vpop.eup %8289  ;;  %v11071_v40 = vor.u32 1.1754944e-38, %v1943_v63  ;;  %v8031_v63 = vld [vmem:[%s18418_s0 + $0x268] sm:$0xf0]  ;;  %v1787_v53 = vadd.f32 %v19370_v33, %v11075_v11 }
 0x14a   :  { %19351 = vst [vmem:[#allocation156_spill] sm:$0xff] %v10998_v2  ;;  %v1068_v37 = vadd.f32 %v1067_v22, %v898_v25  ;;  %8295 = vpow2.f32 %v7774_v46  ;;  %v7775_v55 = vmul.f32 -1.442695, %v1785_v9  ;;  %3920 = vrot.lane.b32.xlu2 %v19357_v13, %s9213_s12  ;;  %v1965_v46 = vmul.f32 %v19345_v26, %v1964_v7  ;;  %v19360_v9 = vld [vmem:[#allocation108_spill] sm:$0xff]  ;;  %v11042_v14 = vpop.permute.xlu2 %3118  ;;  %v11063_v12 = vpop.eup %8291 }
 0x14b   :  { %19352 = vst [vmem:[#allocation157_spill] sm:$0xff] %v11003_v41  ;;  %8297 = vpow2.f32 %v7806_v36  ;;  %v11037_v42 = vmul.f32 %v19360_v9, %v19359_v0  ;;  %v1786_v25 = vadd.f32 %v19361_v50, %v11011_v32  ;;  %v2589_v7 = vsub.f32 1.0, %v10928_v60  ;;  %v7496_v60 = vld [vmem:[%s18418_s0 + $0x1a0] sm:$0xf]  ;;  %v8294_v13 = vpop.eup %8293 }
 0x14c   :  { %19353 = vst [vmem:[#allocation158_spill] sm:$0xff] %v11011_v32  ;;  %v11024_v62 = vadd.f32 %v1236_v15, %v1068_v37  ;;  %8299 = vrcp.f32 %v11003_v41  ;;  %v2426_v36 = vadd.f32 %v10657_v30, %v11011_v32  ;;  %v11065_v15 = vadd.f32 1.0, %v8290_v3  ;;  %v8007_v3 = vld [vmem:[%s18418_s0 + $0x1a8] sm:$0xf0]  ;;  %v19395_v37 = vld [vmem:[#allocation100_spill] sm:$0xff] }
 0x14d   :  { %19354 = vst [vmem:[#allocation159_spill] sm:$0xff] %v11013_v27  ;;  %v900_v22 = vpop.f32.mrf.mxu0  ;;  %v11087_v50 = vadd.f32 %v19345_v26, %v1965_v46  ;;  %v7776_v54 = vmul.f32 -1.442695, %v1786_v25  ;;  %v1971_v41 = vand.u32 2147483647, %v19344_v21  ;;  %v1979_v46 = vsub.f32 1.0, %v11037_v42 }
 0x14e   :  { %19356 = vst [vmem:[#allocation97_spill] sm:$0xff] %v11020_v56  ;;  %8301 = vtanh.f32 %v11024_v62  ;;  %v8006_v21 = vld [vmem:[%s18418_s0 + $0x1a0] sm:$0xf0]  ;;  %v11116_v42 = vmul.f32 %v19336_v52, %v2589_v7  ;;  %v8005_v7 = vld [vmem:[%s18418_s0 + $0x19c] sm:$0xf]  ;;  %vm1983_vm3 = vweird.f32 %v19360_v9  ;;  %vm1997_vm7 = vweird.f32 %v19395_v37 }
 0x14f   :  { %19358 = vst [vmem:[#allocation87_spill] sm:$0xff] %v11032_v4  ;;  %8303 = vpow2.f32 %v7775_v55  ;;  %v7592_v55 = vld [vmem:[%s18418_s0 + $0x260] sm:$0xf]  ;;  %v7777_v2 = vmul.f32 -1.442695, %v1787_v53  ;;  %vm11155_vm14 = vcmp.eq.f32.partialorder %v1971_v41, 8.507059e+37  ;;  %vm11251_vm4 = vmor %vm1982_vm2, %vm1983_vm3 }
 0x150   :  { %19362 = vst [vmem:[#allocation92_spill] sm:$0xff] %v11042_v14  ;;  %8305 = vtanh.f32 %v10910_v17  ;;  %v8296_v59 = vpop.eup %8295  ;;  %v11105_v25 = vpop.f32.mrf.mxu3  ;;  %v7593_v20 = vor.u32 %v8031_v63, %v7592_v55  ;;  %v2427_v55 = vadd.f32 %v10726_v49, %v11075_v11  ;;  %v19387_v49 = vld [vmem:[#allocation75_spill] sm:$0xff] }
 0x151   :  { %19367 = vst [vmem:[#allocation108_spill] sm:$0xff] %v11063_v12  ;;  %v1069_v30 = vpop.f32.mrf.mxu1  ;;  %v8298_v56 = vpop.eup %8297  ;;  %8307 = vpow2.f32 %v7807_v44  ;;  %v7808_v12 = vmul.f32 -1.442695, %v2426_v36  ;;  %3928 = vrot.lane.b32.xlu0 %v10734_v28, %s9213_s12  ;;  %v11120_v36 = vadd.f32 1.0, %v8294_v13  ;;  %v7497_v28 = vor.u32 %v8007_v3, %v7496_v60 }
 0x152   :  { %v1070_v29 = vadd.f32 %v1069_v30, %v900_v22  ;;  %19371 = vst [vmem:[#allocation160_spill] sm:$0xff] %v11105_v25  ;;  %v1238_v30 = vpop.f32.mrf.mxu2  ;;  %v7488_v22 = vld [vmem:[%s18418_s0 + $0x198] sm:$0xf]  ;;  %v11118_v44 = vpop.eup %8299  ;;  %3926 = vrot.lane.b32.xlu2 %v10653_v61, %s9213_s12  ;;  %8309 = vrcp.f32 %v11065_v15  ;;  %v11127_v27 = vadd.f32 1.0, %v8296_v59  ;;  %v1970_v61 = vsel %vm11097_vm12, %v19345_v26, %v11087_v50 }
 0x153   :  { %19372 = vst [vmem:[#allocation161_spill] sm:$0xff] %v11118_v44  ;;  %v11129_v17 = vpop.permute.xlu1 %3128  ;;  %v1974_v60 = vor.u32 1.1754944e-38, %v1973_v39  ;;  %v11142_v3 = vadd.f32 1.0, %v8298_v56  ;;  %8311 = vpow2.f32 %v7776_v54  ;;  %v11147_v63 = vpop.permute.xlu2 %3124  ;;  %v7489_v59 = vor.u32 %v8006_v21, %v7488_v22  ;;  %v19379_v26 = vld [vmem:[#allocation29_spill] sm:$0xff]  ;;  %1280 = vmatmul.bf16.gmra.mxu2 %v7497_v28 }
 0x154   :  { %19373 = vst [vmem:[#allocation162_spill] sm:$0xff] %v11120_v36  ;;  %v11122_v33 = vadd.f32 %v1238_v30, %v1070_v29  ;;  %v8302_v25 = vpop.eup %8301  ;;  %v7490_v29 = vld [vmem:[%s18418_s0 + $0x1a4] sm:$0xf0]  ;;  %8313 = vpow2.f32 %v7808_v12  ;;  %v3212_v50 = vadd.f32 %v10967_v34, %v19379_v26  ;;  %v19384_v12 = vld [vmem:[#allocation86_spill] sm:$0xff]  ;;  %v11235_v56 = vadd.f32 %v19336_v52, %v11116_v42 }
 0x155   :  { %19375 = vst [vmem:[#allocation164_spill] sm:$0xff] %v11127_v27  ;;  %v8304_v13 = vpop.eup %8303  ;;  %3948 = vrot.lane.b32.xlu1 %v8302_v25, %s9213_s12  ;;  %v11153_v39 = vpop.f32.mrf.mxu0  ;;  %8315 = vrcp.f32 %v11120_v36  ;;  %1320 = vmatmul.bf16.gmra.mxu3 %v7593_v20  ;;  %v7493_v53 = vor.u32 %v8005_v7, %v7490_v29  ;;  %v19385_v25 = vld [vmem:[#allocation101_spill] sm:$0xff]  ;;  %v1788_v36 = vadd.f32 %v19387_v49, %v11024_v62  ;;  %v7809_v7 = vmul.f32 -1.442695, %v2427_v55 }
 0x156   :  { %19374 = vst [vmem:[#allocation163_spill] sm:$0xff] %v11122_v33  ;;  %v11149_v30 = vpop.eup %8305  ;;  %v11175_v22 = vmul.f32 %v19385_v25, %v19384_v12  ;;  %8317 = vrcp.f32 %v11127_v27  ;;  %v11178_v26 = vadd.f32 1.0, %v8304_v13  ;;  %v1980_v20 = vmul.f32 %v19360_v9, %v1979_v46  ;;  %942 = vmatmul.bf16.gmra.mxu0 %v7489_v59 }
 0x157   :  { %19376 = vst [vmem:[#allocation165_spill] sm:$0xff] %v11129_v17  ;;  %v8308_v21 = vpop.eup %8307  ;;  %8319 = vrcp.f32 %v11142_v3  ;;  %v11188_v29 = vsel %vm11155_vm14, %v1974_v60, %v1970_v61  ;;  %v19389_v13 = vsel %vm11049_vm8, %v19327_v1, %v10996_v45  ;;  %v19391_v46 = vand.u32 2147483647, %v10330_v51 }
 0x158   :  { %19377 = vst [vmem:[#allocation166_spill] sm:$0xff] %v11142_v3  ;;  %v11198_v41 = vsel %vm11059_vm11, %v11071_v40, %v19389_v13  ;;  %v11206_v55 = vpop.eup %8309  ;;  %8321 = vpow2.f32 %v7777_v2  ;;  %v7826_v61 = vmul.f32 -1.442695, %v3212_v50  ;;  %v11208_v60 = vpop.f32.mrf.mxu3  ;;  %v11216_v1 = vadd.f32 1.0, %v8308_v21 }
 0x159   :  { %19378 = vst [vmem:[#allocation167_spill] sm:$0xff] %v11147_v63  ;;  %v11182_v28 = vpop.f32.mrf.mxu1  ;;  %vm11202_vm1 = vcmp.eq.f32.partialorder %v19391_v46, 8.507059e+37  ;;  %3934 = vrot.lane.b32.xlu0 %v10883_v6, %s9213_s12  ;;  %v8312_v51 = vpop.eup %8311  ;;  %8323 = vtanh.f32 %v11011_v32  ;;  %v2428_v45 = vadd.f32 %v10722_v43, %v11024_v62  ;;  %1111 = vmatmul.bf16.gmra.mxu1 %v7493_v53  ;;  %v11225_v40 = vmul.f32 %v10678_v10, %v19395_v37 }
 0x15a   :  { %19386 = vst [vmem:[#allocation29_spill] sm:$0xff] %v11178_v26  ;;  %v11210_v48 = vpop.f32.mrf.mxu2  ;;  %3932 = vrot.lane.b32.xlu2 %v10843_v57, %s9213_s12  ;;  %v8314_v6 = vpop.eup %8313  ;;  %8325 = vrcp.f32 %v11178_v26  ;;  %v7778_v59 = vmul.f32 -1.442695, %v1788_v36  ;;  %v11231_v50 = vadd.f32 %v19360_v9, %v1980_v20  ;;  %v19398_v57 = vld [vmem:[#allocation41_spill] sm:$0xff]  ;;  %v11245_v36 = vmul.f32 %v10756_v35, %v10641_v18 }
 0x15b   :  { %19388 = vst [vmem:[#allocation168_spill] sm:$0xff] %v11188_v29  ;;  %v11228_v2 = vpop.permute.xlu1 %3134  ;;  %v11237_v53 = vpop.eup %8315  ;;  %8327 = vpow2.f32 %v7809_v7  ;;  %v3215_v21 = vadd.f32 %v11032_v4, %v19398_v57  ;;  %v11258_v46 = vadd.f32 1.0, %v8312_v51  ;;  %v19404_v57 = vld [vmem:[#allocation33_spill] sm:$0xff]  ;;  %v11268_v49 = vadd.f32 1.0, %v8314_v6 }
 0x15c   :  { %19390 = vst [vmem:[#allocation169_spill] sm:$0xff] %v11198_v41  ;;  %v11241_v13 = vpop.permute.xlu2 %3130  ;;  %v11256_v7 = vpop.eup %8317  ;;  %8329 = vpow2.f32 %v7826_v61  ;;  %v7810_v34 = vmul.f32 -1.442695, %v2428_v45  ;;  %v7508_v51 = vld [vmem:[%s18418_s0 + $0x1b8] sm:$0xf]  ;;  %v1994_v61 = vsub.f32 1.0, %v11225_v40  ;;  %v2429_v27 = vadd.f32 %v10662_v16, %v11122_v33 }
 0x15d   :  { %19394 = vst [vmem:[#allocation170_spill] sm:$0xff] %v11216_v1  ;;  %v11262_v44 = vpop.f32.mrf.mxu0  ;;  %v11265_v43 = vpop.eup %8319  ;;  %8331 = vrcp.f32 %v11216_v1  ;;  %v19409_v42 = vand.u32 2147483647, %v10385_v5  ;;  %v19412_v4 = vld [vmem:[#allocation73_spill] sm:$0xff]  ;;  %v8010_v1 = vld [vmem:[%s18418_s0 + $0x1c0] sm:$0xf0]  ;;  %v1073_v26 = vadd.f32 %v11182_v28, %v11153_v39  ;;  %v19414_v39 = vsel %vm11164_vm0, %v10440_v8, %v11006_v19 }
 0x15e   :  { %19396 = vst [vmem:[#allocation100_spill] sm:$0xff] %v11228_v2  ;;  %v8322_v45 = vpop.eup %8321  ;;  %8333 = vpow2.f32 %v7778_v59  ;;  %v8034_v5 = vld [vmem:[%s18418_s0 + $0x280] sm:$0xf0]  ;;  %v11340_v28 = vsel %vm11202_vm1, %v10888_v47, %v19414_v39  ;;  %v7509_v41 = vor.u32 %v8010_v1, %v7508_v51  ;;  %v11349_v8 = vpop.permute.xlu0 %3120  ;;  %v8008_v47 = vld [vmem:[%s18418_s0 + $0x1b4] sm:$0xf]  ;;  %v1995_v19 = vmul.f32 %v10678_v10, %v1994_v61 }
 0x15f   :  { %19397 = vst [vmem:[#allocation171_spill] sm:$0xff] %v11237_v53  ;;  %v3213_v53 = vadd.f32 %v11042_v14, %v19404_v57  ;;  %vm11284_vm6 = vcmp.eq.f32.partialorder %v19409_v42, 8.507059e+37  ;;  %v7604_v14 = vld [vmem:[%s18418_s0 + $0x278] sm:$0xf]  ;;  %v2595_v42 = vsel %vm11278_vm5, %v19336_v52, %v11235_v56  ;;  %8335 = vtanh.f32 %v11075_v11  ;;  %v7500_v56 = vld [vmem:[%s18418_s0 + $0x1b0] sm:$0xf] }
 0x160   :  { %19399 = vst [vmem:[#allocation41_spill] sm:$0xff] %v11241_v13  ;;  %8337 = vrcp.f32 %v11258_v46  ;;  %v11320_v57 = vpop.f32.mrf.mxu3  ;;  %v7605_v16 = vor.u32 %v8034_v5, %v7604_v14  ;;  %vm1998_vm8 = vweird.f32 %v10678_v10  ;;  %v11369_v61 = vadd.f32 %v11210_v48, %v1073_v26 }
 0x161   :  { %19402 = vst [vmem:[#allocation172_spill] sm:$0xff] %v11256_v7  ;;  %v11290_v40 = vpop.f32.mrf.mxu1  ;;  %v7829_v7 = vmul.f32 -1.442695, %v3215_v21  ;;  %v7827_v59 = vmul.f32 -1.442695, %v3213_v53  ;;  %3940 = vrot.lane.b32.xlu0 %v11149_v30, %s9213_s12  ;;  %v11342_v30 = vadd.f32 1.0, %v8322_v45  ;;  %8339 = vpow2.f32 %v7810_v34  ;;  %vm11411_vm9 = vmor %vm1997_vm7, %vm1998_vm8 }
 0x162   :  { %19403 = vst [vmem:[#allocation173_spill] sm:$0xff] %v11258_v46  ;;  %v11322_v52 = vpop.f32.mrf.mxu2  ;;  %v8009_v21 = vld [vmem:[%s18418_s0 + $0x1b8] sm:$0xf0]  ;;  %3938 = vrot.lane.b32.xlu2 %v11022_v31, %s9213_s12  ;;  %8341 = vrcp.f32 %v11268_v49  ;;  %v7502_v34 = vld [vmem:[%s18418_s0 + $0x1bc] sm:$0xf0]  ;;  %v3218_v45 = vadd.f32 %v11129_v17, %v19234_v38  ;;  %v2003_v26 = vand.u32 2147483648, %v19395_v37  ;;  %vm2012_vm11 = vweird.f32 %v10641_v18 }
 0x163   :  { %19405 = vst [vmem:[#allocation33_spill] sm:$0xff] %v11265_v43  ;;  %v1789_v43 = vadd.f32 %v19412_v4, %v11122_v33  ;;  %v11309_v4 = vpop.eup %8323  ;;  %8343 = vpow2.f32 %v7829_v7  ;;  %v7501_v3 = vor.u32 %v8009_v21, %v7500_v56  ;;  %v19422_v7 = vld [vmem:[#allocation77_spill] sm:$0xff]  ;;  %1285 = vmatmul.bf16.gmra.mxu2 %v7509_v41  ;;  %v7505_v21 = vor.u32 %v8008_v47, %v7502_v34  ;;  %vm11500_vm14 = vmor %vm2012_vm11, %vm2013_vm13 }
 0x164   :  { %19406 = vst [vmem:[#allocation174_spill] sm:$0xff] %v11268_v49  ;;  %v11315_v29 = vpop.eup %8325  ;;  %v11361_v14 = vpop.permute.xlu2 %3136  ;;  %8345 = vpow2.f32 %v7827_v59  ;;  %v3216_v56 = vadd.f32 %v11147_v63, %v19422_v7  ;;  %v19424_v48 = vand.u32 2147483648, %v19359_v0  ;;  %v11397_v47 = vadd.f32 %v10678_v10, %v1995_v19 }
 0x165   :  { %19413 = vst [vmem:[#allocation175_spill] sm:$0xff] %v11315_v29  ;;  %v8328_v53 = vpop.eup %8327  ;;  %v7779_v54 = vmul.f32 -1.442695, %v1789_v43  ;;  %v11347_v29 = vpop.permute.xlu1 %3140  ;;  %v7811_v43 = vmul.f32 -1.442695, %v2429_v27  ;;  %8347 = vrcp.f32 %v11342_v30  ;;  %1325 = vmatmul.bf16.gmra.mxu3 %v7605_v16  ;;  %v19426_v16 = vld [vmem:[#allocation81_spill] sm:$0xff]  ;;  %vm2608_vm0 = vweird.f32 %v19385_v25 }
 0x166   :  { %19415 = vst [vmem:[#allocation176_spill] sm:$0xff] %v11342_v30  ;;  %v8330_v46 = vpop.eup %8329  ;;  %v11364_v51 = vadd.f32 1.0, %v8328_v53  ;;  %v11371_v5 = vpop.f32.mrf.mxu0  ;;  %v11385_v53 = vor.u32 1.1754944e-38, %v19424_v48  ;;  %947 = vmatmul.bf16.gmra.mxu0 %v7501_v3  ;;  %v7832_v48 = vmul.f32 -1.442695, %v3218_v45  ;;  %v19430_v45 = vsub.f32 1.0, %v11245_v36 }
 0x167   :  { %19416 = vst [vmem:[#allocation177_spill] sm:$0xff] %v11347_v29  ;;  %v11359_v31 = vpop.eup %8331  ;;  %v11374_v27 = vadd.f32 1.0, %v8330_v46  ;;  %8349 = vpow2.f32 %v7779_v54  ;;  %v11390_v46 = vsel %vm11284_vm6, %v10905_v24, %v2595_v42  ;;  %v1790_v54 = vadd.f32 %v19426_v16, %v11369_v61 }
 0x168   :  { %19417 = vst [vmem:[#allocation178_spill] sm:$0xff] %v11349_v8  ;;  %v8334_v1 = vpop.eup %8333  ;;  %8351 = vpow2.f32 %v7811_v43  ;;  %v2430_v24 = vadd.f32 %v10760_v58, %v11369_v61  ;;  %v2001_v19 = vand.u32 2147483647, %v19395_v37  ;;  %v7830_v3 = vmul.f32 -1.442695, %v3216_v56  ;;  %v19434_v37 = vld [vmem:[#allocation9_spill] sm:$0xff] }
 0x169   :  { %19418 = vst [vmem:[#allocation179_spill] sm:$0xff] %v11359_v31  ;;  %v8336_v39 = vpop.eup %8335  ;;  %v11380_v38 = vpop.f32.mrf.mxu1  ;;  %v11392_v41 = vadd.f32 1.0, %v8334_v1  ;;  %8353 = vrcp.f32 %v11364_v51  ;;  %1116 = vmatmul.bf16.gmra.mxu1 %v7505_v21  ;;  %v2018_v17 = vand.u32 2147483648, %v10641_v18  ;;  %v2604_v20 = vsub.f32 1.0, %v11175_v22 }
 0x16a   :  { %19419 = vst [vmem:[#allocation180_spill] sm:$0xff] %v11361_v14  ;;  %v11378_v59 = vpop.eup %8337  ;;  %v11404_v6 = vpop.f32.mrf.mxu2  ;;  %3946 = vrot.lane.b32.xlu0 %v8336_v39, %s9213_s12  ;;  %8355 = vrcp.f32 %v11374_v27  ;;  %3944 = vrot.lane.b32.xlu2 %v11309_v4, %s9213_s12  ;;  %v2010_v39 = vmul.f32 %v10756_v35, %v19430_v45  ;;  %v1075_v4 = vadd.f32 %v11290_v40, %v11262_v44  ;;  %v7780_v45 = vmul.f32 -1.442695, %v1790_v54 }
 0x16b   :  { %19420 = vst [vmem:[#allocation181_spill] sm:$0xff] %v11364_v51  ;;  %v8340_v7 = vpop.eup %8339  ;;  %v11417_v1 = vpop.f32.mrf.mxu3  ;;  %v19431_v51 = vand.u32 2147483647, %v19359_v0  ;;  %8357 = vtanh.f32 %v11122_v33  ;;  %v2004_v0 = vor.u32 1.1754944e-38, %v2003_v26  ;;  %v7812_v40 = vmul.f32 -1.442695, %v2430_v24 }
 0x16c   :  { %19421 = vst [vmem:[#allocation182_spill] sm:$0xff] %v11374_v27  ;;  %v11399_v34 = vpop.eup %8341  ;;  %v11432_v27 = vmul.f32 %v11340_v28, %v19434_v37  ;;  %v11434_v49 = vadd.f32 1.0, %v8340_v7  ;;  %v11441_v21 = vpop.permute.xlu0 %3126  ;;  %8359 = vrcp.f32 %v11392_v41  ;;  %v2000_v7 = vsel %vm11411_vm9, %v10678_v10, %v11397_v47  ;;  %v7520_v10 = vld [vmem:[%s18418_s0 + $0x1d0] sm:$0xf]  ;;  %v7514_v26 = vld [vmem:[%s18418_s0 + $0x1d4] sm:$0xf0] }
 0x16d   :  { %19423 = vst [vmem:[#allocation77_spill] sm:$0xff] %v11378_v59  ;;  %v8344_v43 = vpop.eup %8343  ;;  %vm11426_vm10 = vcmp.eq.f32.partialorder %v19431_v51, 8.507059e+37  ;;  %v11439_v36 = vpop.permute.xlu1 %3146  ;;  %8361 = vpow2.f32 %v7832_v48  ;;  %vm11455_vm12 = vcmp.eq.f32.partialorder %v2001_v19, 8.507059e+37  ;;  %v2016_v47 = vand.u32 2147483647, %v10641_v18  ;;  %v19506_v33 = vld [vmem:[#allocation152_spill] sm:$0xff] }
 0x16e   :  { %19425 = vst [vmem:[#allocation183_spill] sm:$0xff] %v11392_v41  ;;  %v8346_v56 = vpop.eup %8345  ;;  %v11446_v28 = vpop.permute.xlu2 %3142  ;;  %8363 = vpow2.f32 %v7830_v3  ;;  %v3221_v24 = vadd.f32 %v11228_v2, %v10648_v23  ;;  %v11474_v42 = vadd.f32 %v11322_v52, %v1075_v4  ;;  %v7616_v3 = vld [vmem:[%s18418_s0 + $0x290] sm:$0xf]  ;;  %v19448_v4 = vld [vmem:[#allocation93_spill] sm:$0xff]  ;;  %vm2607_vm3 = vweird.f32 %v19384_v12 }
 0x16f   :  { %19427 = vst [vmem:[#allocation184_spill] sm:$0xff] %v11399_v34  ;;  %v11443_v51 = vpop.eup %8347  ;;  %v11453_v37 = vpop.f32.mrf.mxu0  ;;  %v11462_v31 = vadd.f32 1.0, %v8346_v56  ;;  %8365 = vrcp.f32 %v11434_v49  ;;  %v8037_v56 = vld [vmem:[%s18418_s0 + $0x298] sm:$0xf0]  ;;  %v3219_v2 = vadd.f32 %v11241_v13, %v19448_v4  ;;  %v7512_v4 = vld [vmem:[%s18418_s0 + $0x1c8] sm:$0xf]  ;;  %v11519_v13 = vsel %vm11455_vm12, %v2004_v0, %v2000_v7  ;;  %vm11751_vm6 = vmor %vm2607_vm3, %vm2608_vm0 }
 0x170   :  { %19435 = vst [vmem:[#allocation185_spill] sm:$0xff] %v11432_v27  ;;  %v8350_v44 = vpop.eup %8349  ;;  %v11460_v27 = vadd.f32 1.0, %v8344_v43  ;;  %v8013_v43 = vld [vmem:[%s18418_s0 + $0x1d8] sm:$0xf0]  ;;  %8367 = vpow2.f32 %v7780_v45  ;;  %v19453_v45 = vld [vmem:[#allocation79_spill] sm:$0xff]  ;;  %vm11526_vm15 = vcmp.eq.f32.partialorder %v2016_v47, 8.507059e+37  ;;  %vm2103_vm0 = vweird.f32 %v11206_v55 }
 0x171   :  { %19436 = vst [vmem:[#allocation186_spill] sm:$0xff] %v11434_v49  ;;  %v8352_v54 = vpop.eup %8351  ;;  %v11476_v19 = vpop.f32.mrf.mxu1  ;;  %v11492_v52 = vadd.f32 1.0, %v8350_v44  ;;  %8369 = vpow2.f32 %v7812_v40  ;;  %v1791_v44 = vadd.f32 %v19453_v45, %v11474_v42  ;;  %v7617_v45 = vor.u32 %v8037_v56, %v7616_v3  ;;  %v8011_v7 = vld [vmem:[%s18418_s0 + $0x1cc] sm:$0xf]  ;;  %v19460_v47 = vld [vmem:[#allocation129_spill] sm:$0xff] }
 0x172   :  { %19437 = vst [vmem:[#allocation187_spill] sm:$0xff] %v11439_v36  ;;  %v11468_v48 = vpop.eup %8353  ;;  %v11507_v63 = vadd.f32 1.0, %v8352_v54  ;;  %8371 = vrcp.f32 %v11460_v27  ;;  %v11524_v40 = vpop.f32.mrf.mxu2  ;;  %v7521_v54 = vor.u32 %v8013_v43, %v7520_v10  ;;  %v19461_v43 = vld [vmem:[#allocation148_spill] sm:$0xff]  ;;  %v7833_v56 = vmul.f32 -1.442695, %v3219_v2 }
 0x173   :  { %19438 = vst [vmem:[#allocation188_spill] sm:$0xff] %v11441_v21  ;;  %v11490_v23 = vpop.eup %8355  ;;  %8373 = vrcp.f32 %v11462_v31  ;;  %v7781_v49 = vmul.f32 -1.442695, %v1791_v44  ;;  %vm2042_vm1 = vweird.f32 %v19460_v47  ;;  %vm2043_vm2 = vweird.f32 %v19461_v43 }
 0x174   :  { %19439 = vst [vmem:[#allocation189_spill] sm:$0xff] %v11443_v51  ;;  %v7835_v51 = vmul.f32 -1.442695, %v3221_v24  ;;  %v11533_v0 = vpop.permute.xlu0 %3132  ;;  %v2038_v24 = vmul.f32 %v19461_v43, %v19460_v47  ;;  %8375 = vrcp.f32 %v11492_v52  ;;  %1290 = vmatmul.bf16.gmra.mxu2 %v7521_v54 }
 0x175   :  { %19440 = vst [vmem:[#allocation190_spill] sm:$0xff] %v11446_v28  ;;  %v11531_v30 = vpop.permute.xlu1 %3152  ;;  %8377 = vrcp.f32 %v11507_v63  ;;  %1330 = vmatmul.bf16.gmra.mxu3 %v7617_v45  ;;  %v1078_v45 = vadd.f32 %v11380_v38, %v11371_v5 }
 0x176   :  { %19443 = vst [vmem:[#allocation191_spill] sm:$0xff] %v11460_v27  ;;  %v19462_v27 = vld [vmem:[#allocation131_spill] sm:$0xff]  ;;  %v11552_v41 = vpop.permute.xlu2 %3148  ;;  %8379 = vtanh.f32 %v11369_v61 }
 0x177   :  { %19444 = vst [vmem:[#allocation192_spill] sm:$0xff] %v11462_v31  ;;  %v2431_v31 = vadd.f32 %v19462_v27, %v11474_v42  ;;  %8381 = vpow2.f32 %v7835_v51 }
 0x178   :  { %19445 = vst [vmem:[#allocation193_spill] sm:$0xff] %v11468_v48  ;;  %v11488_v48 = vadd.f32 %v10756_v35, %v2010_v39  ;;  %v11505_v39 = vpop.eup %8357  ;;  %8383 = vpow2.f32 %v7833_v56 }
 0x179   :  { %19446 = vst [vmem:[#allocation194_spill] sm:$0xff] %v11490_v23  ;;  %v8012_v23 = vld [vmem:[%s18418_s0 + $0x1d0] sm:$0xf0]  ;;  %v11521_v18 = vpop.eup %8359  ;;  %v11581_v54 = vpop.f32.mrf.mxu1  ;;  %8385 = vpow2.f32 %v7781_v49 }
 0x17a   :  { %19447 = vst [vmem:[#allocation195_spill] sm:$0xff] %v11492_v52  ;;  %v8362_v16 = vpop.eup %8361  ;;  %v2015_v10 = vsel %vm11500_vm14, %v10756_v35, %v11488_v48  ;;  %v2019_v35 = vor.u32 1.1754944e-38, %v2018_v17  ;;  %v19465_v48 = vsel %vm11251_vm4, %v19360_v9, %v11231_v50  ;;  %v7517_v17 = vor.u32 %v8011_v7, %v7514_v26  ;;  %v19469_v9 = vld [vmem:[#allocation154_spill] sm:$0xff]  ;;  %v19471_v7 = vld [vmem:[#allocation12_spill] sm:$0xff]  ;;  %vm11680_vm4 = vmor %vm2042_vm1, %vm2043_vm2 }
 0x17b   :  { %19451 = vst [vmem:[#allocation93_spill] sm:$0xff] %v11505_v39  ;;  %v8364_v3 = vpop.eup %8363  ;;  %v7513_v39 = vor.u32 %v8012_v23, %v7512_v4  ;;  %v11565_v2 = vsel %vm11426_vm10, %v11385_v53, %v19465_v48  ;;  %v11567_v27 = vadd.f32 1.0, %v8362_v16  ;;  %v11570_v23 = vpop.f32.mrf.mxu0  ;;  %v3224_v50 = vadd.f32 %v11347_v29, %v19469_v9  ;;  %v19481_v49 = vld [vmem:[#allocation28_spill] sm:$0xff]  ;;  %v19482_v48 = vld [vmem:[#allocation159_spill] sm:$0xff] }
 0x17c   :  { %19452 = vst [vmem:[#allocation196_spill] sm:$0xff] %v11507_v63  ;;  %v11554_v59 = vpop.eup %8365  ;;  %v11573_v4 = vadd.f32 1.0, %v8364_v3  ;;  %v2039_v53 = vsub.f32 1.0, %v2038_v24  ;;  %v7813_v16 = vmul.f32 -1.442695, %v2431_v31  ;;  %v11585_v22 = vmul.f32 %v11390_v46, %v19471_v7  ;;  %v19475_v24 = vld [vmem:[#allocation136_spill] sm:$0xff]  ;;  %1121 = vmatmul.bf16.gmra.mxu1 %v7517_v17 }
 0x17d   :  { %19454 = vst [vmem:[#allocation197_spill] sm:$0xff] %v11519_v13  ;;  %v8368_v52 = vpop.eup %8367  ;;  %952 = vmatmul.bf16.gmra.mxu0 %v7513_v39  ;;  %v3222_v3 = vadd.f32 %v11361_v14, %v19475_v24  ;;  %v11595_v31 = vsel %vm11526_vm15, %v2019_v35, %v2015_v10  ;;  %8387 = vrcp.f32 %v11567_v27  ;;  %v19479_v46 = vld [vmem:[#allocation37_spill] sm:$0xff]  ;;  %v11609_v9 = vadd.f32 %v19482_v48, %v19481_v49  ;;  %v11612_v10 = vpop.permute.xlu1 %3158  ;;  %v19489_v49 = vld [vmem:[#allocation140_spill] sm:$0xff]  ;;  %v7532_v63 = vld [vmem:[%s18418_s0 + $0x1e8] sm:$0xf] }
 0x17e   :  { %19455 = vst [vmem:[#allocation198_spill] sm:$0xff] %v11521_v18  ;;  %v11550_v18 = vpop.f32.mrf.mxu3  ;;  %v8370_v44 = vpop.eup %8369  ;;  %v11589_v51 = vadd.f32 1.0, %v8368_v52  ;;  %v3214_v39 = vadd.f32 %v11349_v8, %v19479_v46  ;;  %v2605_v52 = vmul.f32 %v19385_v25, %v2604_v20  ;;  %8389 = vrcp.f32 %v11573_v4  ;;  %v19494_v14 = vld [vmem:[#allocation160_spill] sm:$0xff] }
 0x17f   :  { %19458 = vst [vmem:[#allocation199_spill] sm:$0xff] %v11531_v30  ;;  %v11577_v34 = vpop.eup %8371  ;;  %v11600_v38 = vadd.f32 1.0, %v8370_v44  ;;  %v7838_v58 = vmul.f32 -1.442695, %v3224_v50  ;;  %v11614_v35 = vpop.permute.xlu0 %3138  ;;  %v2040_v44 = vmul.f32 %v19461_v43, %v2039_v53  ;;  %8391 = vpow2.f32 %v7813_v16  ;;  %v19488_v50 = vld [vmem:[#allocation120_spill] sm:$0xff]  ;;  %v19490_v16 = vld [vmem:[#allocation145_spill] sm:$0xff] }
 0x180   :  { %19459 = vst [vmem:[#allocation200_spill] sm:$0xff] %v11533_v0  ;;  %v11587_v26 = vpop.eup %8373  ;;  %v11621_v20 = vadd.f32 %v11404_v6, %v1078_v45  ;;  %v11623_v24 = vpop.f32.mrf.mxu2  ;;  %v11630_v48 = vmul.f32 %v19489_v49, %v19488_v50  ;;  %8393 = vrcp.f32 %v11589_v51  ;;  %v7836_v53 = vmul.f32 -1.442695, %v3222_v3 }
 0x181   :  { %19463 = vst [vmem:[#allocation129_spill] sm:$0xff] %v11552_v41  ;;  %v11597_v5 = vpop.eup %8375  ;;  %v11625_v46 = vpop.permute.xlu2 %3154  ;;  %8395 = vrcp.f32 %v11600_v38  ;;  %v2046_v3 = vand.u32 2147483647, %v19460_v47  ;;  %vm2057_vm7 = vweird.f32 %v19490_v16  ;;  %vm2102_vm15 = vweird.f32 %v11065_v15 }
 0x182   :  { %19464 = vst [vmem:[#allocation148_spill] sm:$0xff] %v11554_v59  ;;  %v11605_v56 = vpop.eup %8377  ;;  %8397 = vpow2.f32 %v7838_v58  ;;  %v11665_v59 = vadd.f32 %v19461_v43, %v2040_v44  ;;  %v19499_v58 = vld [vmem:[#allocation116_spill] sm:$0xff]  ;;  %v2048_v44 = vand.u32 2147483648, %v19460_v47  ;;  %vm12099_vm1 = vmor %vm2102_vm15, %vm2103_vm0 }
 0x183   :  { %19466 = vst [vmem:[#allocation201_spill] sm:$0xff] %v11565_v2  ;;  %v11618_v17 = vpop.eup %8379  ;;  %8399 = vtanh.f32 %v11474_v42  ;;  %v11674_v8 = vpop.f32.mrf.mxu0  ;;  %v8015_v2 = vld [vmem:[%s18418_s0 + $0x1e8] sm:$0xf0]  ;;  %vm11722_vm5 = vcmp.eq.f32.partialorder %v2046_v3, 8.507059e+37 }
 0x184   :  { %19467 = vst [vmem:[#allocation202_spill] sm:$0xff] %v11567_v27  ;;  %v8382_v7 = vpop.eup %8381  ;;  %v19491_v27 = vld [vmem:[#allocation153_spill] sm:$0xff]  ;;  %8401 = vpow2.f32 %v7836_v53  ;;  %v11702_v53 = vpop.f32.mrf.mxu1 }
 0x185   :  { %19468 = vst [vmem:[#allocation203_spill] sm:$0xff] %v11573_v4  ;;  %v11636_v6 = vmul.f32 %v19491_v27, %v19490_v16  ;;  %v8384_v45 = vpop.eup %8383  ;;  %v11647_v4 = vadd.f32 %v19385_v25, %v2605_v52  ;;  %v8040_v52 = vld [vmem:[%s18418_s0 + $0x2b0] sm:$0xf0]  ;;  %v11708_v32 = vpop.permute.xlu1 %3164  ;;  %vm2058_vm8 = vweird.f32 %v19491_v27 }
 0x186   :  { %19470 = vst [vmem:[#allocation154_spill] sm:$0xff] %v11577_v34  ;;  %v7828_v34 = vmul.f32 -1.442695, %v3214_v39  ;;  %v8386_v29 = vpop.eup %8385  ;;  %vm11805_vm9 = vmor %vm2057_vm7, %vm2058_vm8 }
 0x187   :  { %19472 = vst [vmem:[#allocation204_spill] sm:$0xff] %v11585_v22  ;;  %v7628_v22 = vld [vmem:[%s18418_s0 + $0x2a8] sm:$0xf]  ;;  %v2054_v50 = vsub.f32 1.0, %v11636_v6  ;;  %v11698_v47 = vadd.f32 1.0, %v8386_v29  ;;  %v11710_v6 = vpop.permute.xlu0 %3144 }
 0x188   :  { %19473 = vst [vmem:[#allocation205_spill] sm:$0xff] %v11587_v26  ;;  %v19493_v26 = vld [vmem:[#allocation32_spill] sm:$0xff]  ;;  %8403 = vpow2.f32 %v7828_v34  ;;  %v8014_v29 = vld [vmem:[%s18418_s0 + $0x1e4] sm:$0xf] }
 0x189   :  { %19474 = vst [vmem:[#allocation206_spill] sm:$0xff] %v11589_v51  ;;  %v8016_v51 = vld [vmem:[%s18418_s0 + $0x1f0] sm:$0xf0] }
 0x18a   :  { %19476 = vst [vmem:[#allocation136_spill] sm:$0xff] %v11595_v31 }
 0x18b   :  { %19477 = vst [vmem:[#allocation207_spill] sm:$0xff] %v11597_v5  ;;  %v11651_v5 = vadd.f32 %v19494_v14, %v19493_v26  ;;  %v11667_v14 = vpop.eup %8387  ;;  %v11669_v26 = vadd.f32 1.0, %v8382_v7  ;;  %v11687_v7 = vadd.f32 1.0, %v8384_v45  ;;  %v1080_v45 = vadd.f32 %v11476_v19, %v11453_v37  ;;  %v19514_v37 = vld [vmem:[#allocation46_spill] sm:$0xff] }
 0x18c   :  { %19478 = vst [vmem:[#allocation208_spill] sm:$0xff] %v11600_v38  ;;  %v19496_v38 = vld [vmem:[#allocation76_spill] sm:$0xff]  ;;  %v3217_v3 = vadd.f32 %v11441_v21, %v19514_v37 }
 0x18d   :  { %19480 = vst [vmem:[#allocation37_spill] sm:$0xff] %v11605_v56  ;;  %v11640_v56 = vpop.f32.mrf.mxu3  ;;  %v1792_v39 = vadd.f32 %v19496_v38, %v11621_v20  ;;  %v2432_v38 = vadd.f32 %v19499_v58, %v11621_v20  ;;  %v3227_v58 = vadd.f32 %v11439_v36, %v11075_v11  ;;  %v7629_v11 = vor.u32 %v8040_v52, %v7628_v22  ;;  %v11729_v22 = vpop.permute.xlu2 %3160 }
 0x18e   :  { %19483 = vst [vmem:[#allocation28_spill] sm:$0xff] %v11609_v9  ;;  %v7524_v9 = vld [vmem:[%s18418_s0 + $0x1e0] sm:$0xf]  ;;  %8405 = vrcp.f32 %v11669_v26 }
 0x18f   :  { %19484 = vst [vmem:[#allocation159_spill] sm:$0xff] %v11612_v10  ;;  %v7782_v13 = vmul.f32 -1.442695, %v1792_v39  ;;  %v7814_v34 = vmul.f32 -1.442695, %v2432_v38  ;;  %v11731_v39 = vor.u32 1.1754944e-38, %v2048_v44  ;;  %8407 = vrcp.f32 %v11687_v7  ;;  %1335 = vmatmul.bf16.gmra.mxu3 %v7629_v11  ;;  %v11777_v11 = vpop.f32.mrf.mxu0 }
 0x190   :  { %19485 = vst [vmem:[#allocation209_spill] sm:$0xff] %v11614_v35  ;;  %8409 = vrcp.f32 %v11698_v47  ;;  %v7841_v38 = vmul.f32 -1.442695, %v3227_v58  ;;  %v2055_v58 = vmul.f32 %v19491_v27, %v2054_v50  ;;  %v2063_v50 = vand.u32 2147483648, %v19490_v16 }
 0x191   :  { %19486 = vst [vmem:[#allocation210_spill] sm:$0xff] %v11618_v17  ;;  %v3225_v17 = vadd.f32 %v11446_v28, %v19506_v33  ;;  %8411 = vpow2.f32 %v7782_v13  ;;  %v19519_v13 = vld [vmem:[#allocation3_spill] sm:$0xff] }
 0x192   :  { %19487 = vst [vmem:[#allocation211_spill] sm:$0xff] %v11625_v46  ;;  %8413 = vpow2.f32 %v7814_v34  ;;  %v7831_v34 = vmul.f32 -1.442695, %v3217_v3  ;;  %v11789_v3 = vpop.permute.xlu0 %3150 }
 0x193   :  { %19492 = vst [vmem:[#allocation140_spill] sm:$0xff] %v11647_v4  ;;  %v7839_v37 = vmul.f32 -1.442695, %v3225_v17 }
 0x194   :  { %19495 = vst [vmem:[#allocation145_spill] sm:$0xff] %v11651_v5  ;;  %v8019_v5 = vld [vmem:[%s18418_s0 + $0x208] sm:$0xf0] }
 0x195   :  { %19497 = vst [vmem:[#allocation153_spill] sm:$0xff] %v11667_v14  ;;  %v11685_v14 = vpop.eup %8389 }
 0x196   :  { %19498 = vst [vmem:[#allocation32_spill] sm:$0xff] %v11669_v26  ;;  %v8392_v31 = vpop.eup %8391  ;;  %v11743_v26 = vadd.f32 %v11524_v40, %v1080_v45  ;;  %v11762_v45 = vpop.f32.mrf.mxu3  ;;  %v3230_v40 = vadd.f32 %v11531_v30, %v11369_v61 }
 0x197   :  { %19502 = vst [vmem:[#allocation160_spill] sm:$0xff] %v11685_v14  ;;  %v7533_v14 = vor.u32 %v8016_v51, %v7532_v63  ;;  %v11704_v36 = vpop.eup %8393  ;;  %v7526_v63 = vld [vmem:[%s18418_s0 + $0x1ec] sm:$0xf0]  ;;  %v7525_v51 = vor.u32 %v8015_v2, %v7524_v9  ;;  %v11734_v28 = vadd.f32 1.0, %v8392_v31  ;;  %v11745_v2 = vpop.f32.mrf.mxu2  ;;  %v19515_v31 = vmov 0 }
 0x198   :  { %19503 = vst [vmem:[#allocation212_spill] sm:$0xff] %v11687_v7  ;;  %v11726_v33 = vpop.eup %8395  ;;  %v7529_v9 = vor.u32 %v8014_v29, %v7526_v63  ;;  %v19516_v31 = vsel %vm11751_vm6, 4294967295, %v19515_v31  ;;  %v1793_v17 = vadd.f32 %v19519_v13, %v11743_v26  ;;  %v19523_v7 = vld [vmem:[#allocation36_spill] sm:$0xff]  ;;  %v7844_v30 = vmul.f32 -1.442695, %v3230_v40 }
 0x199   :  { %19504 = vst [vmem:[#allocation213_spill] sm:$0xff] %v11698_v47  ;;  %v8398_v52 = vpop.eup %8397  ;;  %1295 = vmatmul.bf16.gmra.mxu2 %v7533_v14  ;;  %957 = vmatmul.bf16.gmra.mxu0 %v7525_v51  ;;  %8415 = vrcp.f32 %v11734_v28  ;;  %v19521_v51 = vld [vmem:[#allocation138_spill] sm:$0xff] }
 0x19a   :  { %19505 = vst [vmem:[#allocation214_spill] sm:$0xff] %v11704_v36  ;;  %v11760_v14 = vadd.f32 1.0, %v8398_v52  ;;  %8417 = vpow2.f32 %v7841_v38  ;;  %v2433_v52 = vadd.f32 %v19521_v51, %v11743_v26  ;;  %1126 = vmatmul.bf16.gmra.mxu1 %v7529_v9  ;;  %v11787_v38 = vpop.permute.xlu1 %3170  ;;  %v11797_v9 = vpop.f32.mrf.mxu1  ;;  %v2064_v51 = vor.u32 1.1754944e-38, %v2063_v50 }
 0x19b   :  { %19507 = vst [vmem:[#allocation152_spill] sm:$0xff] %v11708_v32  ;;  %v11739_v32 = vpop.eup %8399  ;;  %8419 = vpow2.f32 %v7839_v37  ;;  %v19533_v37 = vld [vmem:[#allocation108_spill] sm:$0xff] }
 0x19c   :  { %19508 = vst [vmem:[#allocation215_spill] sm:$0xff] %v11710_v6  ;;  %v8402_v44 = vpop.eup %8401  ;;  %8421 = vrcp.f32 %v11760_v14  ;;  %v7815_v21 = vmul.f32 -1.442695, %v2433_v52  ;;  %vm2088_vm12 = vweird.f32 %v19533_v37 }
 0x19d   :  { %19511 = vst [vmem:[#allocation216_spill] sm:$0xff] %v11726_v33  ;;  %v8404_v29 = vpop.eup %8403  ;;  %v11785_v33 = vadd.f32 1.0, %v8402_v44  ;;  %v19532_v44 = vld [vmem:[#allocation99_spill] sm:$0xff]  ;;  %8423 = vtanh.f32 %v11621_v20 }
 0x19e   :  { %19512 = vst [vmem:[#allocation217_spill] sm:$0xff] %v11729_v22  ;;  %v11771_v63 = vpop.eup %8405  ;;  %v11795_v61 = vadd.f32 1.0, %v8404_v29  ;;  %8425 = vpow2.f32 %v7831_v34  ;;  %vm2087_vm11 = vweird.f32 %v19532_v44 }
 0x19f   :  { %19513 = vst [vmem:[#allocation218_spill] sm:$0xff] %v11734_v28  ;;  %v11779_v36 = vpop.eup %8407  ;;  %v11783_v28 = vadd.f32 %v11208_v60, %v19523_v7  ;;  %v2061_v7 = vand.u32 2147483647, %v19490_v16  ;;  %v7544_v16 = vld [vmem:[%s18418_s0 + $0x200] sm:$0xf]  ;;  %8427 = vrcp.f32 %v11785_v33  ;;  %v11857_v34 = vpop.f32.mrf.mxu2  ;;  %vm11964_vm13 = vmor %vm2087_vm11, %vm2088_vm12 }
 0x1a0   :  { %19517 = vst [vmem:[#allocation46_spill] sm:$0xff] %v19516_v31  ;;  %v11792_v47 = vpop.eup %8409  ;;  %8429 = vrcp.f32 %v11795_v61 }
 0x1a1   :  { %19518 = vst [vmem:[#allocation219_spill] sm:$0xff] %v11760_v14  ;;  %v8412_v29 = vpop.eup %8411  ;;  %v7783_v14 = vmul.f32 -1.442695, %v1793_v17  ;;  %vm11859_vm10 = vcmp.eq.f32.partialorder %v2061_v7, 8.507059e+37  ;;  %v8018_v7 = vld [vmem:[%s18418_s0 + $0x200] sm:$0xf0] }
 0x1a2   :  { %19520 = vst [vmem:[#allocation220_spill] sm:$0xff] %v11771_v63  ;;  %v2056_v63 = vadd.f32 %v19491_v27, %v2055_v58  ;;  %v11812_v58 = vmul.f32 %v19533_v37, %v19532_v44  ;;  %v8414_v13 = vpop.eup %8413  ;;  %v11855_v40 = vadd.f32 1.0, %v8412_v29  ;;  %v7536_v29 = vld [vmem:[%s18418_s0 + $0x1f8] sm:$0xf] }
 0x1a3   :  { %19522 = vst [vmem:[#allocation221_spill] sm:$0xff] %v11779_v36  ;;  %v11799_v36 = vpop.permute.xlu2 %3166  ;;  %8431 = vpow2.f32 %v7783_v14 }
 0x1a4   :  { %19524 = vst [vmem:[#allocation36_spill] sm:$0xff] %v11783_v28  ;;  %v19534_v28 = vsel %vm11680_vm4, %v19461_v43, %v11665_v59  ;;  %v7640_v59 = vld [vmem:[%s18418_s0 + $0x2c0] sm:$0xf]  ;;  %v2060_v43 = vsel %vm11805_vm9, %v19491_v27, %v2056_v63  ;;  %v11864_v27 = vadd.f32 1.0, %v8414_v13  ;;  %8433 = vpow2.f32 %v7815_v21  ;;  %v19544_v13 = vld [vmem:[#allocation72_spill] sm:$0xff] }
 0x1a5   :  { %19525 = vst [vmem:[#allocation222_spill] sm:$0xff] %v11785_v33  ;;  %v11828_v17 = vsel %vm11722_vm5, %v11731_v39, %v19534_v28  ;;  %v8043_v28 = vld [vmem:[%s18418_s0 + $0x2c8] sm:$0xf0]  ;;  %v3220_v14 = vadd.f32 %v11533_v0, %v19544_v13  ;;  %8435 = vpow2.f32 %v7844_v30  ;;  %v8017_v21 = vld [vmem:[%s18418_s0 + $0x1fc] sm:$0xf] }
 0x1a6   :  { %19526 = vst [vmem:[#allocation223_spill] sm:$0xff] %v11789_v3  ;;  %v7641_v33 = vor.u32 %v8043_v28, %v7640_v59  ;;  %8437 = vrcp.f32 %v11855_v40  ;;  %v19550_v59 = vld [vmem:[#allocation88_spill] sm:$0xff] }
 0x1a7   :  { %19527 = vst [vmem:[#allocation224_spill] sm:$0xff] %v11792_v47  ;;  %v1083_v47 = vadd.f32 %v11581_v54, %v11570_v23  ;;  %v11830_v23 = vpop.eup %8415  ;;  %v19536_v54 = vld [vmem:[#allocation40_spill] sm:$0xff]  ;;  %8439 = vrcp.f32 %v11864_v27 }
 0x1a8   :  { %19528 = vst [vmem:[#allocation225_spill] sm:$0xff] %v11795_v61  ;;  %v11834_v50 = vadd.f32 %v11320_v57, %v19536_v54  ;;  %v19538_v57 = vsub.f32 1.0, %v11630_v48  ;;  %v8418_v39 = vpop.eup %8417  ;;  %v2084_v54 = vsub.f32 1.0, %v11812_v58  ;;  %v3228_v48 = vadd.f32 %v11552_v41, %v11024_v62  ;;  %v11881_v58 = vpop.f32.mrf.mxu3  ;;  %1340 = vmatmul.bf16.gmra.mxu3 %v7641_v33 }
 0x1a9   :  { %19529 = vst [vmem:[#allocation226_spill] sm:$0xff] %v11799_v36  ;;  %v8420_v60 = vpop.eup %8419  ;;  %v11869_v63 = vadd.f32 %v11623_v24, %v1083_v47  ;;  %v7545_v62 = vor.u32 %v8019_v5, %v7544_v16  ;;  %v19545_v47 = vld [vmem:[#allocation44_spill] sm:$0xff]  ;;  %v11889_v61 = vadd.f32 1.0, %v8418_v39  ;;  %v7538_v16 = vld [vmem:[%s18418_s0 + $0x204] sm:$0xf0]  ;;  %v11903_v5 = vsel %vm11859_vm10, %v2064_v51, %v2060_v43  ;;  %v11910_v39 = vpop.f32.mrf.mxu0  ;;  %v19553_v51 = vld [vmem:[#allocation134_spill] sm:$0xff] }
 0x1aa   :  { %19535 = vst [vmem:[#allocation99_spill] sm:$0xff] %v11830_v23  ;;  %v11852_v19 = vmul.f32 %v19489_v49, %v19538_v57  ;;  %v11877_v57 = vpop.eup %8421  ;;  %v11887_v23 = vadd.f32 %v11417_v1, %v19545_v47  ;;  %v11906_v30 = vadd.f32 1.0, %v8420_v60  ;;  %v7537_v47 = vor.u32 %v8018_v7, %v7536_v29 }
 0x1ab   :  { %19537 = vst [vmem:[#allocation108_spill] sm:$0xff] %v11834_v50  ;;  %v11883_v24 = vpop.eup %8423  ;;  %v11891_v50 = vpop.permute.xlu1 %3176  ;;  %v1794_v28 = vadd.f32 %v19550_v59, %v11869_v63  ;;  %v7842_v52 = vmul.f32 -1.442695, %v3228_v48  ;;  %v2434_v43 = vadd.f32 %v19553_v51, %v11869_v63  ;;  %v11921_v60 = vmul.f32 %v11206_v55, %v11065_v15  ;;  %1300 = vmatmul.bf16.gmra.mxu2 %v7545_v62 }
 0x1ac   :  { %19539 = vst [vmem:[#allocation40_spill] sm:$0xff] %v11855_v40  ;;  %v8426_v1 = vpop.eup %8425  ;;  %v11912_v13 = vpop.permute.xlu2 %3172  ;;  %8441 = vtanh.f32 %v11743_v26  ;;  %v7834_v59 = vmul.f32 -1.442695, %v3220_v14  ;;  %v7541_v29 = vor.u32 %v8017_v21, %v7538_v16  ;;  %v2085_v7 = vmul.f32 %v19533_v37, %v2084_v54  ;;  %962 = vmatmul.bf16.gmra.mxu0 %v7537_v47 }
 0x1ad   :  { %19542 = vst [vmem:[#allocation227_spill] sm:$0xff] %v11864_v27  ;;  %v11914_v0 = vpop.eup %8427  ;;  %8443 = vrcp.f32 %v11889_v61  ;;  %v1085_v27 = vadd.f32 %v11702_v53, %v11674_v8  ;;  %v7784_v14 = vmul.f32 -1.442695, %v1794_v28  ;;  %v7816_v54 = vmul.f32 -1.442695, %v2434_v43 }
 0x1ae   :  { %19543 = vst [vmem:[#allocation228_spill] sm:$0xff] %v11877_v57  ;;  %v11893_v57 = vpop.permute.xlu0 %3156  ;;  %v11923_v40 = vpop.eup %8429  ;;  %8445 = vrcp.f32 %v11906_v30  ;;  %v3233_v62 = vadd.f32 %v11612_v10, %v11743_v26  ;;  %v2091_v21 = vand.u32 2147483647, %v19532_v44  ;;  %v3231_v16 = vadd.f32 %v11625_v46, %v11474_v42  ;;  %1131 = vmatmul.bf16.gmra.mxu1 %v7541_v29 }
 0x1af   :  { %19546 = vst [vmem:[#allocation72_spill] sm:$0xff] %v11887_v23  ;;  %v11926_v23 = vpop.f32.mrf.mxu1  ;;  %v8432_v48 = vpop.eup %8431  ;;  %8447 = vpow2.f32 %v7842_v52  ;;  %v2086_v28 = vadd.f32 %v19533_v37, %v2085_v7  ;;  %v11956_v52 = vadd.f32 %v11745_v2, %v1085_v27  ;;  %v1088_v42 = vadd.f32 %v11797_v9, %v11777_v11 }
 0x1b0   :  { %19547 = vst [vmem:[#allocation44_spill] sm:$0xff] %v11889_v61  ;;  %v8434_v51 = vpop.eup %8433  ;;  %v11943_v53 = vadd.f32 1.0, %v8432_v48  ;;  %8449 = vpow2.f32 %v7834_v59  ;;  %v2099_v61 = vsub.f32 1.0, %v11921_v60  ;;  %v7556_v60 = vld [vmem:[%s18418_s0 + $0x218] sm:$0xf]  ;;  %vm11995_vm14 = vcmp.eq.f32.partialorder %v2091_v21, 8.507059e+37 }
 0x1b1   :  { %19548 = vst [vmem:[#allocation229_spill] sm:$0xff] %v11891_v50  ;;  %v8436_v33 = vpop.eup %8435  ;;  %v11953_v26 = vadd.f32 1.0, %v8434_v51  ;;  %v19563_v51 = vld [vmem:[#allocation84_spill] sm:$0xff]  ;;  %v7652_v21 = vld [vmem:[%s18418_s0 + $0x2d8] sm:$0xf] }
 0x1b2   :  { %19549 = vst [vmem:[#allocation230_spill] sm:$0xff] %v11906_v30  ;;  %v11941_v8 = vpop.eup %8437  ;;  %v11970_v48 = vadd.f32 1.0, %v8436_v33  ;;  %v3223_v2 = vadd.f32 %v11614_v35, %v19563_v51  ;;  %v11985_v33 = vpop.f32.mrf.mxu3  ;;  %v2100_v11 = vmul.f32 %v11206_v55, %v2099_v61  ;;  %v8020_v61 = vld [vmem:[%s18418_s0 + $0x214] sm:$0xf] }
 0x1b3   :  { %19551 = vst [vmem:[#allocation231_spill] sm:$0xff] %v11912_v13  ;;  %v11950_v47 = vpop.eup %8439  ;;  %v3919_v59 = vpop.permute.xlu1 %3918 }
 0x1b4   :  { %19552 = vst [vmem:[#allocation232_spill] sm:$0xff] %v11914_v0  ;;  %v11930_v0 = vadd.f32 1.0, %v8426_v1  ;;  %v11947_v1 = vpop.f32.mrf.mxu2  ;;  %v11968_v7 = vpop.eup %8441 }
 0x1b5   :  { %19554 = vst [vmem:[#allocation233_spill] sm:$0xff] %v11923_v40  ;;  %v2093_v40 = vand.u32 2147483648, %v19532_v44  ;;  %v11974_v27 = vpop.permute.xlu2 %3178  ;;  %v11977_v30 = vpop.eup %8443  ;;  %v7847_v44 = vmul.f32 -1.442695, %v3233_v62 }
 0x1b6   :  { %19555 = vst [vmem:[#allocation234_spill] sm:$0xff] %v11930_v0  ;;  %8451 = vrcp.f32 %v11930_v0  ;;  %v11958_v43 = vpop.permute.xlu0 %3162  ;;  %v11982_v10 = vpop.eup %8445 }
 0x1b7   :  { %19556 = vst [vmem:[#allocation235_spill] sm:$0xff] %v11941_v8  ;;  %v2094_v29 = vor.u32 1.1754944e-38, %v2093_v40  ;;  %8453 = vpow2.f32 %v7784_v14  ;;  %v19567_v40 = vld [vmem:[#allocation97_spill] sm:$0xff]  ;;  %v7845_v14 = vmul.f32 -1.442695, %v3231_v16  ;;  %v11987_v51 = vpop.f32.mrf.mxu0 }
 0x1b8   :  { %19557 = vst [vmem:[#allocation236_spill] sm:$0xff] %v11943_v53  ;;  %8455 = vpow2.f32 %v7816_v54  ;;  %v4013_v8 = vmul.f32 %v3919_v59, %v19567_v40  ;;  %v2090_v54 = vsel %vm11964_vm13, %v19533_v37, %v2086_v28  ;;  %v8448_v59 = vpop.eup %8447  ;;  %v19571_v40 = vld [vmem:[#allocation45_spill] sm:$0xff]  ;;  %v8022_v37 = vld [vmem:[%s18418_s0 + $0x220] sm:$0xf0]  ;;  %vm2028_vm13 = vweird.f32 %v19489_v49 }
 0x1b9   :  { %19558 = vst [vmem:[#allocation237_spill] sm:$0xff] %v11950_v47  ;;  %v19566_v47 = vld [vmem:[#allocation2_spill] sm:$0xff]  ;;  %8457 = vrcp.f32 %v11943_v53  ;;  %v12001_v16 = vadd.f32 %v11550_v18, %v19571_v40  ;;  %v8450_v28 = vpop.eup %8449  ;;  %v12024_v40 = vpop.f32.mrf.mxu1  ;;  %v7548_v53 = vld [vmem:[%s18418_s0 + $0x210] sm:$0xf] }
 0x1ba   :  { %19559 = vst [vmem:[#allocation238_spill] sm:$0xff] %v11953_v26  ;;  %v1795_v0 = vadd.f32 %v19566_v47, %v11956_v52  ;;  %8459 = vrcp.f32 %v11953_v26  ;;  %4078 = vrot.lane.b32.xlu0 %v4013_v8, %s9212_s19  ;;  %v8046_v18 = vld [vmem:[%s18418_s0 + $0x2e0] sm:$0xf0]  ;;  %v12042_v47 = vadd.f32 1.0, %v8450_v28  ;;  %v19583_v28 = vld [vmem:[#allocation29_spill] sm:$0xff] }
 0x1bb   :  { %19562 = vst [vmem:[#allocation239_spill] sm:$0xff] %v11970_v48  ;;  %8461 = vrcp.f32 %v11970_v48  ;;  %v12036_v48 = vsel %vm11995_vm14, %v2094_v29, %v2090_v54  ;;  %v3925_v46 = vpop.permute.xlu1 %3924  ;;  %vm2132_vm2 = vweird.f32 %v19583_v28 }
 0x1bc   :  { %19564 = vst [vmem:[#allocation84_spill] sm:$0xff] %v11974_v27  ;;  %v12026_v26 = vpop.eup %8451  ;;  %8463 = vpow2.f32 %v7847_v44  ;;  %v7785_v35 = vmul.f32 -1.442695, %v1795_v0  ;;  %v7557_v0 = vor.u32 %v8022_v37, %v7556_v60  ;;  %v7653_v44 = vor.u32 %v8046_v18, %v7652_v21  ;;  %v7550_v60 = vld [vmem:[%s18418_s0 + $0x21c] sm:$0xf0] }
 0x1bd   :  { %19565 = vst [vmem:[#allocation240_spill] sm:$0xff] %v11977_v30  ;;  %v19573_v30 = vld [vmem:[#allocation49_spill] sm:$0xff]  ;;  %v8454_v9 = vpop.eup %8453  ;;  %8465 = vtanh.f32 %v11869_v63 }
 0x1be   :  { %19568 = vst [vmem:[#allocation97_spill] sm:$0xff] %v11982_v10  ;;  %v12006_v10 = vadd.f32 %v11640_v56, %v19573_v30  ;;  %v7837_v56 = vmul.f32 -1.442695, %v3223_v2  ;;  %v19575_v30 = vld [vmem:[#allocation121_spill] sm:$0xff]  ;;  %8467 = vpow2.f32 %v7845_v14  ;;  %v12048_v54 = vpop.permute.xlu0 %3168  ;;  %v12065_v18 = vadd.f32 1.0, %v8454_v9  ;;  %1305 = vmatmul.bf16.gmra.mxu2 %v7557_v0  ;;  %1345 = vmatmul.bf16.gmra.mxu3 %v7653_v44 }
 0x1bf   :  { %19572 = vst [vmem:[#allocation45_spill] sm:$0xff] %v12001_v16  ;;  %v2435_v8 = vadd.f32 %v19575_v30, %v11956_v52  ;;  %v8021_v2 = vld [vmem:[%s18418_s0 + $0x218] sm:$0xf0]  ;;  %v12039_v30 = vadd.f32 1.0, %v8448_v59  ;;  %v19579_v16 = vld [vmem:[#allocation158_spill] sm:$0xff]  ;;  %v12059_v59 = vadd.f32 %v11857_v34, %v1088_v42 }
 0x1c0   :  { %19574 = vst [vmem:[#allocation49_spill] sm:$0xff] %v12006_v10  ;;  %v3234_v10 = vadd.f32 %v11729_v22, %v11869_v63  ;;  %v3226_v29 = vadd.f32 %v11710_v6, %v19579_v16  ;;  %8469 = vpow2.f32 %v7837_v56  ;;  %v12061_v63 = vpop.f32.mrf.mxu2  ;;  %v3921_v16 = vpop.permute.xlu2 %3920  ;;  %v7549_v37 = vor.u32 %v8021_v2, %v7548_v53  ;;  %v19584_v6 = vld [vmem:[#allocation175_spill] sm:$0xff]  ;;  %v19587_v56 = vld [vmem:[#allocation168_spill] sm:$0xff]  ;;  %v19590_v0 = vld [vmem:[#allocation141_spill] sm:$0xff] }
 0x1c1   :  { %19576 = vst [vmem:[#allocation241_spill] sm:$0xff] %v12026_v26  ;;  %v8456_v26 = vpop.eup %8455  ;;  %v7817_v14 = vmul.f32 -1.442695, %v2435_v8  ;;  %8471 = vpow2.f32 %v7785_v35  ;;  %v2128_v22 = vmul.f32 %v19584_v6, %v19583_v28  ;;  %v4014_v8 = vmul.f32 %v3921_v16, %v19587_v56  ;;  %v19588_v2 = vld [vmem:[#allocation95_spill] sm:$0xff]  ;;  %v12092_v56 = vpop.f32.mrf.mxu0 }
 0x1c2   :  { %19577 = vst [vmem:[#allocation242_spill] sm:$0xff] %v12039_v30  ;;  %v12056_v62 = vpop.eup %8457  ;;  %8473 = vrcp.f32 %v12039_v30  ;;  %v12073_v34 = vadd.f32 1.0, %v8456_v26  ;;  %v7553_v53 = vor.u32 %v8020_v61, %v7550_v60  ;;  %v7848_v35 = vmul.f32 -1.442695, %v3234_v10  ;;  %v19591_v61 = vld [vmem:[#allocation152_spill] sm:$0xff]  ;;  %v12090_v10 = vpop.f32.mrf.mxu3  ;;  %967 = vmatmul.bf16.gmra.mxu0 %v7549_v37 }
 0x1c3   :  { %19578 = vst [vmem:[#allocation243_spill] sm:$0xff] %v12042_v47  ;;  %v12063_v21 = vpop.eup %8459  ;;  %8475 = vrcp.f32 %v12042_v47  ;;  %v1796_v9 = vadd.f32 %v19588_v2, %v12059_v59  ;;  %v7840_v16 = vmul.f32 -1.442695, %v3226_v29  ;;  %v2436_v44 = vadd.f32 %v19590_v0, %v12059_v59  ;;  %4080 = vrot.lane.b32.xlu1 %v4014_v8, %s9212_s19  ;;  %v12114_v2 = vpop.f32.mrf.mxu1 }
 0x1c4   :  { %19580 = vst [vmem:[#allocation158_spill] sm:$0xff] %v12056_v62  ;;  %v12070_v62 = vpop.eup %8461  ;;  %8477 = vpow2.f32 %v7817_v14  ;;  %v3236_v60 = vadd.f32 %v19591_v61, %v12059_v59  ;;  %v19594_v14 = vld [vmem:[#allocation62_spill] sm:$0xff]  ;;  %v2129_v47 = vsub.f32 1.0, %v2128_v22  ;;  %v19597_v61 = vld [vmem:[#allocation163_spill] sm:$0xff]  ;;  %1136 = vmatmul.bf16.gmra.mxu1 %v7553_v53  ;;  %v1090_v22 = vadd.f32 %v11926_v23, %v11910_v39  ;;  %v19603_v23 = vld [vmem:[#allocation197_spill] sm:$0xff] }
 0x1c5   :  { %19581 = vst [vmem:[#allocation244_spill] sm:$0xff] %v12063_v21  ;;  %v8464_v42 = vpop.eup %8463  ;;  %v19589_v21 = vld [vmem:[#allocation210_spill] sm:$0xff]  ;;  %8479 = vrcp.f32 %v12065_v18  ;;  %v3229_v0 = vadd.f32 %v11789_v3, %v19597_v61  ;;  %v7818_v53 = vmul.f32 -1.442695, %v2436_v44  ;;  %v4016_v39 = vmul.f32 %v3925_v46, %v19603_v23 }
 0x1c6   :  { %19582 = vst [vmem:[#allocation245_spill] sm:$0xff] %v12065_v18  ;;  %3952 = vrot.lane.b32.xlu0 %v19589_v21, %s9213_s12  ;;  %v12084_v26 = vpop.eup %8465  ;;  %v12106_v21 = vadd.f32 %v11762_v45, %v19594_v14  ;;  %8481 = vrcp.f32 %v12073_v34  ;;  %v12110_v37 = vadd.f32 1.0, %v8464_v42  ;;  %v2108_v18 = vand.u32 2147483648, %v11065_v15  ;;  %v12119_v14 = vpop.permute.xlu0 %3174 }
 0x1c7   :  { %19585 = vst [vmem:[#allocation29_spill] sm:$0xff] %v12070_v62  ;;  %v12082_v62 = vadd.f32 %v11206_v55, %v2100_v11  ;;  %v8468_v29 = vpop.eup %8467  ;;  %8483 = vpow2.f32 %v7848_v35  ;;  %v7786_v45 = vmul.f32 -1.442695, %v1796_v9  ;;  %v2130_v9 = vmul.f32 %v19584_v6, %v2129_v47 }
 0x1c8   :  { %19586 = vst [vmem:[#allocation175_spill] sm:$0xff] %v12073_v34  ;;  %v8470_v8 = vpop.eup %8469  ;;  %v12127_v30 = vadd.f32 1.0, %v8468_v29  ;;  %8485 = vpow2.f32 %v7840_v16  ;;  %v7850_v34 = vmul.f32 -1.442695, %v3236_v60  ;;  %v7843_v29 = vmul.f32 -1.442695, %v3229_v0 }
 0x1c9   :  { %19595 = vst [vmem:[#allocation168_spill] sm:$0xff] %v12106_v21  ;;  %v8472_v4 = vpop.eup %8471  ;;  %v12131_v35 = vadd.f32 1.0, %v8470_v8  ;;  %8487 = vtanh.f32 %v11956_v52  ;;  %v7568_v16 = vld [vmem:[%s18418_s0 + $0x230] sm:$0xf]  ;;  %v12144_v44 = vor.u32 1.1754944e-38, %v2108_v18  ;;  %v19606_v8 = vld [vmem:[#allocation71_spill] sm:$0xff]  ;;  %v12153_v47 = vadd.f32 %v11947_v1, %v1090_v22 }
 0x1ca   :  { %19596 = vst [vmem:[#allocation210_spill] sm:$0xff] %v12110_v37  ;;  %v12125_v61 = vpop.eup %8473  ;;  %8489 = vrcp.f32 %v12110_v37  ;;  %v12137_v42 = vadd.f32 1.0, %v8472_v4  ;;  %v12150_v46 = vadd.f32 %v11881_v58, %v19606_v8  ;;  %v8025_v4 = vld [vmem:[%s18418_s0 + $0x238] sm:$0xf0]  ;;  %v7664_v18 = vld [vmem:[%s18418_s0 + $0x2f0] sm:$0xf]  ;;  %vm2133_vm3 = vweird.f32 %v19584_v6 }
 0x1cb   :  { %19598 = vst [vmem:[#allocation62_spill] sm:$0xff] %v12119_v14  ;;  %v12129_v21 = vpop.eup %8475  ;;  %8491 = vpow2.f32 %v7786_v45  ;;  %v8049_v0 = vld [vmem:[%s18418_s0 + $0x2f8] sm:$0xf0]  ;;  %3954 = vrot.lane.b32.xlu1 %v11739_v32, %s9213_s12  ;;  %v2136_v1 = vand.u32 2147483647, %v19583_v28  ;;  %v2138_v45 = vand.u32 2147483648, %v19583_v28  ;;  %v12184_v32 = vadd.f32 %v19584_v6, %v2130_v9  ;;  %vm12231_vm5 = vmor %vm2132_vm2, %vm2133_vm3 }
 0x1cc   :  { %19599 = vst [vmem:[#allocation163_spill] sm:$0xff] %v12125_v61  ;;  %v8478_v3 = vpop.eup %8477  ;;  %v12139_v61 = vpop.f32.mrf.mxu2  ;;  %8493 = vrcp.f32 %v12127_v30  ;;  %v8024_v8 = vld [vmem:[%s18418_s0 + $0x230] sm:$0xf0]  ;;  %v19610_v37 = vld [vmem:[#allocation173_spill] sm:$0xff]  ;;  %v7569_v25 = vor.u32 %v8025_v4, %v7568_v16  ;;  %v7665_v31 = vor.u32 %v8049_v0, %v7664_v18  ;;  %v19614_v9 = vld [vmem:[#allocation139_spill] sm:$0xff]  ;;  %v3237_v12 = vadd.f32 %v11799_v36, %v12153_v47 }
 0x1cd   :  { %19600 = vst [vmem:[#allocation246_spill] sm:$0xff] %v12127_v30  ;;  %v12146_v60 = vpop.eup %8479  ;;  %8495 = vrcp.f32 %v12131_v35  ;;  %v12175_v23 = vadd.f32 1.0, %v8478_v3  ;;  %v19611_v30 = vld [vmem:[#allocation77_spill] sm:$0xff]  ;;  %v2437_v27 = vadd.f32 %v19614_v9, %v12153_v47  ;;  %v8023_v16 = vld [vmem:[%s18418_s0 + $0x22c] sm:$0xf]  ;;  %v12215_v36 = vpop.f32.mrf.mxu1  ;;  %vm12247_vm7 = vcmp.eq.f32.partialorder %v2136_v1, 8.507059e+37 }
 0x1ce   :  { %19601 = vst [vmem:[#allocation247_spill] sm:$0xff] %v12129_v21  ;;  %4084 = vrot.lane.b32.xlu0 %v4016_v39, %s9212_s19  ;;  %v12166_v58 = vpop.eup %8481  ;;  %v7560_v39 = vld [vmem:[%s18418_s0 + $0x228] sm:$0xf]  ;;  %v2143_v21 = vmul.f32 %v19611_v30, %v19610_v37  ;;  %8497 = vpow2.f32 %v7818_v53  ;;  %v1093_v53 = vadd.f32 %v12024_v40, %v11987_v51  ;;  %v3917_v50 = vpop.permute.xlu0 %3916  ;;  %v7562_v4 = vld [vmem:[%s18418_s0 + $0x234] sm:$0xf0]  ;;  %1310 = vmatmul.bf16.gmra.mxu2 %v7569_v25  ;;  %vm2147_vm8 = vweird.f32 %v19610_v37  ;;  %v19666_v9 = vld [vmem:[#allocation142_spill] sm:$0xff] }
 0x1cf   :  { %19602 = vst [vmem:[#allocation248_spill] sm:$0xff] %v12131_v35  ;;  %v8484_v22 = vpop.eup %8483  ;;  %v19612_v35 = vld [vmem:[#allocation94_spill] sm:$0xff]  ;;  %8499 = vrcp.f32 %v12137_v42  ;;  %v7561_v51 = vor.u32 %v8024_v8, %v7560_v39  ;;  %v19617_v40 = vand.u32 2147483647, %v11065_v15  ;;  %v19625_v8 = vld [vmem:[#allocation136_spill] sm:$0xff]  ;;  %1350 = vmatmul.bf16.gmra.mxu3 %v7665_v31  ;;  %v1095_v31 = vadd.f32 %v12114_v2, %v12092_v56  ;;  %v19631_v56 = vld [vmem:[#allocation91_spill] sm:$0xff] }
 0x1d0   :  { %19604 = vst [vmem:[#allocation197_spill] sm:$0xff] %v12137_v42  ;;  %v1797_v3 = vadd.f32 %v19612_v35, %v12153_v47  ;;  %v3927_v35 = vpop.permute.xlu2 %3926  ;;  %v12211_v0 = vadd.f32 1.0, %v8484_v22  ;;  %8501 = vpow2.f32 %v7850_v34  ;;  %v3232_v42 = vadd.f32 %v11893_v57, %v11621_v20  ;;  %v19621_v22 = vld [vmem:[#allocation169_spill] sm:$0xff] }
 0x1d1   :  { %19605 = vst [vmem:[#allocation249_spill] sm:$0xff] %v12146_v60  ;;  %v12190_v60 = vpop.f32.mrf.mxu3  ;;  %vm12219_vm4 = vcmp.eq.f32.partialorder %v19617_v40, 8.507059e+37  ;;  %8503 = vrcp.f32 %v12175_v23  ;;  %v2144_v15 = vsub.f32 1.0, %v2143_v21  ;;  %v4017_v40 = vmul.f32 %v3927_v35, %v19625_v8 }
 0x1d2   :  { %19607 = vst [vmem:[#allocation71_spill] sm:$0xff] %v12150_v46  ;;  %v12192_v46 = vpop.f32.mrf.mxu0  ;;  %8505 = vtanh.f32 %v12059_v59  ;;  %v7787_v39 = vmul.f32 -1.442695, %v1797_v3  ;;  %v12242_v28 = vadd.f32 %v12061_v63, %v1093_v53  ;;  %972 = vmatmul.bf16.gmra.mxu0 %v7561_v51  ;;  %v7851_v35 = vmul.f32 -1.442695, %v3237_v12  ;;  %v3931_v53 = vpop.permute.xlu1 %3930  ;;  %v19634_v12 = vld [vmem:[#allocation126_spill] sm:$0xff] }
 0x1d3   :  { %19608 = vst [vmem:[#allocation250_spill] sm:$0xff] %v12166_v58  ;;  %v8486_v58 = vpop.eup %8485  ;;  %8507 = vpow2.f32 %v7843_v29  ;;  %4086 = vrot.lane.b32.xlu1 %v4017_v40, %s9212_s19  ;;  %v2145_v29 = vmul.f32 %v19611_v30, %v2144_v15  ;;  %v7846_v2 = vmul.f32 -1.442695, %v3232_v42  ;;  %vm2148_vm9 = vweird.f32 %v19611_v30 }
 0x1d4   :  { %19609 = vst [vmem:[#allocation251_spill] sm:$0xff] %v12175_v23  ;;  %v12194_v41 = vpop.eup %8487  ;;  %v12224_v14 = vadd.f32 1.0, %v8486_v58  ;;  %v7565_v58 = vor.u32 %v8023_v16, %v7562_v4  ;;  %8509 = vrcp.f32 %v12211_v0  ;;  %v1798_v3 = vadd.f32 %v19631_v56, %v12242_v28  ;;  %vm12304_vm10 = vmor %vm2147_vm8, %vm2148_vm9  ;;  %v19684_v23 = vld [vmem:[#allocation110_spill] sm:$0xff] }
 0x1d5   :  { %19613 = vst [vmem:[#allocation173_spill] sm:$0xff] %v12194_v41  ;;  %v12209_v18 = vpop.eup %8489  ;;  %v3235_v42 = vadd.f32 %v11958_v43, %v11956_v52  ;;  %v12283_v4 = vadd.f32 %v12139_v61, %v1095_v31  ;;  %v2151_v51 = vand.u32 2147483647, %v19610_v37  ;;  %v12294_v40 = vadd.f32 %v19611_v30, %v2145_v29  ;;  %v19637_v61 = vld [vmem:[#allocation107_spill] sm:$0xff]  ;;  %v19641_v29 = vld [vmem:[#allocation82_spill] sm:$0xff] }
 0x1d6   :  { %19615 = vst [vmem:[#allocation77_spill] sm:$0xff] %v12209_v18  ;;  %v8492_v41 = vpop.eup %8491  ;;  %v4012_v18 = vmul.f32 %v3917_v50, %v19621_v22  ;;  %v7819_v22 = vmul.f32 -1.442695, %v2437_v27  ;;  %3958 = vrot.lane.b32.xlu0 %v11968_v7, %s9213_s12  ;;  %v12256_v27 = vpop.f32.mrf.mxu2  ;;  %v2135_v7 = vsel %vm12231_vm5, %v19584_v6, %v12184_v32  ;;  %8511 = vrcp.f32 %v12224_v14  ;;  %1141 = vmatmul.bf16.gmra.mxu1 %v7565_v58 }
 0x1d7   :  { %19616 = vst [vmem:[#allocation252_spill] sm:$0xff] %v12211_v0  ;;  %v12235_v34 = vpop.eup %8493  ;;  %v12252_v25 = vadd.f32 1.0, %v8492_v41  ;;  %v2139_v41 = vor.u32 1.1754944e-38, %v2138_v45  ;;  %8513 = vpow2.f32 %v7787_v39  ;;  %v2438_v45 = vadd.f32 %v19634_v12, %v12242_v28 }
 0x1d8   :  { %19620 = vst [vmem:[#allocation253_spill] sm:$0xff] %v12224_v14  ;;  %v12239_v50 = vpop.eup %8495  ;;  %4076 = vrot.lane.b32.xlu2 %v4012_v18, %s9212_s19  ;;  %8515 = vpow2.f32 %v7819_v22  ;;  %v4019_v39 = vmul.f32 %v3931_v53, %v11828_v17  ;;  %v7788_v52 = vmul.f32 -1.442695, %v1798_v3  ;;  %v1799_v22 = vadd.f32 %v19637_v61, %v12283_v4 }
 0x1d9   :  { %19624 = vst [vmem:[#allocation169_spill] sm:$0xff] %v12235_v34  ;;  %v8498_v21 = vpop.eup %8497  ;;  %8517 = vrcp.f32 %v12252_v25  ;;  %v12285_v18 = vpop.f32.mrf.mxu3  ;;  %v2153_v17 = vand.u32 2147483648, %v19610_v37  ;;  %v19642_v3 = vsel %vm12099_vm1, %v11206_v55, %v12082_v62  ;;  %v19643_v37 = vld [vmem:[#allocation93_spill] sm:$0xff]  ;;  %v12338_v55 = vsel %vm12247_vm7, %v2139_v41, %v2135_v7 }
 0x1da   :  { %19626 = vst [vmem:[#allocation136_spill] sm:$0xff] %v12239_v50  ;;  %v12263_v63 = vpop.eup %8499  ;;  %v12272_v6 = vadd.f32 1.0, %v8498_v21  ;;  %8519 = vpow2.f32 %v7851_v35  ;;  %v12291_v8 = vpop.f32.mrf.mxu0  ;;  %v12324_v53 = vsel %vm12219_vm4, %v12144_v44, %v19642_v3  ;;  %v7849_v44 = vmul.f32 -1.442695, %v3235_v42  ;;  %v19656_v3 = vld [vmem:[#allocation104_spill] sm:$0xff] }
 0x1db   :  { %19629 = vst [vmem:[#allocation254_spill] sm:$0xff] %v12252_v25  ;;  %v8502_v1 = vpop.eup %8501  ;;  %8521 = vpow2.f32 %v7846_v2  ;;  %v1099_v21 = vpop.f32.mrf.mxu1  ;;  %v7820_v2 = vmul.f32 -1.442695, %v2438_v45  ;;  %3960 = vrot.lane.b32.xlu1 %v12084_v26, %s9213_s12  ;;  %vm12347_vm11 = vcmp.eq.f32.partialorder %v2151_v51, 8.507059e+37  ;;  %v7789_v59 = vmul.f32 -1.442695, %v1799_v22 }
 0x1dc   :  { %19630 = vst [vmem:[#allocation255_spill] sm:$0xff] %v12263_v63  ;;  %v12270_v16 = vpop.eup %8503  ;;  %v12288_v15 = vadd.f32 1.0, %v8502_v1  ;;  %8523 = vrcp.f32 %v12272_v6  ;;  %v12314_v1 = vadd.f32 %v11985_v33, %v19641_v29  ;;  %v19645_v33 = vld [vmem:[#allocation50_spill] sm:$0xff]  ;;  %v3923_v41 = vpop.permute.xlu0 %3922  ;;  %v2154_v26 = vor.u32 1.1754944e-38, %v2153_v17  ;;  %v19652_v22 = vld [vmem:[#allocation143_spill] sm:$0xff] }
 0x1dd   :  { %19632 = vst [vmem:[#allocation91_spill] sm:$0xff] %v12270_v16  ;;  %v12277_v32 = vpop.eup %8505  ;;  %8525 = vtanh.f32 %v12153_v47  ;;  %v12334_v11 = vadd.f32 %v12090_v10, %v19645_v33  ;;  %v2150_v47 = vsel %vm12304_vm10, %v19611_v30, %v12294_v40  ;;  %v12355_v45 = vadd.f32 %v19489_v49, %v11852_v19  ;;  %v3933_v51 = vpop.permute.xlu2 %3932 }
 0x1de   :  { %19633 = vst [vmem:[#allocation256_spill] sm:$0xff] %v12272_v6  ;;  %v8508_v20 = vpop.eup %8507  ;;  %4090 = vrot.lane.b32.xlu0 %v4019_v39, %s9212_s19  ;;  %8527 = vrcp.f32 %v12288_v15  ;;  %v1268_v7 = vpop.f32.mrf.mxu2  ;;  %v1098_v30 = vadd.f32 %v12215_v36, %v12192_v46  ;;  %v19650_v39 = vld [vmem:[#allocation120_spill] sm:$0xff]  ;;  %v2439_v31 = vadd.f32 %v19652_v22, %v12283_v4  ;;  %v3238_v36 = vadd.f32 %v12048_v54, %v12242_v28  ;;  %v19654_v46 = vld [vmem:[#allocation201_spill] sm:$0xff] }
 0x1df   :  { %19635 = vst [vmem:[#allocation126_spill] sm:$0xff] %v12288_v15  ;;  %v12296_v58 = vpop.eup %8509  ;;  %v12329_v0 = vadd.f32 1.0, %v8508_v20  ;;  %8529 = vpow2.f32 %v7788_v52  ;;  %vm2027_vm12 = vweird.f32 %v19650_v39  ;;  %v4015_v17 = vmul.f32 %v3923_v41, %v19654_v46  ;;  %v19662_v46 = vld [vmem:[#allocation85_spill] sm:$0xff] }
 0x1e0   :  { %19636 = vst [vmem:[#allocation257_spill] sm:$0xff] %v12296_v58  ;;  %v12309_v35 = vpop.eup %8511  ;;  %3950 = vrot.lane.b32.xlu2 %v19643_v37, %s9213_s12  ;;  %8531 = vpow2.f32 %v7820_v2  ;;  %v12381_v37 = vadd.f32 %v12190_v60, %v19656_v3  ;;  %v12392_v41 = vadd.f32 %v12256_v27, %v1098_v30  ;;  %vm12398_vm14 = vmor %vm2027_vm12, %vm2028_vm13  ;;  %v7821_v27 = vmul.f32 -1.442695, %v2439_v31  ;;  %v3937_v31 = vpop.permute.xlu1 %3936 }
 0x1e1   :  { %19640 = vst [vmem:[#allocation107_spill] sm:$0xff] %v12309_v35  ;;  %v8514_v58 = vpop.eup %8513  ;;  %8533 = vrcp.f32 %v12329_v0  ;;  %v12383_v33 = vpop.f32.mrf.mxu3  ;;  %v1100_v30 = vadd.f32 %v1099_v21, %v12291_v8  ;;  %v19664_v8 = vld [vmem:[#allocation103_spill] sm:$0xff]  ;;  %v4022_v35 = vmul.f32 %v3937_v31, %v12036_v48  ;;  %vm2073_vm1 = vweird.f32 %v19662_v46 }
 0x1e2   :  { %19644 = vst [vmem:[#allocation82_spill] sm:$0xff] %v12329_v0  ;;  %v8516_v62 = vpop.eup %8515  ;;  %v12357_v20 = vadd.f32 1.0, %v8514_v58  ;;  %8535 = vpow2.f32 %v7849_v44  ;;  %v3239_v58 = vadd.f32 %v11787_v38, %v12283_v4  ;;  %v7852_v0 = vmul.f32 -1.442695, %v3238_v36 }
 0x1e3   :  { %v12351_v10 = vpop.eup %8517  ;;  %v12363_v52 = vadd.f32 1.0, %v8516_v62  ;;  %8537 = vpow2.f32 %v7789_v59  ;;  %v4020_v62 = vmul.f32 %v3933_v51, %v11903_v5  ;;  %v2031_v5 = vand.u32 2147483647, %v19650_v39  ;;  %v1102_v51 = vpop.f32.mrf.mxu1 }
 0x1e4   :  { %19648 = vst [vmem:[#allocation93_spill] sm:$0xff] %v12351_v10  ;;  %v8520_v42 = vpop.eup %8519  ;;  %8539 = vrcp.f32 %v12357_v20  ;;  %v7853_v34 = vmul.f32 -1.442695, %v3239_v58  ;;  %v1800_v21 = vadd.f32 %v19664_v8, %v12392_v41  ;;  %v12437_v60 = vadd.f32 %v1268_v7, %v1100_v30 }
 0x1e5   :  { %19649 = vst [vmem:[#allocation50_spill] sm:$0xff] %v12357_v20  ;;  %v8522_v40 = vpop.eup %8521  ;;  %v12377_v2 = vadd.f32 1.0, %v8520_v42  ;;  %v933_v42 = vpop.f32.mrf.mxu0  ;;  %8541 = vrcp.f32 %v12363_v52  ;;  %4092 = vrot.lane.b32.xlu1 %v4020_v62, %s9212_s19  ;;  %v2030_v62 = vsel %vm12398_vm14, %v19489_v49, %v12355_v45  ;;  %vm12431_vm15 = vcmp.eq.f32.partialorder %v2031_v5, 8.507059e+37 }
 0x1e6   :  { %19651 = vst [vmem:[#allocation120_spill] sm:$0xff] %v12363_v52  ;;  %v12368_v19 = vpop.eup %8523  ;;  %v12389_v15 = vadd.f32 1.0, %v8522_v40  ;;  %3964 = vrot.lane.b32.xlu0 %v12277_v32, %s9213_s12  ;;  %v19661_v40 = vld [vmem:[#allocation151_spill] sm:$0xff]  ;;  %8543 = vtanh.f32 %v12242_v28  ;;  %v12414_v32 = vsel %vm12347_vm11, %v2154_v26, %v2150_v47  ;;  %v2033_v28 = vand.u32 2147483648, %v19650_v39  ;;  %v1271_v49 = vpop.f32.mrf.mxu2 }
 0x1e7   :  { %19653 = vst [vmem:[#allocation143_spill] sm:$0xff] %v12368_v19  ;;  %v12375_v29 = vpop.eup %8525  ;;  %v2068_v3 = vmul.f32 %v19662_v46, %v19661_v40  ;;  %8545 = vrcp.f32 %v12377_v2  ;;  %v2440_v26 = vadd.f32 %v19666_v9, %v12392_v41  ;;  %v3240_v5 = vadd.f32 %v11912_v13, %v12392_v41 }
 0x1e8   :  { %19655 = vst [vmem:[#allocation201_spill] sm:$0xff] %v12377_v2  ;;  %v12386_v44 = vpop.eup %8527  ;;  %4082 = vrot.lane.b32.xlu2 %v4015_v17, %s9212_s19  ;;  %8547 = vrcp.f32 %v12389_v15  ;;  %v7790_v7 = vmul.f32 -1.442695, %v1800_v21  ;;  %v2034_v30 = vor.u32 1.1754944e-38, %v2033_v28  ;;  %v1103_v14 = vadd.f32 %v1102_v51, %v933_v42  ;;  %v19677_v21 = vld [vmem:[#allocation130_spill] sm:$0xff] }
 0x1e9   :  { %19657 = vst [vmem:[#allocation104_spill] sm:$0xff] %v12386_v44  ;;  %v8530_v59 = vpop.eup %8529  ;;  %8549 = vpow2.f32 %v7821_v27  ;;  %v2069_v45 = vsub.f32 1.0, %v2068_v3  ;;  %v2441_v31 = vadd.f32 %v19677_v21, %v12437_v60  ;;  %v12468_v28 = vpop.f32.mrf.mxu3  ;;  %vm2072_vm0 = vweird.f32 %v19661_v40 }
 0x1ea   :  { %19658 = vst [vmem:[#allocation258_spill] sm:$0xff] %v12389_v15  ;;  %v8532_v44 = vpop.eup %8531  ;;  %v12427_v47 = vadd.f32 1.0, %v8530_v59  ;;  %8551 = vtanh.f32 %v12283_v4  ;;  %v19671_v59 = vld [vmem:[#allocation117_spill] sm:$0xff]  ;;  %v12485_v50 = vadd.f32 %v1271_v49, %v1103_v14  ;;  %vm12504_vm2 = vmor %vm2072_vm0, %vm2073_vm1 }
 0x1eb   :  { %v12416_v17 = vpop.eup %8533  ;;  %v12444_v15 = vadd.f32 %v12285_v18, %v19671_v59  ;;  %8553 = vpow2.f32 %v7853_v34  ;;  %v19675_v18 = vld [vmem:[#allocation102_spill] sm:$0xff]  ;;  %v7822_v34 = vmul.f32 -1.442695, %v2440_v26  ;;  %v1104_v13 = vpop.f32.mrf.mxu1 }
 0x1ec   :  { %19663 = vst [vmem:[#allocation151_spill] sm:$0xff] %v12416_v17  ;;  %v8536_v58 = vpop.eup %8535  ;;  %v12435_v17 = vadd.f32 1.0, %v8532_v44  ;;  %8555 = vrcp.f32 %v12427_v47  ;;  %v1801_v59 = vadd.f32 %v19675_v18, %v12437_v60 }
 0x1ed   :  { %19665 = vst [vmem:[#allocation85_spill] sm:$0xff] %v12427_v47  ;;  %v8538_v2 = vpop.eup %8537  ;;  %v12451_v27 = vadd.f32 1.0, %v8536_v58  ;;  %3966 = vrot.lane.b32.xlu1 %v12375_v29, %s9213_s12  ;;  %v19679_v58 = vld [vmem:[#allocation62_spill] sm:$0xff]  ;;  %v3929_v29 = vpop.permute.xlu0 %3928 }
 0x1ee   :  { %19669 = vst [vmem:[#allocation103_spill] sm:$0xff] %v12435_v17  ;;  %v12439_v39 = vpop.eup %8539  ;;  %v12456_v4 = vadd.f32 1.0, %v8538_v2  ;;  %4096 = vrot.lane.b32.xlu0 %v4022_v35, %s9212_s19  ;;  %8557 = vrcp.f32 %v12435_v17  ;;  %v2070_v2 = vmul.f32 %v19662_v46, %v2069_v45  ;;  %v7854_v35 = vmul.f32 -1.442695, %v3240_v5 }
 0x1ef   :  { %19670 = vst [vmem:[#allocation142_spill] sm:$0xff] %v12439_v39  ;;  %v12449_v44 = vpop.eup %8541  ;;  %8559 = vpow2.f32 %v7852_v0  ;;  %v3241_v26 = vadd.f32 %v19679_v58, %v12437_v60  ;;  %v2035_v45 = vsel %vm12431_vm15, %v2034_v30, %v2030_v62  ;;  %v7791_v17 = vmul.f32 -1.442695, %v1801_v59 }
 0x1f0   :  { %19672 = vst [vmem:[#allocation117_spill] sm:$0xff] %v12449_v44  ;;  %v12453_v3 = vpop.eup %8543  ;;  %3956 = vrot.lane.b32.xlu2 %v11883_v24, %s9213_s12  ;;  %v935_v24 = vpop.f32.mrf.mxu0  ;;  %8561 = vrcp.f32 %v12451_v27  ;;  %v7823_v58 = vmul.f32 -1.442695, %v2441_v31  ;;  %v2071_v16 = vadd.f32 %v19662_v46, %v2070_v2  ;;  %v2078_v62 = vand.u32 2147483648, %v19661_v40 }
 0x1f1   :  { %19673 = vst [vmem:[#allocation259_spill] sm:$0xff] %v12451_v27  ;;  %v12463_v48 = vpop.eup %8545  ;;  %8563 = vrcp.f32 %v12456_v4  ;;  %v3939_v44 = vpop.permute.xlu2 %3938  ;;  %v2076_v27 = vand.u32 2147483647, %v19661_v40  ;;  %v1802_v59 = vadd.f32 %v19684_v23, %v12485_v50  ;;  %v4018_v14 = vmul.f32 %v3929_v29, %v2035_v45  ;;  %v19689_v45 = vld [vmem:[#allocation149_spill] sm:$0xff] }
 0x1f2   :  { %19674 = vst [vmem:[#allocation260_spill] sm:$0xff] %v12456_v4  ;;  %v12473_v42 = vpop.eup %8547  ;;  %8565 = vpow2.f32 %v7790_v7  ;;  %v7855_v19 = vmul.f32 -1.442695, %v3241_v26  ;;  %v4023_v7 = vmul.f32 %v3939_v44, %v12324_v53  ;;  %v1273_v31 = vpop.f32.mrf.mxu2  ;;  %v19690_v26 = vld [vmem:[#allocation229_spill] sm:$0xff]  ;;  %v1105_v29 = vadd.f32 %v1104_v13, %v935_v24 }
 0x1f3   :  { %19676 = vst [vmem:[#allocation102_spill] sm:$0xff] %v12463_v48  ;;  %v8550_v51 = vpop.eup %8549  ;;  %v19680_v48 = vld [vmem:[#allocation164_spill] sm:$0xff]  ;;  %8567 = vpow2.f32 %v7822_v34  ;;  %v3242_v53 = vadd.f32 %v19690_v26, %v12485_v50  ;;  %v3943_v44 = vpop.permute.xlu1 %3942  ;;  %vm12518_vm3 = vcmp.eq.f32.partialorder %v2076_v27, 8.507059e+37  ;;  %v7792_v26 = vmul.f32 -1.442695, %v1802_v59  ;;  %v19697_v27 = vld [vmem:[#allocation137_spill] sm:$0xff] }
 0x1f4   :  { %19678 = vst [vmem:[#allocation261_spill] sm:$0xff] %v12473_v42  ;;  %v19681_v42 = vld [vmem:[#allocation172_spill] sm:$0xff]  ;;  %v8552_v5 = vpop.eup %8551  ;;  %v12492_v30 = vadd.f32 1.0, %v8550_v51  ;;  %8569 = vtanh.f32 %v12392_v41  ;;  %v2442_v41 = vadd.f32 %v19689_v45, %v12485_v50  ;;  %v12533_v24 = vadd.f32 %v12383_v33, %v19697_v27 }
 0x1f5   :  { %v2113_v0 = vmul.f32 %v19681_v42, %v19680_v48  ;;  %v8554_v52 = vpop.eup %8553  ;;  %8571 = vpow2.f32 %v7854_v35  ;;  %4098 = vrot.lane.b32.xlu1 %v4023_v7, %s9212_s19  ;;  %v19698_v7 = vld [vmem:[#allocation86_spill] sm:$0xff]  ;;  %v12540_v47 = vmul.f32 -1.442695, %v3242_v53  ;;  %v12545_v33 = vadd.f32 %v1273_v31, %v1105_v29 }
 0x1f6   :  { %v12490_v36 = vpop.eup %8555  ;;  %19683 = vst [vmem:[#allocation172_spill] sm:$0xff] %v12492_v30  ;;  %v12508_v6 = vadd.f32 1.0, %v8554_v52  ;;  %3970 = vrot.lane.b32.xlu0 %v8552_v5, %s9213_s12  ;;  %8573 = vpow2.f32 %v7791_v17  ;;  %v2079_v52 = vor.u32 1.1754944e-38, %v2078_v62  ;;  %v19696_v5 = vld [vmem:[#allocation198_spill] sm:$0xff]  ;;  %v2075_v17 = vsel %vm12504_vm2, %v19662_v46, %v2071_v16 }
 0x1f7   :  { %19682 = vst [vmem:[#allocation164_spill] sm:$0xff] %v12490_v36  ;;  %v12496_v49 = vpop.eup %8557  ;;  %v2114_v34 = vsub.f32 1.0, %v2113_v0  ;;  %8575 = vrcp.f32 %v12492_v30  ;;  %v4025_v62 = vmul.f32 %v3943_v44, %v12338_v55  ;;  %v7824_v30 = vmul.f32 -1.442695, %v2442_v41  ;;  %v1107_v55 = vpop.f32.mrf.mxu1 }
 0x1f8   :  { %19685 = vst [vmem:[#allocation262_spill] sm:$0xff] %v12496_v49  ;;  %v8560_v51 = vpop.eup %8559  ;;  %4088 = vrot.lane.b32.xlu2 %v4018_v14, %s9212_s19  ;;  %v19695_v49 = vld [vmem:[#allocation183_spill] sm:$0xff]  ;;  %8577 = vpow2.f32 %v7823_v58  ;;  %v12536_v14 = vpop.f32.mrf.mxu3  ;;  %v2080_v44 = vsel %vm12518_vm3, %v2079_v52, %v2075_v17  ;;  %vm2117_vm4 = vweird.f32 %v19680_v48  ;;  %vm2118_vm5 = vweird.f32 %v19681_v42 }
 0x1f9   :  { %19688 = vst [vmem:[#allocation263_spill] sm:$0xff] %v12508_v6  ;;  %v12516_v40 = vpop.eup %8561  ;;  %v2173_v36 = vmul.f32 %v19696_v5, %v19695_v49  ;;  %8579 = vrcp.f32 %v12508_v6  ;;  %v2115_v16 = vmul.f32 %v19681_v42, %v2114_v34  ;;  %v12543_v2 = vadd.f32 1.0, %v8560_v51  ;;  %v938_v58 = vpop.f32.mrf.mxu0  ;;  %vm12604_vm10 = vmor %vm2117_vm4, %vm2118_vm5 }
 0x1fa   :  { %19691 = vst [vmem:[#allocation264_spill] sm:$0xff] %v12516_v40  ;;  %v12523_v35 = vpop.eup %8563  ;;  %8581 = vpow2.f32 %v7855_v19  ;;  %v19702_v19 = vld [vmem:[#allocation109_spill] sm:$0xff]  ;;  %v2121_v51 = vand.u32 2147483647, %v19680_v48  ;;  %v3945_v0 = vpop.permute.xlu2 %3944  ;;  %v1108_v52 = vadd.f32 %v1107_v55, %v938_v58  ;;  %v2123_v58 = vand.u32 2147483648, %v19680_v48  ;;  %v19709_v55 = vld [vmem:[#allocation84_spill] sm:$0xff] }
 0x1fb   :  { %19694 = vst [vmem:[#allocation265_spill] sm:$0xff] %v12523_v35  ;;  %v8566_v13 = vpop.eup %8565  ;;  %8583 = vpow2.f32 %v7792_v26  ;;  %v2174_v41 = vsub.f32 1.0, %v2173_v36  ;;  %v1803_v31 = vadd.f32 %v19702_v19, %v12545_v33  ;;  %v12561_v26 = vadd.f32 %v19681_v42, %v2115_v16  ;;  %v19704_v36 = vld [vmem:[#allocation173_spill] sm:$0xff]  ;;  %v19719_v48 = vld [vmem:[#allocation47_spill] sm:$0xff] }
 0x1fc   :  { %v8568_v59 = vpop.eup %8567  ;;  %19699 = vst [vmem:[#allocation183_spill] sm:$0xff] %v12543_v2  ;;  %v12549_v40 = vadd.f32 1.0, %v8566_v13  ;;  %8585 = vtanh.f32 %v12485_v50  ;;  %v19706_v13 = vld [vmem:[#allocation144_spill] sm:$0xff]  ;;  %vm2177_vm7 = vweird.f32 %v19695_v49  ;;  %vm12585_vm8 = vcmp.eq.f32.partialorder %v2121_v51, 8.507059e+37 }
 0x1fd   :  { %v8570_v46 = vpop.eup %8569  ;;  %v12552_v34 = vadd.f32 1.0, %v8568_v59  ;;  %8587 = vpow2.f32 %v7824_v30  ;;  %v2443_v30 = vadd.f32 %v19706_v13, %v12545_v33  ;;  %v1276_v59 = vpop.f32.mrf.mxu2  ;;  %vm2178_vm9 = vweird.f32 %v19696_v5 }
 0x1fe   :  { %v8572_v27 = vpop.eup %8571  ;;  %19700 = vst [vmem:[#allocation198_spill] sm:$0xff] %v12549_v40  ;;  %4102 = vrot.lane.b32.xlu0 %v4025_v62, %s9212_s19  ;;  %8589 = vrcp.f32 %v12543_v2  ;;  %3972 = vrot.lane.b32.xlu1 %v8570_v46, %s9213_s12  ;;  %v7793_v2 = vmul.f32 -1.442695, %v1803_v31  ;;  %v3935_v46 = vpop.permute.xlu0 %3934  ;;  %v2181_v31 = vand.u32 2147483647, %v19695_v49  ;;  %v2183_v51 = vand.u32 2147483648, %v19695_v49  ;;  %vm12617_vm11 = vmor %vm2177_vm7, %vm2178_vm9 }
 0x1ff   :  { %v8574_v53 = vpop.eup %8573  ;;  %19701 = vst [vmem:[#allocation137_spill] sm:$0xff] %v12552_v34  ;;  %v12568_v17 = vadd.f32 1.0, %v8572_v27  ;;  %8591 = vrcp.f32 %v12549_v40  ;;  %v2175_v27 = vmul.f32 %v19696_v5, %v2174_v41  ;;  %v12593_v41 = vadd.f32 %v1276_v59, %v1108_v52  ;;  %v19725_v49 = vld [vmem:[#allocation28_spill] sm:$0xff] }
 0x200   :  { %v12558_v29 = vpop.eup %8575  ;;  %3962 = vrot.lane.b32.xlu2 %v19704_v36, %s9213_s12  ;;  %v12577_v62 = vadd.f32 1.0, %v8574_v53  ;;  %v3243_v36 = vadd.f32 %v19709_v55, %v12545_v33  ;;  %8593 = vrcp.f32 %v12552_v34  ;;  %vm12639_vm12 = vcmp.eq.f32.partialorder %v2181_v31, 8.507059e+37 }
 0x201   :  { %19703 = vst [vmem:[#allocation86_spill] sm:$0xff] %v12558_v29  ;;  %v8578_v50 = vpop.eup %8577  ;;  %v4026_v29 = vmul.f32 %v3945_v0, %v12414_v32  ;;  %8595 = vtanh.f32 %v12437_v60  ;;  %v7825_v32 = vmul.f32 -1.442695, %v2443_v30  ;;  %v1316_v0 = vpop.f32.mrf.mxu3  ;;  %v2176_v13 = vadd.f32 %v19696_v5, %v2175_v27  ;;  %v19720_v27 = vld [vmem:[#allocation176_spill] sm:$0xff] }
 0x202   :  { %19705 = vst [vmem:[#allocation173_spill] sm:$0xff] %v12568_v17  ;;  %v12574_v16 = vpop.eup %8579  ;;  %v12589_v40 = vadd.f32 1.0, %v8578_v50  ;;  %8597 = vrcp.f32 %v12568_v17  ;;  %v7857_v50 = vmul.f32 -1.442695, %v3243_v36  ;;  %v4021_v60 = vmul.f32 %v3935_v46, %v2080_v44  ;;  %v19721_v46 = vld [vmem:[#allocation189_spill] sm:$0xff] }
 0x203   :  { %19707 = vst [vmem:[#allocation266_spill] sm:$0xff] %v12574_v16  ;;  %v8582_v6 = vpop.eup %8581  ;;  %8599 = vrcp.f32 %v12577_v62  ;;  %v4590_v36 = vadd.f32 %v19719_v48, %v12593_v41  ;;  %v2158_v17 = vmul.f32 %v19721_v46, %v19720_v27  ;;  %v1317_v19 = vadd.f32 %v1316_v0, %v19725_v49  ;;  %v940_v0 = vpop.f32.mrf.mxu0 }
 0x204   :  { %19708 = vst [vmem:[#allocation267_spill] sm:$0xff] %v12577_v62  ;;  %v8584_v53 = vpop.eup %8583  ;;  %v12610_v59 = vadd.f32 1.0, %v8582_v6  ;;  %8601 = vpow2.f32 %v12540_v47  ;;  %v19724_v47 = vld [vmem:[#allocation48_spill] sm:$0xff]  ;;  %v19736_v52 = vand.u32 2147483647, %v19698_v7  ;;  %vm2162_vm14 = vweird.f32 %v19720_v27 }
 0x205   :  { %19712 = vst [vmem:[#allocation268_spill] sm:$0xff] %v12589_v40  ;;  %v8586_v55 = vpop.eup %8585  ;;  %8603 = vrcp.f32 %v12589_v40  ;;  %v12628_v6 = vadd.f32 1.0, %v8584_v53  ;;  %v2184_v53 = vor.u32 1.1754944e-38, %v2183_v51  ;;  %v7858_v51 = vmul.f32 -1.442695, %v4590_v36 }
 0x206   :  { %v8588_v34 = vpop.eup %8587  ;;  %19716 = vst [vmem:[#allocation270_spill] sm:$0xff] %v12610_v59  ;;  %3976 = vrot.lane.b32.xlu0 %v8586_v55, %s9213_s12  ;;  %8605 = vpow2.f32 %v7793_v2  ;;  %4104 = vrot.lane.b32.xlu1 %v4026_v29, %s9212_s19  ;;  %v2180_v55 = vsel %vm12617_vm11, %v19696_v5, %v2176_v13  ;;  %v2120_v2 = vsel %vm12604_vm10, %v19681_v42, %v12561_v26  ;;  %v3949_v29 = vpop.permute.xlu1 %3948  ;;  %v2159_v49 = vsub.f32 1.0, %v2158_v17  ;;  %v19733_v5 = vld [vmem:[#allocation150_spill] sm:$0xff]  ;;  %v19735_v26 = vld [vmem:[#allocation75_spill] sm:$0xff] }
 0x207   :  { %v12608_v30 = vpop.eup %8589  ;;  %19723 = vst [vmem:[#allocation176_spill] sm:$0xff] %v12628_v6  ;;  %v12637_v48 = vadd.f32 1.0, %v8588_v34  ;;  %8607 = vpow2.f32 %v7825_v32  ;;  %v2124_v34 = vor.u32 1.1754944e-38, %v2123_v58  ;;  %v19731_v32 = vld [vmem:[#allocation155_spill] sm:$0xff]  ;;  %v12662_v13 = vadd.f32 %v12468_v28, %v19733_v5  ;;  %v19739_v17 = vld [vmem:[#allocation90_spill] sm:$0xff] }
 0x208   :  { %19715 = vst [vmem:[#allocation269_spill] sm:$0xff] %v12608_v30  ;;  %v12625_v62 = vpop.eup %8591  ;;  %v5230_v30 = vadd.f32 %v19724_v47, %v12593_v41  ;;  %4094 = vrot.lane.b32.xlu2 %v4021_v60, %s9212_s19  ;;  %v1109_v60 = vpop.f32.mrf.mxu1  ;;  %8609 = vrcp.f32 %v12610_v59  ;;  %v5902_v47 = vadd.f32 %v19731_v32, %v12593_v41  ;;  %v4606_v58 = vadd.f32 %v19735_v26, %v1317_v19 }
 0x209   :  { %19722 = vst [vmem:[#allocation47_spill] sm:$0xff] %v12625_v62  ;;  %v12635_v35 = vpop.eup %8593  ;;  %8611 = vrcp.f32 %v12628_v6  ;;  %vm12668_vm13 = vcmp.eq.f32.partialorder %v19736_v52, 8.507059e+37  ;;  %v12675_v32 = vadd.f32 %v12536_v14, %v19739_v17  ;;  %v2185_v28 = vsel %vm12639_vm12, %v2184_v53, %v2180_v55  ;;  %v19743_v14 = vld [vmem:[#allocation127_spill] sm:$0xff] }
 0x20a   :  { %19726 = vst [vmem:[#allocation189_spill] sm:$0xff] %v12635_v35  ;;  %v12644_v40 = vpop.eup %8595  ;;  %v7890_v42 = vmul.f32 -1.442695, %v5230_v30  ;;  %8613 = vrcp.f32 %v12637_v48  ;;  %v1110_v5 = vadd.f32 %v1109_v60, %v940_v0  ;;  %v4028_v26 = vmul.f32 %v3949_v29, %v2185_v28  ;;  %v19745_v0 = vld [vmem:[#allocation129_spill] sm:$0xff]  ;;  %v19755_v28 = vld [vmem:[#allocation123_spill] sm:$0xff] }
 0x20b   :  { %19727 = vst [vmem:[#allocation48_spill] sm:$0xff] %v12637_v48  ;;  %v12653_v31 = vpop.eup %8597  ;;  %8615 = vpow2.f32 %v7857_v50  ;;  %v2125_v52 = vsel %vm12585_vm8, %v2124_v34, %v2120_v2  ;;  %v19742_v35 = vand.u32 2147483648, %v19698_v7  ;;  %v7922_v6 = vmul.f32 -1.442695, %v5902_v47  ;;  %v1318_v34 = vpop.f32.mrf.mxu3 }
 0x20c   :  { %19730 = vst [vmem:[#allocation28_spill] sm:$0xff] %v12653_v31  ;;  %v12658_v44 = vpop.eup %8599  ;;  %v1278_v31 = vpop.f32.mrf.mxu2  ;;  %8617 = vpow2.f32 %v7858_v51  ;;  %v5246_v17 = vadd.f32 %v19743_v14, %v1317_v19  ;;  %v2160_v62 = vmul.f32 %v19721_v46, %v2159_v49  ;;  %v7874_v50 = vmul.f32 -1.442695, %v4606_v58  ;;  %v19756_v14 = vld [vmem:[#allocation56_spill] sm:$0xff] }
 0x20d   :  { %19732 = vst [vmem:[#allocation155_spill] sm:$0xff] %v12658_v44  ;;  %v8602_v36 = vpop.eup %8601  ;;  %v2614_v44 = vor.u32 1.1754944e-38, %v19742_v35  ;;  %8619 = vpow2.f32 %v7890_v42  ;;  %v5918_v60 = vadd.f32 %v19745_v0, %v1317_v19  ;;  %v12695_v7 = vadd.f32 %v1278_v31, %v1110_v5  ;;  %v3941_v47 = vpop.permute.xlu0 %3940 }
 0x20e   :  { %19734 = vst [vmem:[#allocation150_spill] sm:$0xff] %v12662_v13  ;;  %v12679_v30 = vpop.eup %8603  ;;  %v12687_v55 = vadd.f32 1.0, %v8602_v36  ;;  %4108 = vrot.lane.b32.xlu0 %v4028_v26, %s9212_s19  ;;  %8621 = vtanh.f32 %v1317_v19  ;;  %vm2163_vm15 = vweird.f32 %v19721_v46  ;;  %v2166_v29 = vand.u32 2147483647, %v19720_v27 }
 0x20f   :  { %19740 = vst [vmem:[#allocation75_spill] sm:$0xff] %v12675_v32  ;;  %v8606_v48 = vpop.eup %8605  ;;  %8623 = vtanh.f32 %v12545_v33  ;;  %v7906_v31 = vmul.f32 -1.442695, %v5246_v17  ;;  %v2161_v49 = vadd.f32 %v19721_v46, %v2160_v62  ;;  %v19751_v33 = vld [vmem:[#allocation51_spill] sm:$0xff]  ;;  %vm12718_vm0 = vmor %vm2162_vm14, %vm2163_vm15  ;;  %v5231_v17 = vadd.f32 %v19756_v14, %v12695_v7  ;;  %v19757_v62 = vld [vmem:[#allocation145_spill] sm:$0xff] }
 0x210   :  { %19741 = vst [vmem:[#allocation90_spill] sm:$0xff] %v12679_v30  ;;  %v8608_v53 = vpop.eup %8607  ;;  %3968 = vrot.lane.b32.xlu2 %v12453_v3, %s9213_s12  ;;  %v12701_v2 = vadd.f32 1.0, %v8606_v48  ;;  %v2168_v3 = vand.u32 2147483648, %v19720_v27  ;;  %8625 = vpow2.f32 %v7922_v6  ;;  %v7938_v48 = vmul.f32 -1.442695, %v5918_v60  ;;  %v19754_v6 = vld [vmem:[#allocation106_spill] sm:$0xff]  ;;  %v1112_v59 = vpop.f32.mrf.mxu1 }
 0x211   :  { %19744 = vst [vmem:[#allocation127_spill] sm:$0xff] %v12687_v55  ;;  %v12693_v35 = vpop.eup %8609  ;;  %v12708_v19 = vadd.f32 1.0, %v8608_v53  ;;  %8627 = vrcp.f32 %v12687_v55  ;;  %v4591_v58 = vadd.f32 %v19751_v33, %v12695_v7  ;;  %v2633_v5 = vmul.f32 %v19755_v28, %v19754_v6  ;;  %v19759_v60 = vld [vmem:[#allocation101_spill] sm:$0xff]  ;;  %v19760_v33 = vld [vmem:[#allocation140_spill] sm:$0xff] }
 0x212   :  { %19746 = vst [vmem:[#allocation129_spill] sm:$0xff] %v12693_v35  ;;  %v12699_v16 = vpop.eup %8611  ;;  %8629 = vpow2.f32 %v7874_v50  ;;  %v12727_v53 = vadd.f32 %v1318_v34, %v19757_v62  ;;  %v19761_v27 = vsel %vm11751_vm6, %v19759_v60, %v19760_v33  ;;  %v4024_v30 = vmul.f32 %v3941_v47, %v2125_v52  ;;  %v19765_v62 = vld [vmem:[#allocation92_spill] sm:$0xff]  ;;  %v943_v60 = vpop.f32.mrf.mxu0 }
 0x213   :  { %19747 = vst [vmem:[#allocation271_spill] sm:$0xff] %v12699_v16  ;;  %v12706_v51 = vpop.eup %8613  ;;  %v2615_v55 = vsel %vm12668_vm13, %v2614_v44, %v19761_v27  ;;  %8631 = vrcp.f32 %v12701_v2  ;;  %vm12737_vm1 = vcmp.eq.f32.partialorder %v2166_v29, 8.507059e+37  ;;  %v2169_v14 = vor.u32 1.1754944e-38, %v2168_v3  ;;  %v19766_v3 = vld [vmem:[#allocation8_spill] sm:$0xff] }
 0x214   :  { %19748 = vst [vmem:[#allocation272_spill] sm:$0xff] %v12701_v2  ;;  %v8616_v42 = vpop.eup %8615  ;;  %8633 = vrcp.f32 %v12708_v19  ;;  %v5903_v0 = vadd.f32 %v19765_v62, %v12695_v7  ;;  %v2165_v44 = vsel %vm12718_vm0, %v19721_v46, %v2161_v49  ;;  %v7859_v29 = vmul.f32 -1.442695, %v4591_v58  ;;  %v19768_v46 = vld [vmem:[#allocation73_spill] sm:$0xff] }
 0x215   :  { %19749 = vst [vmem:[#allocation273_spill] sm:$0xff] %v12706_v51  ;;  %v8618_v26 = vpop.eup %8617  ;;  %v12742_v34 = vadd.f32 1.0, %v8616_v42  ;;  %8635 = vpow2.f32 %v7906_v31  ;;  %v12754_v47 = vmul.f32 %v2615_v55, %v19766_v3  ;;  %v2634_v42 = vsub.f32 1.0, %v2633_v5  ;;  %v19773_v3 = vld [vmem:[#allocation96_spill] sm:$0xff] }
 0x216   :  { %19750 = vst [vmem:[#allocation274_spill] sm:$0xff] %v12708_v19  ;;  %v8620_v35 = vpop.eup %8619  ;;  %v12756_v27 = vadd.f32 1.0, %v8618_v26  ;;  %8637 = vtanh.f32 %v12593_v41  ;;  %v7891_v62 = vmul.f32 -1.442695, %v5231_v17  ;;  %v4607_v49 = vadd.f32 %v19768_v46, %v12727_v53  ;;  %v19772_v26 = vld [vmem:[#allocation223_spill] sm:$0xff]  ;;  %v1281_v17 = vpop.f32.mrf.mxu2 }
 0x217   :  { %v8622_v51 = vpop.eup %8621  ;;  %19764 = vst [vmem:[#allocation51_spill] sm:$0xff] %v12742_v34  ;;  %v12763_v31 = vadd.f32 1.0, %v8620_v35  ;;  %8639 = vpow2.f32 %v7938_v48  ;;  %v1113_v55 = vadd.f32 %v1112_v59, %v943_v60  ;;  %v7923_v5 = vmul.f32 -1.442695, %v5903_v0  ;;  %v19774_v19 = vld [vmem:[#allocation111_spill] sm:$0xff] }
 0x218   :  { %v12749_v52 = vpop.eup %8623  ;;  %6638 = vrot.lane.b32.xlu0 %v8622_v51, %s9213_s12  ;;  %4100 = vrot.lane.b32.xlu2 %v4024_v30, %s9212_s19  ;;  %19767 = vst [vmem:[#allocation106_spill] sm:$0xff] %v12756_v27  ;;  %v19771_v30 = vld [vmem:[#allocation115_spill] sm:$0xff]  ;;  %8641 = vrcp.f32 %v12742_v34  ;;  %v5919_v41 = vadd.f32 %v19772_v26, %v12727_v53  ;;  %v2618_v46 = vmul.f32 %v19774_v19, %v19773_v3  ;;  %v2641_v60 = vand.u32 2147483647, %v19754_v6  ;;  %v1114_v16 = vpop.f32.mrf.mxu1 }
 0x219   :  { %v8626_v33 = vpop.eup %8625  ;;  %19770 = vst [vmem:[#allocation56_spill] sm:$0xff] %v12763_v31  ;;  %v5247_v51 = vadd.f32 %v19771_v30, %v12727_v53  ;;  %8643 = vpow2.f32 %v7859_v29  ;;  %v2635_v48 = vmul.f32 %v19755_v28, %v2634_v42  ;;  %v7875_v0 = vmul.f32 -1.442695, %v4607_v49 }
 0x21a   :  { %v12761_v36 = vpop.eup %8627  ;;  %v12774_v35 = vadd.f32 1.0, %v8626_v33  ;;  %8645 = vrcp.f32 %v12756_v27  ;;  %v2170_v30 = vsel %vm12737_vm1, %v2169_v14, %v2165_v44  ;;  %v2643_v26 = vand.u32 2147483648, %v19754_v6 }
 0x21b   :  { %19769 = vst [vmem:[#allocation123_spill] sm:$0xff] %v12761_v36  ;;  %v8630_v58 = vpop.eup %8629  ;;  %8647 = vrcp.f32 %v12763_v31  ;;  %v7907_v29 = vmul.f32 -1.442695, %v5247_v51  ;;  %v12787_v34 = vadd.f32 %v1281_v17, %v1113_v55  ;;  %vm2637_vm6 = vweird.f32 %v19754_v6  ;;  %v19783_v55 = vld [vmem:[#allocation53_spill] sm:$0xff] }
 0x21c   :  { %v12772_v2 = vpop.eup %8631  ;;  %19776 = vst [vmem:[#allocation46_spill] sm:$0xff] %v12774_v35  ;;  %v12785_v33 = vadd.f32 1.0, %v8630_v58  ;;  %8649 = vpow2.f32 %v7891_v62  ;;  %v2619_v49 = vsub.f32 1.0, %v2618_v46  ;;  %v2636_v14 = vadd.f32 %v19755_v28, %v2635_v48  ;;  %v19785_v48 = vld [vmem:[#allocation36_spill] sm:$0xff]  ;;  %v19792_v6 = vld [vmem:[#allocation133_spill] sm:$0xff] }
 0x21d   :  { %19775 = vst [vmem:[#allocation145_spill] sm:$0xff] %v12772_v2  ;;  %v12778_v59 = vpop.eup %8633  ;;  %v1321_v2 = vpop.f32.mrf.mxu3  ;;  %8651 = vrcp.f32 %v12774_v35  ;;  %vm2638_vm2 = vweird.f32 %v19755_v28  ;;  %vm12797_vm3 = vcmp.eq.f32.partialorder %v2641_v60, 8.507059e+37  ;;  %v4592_v58 = vadd.f32 %v19783_v55, %v12787_v34 }
 0x21e   :  { %19777 = vst [vmem:[#allocation101_spill] sm:$0xff] %v12778_v59  ;;  %v8636_v36 = vpop.eup %8635  ;;  %v7939_v59 = vmul.f32 -1.442695, %v5919_v41  ;;  %8653 = vpow2.f32 %v7923_v5  ;;  %v2644_v41 = vor.u32 1.1754944e-38, %v2643_v26  ;;  %v12811_v60 = vadd.f32 %v1321_v2, %v19785_v48  ;;  %v3947_v5 = vpop.permute.xlu0 %3946  ;;  %vm12822_vm5 = vmor %vm2637_vm6, %vm2638_vm2 }
 0x21f   :  { %19778 = vst [vmem:[#allocation140_spill] sm:$0xff] %v12785_v33  ;;  %v12789_v42 = vpop.eup %8637  ;;  %v12803_v51 = vadd.f32 1.0, %v8636_v36  ;;  %8655 = vrcp.f32 %v12785_v33  ;;  %vm2622_vm4 = vweird.f32 %v19773_v3  ;;  %v2620_v55 = vmul.f32 %v19774_v19, %v2619_v49  ;;  %v945_v33 = vpop.f32.mrf.mxu0 }
 0x220   :  { %v8640_v50 = vpop.eup %8639  ;;  %3974 = vrot.lane.b32.xlu2 %v12644_v40, %s9213_s12  ;;  %v19784_v40 = vld [vmem:[#allocation64_spill] sm:$0xff]  ;;  %8657 = vpow2.f32 %v7875_v0  ;;  %vm2623_vm7 = vweird.f32 %v19774_v19  ;;  %v2640_v0 = vsel %vm12822_vm5, %v19755_v28, %v2636_v14  ;;  %v7860_v49 = vmul.f32 -1.442695, %v4592_v58  ;;  %v19796_v28 = vld [vmem:[#allocation81_spill] sm:$0xff] }
 0x221   :  { %v12801_v62 = vpop.eup %8641  ;;  %19782 = vst [vmem:[#allocation73_spill] sm:$0xff] %v12803_v51  ;;  %v5232_v46 = vadd.f32 %v19784_v40, %v12787_v34  ;;  %v12816_v36 = vadd.f32 1.0, %v8640_v50  ;;  %8659 = vtanh.f32 %v12695_v7  ;;  %v2626_v50 = vand.u32 2147483647, %v19773_v3  ;;  %v19791_v40 = vld [vmem:[#allocation113_spill] sm:$0xff]  ;;  %vm12872_vm8 = vmor %vm2622_vm4, %vm2623_vm7 }
 0x222   :  { %19781 = vst [vmem:[#allocation92_spill] sm:$0xff] %v12801_v62  ;;  %v8644_v17 = vpop.eup %8643  ;;  %v2648_v48 = vmul.f32 %v19792_v6, %v19791_v40  ;;  %8661 = vrcp.f32 %v12803_v51  ;;  %v4608_v14 = vadd.f32 %v19796_v28, %v12811_v60  ;;  %v4027_v26 = vmul.f32 %v3947_v5, %v2170_v30 }
 0x223   :  { %v12814_v35 = vpop.eup %8645  ;;  %19787 = vst [vmem:[#allocation223_spill] sm:$0xff] %v12816_v36  ;;  %v12838_v31 = vadd.f32 1.0, %v8644_v17  ;;  %8663 = vpow2.f32 %v7907_v29  ;;  %v7892_v7 = vmul.f32 -1.442695, %v5232_v46  ;;  %v19797_v17 = vld [vmem:[#allocation132_spill] sm:$0xff]  ;;  %v2645_v58 = vsel %vm12797_vm3, %v2644_v41, %v2640_v0 }
 0x224   :  { %19786 = vst [vmem:[#allocation115_spill] sm:$0xff] %v12814_v35  ;;  %v12828_v2 = vpop.eup %8647  ;;  %v19794_v35 = vld [vmem:[#allocation178_spill] sm:$0xff]  ;;  %8665 = vrcp.f32 %v12816_v36  ;;  %v5248_v51 = vadd.f32 %v19797_v17, %v12811_v60  ;;  %v2628_v30 = vand.u32 2147483648, %v19773_v3  ;;  %v2649_v46 = vsub.f32 1.0, %v2648_v48  ;;  %v19800_v17 = vld [vmem:[#allocation199_spill] sm:$0xff]  ;;  %v19802_v36 = vld [vmem:[#allocation4_spill] sm:$0xff] }
 0x225   :  { %19790 = vst [vmem:[#allocation96_spill] sm:$0xff] %v12828_v2  ;;  %v8650_v62 = vpop.eup %8649  ;;  %v5904_v2 = vadd.f32 %v19794_v35, %v12787_v34  ;;  %v2621_v35 = vadd.f32 %v19774_v19, %v2620_v55  ;;  %8667 = vpow2.f32 %v7939_v59  ;;  %v5920_v44 = vadd.f32 %v19800_v17, %v12811_v60  ;;  %v1283_v59 = vpop.f32.mrf.mxu2 }
 0x226   :  { %19793 = vst [vmem:[#allocation111_spill] sm:$0xff] %v12838_v31  ;;  %v12842_v27 = vpop.eup %8651  ;;  %v12854_v29 = vadd.f32 1.0, %v8650_v62  ;;  %8669 = vrcp.f32 %v12838_v31  ;;  %v1115_v41 = vadd.f32 %v1114_v16, %v945_v33  ;;  %v7876_v62 = vmul.f32 -1.442695, %v4608_v14 }
 0x227   :  { %19795 = vst [vmem:[#allocation53_spill] sm:$0xff] %v12842_v27  ;;  %v8654_v4 = vpop.eup %8653  ;;  %v7924_v28 = vmul.f32 -1.442695, %v5904_v2  ;;  %8671 = vpow2.f32 %v7860_v49  ;;  %v2625_v16 = vsel %vm12872_vm8, %v19774_v19, %v2621_v35  ;;  %vm2627_vm9 = vcmp.eq.f32.partialorder %v2626_v50, 8.507059e+37  ;;  %v19808_v50 = vld [vmem:[#allocation135_spill] sm:$0xff]  ;;  %v19809_v35 = vld [vmem:[#allocation74_spill] sm:$0xff] }
 0x228   :  { %v12852_v27 = vpop.eup %8655  ;;  %19799 = vst [vmem:[#allocation36_spill] sm:$0xff] %v12854_v29  ;;  %4106 = vrot.lane.b32.xlu2 %v4027_v26, %s9212_s19  ;;  %v12863_v55 = vadd.f32 1.0, %v8654_v4  ;;  %v12866_v26 = vmul.f32 %v2645_v58, %v19802_v36  ;;  %8673 = vtanh.f32 %v12727_v53  ;;  %v7908_v4 = vmul.f32 -1.442695, %v5248_v51  ;;  %v1323_v53 = vpop.f32.mrf.mxu3 }
 0x229   :  { %19798 = vst [vmem:[#allocation64_spill] sm:$0xff] %v12852_v27  ;;  %v8658_v5 = vpop.eup %8657  ;;  %8675 = vrcp.f32 %v12854_v29  ;;  %v2629_v3 = vor.u32 1.1754944e-38, %v2628_v30  ;;  %v2650_v14 = vmul.f32 %v19792_v6, %v2649_v46  ;;  %v7940_v17 = vmul.f32 -1.442695, %v5920_v44  ;;  %v948_v36 = vpop.f32.mrf.mxu0 }
 0x22a   :  { %v12861_v0 = vpop.eup %8659  ;;  %19801 = vst [vmem:[#allocation113_spill] sm:$0xff] %v12863_v55  ;;  %v12883_v49 = vadd.f32 1.0, %v8658_v5  ;;  %8677 = vpow2.f32 %v7892_v7  ;;  %v2656_v51 = vand.u32 2147483647, %v19791_v40  ;;  %vm2652_vm10 = vweird.f32 %v19791_v40  ;;  %v19812_v7 = vld [vmem:[#allocation57_spill] sm:$0xff]  ;;  %v1117_v29 = vpop.f32.mrf.mxu1 }
 0x22b   :  { %v12876_v48 = vpop.eup %8661  ;;  %8679 = vrcp.f32 %v12863_v55  ;;  %v2630_v19 = vsel %vm2627_vm9, %v2629_v3, %v2625_v16  ;;  %v2678_v30 = vmul.f32 %v19809_v35, %v19808_v50  ;;  %v2651_v3 = vadd.f32 %v19792_v6, %v2650_v14  ;;  %v19819_v14 = vld [vmem:[#allocation87_spill] sm:$0xff] }
 0x22c   :  { %19805 = vst [vmem:[#allocation133_spill] sm:$0xff] %v12876_v48  ;;  %v8664_v33 = vpop.eup %8663  ;;  %v12888_v48 = vadd.f32 %v1283_v59, %v1115_v41  ;;  %8681 = vpow2.f32 %v7924_v28  ;;  %v2658_v41 = vand.u32 2147483648, %v19791_v40  ;;  %vm2653_vm11 = vweird.f32 %v19792_v6  ;;  %v19815_v28 = vld [vmem:[#allocation69_spill] sm:$0xff] }
 0x22d   :  { %19806 = vst [vmem:[#allocation178_spill] sm:$0xff] %v12883_v49  ;;  %v12886_v58 = vpop.eup %8665  ;;  %v12897_v46 = vadd.f32 1.0, %v8664_v33  ;;  %8683 = vrcp.f32 %v12883_v49  ;;  %vm12914_vm12 = vcmp.eq.f32.partialorder %v2656_v51, 8.507059e+37  ;;  %v19820_v49 = vld [vmem:[#allocation11_spill] sm:$0xff]  ;;  %vm12933_vm13 = vmor %vm2652_vm10, %vm2653_vm11  ;;  %vm2682_vm14 = vweird.f32 %v19808_v50  ;;  %v1286_v27 = vpop.f32.mrf.mxu2 }
 0x22e   :  { %19807 = vst [vmem:[#allocation81_spill] sm:$0xff] %v12886_v58  ;;  %v8668_v2 = vpop.eup %8667  ;;  %v4593_v44 = vadd.f32 %v19812_v7, %v12888_v48  ;;  %v19813_v58 = vld [vmem:[#allocation108_spill] sm:$0xff]  ;;  %8685 = vpow2.f32 %v7876_v62  ;;  %v5233_v7 = vadd.f32 %v19815_v28, %v12888_v48  ;;  %v2679_v62 = vsub.f32 1.0, %v2678_v30 }
 0x22f   :  { %v12895_v5 = vpop.eup %8669  ;;  %19811 = vst [vmem:[#allocation199_spill] sm:$0xff] %v12897_v46  ;;  %v12904_v16 = vadd.f32 %v1323_v53, %v19813_v58  ;;  %v12910_v33 = vadd.f32 1.0, %v8668_v2  ;;  %8687 = vtanh.f32 %v12787_v34  ;;  %v5905_v53 = vadd.f32 %v19819_v14, %v12888_v48 }
 0x230   :  { %19810 = vst [vmem:[#allocation132_spill] sm:$0xff] %v12895_v5  ;;  %v8672_v59 = vpop.eup %8671  ;;  %v12924_v2 = vmul.f32 %v2630_v19, %v19820_v49  ;;  %8689 = vrcp.f32 %v12897_v46  ;;  %v7861_v51 = vmul.f32 -1.442695, %v4593_v44  ;;  %v2659_v34 = vor.u32 1.1754944e-38, %v2658_v41  ;;  %v19825_v19 = vld [vmem:[#allocation79_spill] sm:$0xff] }
 0x231   :  { %v12908_v55 = vpop.eup %8673  ;;  %19814 = vst [vmem:[#allocation135_spill] sm:$0xff] %v12910_v33  ;;  %v12927_v28 = vadd.f32 1.0, %v8672_v59  ;;  %8691 = vpow2.f32 %v7908_v4  ;;  %v4609_v30 = vadd.f32 %v19825_v19, %v12904_v16  ;;  %v1118_v49 = vadd.f32 %v1117_v29, %v948_v36  ;;  %v19826_v46 = vld [vmem:[#allocation131_spill] sm:$0xff]  ;;  %v19828_v4 = vld [vmem:[#allocation146_spill] sm:$0xff]  ;;  %v950_v20 = vpop.f32.mrf.mxu0 }
 0x232   :  { %v12918_v58 = vpop.eup %8675  ;;  %v2655_v44 = vsel %vm12933_vm13, %v19792_v6, %v2651_v3  ;;  %8693 = vrcp.f32 %v12910_v33  ;;  %v7893_v40 = vmul.f32 -1.442695, %v5233_v7  ;;  %v5249_v41 = vadd.f32 %v19826_v46, %v12904_v16  ;;  %v19831_v7 = vld [vmem:[#allocation211_spill] sm:$0xff]  ;;  %v1119_v23 = vpop.f32.mrf.mxu1 }
 0x233   :  { %19818 = vst [vmem:[#allocation74_spill] sm:$0xff] %v12918_v58  ;;  %v8678_v31 = vpop.eup %8677  ;;  %8695 = vpow2.f32 %v7940_v17  ;;  %v7925_v29 = vmul.f32 -1.442695, %v5905_v53  ;;  %v2680_v6 = vmul.f32 %v19809_v35, %v2679_v62  ;;  %v5921_v58 = vadd.f32 %v19831_v7, %v12904_v16 }
 0x234   :  { %19821 = vst [vmem:[#allocation57_spill] sm:$0xff] %v12927_v28  ;;  %v12937_v14 = vpop.eup %8679  ;;  %v12952_v36 = vadd.f32 1.0, %v8678_v31  ;;  %8697 = vrcp.f32 %v12927_v28  ;;  %v2660_v46 = vsel %vm12914_vm12, %v2659_v34, %v2655_v44  ;;  %v2686_v19 = vand.u32 2147483647, %v19808_v50 }
 0x235   :  { %19824 = vst [vmem:[#allocation108_spill] sm:$0xff] %v12937_v14  ;;  %v8682_v59 = vpop.eup %8681  ;;  %v19827_v14 = vld [vmem:[#allocation125_spill] sm:$0xff]  ;;  %8699 = vtanh.f32 %v12811_v60  ;;  %v7877_v31 = vmul.f32 -1.442695, %v4609_v30  ;;  %v12966_v17 = vadd.f32 %v1286_v27, %v1118_v49  ;;  %v7909_v62 = vmul.f32 -1.442695, %v5249_v41  ;;  %v1326_v49 = vpop.f32.mrf.mxu3 }
 0x236   :  { %v2663_v32 = vmul.f32 %v19828_v4, %v19827_v14  ;;  %v12950_v45 = vpop.eup %8683  ;;  %19830 = vst [vmem:[#allocation87_spill] sm:$0xff] %v12952_v36  ;;  %8701 = vpow2.f32 %v7861_v51  ;;  %vm2683_vm15 = vweird.f32 %v19809_v35  ;;  %v2681_v44 = vadd.f32 %v19809_v35, %v2680_v6  ;;  %v19836_v30 = vld [vmem:[#allocation5_spill] sm:$0xff] }
 0x237   :  { %19829 = vst [vmem:[#allocation69_spill] sm:$0xff] %v12950_v45  ;;  %v8686_v3 = vpop.eup %8685  ;;  %v12963_v45 = vadd.f32 1.0, %v8682_v59  ;;  %8703 = vrcp.f32 %v12952_v36  ;;  %v2688_v59 = vand.u32 2147483648, %v19808_v50  ;;  %v7941_v27 = vmul.f32 -1.442695, %v5921_v58  ;;  %vm13000_vm1 = vmor %vm2682_vm14, %vm2683_vm15 }
 0x238   :  { %v12961_v33 = vpop.eup %8687  ;;  %v2664_v7 = vsub.f32 1.0, %v2663_v32  ;;  %v12972_v34 = vadd.f32 1.0, %v8686_v3  ;;  %8705 = vpow2.f32 %v7893_v40  ;;  %v12979_v51 = vmul.f32 %v2660_v46, %v19836_v30  ;;  %v19839_v3 = vld [vmem:[#allocation52_spill] sm:$0xff]  ;;  %v19841_v40 = vld [vmem:[#allocation167_spill] sm:$0xff] }
 0x239   :  { %19832 = vst [vmem:[#allocation79_spill] sm:$0xff] %v12963_v45  ;;  %v12968_v53 = vpop.eup %8689  ;;  %vm12981_vm0 = vcmp.eq.f32.partialorder %v2686_v19, 8.507059e+37  ;;  %8707 = vrcp.f32 %v12963_v45  ;;  %v4594_v6 = vadd.f32 %v19839_v3, %v12966_v17  ;;  %v5906_v58 = vadd.f32 %v19841_v40, %v12966_v17  ;;  %v19846_v45 = vld [vmem:[#allocation147_spill] sm:$0xff] }
 0x23a   :  { %19833 = vst [vmem:[#allocation131_spill] sm:$0xff] %v12968_v53  ;;  %v8692_v5 = vpop.eup %8691  ;;  %v19840_v53 = vld [vmem:[#allocation78_spill] sm:$0xff]  ;;  %8709 = vpow2.f32 %v7925_v29  ;;  %v2665_v3 = vmul.f32 %v19828_v4, %v2664_v7  ;;  %v2685_v50 = vsel %vm13000_vm1, %v19809_v35, %v2681_v44  ;;  %v2689_v29 = vor.u32 1.1754944e-38, %v2688_v59 }
 0x23b   :  { %19834 = vst [vmem:[#allocation125_spill] sm:$0xff] %v12972_v34  ;;  %v12976_v60 = vpop.eup %8693  ;;  %v5234_v36 = vadd.f32 %v19840_v53, %v12966_v17  ;;  %v12994_v46 = vadd.f32 1.0, %v8692_v5  ;;  %v19847_v53 = vld [vmem:[#allocation80_spill] sm:$0xff]  ;;  %8711 = vrcp.f32 %v12972_v34  ;;  %vm2667_vm6 = vweird.f32 %v19827_v14 }
 0x23c   :  { %19835 = vst [vmem:[#allocation146_spill] sm:$0xff] %v12976_v60  ;;  %v8696_v32 = vpop.eup %8695  ;;  %v2693_v30 = vmul.f32 %v19847_v53, %v19846_v45  ;;  %v19848_v5 = vld [vmem:[#allocation72_spill] sm:$0xff]  ;;  %8713 = vpow2.f32 %v7877_v31  ;;  %vm2668_vm2 = vweird.f32 %v19828_v4  ;;  %v7862_v34 = vmul.f32 -1.442695, %v4594_v6 }
 0x23d   :  { %v12992_v60 = vpop.eup %8697  ;;  %19843 = vst [vmem:[#allocation52_spill] sm:$0xff] %v12994_v46  ;;  %v13011_v40 = vadd.f32 %v1326_v49, %v19848_v5  ;;  %v13016_v39 = vadd.f32 1.0, %v8696_v32  ;;  %8715 = vtanh.f32 %v12888_v48  ;;  %v7894_v49 = vmul.f32 -1.442695, %v5234_v36  ;;  %v19853_v48 = vld [vmem:[#allocation76_spill] sm:$0xff]  ;;  %vm13051_vm3 = vmor %vm2667_vm6, %vm2668_vm2 }
 0x23e   :  { %19842 = vst [vmem:[#allocation211_spill] sm:$0xff] %v12992_v60  ;;  %v13007_v28 = vpop.eup %8699  ;;  %v7926_v5 = vmul.f32 -1.442695, %v5906_v58  ;;  %8717 = vrcp.f32 %v12994_v46  ;;  %v2690_v35 = vsel %vm12981_vm0, %v2689_v29, %v2685_v50  ;;  %v2666_v31 = vadd.f32 %v19828_v4, %v2665_v3  ;;  %v19854_v46 = vld [vmem:[#allocation116_spill] sm:$0xff] }
 0x23f   :  { %v8702_v60 = vpop.eup %8701  ;;  %19849 = vst [vmem:[#allocation78_spill] sm:$0xff] %v13016_v39  ;;  %v2694_v44 = vsub.f32 1.0, %v2693_v30  ;;  %8719 = vpow2.f32 %v7909_v62  ;;  %v4610_v36 = vadd.f32 %v19853_v48, %v13011_v40  ;;  %v2671_v6 = vand.u32 2147483647, %v19827_v14  ;;  %v19857_v48 = vld [vmem:[#allocation14_spill] sm:$0xff] }
 0x240   :  { %v13020_v7 = vpop.eup %8703  ;;  %v13029_v32 = vadd.f32 1.0, %v8702_v60  ;;  %8721 = vrcp.f32 %v13016_v39  ;;  %v5250_v41 = vadd.f32 %v19854_v46, %v13011_v40  ;;  %v1120_v50 = vadd.f32 %v1119_v23, %v950_v20  ;;  %v1288_v60 = vpop.f32.mrf.mxu2  ;;  %v19860_v46 = vld [vmem:[#allocation157_spill] sm:$0xff] }
 0x241   :  { %19850 = vst [vmem:[#allocation167_spill] sm:$0xff] %v13020_v7  ;;  %v8706_v19 = vpop.eup %8705  ;;  %v2673_v3 = vand.u32 2147483648, %v19827_v14  ;;  %8723 = vpow2.f32 %v7941_v27  ;;  %v5922_v62 = vadd.f32 %v11893_v57, %v13011_v40  ;;  %v2670_v27 = vsel %vm13051_vm3, %v19828_v4, %v2666_v31 }
 0x242   :  { %v13027_v59 = vpop.eup %8707  ;;  %19852 = vst [vmem:[#allocation80_spill] sm:$0xff] %v13029_v32  ;;  %v13040_v29 = vadd.f32 1.0, %v8706_v19  ;;  %8725 = vpow2.f32 %v7862_v34  ;;  %v2695_v57 = vmul.f32 %v19847_v53, %v2694_v44  ;;  %v19861_v19 = vld [vmem:[#allocation161_spill] sm:$0xff]  ;;  %vm2672_vm4 = vcmp.eq.f32.partialorder %v2671_v6, 8.507059e+37 }
 0x243   :  { %19851 = vst [vmem:[#allocation147_spill] sm:$0xff] %v13027_v59  ;;  %v8710_v58 = vpop.eup %8709  ;;  %v13045_v59 = vmul.f32 %v2690_v35, %v19857_v48  ;;  %v2723_v35 = vmul.f32 %v19861_v19, %v19860_v46  ;;  %8727 = vrcp.f32 %v13029_v32  ;;  %v7878_v48 = vmul.f32 -1.442695, %v4610_v36  ;;  %v1328_v36 = vpop.f32.mrf.mxu3 }
 0x244   :  { %v13038_v30 = vpop.eup %8711  ;;  %19856 = vst [vmem:[#allocation76_spill] sm:$0xff] %v13040_v29  ;;  %v13064_v14 = vadd.f32 1.0, %v8710_v58  ;;  %8729 = vtanh.f32 %v12904_v16  ;;  %v7910_v34 = vmul.f32 -1.442695, %v5250_v41  ;;  %v13069_v23 = vadd.f32 %v1288_v60, %v1120_v50 }
 0x245   :  { %19855 = vst [vmem:[#allocation72_spill] sm:$0xff] %v13038_v30  ;;  %v8714_v20 = vpop.eup %8713  ;;  %v2674_v4 = vor.u32 1.1754944e-38, %v2673_v3  ;;  %8731 = vrcp.f32 %v13040_v29  ;;  %vm2697_vm5 = vweird.f32 %v19846_v45  ;;  %vm2698_vm7 = vweird.f32 %v19847_v53  ;;  %v19866_v3 = vld [vmem:[#allocation54_spill] sm:$0xff]  ;;  %v19872_v30 = vld [vmem:[#allocation15_spill] sm:$0xff] }
 0x246   :  { %v13061_v39 = vpop.eup %8715  ;;  %19862 = vst [vmem:[#allocation116_spill] sm:$0xff] %v13064_v14  ;;  %v13072_v44 = vadd.f32 1.0, %v8714_v20  ;;  %8733 = vpow2.f32 %v7894_v49  ;;  %v2696_v16 = vadd.f32 %v19847_v53, %v2695_v57  ;;  %v2724_v41 = vsub.f32 1.0, %v2723_v35  ;;  %v19868_v49 = vld [vmem:[#allocation83_spill] sm:$0xff]  ;;  %v19869_v57 = vld [vmem:[#allocation188_spill] sm:$0xff]  ;;  %vm13103_vm8 = vmor %vm2697_vm5, %vm2698_vm7 }
 0x247   :  { %v13066_v7 = vpop.eup %8717  ;;  %v2675_v6 = vsel %vm2672_vm4, %v2674_v4, %v2670_v27  ;;  %8735 = vrcp.f32 %v13064_v14  ;;  %v4595_v60 = vadd.f32 %v19866_v3, %v13069_v23  ;;  %v2701_v20 = vand.u32 2147483647, %v19846_v45  ;;  %v19871_v3 = vld [vmem:[#allocation45_spill] sm:$0xff] }
 0x248   :  { %19863 = vst [vmem:[#allocation157_spill] sm:$0xff] %v13066_v7  ;;  %v8720_v31 = vpop.eup %8719  ;;  %v2703_v7 = vand.u32 2147483648, %v19846_v45  ;;  %8737 = vpow2.f32 %v7926_v5  ;;  %v5235_v27 = vadd.f32 %v19868_v49, %v13069_v23  ;;  %v5907_v35 = vadd.f32 %v19869_v57, %v13069_v23  ;;  %v953_v45 = vpop.f32.mrf.mxu0  ;;  %v19881_v5 = vld [vmem:[#allocation156_spill] sm:$0xff] }
 0x249   :  { %19864 = vst [vmem:[#allocation161_spill] sm:$0xff] %v13072_v44  ;;  %v13076_v58 = vpop.eup %8721  ;;  %v13084_v32 = vadd.f32 1.0, %v8720_v31  ;;  %8739 = vrcp.f32 %v13072_v44  ;;  %v13094_v14 = vadd.f32 %v1328_v36, %v19871_v3  ;;  %v13097_v13 = vmul.f32 %v2675_v6, %v19872_v30  ;;  %v1122_v3 = vpop.f32.mrf.mxu1 }
 0x24a   :  { %19865 = vst [vmem:[#allocation275_spill] sm:$0xff] %v13076_v58  ;;  %v8724_v50 = vpop.eup %8723  ;;  %v7942_v58 = vmul.f32 -1.442695, %v5922_v62  ;;  %8741 = vtanh.f32 %v12966_v17  ;;  %v2700_v62 = vsel %vm13103_vm8, %v19847_v53, %v2696_v16  ;;  %v2725_v36 = vmul.f32 %v19861_v19, %v2724_v41  ;;  %v19879_v53 = vld [vmem:[#allocation3_spill] sm:$0xff] }
 0x24b   :  { %v8726_v29 = vpop.eup %8725  ;;  %19867 = vst [vmem:[#allocation54_spill] sm:$0xff] %v13084_v32  ;;  %v13109_v49 = vadd.f32 1.0, %v8724_v50  ;;  %8743 = vpow2.f32 %v7878_v48  ;;  %vm2702_vm9 = vcmp.eq.f32.partialorder %v2701_v20, 8.507059e+37  ;;  %v2704_v30 = vor.u32 1.1754944e-38, %v2703_v7 }
 0x24c   :  { %v13090_v4 = vpop.eup %8727  ;;  %v13118_v57 = vadd.f32 1.0, %v8726_v29  ;;  %8745 = vrcp.f32 %v13084_v32  ;;  %v7863_v50 = vmul.f32 -1.442695, %v4595_v60  ;;  %v7895_v17 = vmul.f32 -1.442695, %v5235_v27  ;;  %v19880_v29 = vld [vmem:[#allocation105_spill] sm:$0xff] }
 0x24d   :  { %19870 = vst [vmem:[#allocation83_spill] sm:$0xff] %v13090_v4  ;;  %v13107_v31 = vpop.eup %8729  ;;  %v7927_v4 = vmul.f32 -1.442695, %v5907_v35  ;;  %8747 = vpow2.f32 %v7910_v34  ;;  %v4611_v16 = vadd.f32 %v19879_v53, %v13094_v14  ;;  %v2705_v41 = vsel %vm2702_vm9, %v2704_v30, %v2700_v62  ;;  %v19884_v27 = vld [vmem:[#allocation138_spill] sm:$0xff]  ;;  %v1291_v35 = vpop.f32.mrf.mxu2  ;;  %v19898_v32 = vld [vmem:[#allocation60_spill] sm:$0xff] }
 0x24e   :  { %19875 = vst [vmem:[#allocation188_spill] sm:$0xff] %v13109_v49  ;;  %v13116_v6 = vpop.eup %8731  ;;  %v2708_v48 = vmul.f32 %v19881_v5, %v19880_v29  ;;  %8749 = vrcp.f32 %v13109_v49  ;;  %v1123_v7 = vadd.f32 %v1122_v3, %v953_v45  ;;  %v2726_v20 = vadd.f32 %v19861_v19, %v2725_v36  ;;  %v19886_v45 = vld [vmem:[#allocation159_spill] sm:$0xff] }
 0x24f   :  { %19876 = vst [vmem:[#allocation45_spill] sm:$0xff] %v13116_v6  ;;  %v8734_v44 = vpop.eup %8733  ;;  %vm2728_vm10 = vweird.f32 %v19861_v19  ;;  %8751 = vrcp.f32 %v13118_v57  ;;  %v5251_v30 = vadd.f32 %v19884_v27, %v13094_v14  ;;  %v2733_v62 = vand.u32 2147483648, %v19860_v46 }
 0x250   :  { %19877 = vst [vmem:[#allocation276_spill] sm:$0xff] %v13118_v57  ;;  %v13121_v63 = vpop.eup %8735  ;;  %v13133_v34 = vadd.f32 1.0, %v8734_v44  ;;  %8753 = vpow2.f32 %v7942_v58  ;;  %v5923_v36 = vadd.f32 %v19886_v45, %v13094_v14  ;;  %vm2727_vm11 = vweird.f32 %v19860_v46  ;;  %v19888_v44 = vld [vmem:[#allocation6_spill] sm:$0xff] }
 0x251   :  { %19878 = vst [vmem:[#allocation277_spill] sm:$0xff] %v13121_v63  ;;  %v8738_v6 = vpop.eup %8737  ;;  %v2731_v3 = vand.u32 2147483647, %v19860_v46  ;;  %8755 = vtanh.f32 %v13011_v40  ;;  %v13148_v27 = vmul.f32 %v2705_v41, %v19888_v44  ;;  %vm13152_vm12 = vmor %vm2727_vm11, %vm2728_vm10  ;;  %v2709_v58 = vsub.f32 1.0, %v2708_v48 }
 0x252   :  { %v13130_v60 = vpop.eup %8739  ;;  %19883 = vst [vmem:[#allocation105_spill] sm:$0xff] %v13133_v34  ;;  %v13144_v63 = vadd.f32 1.0, %v8738_v6  ;;  %8757 = vpow2.f32 %v7863_v50  ;;  %v7879_v57 = vmul.f32 -1.442695, %v4611_v16  ;;  %v13158_v46 = vadd.f32 %v1291_v35, %v1123_v7  ;;  %v1331_v7 = vpop.f32.mrf.mxu3 }
 0x253   :  { %19882 = vst [vmem:[#allocation3_spill] sm:$0xff] %v13130_v60  ;;  %v13138_v53 = vpop.eup %8741  ;;  %v2730_v40 = vsel %vm13152_vm12, %v19861_v19, %v2726_v20  ;;  %8759 = vrcp.f32 %v13133_v34  ;;  %v7911_v41 = vmul.f32 -1.442695, %v5251_v30  ;;  %v2734_v44 = vor.u32 1.1754944e-38, %v2733_v62  ;;  %v19893_v60 = vld [vmem:[#allocation162_spill] sm:$0xff] }
 0x254   :  { %19885 = vst [vmem:[#allocation156_spill] sm:$0xff] %v13138_v53  ;;  %v8744_v49 = vpop.eup %8743  ;;  %8761 = vpow2.f32 %v7895_v17  ;;  %v7943_v50 = vmul.f32 -1.442695, %v5923_v36  ;;  %vm2732_vm13 = vcmp.eq.f32.partialorder %v2731_v3, 8.507059e+37  ;;  %v4596_v19 = vadd.f32 %v19898_v32, %v13158_v46  ;;  %v19901_v36 = vld [vmem:[#allocation165_spill] sm:$0xff]  ;;  %v1124_v32 = vpop.f32.mrf.mxu1 }
 0x255   :  { %19887 = vst [vmem:[#allocation138_spill] sm:$0xff] %v13144_v63  ;;  %v13156_v45 = vpop.eup %8745  ;;  %v13168_v48 = vadd.f32 1.0, %v8744_v49  ;;  %8763 = vrcp.f32 %v13144_v63  ;;  %v2735_v20 = vsel %vm2732_vm13, %v2734_v44, %v2730_v40  ;;  %v2710_v30 = vmul.f32 %v19881_v5, %v2709_v58  ;;  %v19900_v49 = vld [vmem:[#allocation89_spill] sm:$0xff] }
 0x256   :  { %19889 = vst [vmem:[#allocation159_spill] sm:$0xff] %v13148_v27  ;;  %v8748_v6 = vpop.eup %8747  ;;  %v19894_v27 = vld [vmem:[#allocation171_spill] sm:$0xff]  ;;  %8765 = vpow2.f32 %v7927_v4  ;;  %v5236_v17 = vadd.f32 %v19900_v49, %v13158_v46  ;;  %v5908_v3 = vadd.f32 %v19901_v36, %v13158_v46  ;;  %vm2712_vm14 = vweird.f32 %v19880_v29  ;;  %v19903_v58 = vld [vmem:[#allocation49_spill] sm:$0xff]  ;;  %v955_v4 = vpop.f32.mrf.mxu0 }
 0x257   :  { %19892 = vst [vmem:[#allocation278_spill] sm:$0xff] %v13156_v45  ;;  %v2738_v21 = vmul.f32 %v19894_v27, %v19893_v60  ;;  %v13166_v10 = vpop.eup %8749  ;;  %v13176_v62 = vadd.f32 1.0, %v8748_v6  ;;  %8767 = vpow2.f32 %v7879_v57  ;;  %vm2713_vm15 = vweird.f32 %v19881_v5  ;;  %v19904_v49 = vld [vmem:[#allocation17_spill] sm:$0xff] }
 0x258   :  { %19895 = vst [vmem:[#allocation162_spill] sm:$0xff] %v13166_v10  ;;  %v13170_v16 = vpop.eup %8751  ;;  %8769 = vrcp.f32 %v13168_v48  ;;  %v13188_v6 = vadd.f32 %v1331_v7, %v19903_v58  ;;  %v13191_v63 = vmul.f32 %v2735_v20, %v19904_v49  ;;  %v2716_v36 = vand.u32 2147483647, %v19880_v29  ;;  %vm13215_vm0 = vmor %vm2712_vm14, %vm2713_vm15 }
 0x259   :  { %19896 = vst [vmem:[#allocation171_spill] sm:$0xff] %v13168_v48  ;;  %v8754_v35 = vpop.eup %8753  ;;  %v2739_v44 = vsub.f32 1.0, %v2738_v21  ;;  %8771 = vtanh.f32 %v13069_v23  ;;  %v7864_v21 = vmul.f32 -1.442695, %v4596_v19  ;;  %v2711_v34 = vadd.f32 %v19881_v5, %v2710_v30  ;;  %v19910_v23 = vld [vmem:[#allocation88_spill] sm:$0xff]  ;;  %v19911_v30 = vld [vmem:[#allocation134_spill] sm:$0xff] }
 0x25a   :  { %19897 = vst [vmem:[#allocation279_spill] sm:$0xff] %v13170_v16  ;;  %v13182_v10 = vpop.eup %8755  ;;  %v13196_v57 = vadd.f32 1.0, %v8754_v35  ;;  %8773 = vrcp.f32 %v13176_v62  ;;  %v7896_v7 = vmul.f32 -1.442695, %v5236_v17  ;;  %v7928_v58 = vmul.f32 -1.442695, %v5908_v3  ;;  %v1293_v17 = vpop.f32.mrf.mxu2 }
 0x25b   :  { %19899 = vst [vmem:[#allocation60_spill] sm:$0xff] %v13176_v62  ;;  %v8758_v40 = vpop.eup %8757  ;;  %v2718_v16 = vand.u32 2147483648, %v19880_v29  ;;  %8775 = vpow2.f32 %v7911_v41  ;;  %v2740_v35 = vmul.f32 %v19894_v27, %v2739_v44  ;;  %v4612_v19 = vadd.f32 %v19910_v23, %v13188_v6 }
 0x25c   :  { %19902 = vst [vmem:[#allocation89_spill] sm:$0xff] %v13182_v10  ;;  %v13194_v45 = vpop.eup %8759  ;;  %v13204_v49 = vadd.f32 1.0, %v8758_v40  ;;  %8777 = vpow2.f32 %v7943_v50  ;;  %v5252_v62 = vadd.f32 %v19911_v30, %v13188_v6  ;;  %vm13219_vm1 = vcmp.eq.f32.partialorder %v2716_v36, 8.507059e+37  ;;  %v19917_v40 = vld [vmem:[#allocation217_spill] sm:$0xff]  ;;  %v19919_v36 = vld [vmem:[#allocation170_spill] sm:$0xff]  ;;  %v19920_v30 = vld [vmem:[#allocation179_spill] sm:$0xff] }
 0x25d   :  { %19905 = vst [vmem:[#allocation165_spill] sm:$0xff] %v13191_v63  ;;  %v8762_v48 = vpop.eup %8761  ;;  %8779 = vrcp.f32 %v13196_v57  ;;  %v2715_v29 = vsel %vm13215_vm0, %v19881_v5, %v2711_v34  ;;  %v2719_v23 = vor.u32 1.1754944e-38, %v2718_v16  ;;  %vm2743_vm6 = vweird.f32 %v19894_v27 }
 0x25e   :  { %19906 = vst [vmem:[#allocation49_spill] sm:$0xff] %v13194_v45  ;;  %v13202_v20 = vpop.eup %8763  ;;  %v1125_v45 = vadd.f32 %v1124_v32, %v955_v4  ;;  %v13224_v44 = vadd.f32 1.0, %v8762_v48  ;;  %v5924_v4 = vadd.f32 %v19917_v40, %v13188_v6  ;;  %8781 = vpow2.f32 %v7864_v21 }
 0x25f   :  { %19907 = vst [vmem:[#allocation280_spill] sm:$0xff] %v13196_v57  ;;  %v8766_v63 = vpop.eup %8765  ;;  %8783 = vrcp.f32 %v13204_v49  ;;  %v2741_v3 = vadd.f32 %v19894_v27, %v2740_v35  ;;  %v7880_v16 = vmul.f32 -1.442695, %v4612_v19  ;;  %v7912_v21 = vmul.f32 -1.442695, %v5252_v62 }
 0x260   :  { %19908 = vst [vmem:[#allocation281_spill] sm:$0xff] %v13202_v20  ;;  %v8768_v50 = vpop.eup %8767  ;;  %v2768_v20 = vmul.f32 %v19920_v30, %v19919_v36  ;;  %v13239_v48 = vadd.f32 1.0, %v8766_v63  ;;  %v13241_v40 = vadd.f32 %v1293_v17, %v1125_v45  ;;  %8785 = vtanh.f32 %v13094_v14 }
 0x261   :  { %19909 = vst [vmem:[#allocation282_spill] sm:$0xff] %v13204_v49  ;;  %v13231_v32 = vpop.eup %8769  ;;  %v13246_v34 = vadd.f32 1.0, %v8768_v50  ;;  %8787 = vrcp.f32 %v13224_v44  ;;  %vm2742_vm2 = vweird.f32 %v19893_v60  ;;  %v2748_v63 = vand.u32 2147483648, %v19893_v60  ;;  %v19928_v50 = vld [vmem:[#allocation59_spill] sm:$0xff]  ;;  %v1127_v49 = vpop.f32.mrf.mxu1 }
 0x262   :  { %19916 = vst [vmem:[#allocation88_spill] sm:$0xff] %v13224_v44  ;;  %v13236_v10 = vpop.eup %8771  ;;  %8789 = vpow2.f32 %v7896_v7  ;;  %v2720_v35 = vsel %vm13219_vm1, %v2719_v23, %v2715_v29  ;;  %vm13256_vm3 = vmor %vm2742_vm2, %vm2743_vm6  ;;  %v2746_v62 = vand.u32 2147483647, %v19893_v60  ;;  %v2769_v19 = vsub.f32 1.0, %v2768_v20  ;;  %v19929_v7 = vld [vmem:[#allocation98_spill] sm:$0xff]  ;;  %v19931_v60 = vld [vmem:[#allocation41_spill] sm:$0xff] }
 0x263   :  { %19918 = vst [vmem:[#allocation134_spill] sm:$0xff] %v13231_v32  ;;  %v13244_v5 = vpop.eup %8773  ;;  %v7944_v32 = vmul.f32 -1.442695, %v5924_v4  ;;  %8791 = vrcp.f32 %v13239_v48  ;;  %v4597_v4 = vadd.f32 %v19928_v50, %v13241_v40  ;;  %v5237_v41 = vadd.f32 %v19929_v7, %v13241_v40  ;;  %v19935_v7 = vld [vmem:[#allocation18_spill] sm:$0xff] }
 0x264   :  { %19921 = vst [vmem:[#allocation217_spill] sm:$0xff] %v13236_v10  ;;  %v8776_v57 = vpop.eup %8775  ;;  %v1333_v10 = vpop.f32.mrf.mxu3  ;;  %v2745_v29 = vsel %vm13256_vm3, %v19894_v27, %v2741_v3  ;;  %8793 = vrcp.f32 %v13246_v34  ;;  %v5909_v20 = vadd.f32 %v19931_v60, %v13241_v40  ;;  %v13285_v14 = vmul.f32 %v2720_v35, %v19935_v7 }
 0x265   :  { %19922 = vst [vmem:[#allocation170_spill] sm:$0xff] %v13239_v48  ;;  %v8778_v45 = vpop.eup %8777  ;;  %8795 = vtanh.f32 %v13158_v46  ;;  %v2749_v27 = vor.u32 1.1754944e-38, %v2748_v63  ;;  %vm2747_vm4 = vcmp.eq.f32.partialorder %v2746_v62, 8.507059e+37  ;;  %v2770_v60 = vmul.f32 %v19920_v30, %v2769_v19  ;;  %v19944_v19 = vld [vmem:[#allocation121_spill] sm:$0xff] }
 0x266   :  { %19923 = vst [vmem:[#allocation179_spill] sm:$0xff] %v13244_v5  ;;  %v13261_v17 = vpop.eup %8779  ;;  %v13272_v5 = vadd.f32 1.0, %v8776_v57  ;;  %v13281_v50 = vadd.f32 1.0, %v8778_v45  ;;  %8797 = vpow2.f32 %v7928_v58  ;;  %v958_v57 = vpop.f32.mrf.mxu0  ;;  %v7865_v46 = vmul.f32 -1.442695, %v4597_v4 }
 0x267   :  { %19924 = vst [vmem:[#allocation283_spill] sm:$0xff] %v13246_v34  ;;  %v8782_v23 = vpop.eup %8781  ;;  %8799 = vpow2.f32 %v7880_v16  ;;  %v2750_v35 = vsel %vm2747_vm4, %v2749_v27, %v2745_v29  ;;  %v7897_v63 = vmul.f32 -1.442695, %v5237_v41  ;;  %v7929_v58 = vmul.f32 -1.442695, %v5909_v20 }
 0x268   :  { %19927 = vst [vmem:[#allocation284_spill] sm:$0xff] %v13261_v17  ;;  %v19932_v17 = vld [vmem:[#allocation168_spill] sm:$0xff]  ;;  %v13279_v44 = vpop.eup %8783  ;;  %v13294_v45 = vadd.f32 1.0, %v8782_v23  ;;  %8801 = vrcp.f32 %v13272_v5  ;;  %v1128_v4 = vadd.f32 %v1127_v49, %v958_v57  ;;  %v1296_v23 = vpop.f32.mrf.mxu2  ;;  %v2771_v41 = vadd.f32 %v19920_v30, %v2770_v60 }
 0x269   :  { %19930 = vst [vmem:[#allocation59_spill] sm:$0xff] %v13272_v5  ;;  %v13277_v48 = vadd.f32 %v1333_v10, %v19932_v17  ;;  %v13287_v3 = vpop.eup %8785  ;;  %v19938_v10 = vld [vmem:[#allocation166_spill] sm:$0xff]  ;;  %v19939_v17 = vld [vmem:[#allocation33_spill] sm:$0xff]  ;;  %8803 = vrcp.f32 %v13281_v50  ;;  %vm2773_vm5 = vweird.f32 %v19920_v30  ;;  %vm2772_vm7 = vweird.f32 %v19919_v36 }
 0x26a   :  { %19933 = vst [vmem:[#allocation98_spill] sm:$0xff] %v13279_v44  ;;  %v2753_v34 = vmul.f32 %v19939_v17, %v19938_v10  ;;  %v13292_v44 = vpop.eup %8787  ;;  %8805 = vpow2.f32 %v7912_v21  ;;  %v19948_v21 = vld [vmem:[#allocation7_spill] sm:$0xff]  ;;  %v13321_v5 = vadd.f32 %v1296_v23, %v1128_v4  ;;  %vm13325_vm8 = vmor %vm2772_vm7, %vm2773_vm5  ;;  %vm2757_vm10 = vweird.f32 %v19938_v10 }
 0x26b   :  { %19934 = vst [vmem:[#allocation41_spill] sm:$0xff] %v13281_v50  ;;  %v8790_v7 = vpop.eup %8789  ;;  %v5925_v16 = vadd.f32 %v11958_v43, %v13277_v48  ;;  %8807 = vrcp.f32 %v13294_v45  ;;  %v2778_v43 = vand.u32 2147483648, %v19919_v36  ;;  %v13318_v50 = vmul.f32 %v2750_v35, %v19948_v21 }
 0x26c   :  { %19936 = vst [vmem:[#allocation168_spill] sm:$0xff] %v13285_v14  ;;  %v19942_v14 = vld [vmem:[#allocation2_spill] sm:$0xff]  ;;  %v13299_v25 = vpop.eup %8791  ;;  %v2754_v20 = vsub.f32 1.0, %v2753_v34  ;;  %v13313_v27 = vadd.f32 1.0, %v8790_v7  ;;  %8809 = vpow2.f32 %v7944_v32  ;;  %v2775_v32 = vsel %vm13325_vm8, %v19920_v30, %v2771_v41 }
 0x26d   :  { %19937 = vst [vmem:[#allocation285_spill] sm:$0xff] %v13287_v3  ;;  %v4613_v62 = vadd.f32 %v19942_v14, %v13277_v48  ;;  %v13306_v29 = vpop.eup %8793  ;;  %8811 = vpow2.f32 %v7865_v46  ;;  %v19954_v46 = vld [vmem:[#allocation184_spill] sm:$0xff]  ;;  %v2779_v4 = vor.u32 1.1754944e-38, %v2778_v43  ;;  %v2761_v30 = vand.u32 2147483647, %v19938_v10 }
 0x26e   :  { %19940 = vst [vmem:[#allocation166_spill] sm:$0xff] %v13292_v44  ;;  %v5253_v44 = vadd.f32 %v19944_v19, %v13277_v48  ;;  %v13310_v14 = vpop.eup %8795  ;;  %v2776_v19 = vand.u32 2147483647, %v19919_v36  ;;  %8813 = vtanh.f32 %v13188_v6  ;;  %v2755_v36 = vmul.f32 %v19939_v17, %v2754_v20  ;;  %v1336_v6 = vpop.f32.mrf.mxu3  ;;  %v19959_v20 = vld [vmem:[#allocation58_spill] sm:$0xff] }
 0x26f   :  { %19941 = vst [vmem:[#allocation33_spill] sm:$0xff] %v13294_v45  ;;  %v8798_v49 = vpop.eup %8797  ;;  %v7881_v57 = vmul.f32 -1.442695, %v4613_v62  ;;  %8815 = vrcp.f32 %v13313_v27  ;;  %v4598_v7 = vadd.f32 %v19959_v20, %v13321_v5  ;;  %vm2758_vm11 = vweird.f32 %v19939_v17 }
 0x270   :  { %19943 = vst [vmem:[#allocation2_spill] sm:$0xff] %v13299_v25  ;;  %v8800_v60 = vpop.eup %8799  ;;  %v7913_v34 = vmul.f32 -1.442695, %v5253_v44  ;;  %v7945_v25 = vmul.f32 -1.442695, %v5925_v16  ;;  %v19953_v44 = vld [vmem:[#allocation174_spill] sm:$0xff]  ;;  %8817 = vpow2.f32 %v7897_v63  ;;  %vm13383_vm13 = vmor %vm2757_vm10, %vm2758_vm11  ;;  %vm2788_vm14 = vweird.f32 %v19954_v46 }
 0x271   :  { %19945 = vst [vmem:[#allocation121_spill] sm:$0xff] %v13306_v29  ;;  %v13329_v45 = vpop.eup %8801  ;;  %v2783_v35 = vmul.f32 %v19954_v46, %v19953_v44  ;;  %v13341_v16 = vadd.f32 1.0, %v8798_v49  ;;  %vm2777_vm9 = vcmp.eq.f32.partialorder %v2776_v19, 8.507059e+37  ;;  %8819 = vpow2.f32 %v7929_v58  ;;  %v19960_v49 = vld [vmem:[#allocation55_spill] sm:$0xff]  ;;  %v19962_v58 = vld [vmem:[#allocation200_spill] sm:$0xff] }
 0x272   :  { %19946 = vst [vmem:[#allocation286_spill] sm:$0xff] %v13310_v14  ;;  %v13338_v62 = vpop.eup %8803  ;;  %v2780_v19 = vsel %vm2777_vm9, %v2779_v4, %v2775_v32  ;;  %8821 = vpow2.f32 %v7881_v57  ;;  %v2763_v20 = vand.u32 2147483648, %v19938_v10  ;;  %v19964_v57 = vld [vmem:[#allocation71_spill] sm:$0xff]  ;;  %v1129_v4 = vpop.f32.mrf.mxu1  ;;  %vm13370_vm12 = vcmp.eq.f32.partialorder %v2761_v30, 8.507059e+37  ;;  %v19976_v14 = vld [vmem:[#allocation152_spill] sm:$0xff] }
 0x273   :  { %19947 = vst [vmem:[#allocation287_spill] sm:$0xff] %v13313_v27  ;;  %v8806_v23 = vpop.eup %8805  ;;  %v2784_v63 = vsub.f32 1.0, %v2783_v35  ;;  %8823 = vrcp.f32 %v13341_v16  ;;  %v13365_v32 = vadd.f32 %v1336_v6, %v19964_v57  ;;  %v19965_v35 = vld [vmem:[#allocation20_spill] sm:$0xff]  ;;  %vm2787_vm15 = vweird.f32 %v19953_v44 }
 0x274   :  { %19949 = vst [vmem:[#allocation288_spill] sm:$0xff] %v13318_v50  ;;  %v13347_v41 = vpop.eup %8807  ;;  %v13356_v27 = vadd.f32 1.0, %v8806_v23  ;;  %v7866_v50 = vmul.f32 -1.442695, %v4598_v7  ;;  %v2764_v10 = vor.u32 1.1754944e-38, %v2763_v20  ;;  %vm13437_vm0 = vmor %vm2787_vm15, %vm2788_vm14 }
 0x275   :  { %19952 = vst [vmem:[#allocation289_spill] sm:$0xff] %v13329_v45  ;;  %v13343_v45 = vadd.f32 1.0, %v8800_v60  ;;  %v8810_v43 = vpop.eup %8809  ;;  %v2756_v60 = vadd.f32 %v19939_v17, %v2755_v36  ;;  %v960_v36 = vpop.f32.mrf.mxu0  ;;  %v5926_v6 = vadd.f32 %v19976_v14, %v13365_v32 }
 0x276   :  { %19955 = vst [vmem:[#allocation174_spill] sm:$0xff] %v13338_v62  ;;  %v5238_v62 = vadd.f32 %v19960_v49, %v13321_v5  ;;  %v8812_v21 = vpop.eup %8811  ;;  %v13368_v49 = vmul.f32 %v2780_v19, %v19965_v35  ;;  %v1130_v57 = vadd.f32 %v1129_v4, %v960_v36  ;;  %v1338_v20 = vpop.f32.mrf.mxu3  ;;  %v2791_v36 = vand.u32 2147483647, %v19953_v44 }
 0x277   :  { %19956 = vst [vmem:[#allocation184_spill] sm:$0xff] %v13341_v16  ;;  %v13361_v29 = vpop.eup %8813  ;;  %8825 = vrcp.f32 %v13343_v45  ;;  %v13387_v19 = vadd.f32 1.0, %v8812_v21  ;;  %v19975_v21 = vld [vmem:[#allocation141_spill] sm:$0xff] }
 0x278   :  { %19957 = vst [vmem:[#allocation290_spill] sm:$0xff] %v13343_v45  ;;  %v13374_v16 = vpop.eup %8815  ;;  %8827 = vtanh.f32 %v13241_v40  ;;  %v7898_v45 = vmul.f32 -1.442695, %v5238_v62  ;;  %v2785_v40 = vmul.f32 %v19954_v46, %v2784_v63  ;;  %vm13447_vm1 = vcmp.eq.f32.partialorder %v2791_v36, 8.507059e+37 }
 0x279   :  { %19958 = vst [vmem:[#allocation291_spill] sm:$0xff] %v13347_v41  ;;  %v5910_v41 = vadd.f32 %v19962_v58, %v13321_v5  ;;  %v13376_v58 = vadd.f32 1.0, %v8810_v43  ;;  %v8818_v30 = vpop.eup %8817  ;;  %8829 = vpow2.f32 %v7913_v34  ;;  %v2760_v43 = vsel %vm13383_vm13, %v19939_v17, %v2756_v60  ;;  %v1298_v17 = vpop.f32.mrf.mxu2 }
 0x27a   :  { %19961 = vst [vmem:[#allocation58_spill] sm:$0xff] %v13356_v27  ;;  %v8820_v7 = vpop.eup %8819  ;;  %8831 = vrcp.f32 %v13356_v27  ;;  %v5254_v34 = vadd.f32 %v19975_v21, %v13365_v32  ;;  %v13403_v63 = vadd.f32 1.0, %v8818_v30  ;;  %v2786_v14 = vadd.f32 %v19954_v46, %v2785_v40  ;;  %v19983_v21 = vld [vmem:[#allocation186_spill] sm:$0xff]  ;;  %v4079_v27 = vpop.permute.xlu0 %4078 }
 0x27b   :  { %19963 = vst [vmem:[#allocation55_spill] sm:$0xff] %v13361_v29  ;;  %v7930_v62 = vmul.f32 -1.442695, %v5910_v41  ;;  %v8822_v35 = vpop.eup %8821  ;;  %8833 = vpow2.f32 %v7945_v25  ;;  %v2765_v41 = vsel %vm13370_vm12, %v2764_v10, %v2760_v43  ;;  %v13419_v23 = vadd.f32 %v1298_v17, %v1130_v57  ;;  %v19986_v57 = vld [vmem:[#allocation21_spill] sm:$0xff] }
 0x27c   :  { %19966 = vst [vmem:[#allocation200_spill] sm:$0xff] %v13368_v49  ;;  %v13400_v60 = vpop.eup %8823  ;;  %8835 = vrcp.f32 %v13376_v58  ;;  %v13417_v30 = vadd.f32 1.0, %v8822_v35  ;;  %v7914_v35 = vmul.f32 -1.442695, %v5254_v34  ;;  %v13433_v17 = vmul.f32 %v2765_v41, %v19986_v57  ;;  %v19994_v57 = vld [vmem:[#allocation61_spill] sm:$0xff] }
 0x27d   :  { %19969 = vst [vmem:[#allocation71_spill] sm:$0xff] %v13374_v16  ;;  %v19974_v16 = vld [vmem:[#allocation95_spill] sm:$0xff]  ;;  %v13408_v25 = vpop.eup %8825  ;;  %8837 = vrcp.f32 %v13387_v19  ;;  %v2790_v34 = vsel %vm13437_vm0, %v19954_v46, %v2786_v14  ;;  %v19997_v46 = vld [vmem:[#allocation100_spill] sm:$0xff]  ;;  %v963_v36 = vpop.f32.mrf.mxu0  ;;  %vm2817_vm6 = vweird.f32 %v19983_v21 }
 0x27e   :  { %19970 = vst [vmem:[#allocation292_spill] sm:$0xff] %v13376_v58  ;;  %v4614_v49 = vadd.f32 %v19974_v16, %v13365_v32  ;;  %v13411_v16 = vadd.f32 1.0, %v8820_v7  ;;  %v13415_v4 = vpop.eup %8827  ;;  %8839 = vpow2.f32 %v7866_v50  ;;  %v2793_v7 = vand.u32 2147483648, %v19953_v44  ;;  %v19984_v58 = vld [vmem:[#allocation148_spill] sm:$0xff] }
 0x27f   :  { %19973 = vst [vmem:[#allocation293_spill] sm:$0xff] %v13387_v19  ;;  %v8830_v43 = vpop.eup %8829  ;;  %8841 = vtanh.f32 %v13277_v48  ;;  %v2813_v40 = vmul.f32 %v19984_v58, %v19983_v21  ;;  %v13430_v50 = vadd.f32 %v1338_v20, %v12314_v1  ;;  %v5911_v14 = vadd.f32 %v19997_v46, %v13419_v23  ;;  %v1132_v48 = vpop.f32.mrf.mxu1 }
 0x280   :  { %19977 = vst [vmem:[#allocation95_spill] sm:$0xff] %v13400_v60  ;;  %v7882_v10 = vmul.f32 -1.442695, %v4614_v49  ;;  %v13426_v60 = vpop.eup %8831  ;;  %8843 = vrcp.f32 %v13403_v63  ;;  %v13442_v49 = vmul.f32 -1.442695, %v5926_v6  ;;  %v13454_v20 = vadd.f32 1.0, %v8830_v43 }
 0x281   :  { %19978 = vst [vmem:[#allocation141_spill] sm:$0xff] %v13403_v63  ;;  %v8834_v44 = vpop.eup %8833  ;;  %8845 = vrcp.f32 %v13411_v16  ;;  %v19995_v6 = vld [vmem:[#allocation119_spill] sm:$0xff]  ;;  %v2814_v19 = vsub.f32 1.0, %v2813_v40  ;;  %v4077_v40 = vpop.permute.xlu2 %4076  ;;  %v1133_v29 = vadd.f32 %v1132_v48, %v963_v36  ;;  %v20014_v48 = vld [vmem:[#allocation214_spill] sm:$0xff]  ;;  %vm2818_vm2 = vweird.f32 %v19984_v58 }
 0x282   :  { %19979 = vst [vmem:[#allocation152_spill] sm:$0xff] %v13408_v25  ;;  %v13451_v41 = vpop.eup %8835  ;;  %8847 = vrcp.f32 %v13417_v30  ;;  %v13464_v43 = vadd.f32 1.0, %v8834_v44  ;;  %vm13549_vm3 = vmor %vm2817_vm6, %vm2818_vm2  ;;  %vm2208_vm7 = vweird.f32 %v20014_v48 }
 0x283   :  { %19980 = vst [vmem:[#allocation294_spill] sm:$0xff] %v13411_v16  ;;  %v5239_v16 = vadd.f32 %v19995_v6, %v13419_v23  ;;  %v13460_v63 = vpop.eup %8837  ;;  %8849 = vpow2.f32 %v7898_v45  ;;  %v20000_v6 = vld [vmem:[#allocation139_spill] sm:$0xff]  ;;  %v20002_v45 = vld [vmem:[#allocation226_spill] sm:$0xff] }
 0x284   :  { %19981 = vst [vmem:[#allocation295_spill] sm:$0xff] %v13415_v4  ;;  %8851 = vpow2.f32 %v7930_v62  ;;  %v5927_v46 = vadd.f32 %v20002_v45, %v13430_v50  ;;  %v13487_v45 = vmul.f32 -1.442695, %v5911_v14 }
 0x285   :  { %19982 = vst [vmem:[#allocation296_spill] sm:$0xff] %v13417_v30  ;;  %v8840_v30 = vpop.eup %8839  ;;  %8853 = vtanh.f32 %v13321_v5 }
 0x286   :  { %19985 = vst [vmem:[#allocation186_spill] sm:$0xff] %v13426_v60  ;;  %v4599_v60 = vadd.f32 %v19994_v57, %v13419_v23  ;;  %v19999_v57 = vld [vmem:[#allocation94_spill] sm:$0xff]  ;;  %v13470_v4 = vpop.eup %8841  ;;  %8855 = vrcp.f32 %v13454_v20  ;;  %v13485_v5 = vadd.f32 1.0, %v8840_v30  ;;  %v13500_v36 = vmul.f32 -1.442695, %v5927_v46 }
 0x287   :  { %19987 = vst [vmem:[#allocation148_spill] sm:$0xff] %v13433_v17  ;;  %v4615_v25 = vadd.f32 %v19999_v57, %v13430_v50  ;;  %v5255_v17 = vadd.f32 %v20000_v6, %v13430_v50  ;;  %v13480_v44 = vpop.eup %8843  ;;  %v7899_v6 = vmul.f32 -1.442695, %v5239_v16  ;;  %8857 = vpow2.f32 %v7882_v10  ;;  %v20011_v10 = vld [vmem:[#allocation10_spill] sm:$0xff] }
 0x288   :  { %19992 = vst [vmem:[#allocation297_spill] sm:$0xff] %v13451_v41  ;;  %v2794_v41 = vor.u32 1.1754944e-38, %v2793_v7  ;;  %v7867_v57 = vmul.f32 -1.442695, %v4599_v60  ;;  %8859 = vrcp.f32 %v13464_v43  ;;  %v20009_v60 = vld [vmem:[#allocation185_spill] sm:$0xff] }
 0x289   :  { %19993 = vst [vmem:[#allocation298_spill] sm:$0xff] %v13454_v20  ;;  %v13495_v1 = vmul.f32 -1.442695, %v5255_v17  ;;  %v13498_v16 = vadd.f32 %v4077_v40, %v20009_v60  ;;  %v20013_v17 = vld [vmem:[#allocation206_spill] sm:$0xff]  ;;  %v2821_v60 = vand.u32 2147483647, %v19983_v21 }
 0x28a   :  { %19996 = vst [vmem:[#allocation61_spill] sm:$0xff] %v13460_v63  ;;  %v20003_v63 = vld [vmem:[#allocation204_spill] sm:$0xff]  ;;  %v2795_v62 = vsel %vm13447_vm1, %v2794_v41, %v2790_v34  ;;  %v13493_v34 = vmul.f32 -1.442695, %v4615_v25  ;;  %v1341_v41 = vpop.f32.mrf.mxu3  ;;  %v20019_v20 = vld [vmem:[#allocation193_spill] sm:$0xff]  ;;  %vm2207_vm5 = vweird.f32 %v20013_v17 }
 0x28b   :  { %19998 = vst [vmem:[#allocation119_spill] sm:$0xff] %v13464_v43  ;;  %v13476_v7 = vadd.f32 %v4079_v27, %v20003_v63  ;;  %v1301_v27 = vpop.f32.mrf.mxu2  ;;  %v2815_v63 = vmul.f32 %v19984_v58, %v2814_v19  ;;  %v13504_v14 = vmul.f32 %v2795_v62, %v20011_v10  ;;  %v2203_v43 = vmul.f32 %v20014_v48, %v20013_v17  ;;  %vm13618_vm8 = vmor %vm2207_vm5, %vm2208_vm7 }
 0x28c   :  { %20001 = vst [vmem:[#allocation100_spill] sm:$0xff] %v13470_v4  ;;  %v13483_v4 = vpop.eup %8845  ;;  %v13507_v25 = vadd.f32 %v1301_v27, %v1133_v29  ;;  %v13516_v46 = vadd.f32 %v1341_v41, %v12334_v11  ;;  %v2823_v27 = vand.u32 2147483648, %v19983_v21  ;;  %vm13560_vm4 = vcmp.eq.f32.partialorder %v2821_v60, 8.507059e+37 }
 0x28d   :  { %20004 = vst [vmem:[#allocation94_spill] sm:$0xff] %v13476_v7  ;;  %v13490_v3 = vpop.eup %8847  ;;  %8861 = vtanh.f32 %v13476_v7  ;;  %v13519_v62 = vadd.f32 %v19984_v58, %v2815_v63  ;;  %v20021_v63 = vld [vmem:[#allocation65_spill] sm:$0xff]  ;;  %v20022_v7 = vld [vmem:[#allocation195_spill] sm:$0xff]  ;;  %v2204_v53 = vsub.f32 1.0, %v2203_v43  ;;  %vm2803_vm13 = vweird.f32 %v20019_v20 }
 0x28e   :  { %20005 = vst [vmem:[#allocation139_spill] sm:$0xff] %v13480_v44  ;;  %v8850_v30 = vpop.eup %8849  ;;  %8863 = vpow2.f32 %v7914_v35  ;;  %v4600_v41 = vadd.f32 %v20021_v63, %v13507_v25  ;;  %vm2192_vm9 = vweird.f32 %v20022_v7 }
 0x28f   :  { %20006 = vst [vmem:[#allocation226_spill] sm:$0xff] %v13483_v4  ;;  %v8852_v19 = vpop.eup %8851  ;;  %8865 = vrcp.f32 %v13485_v5  ;;  %v13524_v29 = vadd.f32 1.0, %v8850_v30  ;;  %v20018_v4 = vld [vmem:[#allocation181_spill] sm:$0xff] }
 0x290   :  { %20007 = vst [vmem:[#allocation204_spill] sm:$0xff] %v13485_v5  ;;  %v13512_v40 = vpop.eup %8853  ;;  %8867 = vtanh.f32 %v13498_v16  ;;  %v13530_v10 = vmul.f32 %v20019_v20, %v20018_v4  ;;  %v13532_v11 = vadd.f32 1.0, %v8852_v19  ;;  %vm2802_vm15 = vweird.f32 %v20018_v4 }
 0x291   :  { %20008 = vst [vmem:[#allocation299_spill] sm:$0xff] %v13490_v3  ;;  %v13522_v35 = vpop.eup %8855  ;;  %8869 = vpow2.f32 %v13442_v49  ;;  %vm13700_vm0 = vmor %vm2802_vm15, %vm2803_vm13 }
 0x292   :  { %20010 = vst [vmem:[#allocation185_spill] sm:$0xff] %v13498_v16  ;;  %v8858_v44 = vpop.eup %8857  ;;  %8871 = vpow2.f32 %v7867_v57  ;;  %v20025_v16 = vld [vmem:[#allocation118_spill] sm:$0xff]  ;;  %v4616_v57 = vadd.f32 %v19631_v56, %v13516_v46  ;;  %v2799_v56 = vsub.f32 1.0, %v13530_v10 }
 0x293   :  { %20012 = vst [vmem:[#allocation300_spill] sm:$0xff] %v13504_v14  ;;  %v13539_v5 = vpop.eup %8859  ;;  %v5240_v3 = vadd.f32 %v20025_v16, %v13507_v25  ;;  %8873 = vtanh.f32 %v13365_v32  ;;  %v2820_v16 = vsel %vm13549_vm3, %v19984_v58, %v13519_v62  ;;  %v2824_v32 = vor.u32 1.1754944e-38, %v2823_v27 }
 0x294   :  { %20015 = vst [vmem:[#allocation206_spill] sm:$0xff] %v13512_v40  ;;  %v20026_v40 = vld [vmem:[#allocation180_spill] sm:$0xff]  ;;  %v8862_v19 = vpop.eup %8861  ;;  %8875 = vrcp.f32 %v13524_v29  ;;  %v13572_v58 = vadd.f32 1.0, %v8858_v44  ;;  %v13574_v62 = vmul.f32 -1.442695, %v4600_v41  ;;  %v2205_v27 = vmul.f32 %v20014_v48, %v2204_v53 }
 0x295   :  { %20016 = vst [vmem:[#allocation214_spill] sm:$0xff] %v13522_v35  ;;  %v20023_v35 = vld [vmem:[#allocation207_spill] sm:$0xff]  ;;  %v5912_v14 = vadd.f32 %v20026_v40, %v13507_v25  ;;  %v8864_v21 = vpop.eup %8863  ;;  %v5256_v40 = vadd.f32 %v19634_v12, %v13516_v46  ;;  %4270 = vrot.lane.b32.xlu2 %v8862_v19, %s9213_s12  ;;  %8877 = vrcp.f32 %v13532_v11  ;;  %v4081_v12 = vpop.permute.xlu1 %4080  ;;  %v13588_v44 = vadd.f32 %v12048_v54, %v13516_v46 }
 0x296   :  { %20017 = vst [vmem:[#allocation301_spill] sm:$0xff] %v13524_v29  ;;  %v2188_v30 = vmul.f32 %v20023_v35, %v20022_v7  ;;  %v13569_v63 = vpop.eup %8865  ;;  %8879 = vpow2.f32 %v7899_v6  ;;  %v13581_v10 = vadd.f32 1.0, %v8864_v21  ;;  %v2213_v54 = vand.u32 2147483648, %v20013_v17 }
 0x297   :  { %20020 = vst [vmem:[#allocation181_spill] sm:$0xff] %v13532_v11  ;;  %v8868_v49 = vpop.eup %8867  ;;  %v13578_v29 = vmul.f32 -1.442695, %v5912_v14  ;;  %8881 = vpow2.f32 %v13487_v45  ;;  %v13584_v11 = vmul.f32 -1.442695, %v4616_v57  ;;  %v13600_v45 = vadd.f32 %v4081_v12, %v12754_v47 }
 0x298   :  { %20024 = vst [vmem:[#allocation193_spill] sm:$0xff] %v13539_v5  ;;  %v2189_v60 = vsub.f32 1.0, %v2188_v30  ;;  %v13576_v5 = vmul.f32 -1.442695, %v5240_v3  ;;  %v8870_v19 = vpop.eup %8869  ;;  %4268 = vrot.lane.b32.xlu1 %v8868_v49, %s9213_s12  ;;  %8883 = vpow2.f32 %v13493_v34  ;;  %v13592_v6 = vmul.f32 -1.442695, %v5256_v40 }
 0x299   :  { %20031 = vst [vmem:[#allocation65_spill] sm:$0xff] %v13569_v63  ;;  %v8872_v3 = vpop.eup %8871  ;;  %8885 = vrcp.f32 %v13572_v58  ;;  %v13606_v34 = vadd.f32 1.0, %v8870_v19  ;;  %v2206_v30 = vadd.f32 %v20014_v48, %v2205_v27  ;;  %v2211_v57 = vand.u32 2147483647, %v20013_v17 }
 0x29a   :  { %20032 = vst [vmem:[#allocation195_spill] sm:$0xff] %v13572_v58  ;;  %v13596_v53 = vpop.eup %8873  ;;  %v2190_v14 = vmul.f32 %v20023_v35, %v2189_v60  ;;  %8887 = vtanh.f32 %v13419_v23  ;;  %v13614_v47 = vadd.f32 1.0, %v8872_v3  ;;  %vm2193_vm10 = vweird.f32 %v20023_v35  ;;  %v3953_v60 = vpop.permute.xlu0 %3952 }
 0x29b   :  { %20033 = vst [vmem:[#allocation207_spill] sm:$0xff] %v13581_v10  ;;  %v13604_v41 = vpop.eup %8875  ;;  %8889 = vrcp.f32 %v13581_v10  ;;  %v2198_v49 = vand.u32 2147483648, %v20022_v7  ;;  %v2825_v17 = vsel %vm13560_vm4, %v2824_v32, %v2820_v16  ;;  %v2800_v12 = vmul.f32 %v20019_v20, %v2799_v56  ;;  %vm13646_vm12 = vmor %vm2192_vm9, %vm2193_vm10  ;;  %v20046_v32 = vld [vmem:[#allocation213_spill] sm:$0xff]  ;;  %v20047_v56 = vld [vmem:[#allocation224_spill] sm:$0xff]  ;;  %v965_v10 = vpop.f32.mrf.mxu0 }
 0x29c   :  { %20034 = vst [vmem:[#allocation118_spill] sm:$0xff] %v13596_v53  ;;  %v13611_v21 = vpop.eup %8877  ;;  %8891 = vpow2.f32 %v13495_v1  ;;  %v2214_v19 = vor.u32 1.1754944e-38, %v2213_v54  ;;  %v2191_v3 = vadd.f32 %v20023_v35, %v2190_v14  ;;  %vm13638_vm11 = vcmp.eq.f32.partialorder %v2211_v57, 8.507059e+37 }
 0x29d   :  { %20035 = vst [vmem:[#allocation180_spill] sm:$0xff] %v13600_v45  ;;  %v8880_v23 = vpop.eup %8879  ;;  %6606 = vrot.lane.b32.xlu2 %v12789_v42, %s9213_s12  ;;  %8893 = vtanh.f32 %v13600_v45  ;;  %v2210_v42 = vsel %vm13618_vm8, %v20014_v48, %v2206_v30  ;;  %v2218_v54 = vmul.f32 %v20047_v56, %v20046_v32  ;;  %v3951_v30 = vpop.permute.xlu2 %3950  ;;  %v20052_v45 = vld [vmem:[#allocation192_spill] sm:$0xff]  ;;  %vm2222_vm2 = vweird.f32 %v20046_v32 }
 0x29e   :  { %20036 = vst [vmem:[#allocation302_spill] sm:$0xff] %v13604_v41  ;;  %v8882_v27 = vpop.eup %8881  ;;  %8895 = vrcp.f32 %v13606_v34  ;;  %v13655_v48 = vadd.f32 1.0, %v8880_v23  ;;  %v1134_v41 = vpop.f32.mrf.mxu1  ;;  %v20053_v23 = vld [vmem:[#allocation205_spill] sm:$0xff]  ;;  %vm2223_vm3 = vweird.f32 %v20047_v56  ;;  %vm3392_vm4 = vweird.f32 %v20052_v45 }
 0x29f   :  { %20037 = vst [vmem:[#allocation303_spill] sm:$0xff] %v13606_v34  ;;  %v8884_v1 = vpop.eup %8883  ;;  %8897 = vrcp.f32 %v13614_v47  ;;  %v13663_v40 = vadd.f32 1.0, %v8882_v27  ;;  %v2199_v34 = vor.u32 1.1754944e-38, %v2198_v49  ;;  %v3388_v63 = vmul.f32 %v20053_v23, %v20052_v45  ;;  %vm13752_vm5 = vmor %vm2222_vm2, %vm2223_vm3 }
 0x2a0   :  { %20038 = vst [vmem:[#allocation304_spill] sm:$0xff] %v13611_v21  ;;  %v2196_v21 = vand.u32 2147483647, %v20022_v7  ;;  %v13652_v14 = vpop.eup %8885  ;;  %3978 = vrot.lane.b32.xlu1 %v12749_v52, %s9213_s12  ;;  %v2806_v7 = vand.u32 2147483647, %v20018_v4  ;;  %8899 = vtanh.f32 %v13430_v50  ;;  %v2215_v52 = vsel %vm13638_vm11, %v2214_v19, %v2210_v42 }
 0x2a1   :  { %20039 = vst [vmem:[#allocation305_spill] sm:$0xff] %v13614_v47  ;;  %v13661_v57 = vpop.eup %8887  ;;  %v2195_v27 = vsel %vm13646_vm12, %v20023_v35, %v2191_v3  ;;  %8901 = vpow2.f32 %v13500_v36  ;;  %v4030_v50 = vmul.f32 %v3953_v60, %v2215_v52  ;;  %v2219_v49 = vsub.f32 1.0, %v2218_v54  ;;  %v1343_v54 = vpop.f32.mrf.mxu3 }
 0x2a2   :  { %20048 = vst [vmem:[#allocation213_spill] sm:$0xff] %v13652_v14  ;;  %v13668_v47 = vpop.eup %8889  ;;  %v13670_v14 = vadd.f32 1.0, %v8884_v1  ;;  %vm2197_vm14 = vcmp.eq.f32.partialorder %v2196_v21, 8.507059e+37  ;;  %8903 = vrcp.f32 %v13655_v48  ;;  %v13681_v1 = vmul.f32 -1.442695, %v13588_v44  ;;  %v1303_v21 = vpop.f32.mrf.mxu2 }
 0x2a3   :  { %20049 = vst [vmem:[#allocation224_spill] sm:$0xff] %v13655_v48  ;;  %v8892_v58 = vpop.eup %8891  ;;  %v1135_v43 = vadd.f32 %v1134_v41, %v965_v10  ;;  %v2808_v19 = vand.u32 2147483648, %v20018_v4  ;;  %8905 = vrcp.f32 %v13663_v40  ;;  %v2200_v35 = vsel %vm2197_vm14, %v2199_v34, %v2195_v27  ;;  %v20058_v41 = vld [vmem:[#allocation23_spill] sm:$0xff] }
 0x2a4   :  { %20050 = vst [vmem:[#allocation306_spill] sm:$0xff] %v13661_v57  ;;  %v2801_v57 = vadd.f32 %v20019_v20, %v2800_v12  ;;  %v8894_v53 = vpop.eup %8893  ;;  %v3389_v36 = vsub.f32 1.0, %v3388_v63  ;;  %8907 = vrcp.f32 %v13670_v14  ;;  %v13693_v10 = vadd.f32 1.0, %v8892_v58  ;;  %v4085_v63 = vpop.permute.xlu0 %4084 }
 0x2a5   :  { %20051 = vst [vmem:[#allocation307_spill] sm:$0xff] %v13663_v40  ;;  %v13684_v42 = vpop.eup %8895  ;;  %4272 = vrot.lane.b32.xlu0 %v8894_v53, %s9213_s12  ;;  %4112 = vrot.lane.b32.xlu2 %v4030_v50, %s9212_s19  ;;  %v4029_v44 = vmul.f32 %v3951_v30, %v2200_v35  ;;  %v13696_v12 = vmul.f32 %v2825_v17, %v20058_v41  ;;  %8909 = vpow2.f32 %v13574_v62  ;;  %vm13711_vm1 = vcmp.eq.f32.partialorder %v2806_v7, 8.507059e+37 }
 0x2a6   :  { %20054 = vst [vmem:[#allocation192_spill] sm:$0xff] %v13668_v47  ;;  %v13690_v60 = vpop.eup %8897  ;;  %v2220_v4 = vmul.f32 %v20047_v56, %v2219_v49  ;;  %v2805_v58 = vsel %vm13700_vm0, %v20019_v20, %v2801_v57  ;;  %8911 = vpow2.f32 %v13576_v5  ;;  %v13716_v3 = vadd.f32 %v1303_v21, %v1135_v43  ;;  %v20064_v5 = vld [vmem:[#allocation63_spill] sm:$0xff]  ;;  %v1137_v17 = vpop.f32.mrf.mxu1  ;;  %v20081_v43 = vld [vmem:[#allocation40_spill] sm:$0xff] }
 0x2a7   :  { %20055 = vst [vmem:[#allocation205_spill] sm:$0xff] %v13670_v14  ;;  %v13704_v53 = vpop.eup %8899  ;;  %v2809_v16 = vor.u32 1.1754944e-38, %v2808_v19  ;;  %vm3393_vm6 = vweird.f32 %v20053_v23  ;;  %8913 = vpow2.f32 %v13578_v29  ;;  %v3390_v20 = vmul.f32 %v20053_v23, %v3389_v36  ;;  %v4083_v29 = vpop.permute.xlu2 %4082 }
 0x2a8   :  { %20056 = vst [vmem:[#allocation308_spill] sm:$0xff] %v13684_v42  ;;  %4110 = vrot.lane.b32.xlu1 %v4029_v44, %s9212_s19  ;;  %v8902_v62 = vpop.eup %8901  ;;  %8915 = vrcp.f32 %v13693_v10  ;;  %v4601_v7 = vadd.f32 %v20064_v5, %v13716_v3  ;;  %v2228_v57 = vand.u32 2147483648, %v20046_v32  ;;  %v13731_v52 = vadd.f32 %v4085_v63, %v12866_v26  ;;  %v3955_v44 = vpop.permute.xlu1 %3954  ;;  %v20072_v63 = vld [vmem:[#allocation112_spill] sm:$0xff]  ;;  %vm13812_vm8 = vmor %vm3392_vm4, %vm3393_vm6 }
 0x2a9   :  { %20057 = vst [vmem:[#allocation309_spill] sm:$0xff] %v13693_v10  ;;  %v13724_v30 = vpop.eup %8903  ;;  %8917 = vpow2.f32 %v13584_v11  ;;  %v2221_v50 = vadd.f32 %v20047_v56, %v2220_v4  ;;  %v2226_v49 = vand.u32 2147483647, %v20046_v32  ;;  %v13742_v35 = vadd.f32 1.0, %v8902_v62  ;;  %v20075_v62 = vld [vmem:[#allocation236_spill] sm:$0xff] }
 0x2aa   :  { %20063 = vst [vmem:[#allocation310_spill] sm:$0xff] %v13724_v30  ;;  %v13734_v27 = vpop.eup %8905  ;;  %8919 = vpow2.f32 %v13592_v6  ;;  %v13746_v26 = vadd.f32 %v1343_v54, %v12381_v37  ;;  %v2810_v21 = vsel %vm13711_vm1, %v2809_v16, %v2805_v58  ;;  %v13760_v6 = vadd.f32 %v4083_v29, %v12924_v2  ;;  %v968_v2 = vpop.f32.mrf.mxu0  ;;  %v20076_v54 = vld [vmem:[#allocation158_spill] sm:$0xff] }
 0x2ab   :  { %20065 = vst [vmem:[#allocation63_spill] sm:$0xff] %v13731_v52  ;;  %v13740_v19 = vpop.eup %8907  ;;  %8921 = vtanh.f32 %v13507_v25  ;;  %v13767_v37 = vadd.f32 %v20053_v23, %v3390_v20  ;;  %v3398_v32 = vand.u32 2147483648, %v20052_v45  ;;  %v7869_v4 = vmul.f32 -1.442695, %v4601_v7 }
 0x2ac   :  { %20066 = vst [vmem:[#allocation311_spill] sm:$0xff] %v13734_v27  ;;  %v8910_v36 = vpop.eup %8909  ;;  %v5241_v25 = vadd.f32 %v20072_v63, %v13716_v3  ;;  %v2229_v58 = vor.u32 1.1754944e-38, %v2228_v57  ;;  %8923 = vtanh.f32 %v13731_v52  ;;  %vm13777_vm7 = vcmp.eq.f32.partialorder %v2226_v49, 8.507059e+37  ;;  %v20078_v57 = vld [vmem:[#allocation209_spill] sm:$0xff] }
 0x2ad   :  { %20067 = vst [vmem:[#allocation312_spill] sm:$0xff] %v13740_v19  ;;  %6608 = vrot.lane.b32.xlu0 %v12861_v0, %s9213_s12  ;;  %6642 = vrot.lane.b32.xlu2 %v13007_v28, %s9213_s12  ;;  %v8912_v34 = vpop.eup %8911  ;;  %8925 = vpow2.f32 %v13681_v1  ;;  %v2225_v0 = vsel %vm13752_vm5, %v20047_v56, %v2221_v50  ;;  %v2248_v20 = vmul.f32 %v20076_v54, %v20075_v62  ;;  %v13786_v7 = vadd.f32 1.0, %v8910_v36  ;;  %v1346_v28 = vpop.f32.mrf.mxu3 }
 0x2ae   :  { %20068 = vst [vmem:[#allocation313_spill] sm:$0xff] %v13742_v35  ;;  %v8914_v16 = vpop.eup %8913  ;;  %8927 = vrcp.f32 %v13742_v35  ;;  %v5913_v1 = vadd.f32 %v20078_v57, %v13716_v3  ;;  %v4617_v29 = vadd.f32 %v19637_v61, %v13746_v26  ;;  %v13794_v50 = vadd.f32 1.0, %v8912_v34  ;;  %v1306_v57 = vpop.f32.mrf.mxu2 }
 0x2af   :  { %20071 = vst [vmem:[#allocation314_spill] sm:$0xff] %v13760_v6  ;;  %v13783_v5 = vpop.eup %8915  ;;  %v5257_v49 = vadd.f32 %v19652_v22, %v13746_v26  ;;  %8929 = vtanh.f32 %v13760_v6  ;;  %v1138_v11 = vadd.f32 %v1137_v17, %v968_v2  ;;  %v13799_v63 = vadd.f32 1.0, %v8914_v16  ;;  %v20086_v17 = vld [vmem:[#allocation24_spill] sm:$0xff] }
 0x2b0   :  { %20077 = vst [vmem:[#allocation112_spill] sm:$0xff] %v13783_v5  ;;  %6640 = vrot.lane.b32.xlu1 %v12908_v55, %s9213_s12  ;;  %v8918_v56 = vpop.eup %8917  ;;  %8931 = vtanh.f32 %v13516_v46  ;;  %v2230_v61 = vsel %vm13777_vm7, %v2229_v58, %v2225_v0  ;;  %v20082_v55 = vld [vmem:[#allocation235_spill] sm:$0xff]  ;;  %v7901_v35 = vmul.f32 -1.442695, %v5241_v25  ;;  %v2249_v27 = vsub.f32 1.0, %v2248_v20  ;;  %v13831_v20 = vpop.permute.xlu2 %3956 }
 0x2b1   :  { %20079 = vst [vmem:[#allocation236_spill] sm:$0xff] %v13794_v50  ;;  %v8920_v36 = vpop.eup %8919  ;;  %v2233_v42 = vmul.f32 %v20082_v55, %v20081_v43  ;;  %8933 = vpow2.f32 %v7869_v4  ;;  %v4031_v22 = vmul.f32 %v3955_v44, %v2230_v61  ;;  %v13817_v58 = vadd.f32 1.0, %v8918_v56 }
 0x2b2   :  { %20080 = vst [vmem:[#allocation158_spill] sm:$0xff] %v13799_v63  ;;  %v13806_v34 = vpop.eup %8921  ;;  %8935 = vrcp.f32 %v13786_v7  ;;  %v13820_v16 = vmul.f32 %v2810_v21, %v20086_v17  ;;  %v13827_v25 = vadd.f32 1.0, %v8920_v36  ;;  %v13829_v0 = vadd.f32 %v1306_v57, %v1138_v11  ;;  %v20089_v57 = vld [vmem:[#allocation68_spill] sm:$0xff]  ;;  %v4087_v17 = vpop.permute.xlu1 %4086 }
 0x2b3   :  { %v8924_v46 = vpop.eup %8923  ;;  %20085 = vst [vmem:[#allocation209_spill] sm:$0xff] %v13817_v58  ;;  %8937 = vrcp.f32 %v13794_v50  ;;  %v13835_v21 = vor.u32 1.1754944e-38, %v3398_v32  ;;  %v7933_v61 = vmul.f32 -1.442695, %v5913_v1  ;;  %v7885_v44 = vmul.f32 -1.442695, %v4617_v29 }
 0x2b4   :  { %v8926_v4 = vpop.eup %8925  ;;  %20087 = vst [vmem:[#allocation40_spill] sm:$0xff] %v13827_v25  ;;  %8939 = vrcp.f32 %v13799_v63  ;;  %v2234_v40 = vsub.f32 1.0, %v2233_v42  ;;  %v7917_v11 = vmul.f32 -1.442695, %v5257_v49  ;;  %v4602_v47 = vadd.f32 %v20089_v57, %v13829_v0  ;;  %v970_v63 = vpop.f32.mrf.mxu0 }
 0x2b5   :  { %4114 = vrot.lane.b32.xlu0 %v4031_v22, %s9212_s19  ;;  %4276 = vrot.lane.b32.xlu2 %v8924_v46, %s9213_s12  ;;  %v13837_v56 = vpop.eup %8927  ;;  %8941 = vpow2.f32 %v7901_v35  ;;  %v2250_v22 = vmul.f32 %v20076_v54, %v2249_v27  ;;  %v13846_v32 = vadd.f32 1.0, %v8926_v4  ;;  %v13850_v1 = vadd.f32 %v11787_v38, %v13746_v26  ;;  %v13855_v35 = vpop.permute.xlu0 %3958  ;;  %v20092_v38 = vld [vmem:[#allocation124_spill] sm:$0xff] }
 0x2b6   :  { %20088 = vst [vmem:[#allocation235_spill] sm:$0xff] %v13837_v56  ;;  %v8930_v36 = vpop.eup %8929  ;;  %8943 = vrcp.f32 %v13817_v58  ;;  %v13853_v42 = vadd.f32 %v1346_v28, %v12444_v15  ;;  %vm2252_vm9 = vweird.f32 %v20075_v62  ;;  %vm2253_vm10 = vweird.f32 %v20076_v54 }
 0x2b7   :  { %v13843_v5 = vpop.eup %8931  ;;  %20090 = vst [vmem:[#allocation68_spill] sm:$0xff] %v13846_v32  ;;  %8945 = vrcp.f32 %v13827_v25  ;;  %v2258_v27 = vand.u32 2147483648, %v20075_v62  ;;  %v5242_v15 = vadd.f32 %v20092_v38, %v13829_v0  ;;  %v13867_v46 = vadd.f32 %v4087_v17, %v12979_v51  ;;  %v1139_v25 = vpop.f32.mrf.mxu1  ;;  %vm13884_vm11 = vmor %vm2252_vm9, %vm2253_vm10 }
 0x2b8   :  { %20091 = vst [vmem:[#allocation315_spill] sm:$0xff] %v13853_v42  ;;  %4274 = vrot.lane.b32.xlu1 %v8930_v36, %s9213_s12  ;;  %v8934_v29 = vpop.eup %8933  ;;  %8947 = vpow2.f32 %v7885_v44  ;;  %v2235_v4 = vmul.f32 %v20082_v55, %v2234_v40  ;;  %v7870_v36 = vmul.f32 -1.442695, %v4602_v47  ;;  %v2251_v57 = vadd.f32 %v20076_v54, %v2250_v22 }
 0x2b9   :  { %v13862_v49 = vpop.eup %8935  ;;  %20093 = vst [vmem:[#allocation124_spill] sm:$0xff] %v13867_v46  ;;  %8949 = vtanh.f32 %v13716_v3  ;;  %v2256_v56 = vand.u32 2147483647, %v20075_v62  ;;  %v13878_v38 = vadd.f32 1.0, %v8934_v29  ;;  %vm2237_vm12 = vweird.f32 %v20081_v43 }
 0x2ba   :  { %v13870_v28 = vpop.eup %8937  ;;  %8951 = vrcp.f32 %v13846_v32  ;;  %vm2238_vm13 = vweird.f32 %v20082_v55  ;;  %v4618_v40 = vadd.f32 %v19664_v8, %v13853_v42  ;;  %v2259_v3 = vor.u32 1.1754944e-38, %v2258_v27  ;;  %v20105_v27 = vld [vmem:[#allocation249_spill] sm:$0xff] }
 0x2bb   :  { %20094 = vst [vmem:[#allocation316_spill] sm:$0xff] %v13870_v28  ;;  %v13875_v44 = vpop.eup %8939  ;;  %8953 = vpow2.f32 %v7917_v11  ;;  %v2243_v17 = vand.u32 2147483648, %v20081_v43  ;;  %v2236_v22 = vadd.f32 %v20082_v55, %v2235_v4  ;;  %v2241_v11 = vand.u32 2147483647, %v20081_v43  ;;  %vm13915_vm15 = vmor %vm2237_vm12, %vm2238_vm13  ;;  %v13921_v4 = vpop.permute.xlu2 %4088  ;;  %v20107_v43 = vld [vmem:[#allocation208_spill] sm:$0xff] }
 0x2bc   :  { %20095 = vst [vmem:[#allocation317_spill] sm:$0xff] %v13875_v44  ;;  %v8942_v47 = vpop.eup %8941  ;;  %8955 = vtanh.f32 %v13867_v46  ;;  %v1140_v29 = vadd.f32 %v1139_v25, %v970_v63  ;;  %v2255_v8 = vsel %vm13884_vm11, %v20076_v54, %v2251_v57  ;;  %vm13907_vm14 = vcmp.eq.f32.partialorder %v2256_v56, 8.507059e+37  ;;  %v1308_v63 = vpop.f32.mrf.mxu2  ;;  %v20104_v25 = vld [vmem:[#allocation245_spill] sm:$0xff]  ;;  %v20108_v57 = vld [vmem:[#allocation216_spill] sm:$0xff] }
 0x2bd   :  { %6644 = vrot.lane.b32.xlu0 %v13107_v31, %s9213_s12  ;;  %6612 = vrot.lane.b32.xlu2 %v13061_v39, %s9213_s12  ;;  %v13897_v62 = vpop.eup %8943  ;;  %8957 = vpow2.f32 %v7933_v61  ;;  %v2263_v61 = vmul.f32 %v20105_v27, %v20104_v25  ;;  %v13924_v54 = vadd.f32 1.0, %v8942_v47  ;;  %v5258_v56 = vadd.f32 %v19666_v9, %v13853_v42  ;;  %v4091_v50 = vpop.permute.xlu0 %4090 }
 0x2be   :  { %20098 = vst [vmem:[#allocation318_spill] sm:$0xff] %v13897_v62  ;;  %v13902_v32 = vpop.eup %8945  ;;  %8959 = vrcp.f32 %v13878_v38  ;;  %v2843_v44 = vmul.f32 %v20108_v57, %v20107_v43  ;;  %v7902_v10 = vmul.f32 -1.442695, %v5242_v15  ;;  %v7886_v41 = vmul.f32 -1.442695, %v4618_v40  ;;  %v973_v2 = vpop.f32.mrf.mxu0 }
 0x2bf   :  { %20099 = vst [vmem:[#allocation319_spill] sm:$0xff] %v13902_v32  ;;  %v8948_v51 = vpop.eup %8947  ;;  %8961 = vtanh.f32 %v13746_v26  ;;  %v2244_v30 = vor.u32 1.1754944e-38, %v2243_v17  ;;  %v2260_v47 = vsel %vm13907_vm14, %v2259_v3, %v2255_v8  ;;  %v2240_v9 = vsel %vm13915_vm15, %v20082_v55, %v2236_v22  ;;  %v20114_v55 = vld [vmem:[#allocation67_spill] sm:$0xff] }
 0x2c0   :  { %20106 = vst [vmem:[#allocation245_spill] sm:$0xff] %v13924_v54  ;;  %6610 = vrot.lane.b32.xlu1 %v12961_v33, %s9213_s12  ;;  %v13932_v32 = vpop.eup %8949  ;;  %vm13942_vm0 = vcmp.eq.f32.partialorder %v2241_v11, 8.507059e+37  ;;  %v13946_v28 = vadd.f32 %v1308_v63, %v1140_v29  ;;  %v13948_v15 = vadd.f32 1.0, %v8948_v51  ;;  %8963 = vpow2.f32 %v7870_v36  ;;  %v13982_v51 = vpop.permute.xlu1 %3960 }
 0x2c1   :  { %v13935_v48 = vpop.eup %8951  ;;  %v4033_v40 = vmul.f32 %v13855_v35, %v2260_v47  ;;  %v2264_v17 = vsub.f32 1.0, %v2263_v61  ;;  %8965 = vrcp.f32 %v13924_v54  ;;  %v7918_v3 = vmul.f32 -1.442695, %v5258_v56 }
 0x2c2   :  { %20109 = vst [vmem:[#allocation249_spill] sm:$0xff] %v13935_v48  ;;  %v8954_v26 = vpop.eup %8953  ;;  %v4603_v22 = vadd.f32 %v20114_v55, %v13946_v28  ;;  %v2844_v11 = vsub.f32 1.0, %v2843_v44  ;;  %v13957_v29 = vmul.f32 -1.442695, %v13850_v1  ;;  %8967 = vpow2.f32 %v7902_v10  ;;  %v1348_v1 = vpop.f32.mrf.mxu3  ;;  %v20139_v48 = vld [vmem:[#allocation194_spill] sm:$0xff] }
 0x2c3   :  { %20112 = vst [vmem:[#allocation208_spill] sm:$0xff] %v13946_v28  ;;  %v8956_v31 = vpop.eup %8955  ;;  %v2245_v36 = vsel %vm13942_vm0, %v2244_v30, %v2240_v9  ;;  %v20117_v35 = vand.u32 2147483647, %v20052_v45  ;;  %v13967_v63 = vadd.f32 1.0, %v8954_v26  ;;  %8969 = vpow2.f32 %v7886_v41  ;;  %v13995_v9 = vpop.permute.xlu2 %3962 }
 0x2c4   :  { %20113 = vst [vmem:[#allocation216_spill] sm:$0xff] %v13948_v15  ;;  %v13954_v8 = vpop.eup %8957  ;;  %v4032_v44 = vmul.f32 %v13831_v20, %v2245_v36  ;;  %v20119_v10 = vsel %vm13812_vm8, %v20053_v23, %v13767_v37  ;;  %8971 = vrcp.f32 %v13948_v15  ;;  %v2265_v45 = vmul.f32 %v20105_v27, %v2264_v17  ;;  %v1142_v20 = vpop.f32.mrf.mxu1 }
 0x2c5   :  { %20115 = vst [vmem:[#allocation67_spill] sm:$0xff] %v13954_v8  ;;  %4278 = vrot.lane.b32.xlu0 %v8956_v31, %s9213_s12  ;;  %4118 = vrot.lane.b32.xlu2 %v4033_v40, %s9212_s19  ;;  %vm3397_vm1 = vcmp.eq.f32.partialorder %v20117_v35, 8.507059e+37  ;;  %v13965_v39 = vpop.eup %8959  ;;  %vm2847_vm6 = vweird.f32 %v20107_v43  ;;  %vm2848_vm2 = vweird.f32 %v20108_v57  ;;  %8973 = vpow2.f32 %v7918_v3  ;;  %v20123_v31 = vld [vmem:[#allocation177_spill] sm:$0xff]  ;;  %v20124_v35 = vld [vmem:[#allocation122_spill] sm:$0xff] }
 0x2c6   :  { %20116 = vst [vmem:[#allocation320_spill] sm:$0xff] %v13957_v29  ;;  %v13976_v30 = vsel %vm3397_vm1, %v13835_v21, %v20119_v10  ;;  %v13978_v61 = vpop.eup %8961  ;;  %v7871_v41 = vmul.f32 -1.442695, %v4603_v22  ;;  %v2845_v23 = vmul.f32 %v20108_v57, %v2844_v11  ;;  %v13990_v56 = vadd.f32 %v1348_v1, %v12533_v24  ;;  %vm14068_vm8 = vmor %vm2847_vm6, %vm2848_vm2 }
 0x2c7   :  { %20118 = vst [vmem:[#allocation321_spill] sm:$0xff] %v13967_v63  ;;  %v8964_v21 = vpop.eup %8963  ;;  %vm2267_vm3 = vweird.f32 %v20104_v25  ;;  %vm2268_vm4 = vweird.f32 %v20105_v27  ;;  %v2271_v47 = vand.u32 2147483647, %v20104_v25  ;;  %8975 = vrcp.f32 %v13967_v63  ;;  %v20142_v63 = vld [vmem:[#allocation197_spill] sm:$0xff] }
 0x2c8   :  { %4116 = vrot.lane.b32.xlu1 %v4032_v44, %s9212_s19  ;;  %20120 = vst [vmem:[#allocation322_spill] sm:$0xff] %v13990_v56  ;;  %v13997_v33 = vpop.eup %8965  ;;  %v2273_v26 = vand.u32 2147483648, %v20104_v25  ;;  %v14002_v40 = vadd.f32 %v4091_v50, %v13045_v59  ;;  %v2853_v24 = vand.u32 2147483648, %v20107_v43  ;;  %8977 = vtanh.f32 %v13829_v0  ;;  %vm14017_vm5 = vmor %vm2267_vm3, %vm2268_vm4  ;;  %v1311_v50 = vpop.f32.mrf.mxu2 }
 0x2c9   :  { %20121 = vst [vmem:[#allocation323_spill] sm:$0xff] %v13997_v33  ;;  %v8968_v17 = vpop.eup %8967  ;;  %v5914_v3 = vadd.f32 %v20123_v31, %v13829_v0  ;;  %v2266_v55 = vadd.f32 %v20105_v27, %v2265_v45  ;;  %v1143_v22 = vadd.f32 %v1142_v20, %v973_v2  ;;  %v14009_v36 = vadd.f32 1.0, %v8964_v21  ;;  %v14021_v0 = vpop.permute.xlu0 %3964  ;;  %v20131_v2 = vld [vmem:[#allocation156_spill] sm:$0xff]  ;;  %v20132_v20 = vld [vmem:[#allocation285_spill] sm:$0xff] }
 0x2ca   :  { %20122 = vst [vmem:[#allocation324_spill] sm:$0xff] %v14002_v40  ;;  %v8970_v11 = vpop.eup %8969  ;;  %8979 = vpow2.f32 %v7871_v41  ;;  %v5243_v44 = vadd.f32 %v20124_v35, %v13946_v28  ;;  %v2846_v1 = vadd.f32 %v20108_v57, %v2845_v23  ;;  %v4619_v45 = vadd.f32 %v19675_v18, %v13990_v56  ;;  %v20134_v18 = vld [vmem:[#allocation254_spill] sm:$0xff]  ;;  %v20144_v33 = vld [vmem:[#allocation89_spill] sm:$0xff]  ;;  %v1351_v59 = vpop.f32.mrf.mxu3 }
 0x2cb   :  { %v14024_v10 = vpop.eup %8971  ;;  %8981 = vtanh.f32 %v13853_v42  ;;  %vm14029_vm7 = vcmp.eq.f32.partialorder %v2271_v47, 8.507059e+37  ;;  %v14035_v25 = vadd.f32 %v13921_v4, %v13097_v13  ;;  %v14041_v21 = vadd.f32 1.0, %v8968_v17  ;;  %v20135_v47 = vld [vmem:[#allocation93_spill] sm:$0xff]  ;;  %v20141_v17 = vld [vmem:[#allocation130_spill] sm:$0xff] }
 0x2cc   :  { %20127 = vst [vmem:[#allocation177_spill] sm:$0xff] %v14024_v10  ;;  %v8974_v23 = vpop.eup %8973  ;;  %v2274_v31 = vor.u32 1.1754944e-38, %v2273_v26  ;;  %8983 = vtanh.f32 %v14002_v40  ;;  %v2293_v35 = vmul.f32 %v20135_v47, %v20134_v18  ;;  %v14046_v37 = vadd.f32 1.0, %v8970_v11  ;;  %v20143_v11 = vld [vmem:[#allocation255_spill] sm:$0xff]  ;;  %v4093_v40 = vpop.permute.xlu1 %4092 }
 0x2cd   :  { %20130 = vst [vmem:[#allocation122_spill] sm:$0xff] %v14035_v25  ;;  %6614 = vrot.lane.b32.xlu0 %v20131_v2, %s9213_s12  ;;  %6648 = vrot.lane.b32.xlu2 %v20132_v20, %s9213_s12  ;;  %v2270_v13 = vsel %vm14017_vm5, %v20105_v27, %v2266_v55  ;;  %v14051_v4 = vadd.f32 %v1311_v50, %v1143_v22  ;;  %v20138_v2 = vld [vmem:[#allocation182_spill] sm:$0xff]  ;;  %v14055_v42 = vpop.eup %8975  ;;  %8985 = vrcp.f32 %v14009_v36  ;;  %v7903_v26 = vmul.f32 -1.442695, %v5243_v44 }
 0x2ce   :  { %20133 = vst [vmem:[#allocation156_spill] sm:$0xff] %v14041_v21  ;;  %v3373_v20 = vmul.f32 %v20139_v48, %v20138_v2  ;;  %v5259_v29 = vadd.f32 %v20141_v17, %v13990_v56  ;;  %v2278_v8 = vmul.f32 %v20143_v11, %v20142_v63  ;;  %v14072_v55 = vpop.eup %8977  ;;  %v14074_v22 = vadd.f32 1.0, %v8974_v23  ;;  %v20149_v27 = vld [vmem:[#allocation114_spill] sm:$0xff] }
 0x2cf   :  { %20136 = vst [vmem:[#allocation285_spill] sm:$0xff] %v14046_v37  ;;  %v7887_v44 = vmul.f32 -1.442695, %v4619_v45  ;;  %8987 = vtanh.f32 %v14035_v25  ;;  %v2275_v17 = vsel %vm14029_vm7, %v2274_v31, %v2270_v13  ;;  %v2294_v23 = vsub.f32 1.0, %v2293_v35 }
 0x2d0   :  { %20137 = vst [vmem:[#allocation254_spill] sm:$0xff] %v14051_v4  ;;  %6646 = vrot.lane.b32.xlu1 %v20144_v33, %s9213_s12  ;;  %v2850_v33 = vsel %vm14068_vm8, %v20108_v57, %v2846_v1  ;;  %v8980_v50 = vpop.eup %8979  ;;  %8989 = vrcp.f32 %v14041_v21  ;;  %v4034_v45 = vmul.f32 %v13982_v51, %v2275_v17  ;;  %v5244_v57 = vadd.f32 %v20149_v27, %v14051_v4  ;;  %v14091_v1 = vpop.permute.xlu2 %4094 }
 0x2d1   :  { %20140 = vst [vmem:[#allocation93_spill] sm:$0xff] %v14055_v42  ;;  %v20148_v42 = vld [vmem:[#allocation66_spill] sm:$0xff]  ;;  %v14085_v52 = vpop.eup %8981  ;;  %8991 = vrcp.f32 %v14046_v37  ;;  %v3374_v21 = vsub.f32 1.0, %v3373_v20  ;;  %v2279_v41 = vsub.f32 1.0, %v2278_v8  ;;  %v20150_v31 = vand.u32 2147483647, %v20107_v43  ;;  %v975_v17 = vpop.f32.mrf.mxu0 }
 0x2d2   :  { %20147 = vst [vmem:[#allocation182_spill] sm:$0xff] %v14074_v22  ;;  %v4604_v54 = vadd.f32 %v20148_v42, %v14051_v4  ;;  %v8984_v25 = vpop.eup %8983  ;;  %8993 = vpow2.f32 %v7903_v26  ;;  %v2854_v42 = vor.u32 1.1754944e-38, %v2853_v24  ;;  %v14095_v35 = vmul.f32 -1.442695, %v5914_v3  ;;  %v1144_v37 = vpop.f32.mrf.mxu1 }
 0x2d3   :  { %vm2852_vm9 = vcmp.eq.f32.partialorder %v20150_v31, 8.507059e+37  ;;  %8995 = vrcp.f32 %v14074_v22  ;;  %v14098_v13 = vadd.f32 1.0, %v8980_v50  ;;  %v7919_v51 = vmul.f32 -1.442695, %v5259_v29  ;;  %v14102_v20 = vpop.eup %8985  ;;  %v14106_v24 = vpop.permute.xlu0 %4096  ;;  %v20153_v50 = vld [vmem:[#allocation150_spill] sm:$0xff] }
 0x2d4   :  { %20151 = vst [vmem:[#allocation194_spill] sm:$0xff] %v14095_v35  ;;  %8997 = vtanh.f32 %v13946_v28  ;;  %v7872_v43 = vmul.f32 -1.442695, %v4604_v54  ;;  %v2295_v8 = vmul.f32 %v20135_v47, %v2294_v23  ;;  %v14108_v3 = vsel %vm2852_vm9, %v2854_v42, %v2850_v33  ;;  %v1313_v31 = vpop.f32.mrf.mxu2  ;;  %v20163_v35 = vld [vmem:[#allocation50_spill] sm:$0xff]  ;;  %v14159_v62 = vpop.permute.xlu1 %3966 }
 0x2d5   :  { %20152 = vst [vmem:[#allocation130_spill] sm:$0xff] %v14098_v13  ;;  %4120 = vrot.lane.b32.xlu0 %v4034_v45, %s9212_s19  ;;  %4282 = vrot.lane.b32.xlu2 %v8984_v25, %s9213_s12  ;;  %v8988_v26 = vpop.eup %8987  ;;  %8999 = vpow2.f32 %v7887_v44  ;;  %v7904_v29 = vmul.f32 -1.442695, %v5244_v57  ;;  %v14111_v27 = vadd.f32 %v1351_v59, %v20153_v50  ;;  %v14114_v45 = vmul.f32 %v20139_v48, %v3374_v21  ;;  %v20157_v44 = vld [vmem:[#allocation159_spill] sm:$0xff]  ;;  %v20164_v28 = vld [vmem:[#allocation142_spill] sm:$0xff] }
 0x2d6   :  { %v14116_v25 = vpop.eup %8989  ;;  %vm2297_vm10 = vweird.f32 %v20134_v18  ;;  %vm2298_vm11 = vweird.f32 %v20135_v47  ;;  %v2280_v54 = vmul.f32 %v20143_v11, %v2279_v41  ;;  %v1145_v23 = vadd.f32 %v1144_v37, %v975_v17 }
 0x2d7   :  { %20154 = vst [vmem:[#allocation197_spill] sm:$0xff] %v14111_v27  ;;  %v14122_v33 = vpop.eup %8991  ;;  %9001 = vrcp.f32 %v14098_v13  ;;  %v14126_v59 = vadd.f32 %v4093_v40, %v20157_v44  ;;  %v2301_v21 = vand.u32 2147483647, %v20134_v18  ;;  %v2303_v57 = vand.u32 2147483648, %v20134_v18  ;;  %v20160_v40 = vld [vmem:[#allocation110_spill] sm:$0xff]  ;;  %vm14142_vm14 = vmor %vm2297_vm10, %vm2298_vm11  ;;  %v1353_v44 = vpop.f32.mrf.mxu3 }
 0x2d8   :  { %20155 = vst [vmem:[#allocation255_spill] sm:$0xff] %v14116_v25  ;;  %4280 = vrot.lane.b32.xlu1 %v8988_v26, %s9213_s12  ;;  %v8994_v42 = vpop.eup %8993  ;;  %v2296_v50 = vadd.f32 %v20135_v47, %v2295_v8  ;;  %vm2282_vm12 = vweird.f32 %v20142_v63  ;;  %vm2283_vm13 = vweird.f32 %v20143_v11  ;;  %v2286_v37 = vand.u32 2147483647, %v20142_v63  ;;  %v14149_v25 = vpop.permute.xlu2 %3968  ;;  %v20182_v26 = vld [vmem:[#allocation260_spill] sm:$0xff] }
 0x2d9   :  { %20156 = vst [vmem:[#allocation89_spill] sm:$0xff] %v14122_v33  ;;  %v14134_v41 = vpop.eup %8995  ;;  %9003 = vpow2.f32 %v7919_v51  ;;  %v4620_v17 = vadd.f32 %v20160_v40, %v14111_v27  ;;  %v2288_v8 = vand.u32 2147483648, %v20142_v63  ;;  %v2308_v22 = vmul.f32 %v20164_v28, %v20163_v35  ;;  %v20165_v40 = vld [vmem:[#allocation149_spill] sm:$0xff]  ;;  %vm14171_vm0 = vmor %vm2282_vm12, %vm2283_vm13  ;;  %v20176_v63 = vld [vmem:[#allocation75_spill] sm:$0xff] }
 0x2da   :  { %20158 = vst [vmem:[#allocation66_spill] sm:$0xff] %v14126_v59  ;;  %v14151_v51 = vpop.eup %8997  ;;  %9005 = vtanh.f32 %v13990_v56  ;;  %v2281_v18 = vadd.f32 %v20143_v11, %v2280_v54  ;;  %v14157_v33 = vadd.f32 %v1313_v31, %v1145_v23  ;;  %v14161_v19 = vadd.f32 1.0, %v8994_v42  ;;  %v20172_v54 = vld [vmem:[#allocation55_spill] sm:$0xff]  ;;  %v20173_v23 = vld [vmem:[#allocation286_spill] sm:$0xff] }
 0x2db   :  { %20159 = vst [vmem:[#allocation114_spill] sm:$0xff] %v14134_v41  ;;  %v5260_v41 = vadd.f32 %v20165_v40, %v14111_v27  ;;  %v9000_v58 = vpop.eup %8999  ;;  %9007 = vpow2.f32 %v7872_v43  ;;  %vm14163_vm15 = vcmp.eq.f32.partialorder %v2301_v21, 8.507059e+37  ;;  %v2304_v46 = vor.u32 1.1754944e-38, %v2303_v57  ;;  %v14203_v6 = vpop.permute.xlu0 %3970  ;;  %v20190_v21 = vld [vmem:[#allocation164_spill] sm:$0xff] }
 0x2dc   :  { %20166 = vst [vmem:[#allocation150_spill] sm:$0xff] %v14157_v33  ;;  %9009 = vtanh.f32 %v14126_v59  ;;  %v2300_v43 = vsel %vm14142_vm14, %v20135_v47, %v2296_v50  ;;  %vm14183_vm1 = vcmp.eq.f32.partialorder %v2286_v37, 8.507059e+37  ;;  %v14188_v57 = vadd.f32 %v1353_v44, %v20176_v63  ;;  %v20181_v50 = vld [vmem:[#allocation128_spill] sm:$0xff]  ;;  %v20183_v44 = vld [vmem:[#allocation265_spill] sm:$0xff] }
 0x2dd   :  { %20167 = vst [vmem:[#allocation159_spill] sm:$0xff] %v14161_v19  ;;  %6650 = vrot.lane.b32.xlu0 %v20172_v54, %s9213_s12  ;;  %6618 = vrot.lane.b32.xlu2 %v20173_v23, %s9213_s12  ;;  %v14190_v31 = vpop.eup %9001  ;;  %9011 = vpow2.f32 %v7904_v29  ;;  %v2289_v42 = vor.u32 1.1754944e-38, %v2288_v8  ;;  %v20179_v54 = vld [vmem:[#allocation70_spill] sm:$0xff]  ;;  %v2309_v56 = vsub.f32 1.0, %v2308_v22  ;;  %v14194_v59 = vadd.f32 1.0, %v9000_v58  ;;  %v20184_v29 = vld [vmem:[#allocation217_spill] sm:$0xff] }
 0x2de   :  { %20177 = vst [vmem:[#allocation110_spill] sm:$0xff] %v14188_v57  ;;  %v4605_v23 = vadd.f32 %v20179_v54, %v14157_v33  ;;  %v2285_v47 = vsel %vm14171_vm0, %v20143_v11, %v2281_v18  ;;  %v5245_v37 = vadd.f32 %v20181_v50, %v14157_v33  ;;  %v2338_v63 = vmul.f32 %v20183_v44, %v20182_v26  ;;  %v20186_v54 = vld [vmem:[#allocation27_spill] sm:$0xff]  ;;  %v20187_v50 = vld [vmem:[#allocation109_spill] sm:$0xff] }
 0x2df   :  { %20178 = vst [vmem:[#allocation50_spill] sm:$0xff] %v14190_v31  ;;  %v14207_v8 = vpop.eup %9003  ;;  %9013 = vrcp.f32 %v14161_v19  ;;  %v7888_v58 = vmul.f32 -1.442695, %v4620_v17  ;;  %v7920_v22 = vmul.f32 -1.442695, %v5260_v41  ;;  %v14212_v11 = vmul.f32 %v14108_v3, %v20186_v54 }
 0x2e0   :  { %20180 = vst [vmem:[#allocation142_spill] sm:$0xff] %v14194_v59  ;;  %6616 = vrot.lane.b32.xlu1 %v20184_v29, %s9213_s12  ;;  %v14214_v18 = vpop.eup %9005  ;;  %v2305_v40 = vsel %vm14163_vm15, %v2304_v46, %v2300_v43  ;;  %v4621_v10 = vadd.f32 %v20187_v50, %v14188_v57  ;;  %v20188_v29 = vld [vmem:[#allocation144_spill] sm:$0xff]  ;;  %v2290_v3 = vsel %vm14183_vm1, %v2289_v42, %v2285_v47  ;;  %v7873_v54 = vmul.f32 -1.442695, %v4605_v23  ;;  %v14230_v46 = vpop.permute.xlu2 %4100 }
 0x2e1   :  { %20185 = vst [vmem:[#allocation149_spill] sm:$0xff] %v14207_v8  ;;  %v5261_v15 = vadd.f32 %v20188_v29, %v14188_v57  ;;  %v14224_v8 = vadd.f32 %v20139_v48, %v14114_v45  ;;  %v9008_v41 = vpop.eup %9007  ;;  %v4036_v17 = vmul.f32 %v14021_v0, %v2305_v40  ;;  %v2310_v14 = vmul.f32 %v20164_v28, %v2309_v56  ;;  %v20189_v0 = vld [vmem:[#allocation85_spill] sm:$0xff]  ;;  %v4099_v47 = vpop.permute.xlu1 %4098 }
 0x2e2   :  { %v9010_v43 = vpop.eup %9009  ;;  %9015 = vrcp.f32 %v14194_v59  ;;  %v4035_v50 = vmul.f32 %v13995_v9, %v2290_v3  ;;  %v7905_v29 = vmul.f32 -1.442695, %v5245_v37  ;;  %v2339_v19 = vsub.f32 1.0, %v2338_v63  ;;  %v20205_v59 = vld [vmem:[#allocation288_spill] sm:$0xff] }
 0x2e3   :  { %v9012_v45 = vpop.eup %9011  ;;  %9017 = vpow2.f32 %v7888_v58  ;;  %vm2312_vm6 = vweird.f32 %v20163_v35  ;;  %vm2313_vm2 = vweird.f32 %v20164_v28  ;;  %v2323_v42 = vmul.f32 %v20190_v21, %v20189_v0 }
 0x2e4   :  { %9019 = vtanh.f32 %v14051_v4  ;;  %v7889_v56 = vmul.f32 -1.442695, %v4621_v10  ;;  %v14241_v23 = vmul.f32 -1.442695, %v5261_v15  ;;  %v2318_v9 = vand.u32 2147483648, %v20163_v35  ;;  %vm14256_vm3 = vmor %vm2312_vm6, %vm2313_vm2 }
 0x2e5   :  { %4284 = vrot.lane.b32.xlu0 %v9010_v43, %s9213_s12  ;;  %4124 = vrot.lane.b32.xlu2 %v4036_v17, %s9212_s19  ;;  %v14244_v37 = vpop.eup %9013  ;;  %v14246_v63 = vadd.f32 1.0, %v9008_v41  ;;  %9021 = vpow2.f32 %v7873_v54  ;;  %v2311_v58 = vadd.f32 %v20164_v28, %v2310_v14  ;;  %v2316_v40 = vand.u32 2147483647, %v20163_v35  ;;  %v20196_v41 = vld [vmem:[#allocation198_spill] sm:$0xff]  ;;  %v20197_v17 = vld [vmem:[#allocation47_spill] sm:$0xff]  ;;  %v20198_v14 = vld [vmem:[#allocation165_spill] sm:$0xff] }
 0x2e6   :  { %20191 = vst [vmem:[#allocation55_spill] sm:$0xff] %v14244_v37  ;;  %v14250_v3 = vadd.f32 1.0, %v9012_v45  ;;  %9023 = vpow2.f32 %v7920_v22  ;;  %v2340_v10 = vmul.f32 %v20183_v44, %v2339_v19  ;;  %v2353_v54 = vmul.f32 %v20197_v17, %v20196_v41  ;;  %v14275_v37 = vpop.permute.xlu0 %4102 }
 0x2e7   :  { %20192 = vst [vmem:[#allocation286_spill] sm:$0xff] %v14246_v63  ;;  %9025 = vtanh.f32 %v14111_v27  ;;  %v14267_v22 = vadd.f32 %v14106_v24, %v20198_v14  ;;  %v2346_v43 = vand.u32 2147483647, %v20182_v26  ;;  %v2324_v35 = vsub.f32 1.0, %v2323_v42 }
 0x2e8   :  { %20193 = vst [vmem:[#allocation75_spill] sm:$0xff] %v14250_v3  ;;  %4122 = vrot.lane.b32.xlu1 %v4035_v50, %s9212_s19  ;;  %v14270_v45 = vpop.eup %9015  ;;  %v2319_v4 = vor.u32 1.1754944e-38, %v2318_v9  ;;  %vm2342_vm4 = vweird.f32 %v20182_v26  ;;  %vm2343_vm5 = vweird.f32 %v20183_v44  ;;  %v2348_v19 = vand.u32 2147483648, %v20182_v26  ;;  %v20203_v9 = vld [vmem:[#allocation168_spill] sm:$0xff]  ;;  %v14289_v27 = vpop.permute.xlu2 %3974 }
 0x2e9   :  { %20199 = vst [vmem:[#allocation70_spill] sm:$0xff] %v14267_v22  ;;  %v9018_v50 = vpop.eup %9017  ;;  %9027 = vrcp.f32 %v14246_v63  ;;  %v2315_v24 = vsel %vm14256_vm3, %v20164_v28, %v2311_v58  ;;  %vm14281_vm7 = vcmp.eq.f32.partialorder %v2316_v40, 8.507059e+37  ;;  %v14287_v14 = vadd.f32 %v14091_v1, %v20203_v9  ;;  %vm14302_vm8 = vmor %vm2342_vm4, %vm2343_vm5  ;;  %v20212_v9 = vld [vmem:[#allocation271_spill] sm:$0xff] }
 0x2ea   :  { %20200 = vst [vmem:[#allocation128_spill] sm:$0xff] %v14270_v45  ;;  %v14291_v45 = vpop.eup %9019  ;;  %9029 = vrcp.f32 %v14250_v3  ;;  %v14295_v63 = vadd.f32 %v4099_v47, %v20205_v59  ;;  %v2341_v15 = vadd.f32 %v20183_v44, %v2340_v10  ;;  %v2354_v28 = vsub.f32 1.0, %v2353_v54  ;;  %v20211_v47 = vld [vmem:[#allocation176_spill] sm:$0xff]  ;;  %v20213_v54 = vld [vmem:[#allocation295_spill] sm:$0xff] }
 0x2eb   :  { %20204 = vst [vmem:[#allocation260_spill] sm:$0xff] %v14287_v14  ;;  %v9022_v58 = vpop.eup %9021  ;;  %9031 = vpow2.f32 %v7905_v29  ;;  %vm14306_vm9 = vcmp.eq.f32.partialorder %v2346_v43, 8.507059e+37  ;;  %v2325_v59 = vmul.f32 %v20190_v21, %v2324_v35  ;;  %v2383_v10 = vmul.f32 %v20212_v9, %v20211_v47  ;;  %v20214_v29 = vld [vmem:[#allocation118_spill] sm:$0xff] }
 0x2ec   :  { %20206 = vst [vmem:[#allocation265_spill] sm:$0xff] %v14295_v63  ;;  %v14317_v26 = vpop.eup %9023  ;;  %v14319_v3 = vadd.f32 1.0, %v9018_v50  ;;  %v2320_v43 = vsel %vm14281_vm7, %v2319_v4, %v2315_v24  ;;  %9033 = vtanh.f32 %v14267_v22  ;;  %v2349_v31 = vor.u32 1.1754944e-38, %v2348_v19  ;;  %v14336_v19 = vpop.permute.xlu1 %3972  ;;  %v20218_v24 = vld [vmem:[#allocation100_spill] sm:$0xff] }
 0x2ed   :  { %6620 = vrot.lane.b32.xlu0 %v20213_v54, %s9213_s12  ;;  %6654 = vrot.lane.b32.xlu2 %v20214_v29, %s9213_s12  ;;  %20215 = vst [vmem:[#allocation217_spill] sm:$0xff] %v14317_v26  ;;  %v14324_v35 = vpop.eup %9025  ;;  %vm2327_vm10 = vweird.f32 %v20189_v0  ;;  %vm2328_vm11 = vweird.f32 %v20190_v21  ;;  %v2331_v54 = vand.u32 2147483647, %v20189_v0  ;;  %v2333_v29 = vand.u32 2147483648, %v20189_v0 }
 0x2ee   :  { %20216 = vst [vmem:[#allocation109_spill] sm:$0xff] %v14319_v3  ;;  %v14330_v13 = vadd.f32 1.0, %v9022_v58  ;;  %9035 = vpow2.f32 %v7889_v56  ;;  %v2345_v4 = vsel %vm14302_vm8, %v20183_v44, %v2341_v15  ;;  %v2355_v50 = vmul.f32 %v20197_v17, %v2354_v28  ;;  %vm14352_vm12 = vmor %vm2327_vm10, %vm2328_vm11  ;;  %v20224_v15 = vld [vmem:[#allocation155_spill] sm:$0xff] }
 0x2ef   :  { %v14340_v42 = vpop.eup %9027  ;;  %v4037_v26 = vmul.f32 %v14159_v62, %v2320_v43  ;;  %9037 = vtanh.f32 %v14287_v14  ;;  %v2326_v58 = vadd.f32 %v20190_v21, %v2325_v59  ;;  %v2384_v56 = vsub.f32 1.0, %v2383_v10  ;;  %v20223_v62 = vld [vmem:[#allocation267_spill] sm:$0xff] }
 0x2f0   :  { %20217 = vst [vmem:[#allocation144_spill] sm:$0xff] %v14330_v13  ;;  %6652 = vrot.lane.b32.xlu1 %v20218_v24, %s9213_s12  ;;  %v14345_v22 = vpop.eup %9029  ;;  %9039 = vrcp.f32 %v14319_v3  ;;  %vm2357_vm13 = vweird.f32 %v20196_v41  ;;  %vm2358_vm14 = vweird.f32 %v20197_v17  ;;  %v2368_v28 = vmul.f32 %v20224_v15, %v20223_v62  ;;  %v14368_v43 = vpop.permute.xlu2 %4106 }
 0x2f1   :  { %20219 = vst [vmem:[#allocation85_spill] sm:$0xff] %v14340_v42  ;;  %v9032_v1 = vpop.eup %9031  ;;  %9041 = vtanh.f32 %v14157_v33  ;;  %v2350_v59 = vsel %vm14306_vm9, %v2349_v31, %v2345_v4  ;;  %vm14363_vm15 = vcmp.eq.f32.partialorder %v2331_v54, 8.507059e+37  ;;  %v2363_v0 = vand.u32 2147483648, %v20196_v41  ;;  %v14373_v33 = vpop.permute.xlu0 %3976  ;;  %vm14386_vm0 = vmor %vm2357_vm13, %vm2358_vm14  ;;  %v20230_v4 = vld [vmem:[#allocation140_spill] sm:$0xff] }
 0x2f2   :  { %20220 = vst [vmem:[#allocation164_spill] sm:$0xff] %v14345_v22  ;;  %v9034_v24 = vpop.eup %9033  ;;  %9043 = vrcp.f32 %v14330_v13  ;;  %v2334_v22 = vor.u32 1.1754944e-38, %v2333_v29  ;;  %v2356_v14 = vadd.f32 %v20197_v17, %v2355_v50  ;;  %v2361_v42 = vand.u32 2147483647, %v20196_v41  ;;  %v20231_v50 = vld [vmem:[#allocation64_spill] sm:$0xff] }
 0x2f3   :  { %9045 = vpow2.f32 %v14241_v23  ;;  %v14377_v31 = vmul.f32 %v14203_v6, %v2350_v59  ;;  %v2330_v40 = vsel %vm14352_vm12, %v20190_v21, %v2326_v58  ;;  %v2385_v29 = vmul.f32 %v20212_v9, %v2384_v56 }
 0x2f4   :  { %v9036_v6 = vpop.eup %9035  ;;  %v14393_v23 = vadd.f32 1.0, %v9032_v1  ;;  %9047 = vtanh.f32 %v14295_v63  ;;  %v2369_v21 = vsub.f32 1.0, %v2368_v28  ;;  %v4991_v58 = vmul.f32 %v20231_v50, %v20230_v4  ;;  %v20235_v28 = vld [vmem:[#allocation200_spill] sm:$0xff] }
 0x2f5   :  { %4126 = vrot.lane.b32.xlu0 %v4037_v26, %s9212_s19  ;;  %4288 = vrot.lane.b32.xlu2 %v9034_v24, %s9213_s12  ;;  %v9038_v41 = vpop.eup %9037  ;;  %v2364_v44 = vor.u32 1.1754944e-38, %v2363_v0  ;;  %vm2387_vm1 = vweird.f32 %v20211_v47  ;;  %vm2388_vm6 = vweird.f32 %v20212_v9  ;;  %v2393_v56 = vand.u32 2147483648, %v20211_v47  ;;  %v20237_v0 = vld [vmem:[#allocation148_spill] sm:$0xff] }
 0x2f6   :  { %20229 = vst [vmem:[#allocation198_spill] sm:$0xff] %v14393_v23  ;;  %v14401_v26 = vpop.eup %9039  ;;  %v2360_v1 = vsel %vm14386_vm0, %v20197_v17, %v2356_v14  ;;  %vm14406_vm2 = vcmp.eq.f32.partialorder %v2361_v42, 8.507059e+37  ;;  %v14412_v24 = vadd.f32 %v14275_v37, %v20235_v28  ;;  %v14416_v63 = vadd.f32 %v14230_v46, %v20237_v0  ;;  %v4105_v28 = vpop.permute.xlu1 %4104  ;;  %vm14434_vm3 = vmor %vm2387_vm1, %vm2388_vm6 }
 0x2f7   :  { %20232 = vst [vmem:[#allocation47_spill] sm:$0xff] %v14401_v26  ;;  %v14419_v3 = vpop.eup %9041  ;;  %9049 = vtanh.f32 %v14188_v57  ;;  %v2335_v17 = vsel %vm14363_vm15, %v2334_v22, %v2330_v40  ;;  %v2386_v14 = vadd.f32 %v20212_v9, %v2385_v29  ;;  %v2391_v42 = vand.u32 2147483647, %v20211_v47  ;;  %v20243_v40 = vld [vmem:[#allocation106_spill] sm:$0xff]  ;;  %v20244_v29 = vld [vmem:[#allocation115_spill] sm:$0xff] }
 0x2f8   :  { %20236 = vst [vmem:[#allocation165_spill] sm:$0xff] %v14412_v24  ;;  %4286 = vrot.lane.b32.xlu1 %v9038_v41, %s9213_s12  ;;  %v14426_v54 = vpop.eup %9043  ;;  %v14428_v37 = vadd.f32 1.0, %v9036_v6  ;;  %v2370_v10 = vmul.f32 %v20224_v15, %v2369_v21  ;;  %v4992_v22 = vsub.f32 1.0, %v4991_v58  ;;  %v4751_v41 = vmul.f32 %v20244_v29, %v20243_v40  ;;  %v14447_v26 = vpop.permute.xlu2 %4270 }
 0x2f9   :  { %20238 = vst [vmem:[#allocation168_spill] sm:$0xff] %v14416_v63  ;;  %v9046_v0 = vpop.eup %9045  ;;  %9051 = vrcp.f32 %v14393_v23  ;;  %v14443_v6 = vmul.f32 %v14149_v25, %v2335_v17  ;;  %v2365_v57 = vsel %vm14406_vm2, %v2364_v44, %v2360_v1  ;;  %v2394_v47 = vor.u32 1.1754944e-38, %v2393_v56  ;;  %v20245_v17 = vld [vmem:[#allocation300_spill] sm:$0xff]  ;;  %v20249_v1 = vld [vmem:[#allocation306_spill] sm:$0xff] }
 0x2fa   :  { %20239 = vst [vmem:[#allocation288_spill] sm:$0xff] %v14426_v54  ;;  %vm3378_vm4 = vweird.f32 %v20139_v48  ;;  %v9048_v54 = vpop.eup %9047  ;;  %vm2372_vm5 = vweird.f32 %v20223_v62  ;;  %vm2373_vm7 = vweird.f32 %v20224_v15  ;;  %v2376_v21 = vand.u32 2147483647, %v20223_v62 }
 0x2fb   :  { %20240 = vst [vmem:[#allocation176_spill] sm:$0xff] %v14428_v37  ;;  %v2378_v58 = vand.u32 2147483648, %v20223_v62  ;;  %v14455_v25 = vmul.f32 %v14336_v19, %v2365_v57  ;;  %v14458_v59 = vadd.f32 %v4105_v28, %v20245_v17  ;;  %v2390_v44 = vsel %vm14434_vm3, %v20212_v9, %v2386_v14  ;;  %v4109_v19 = vpop.permute.xlu0 %4108  ;;  %vm14483_vm10 = vmor %vm2372_vm5, %vm2373_vm7  ;;  %v20257_v62 = vld [vmem:[#allocation206_spill] sm:$0xff] }
 0x2fc   :  { %vm14463_vm8 = vcmp.eq.f32.partialorder %v2391_v42, 8.507059e+37  ;;  %vm3377_vm9 = vweird.f32 %v20138_v2  ;;  %9053 = vrcp.f32 %v14428_v37  ;;  %v2371_v57 = vadd.f32 %v20224_v15, %v2370_v10  ;;  %v20254_v10 = vld [vmem:[#allocation72_spill] sm:$0xff]  ;;  %v20282_v37 = vld [vmem:[#allocation37_spill] sm:$0xff] }
 0x2fd   :  { %20246 = vst [vmem:[#allocation271_spill] sm:$0xff] %v14458_v59  ;;  %4290 = vrot.lane.b32.xlu0 %v9048_v54, %s9213_s12  ;;  %6624 = vrot.lane.b32.xlu2 %v20249_v1, %s9213_s12  ;;  %v4993_v28 = vmul.f32 %v20231_v50, %v4992_v22  ;;  %v4752_v46 = vsub.f32 1.0, %v4751_v41  ;;  %v14474_v9 = vpop.eup %9049  ;;  %v14476_v14 = vadd.f32 1.0, %v9046_v0  ;;  %9055 = vtanh.f32 %v14412_v24  ;;  %v20253_v54 = vld [vmem:[#allocation125_spill] sm:$0xff]  ;;  %vm14556_vm6 = vmor %vm3377_vm9, %vm3378_vm4 }
 0x2fe   :  { %vm4995_vm11 = vweird.f32 %v20230_v4  ;;  %v5021_v22 = vmul.f32 %v20254_v10, %v20253_v54  ;;  %9057 = vtanh.f32 %v14416_v63  ;;  %v2395_v41 = vsel %vm14463_vm8, %v2394_v47, %v2390_v44 }
 0x2ff   :  { %20250 = vst [vmem:[#allocation295_spill] sm:$0xff] %v14476_v14  ;;  %vm14493_vm12 = vcmp.eq.f32.partialorder %v2376_v21, 8.507059e+37  ;;  %v2379_v17 = vor.u32 1.1754944e-38, %v2378_v58  ;;  %v14499_v1 = vpop.eup %9051  ;;  %9059 = vtanh.f32 %v14458_v59  ;;  %v14503_v14 = vadd.f32 %v4109_v19, %v13696_v12 }
 0x300   :  { %6622 = vrot.lane.b32.xlu1 %v20257_v62, %s9213_s12  ;;  %20258 = vst [vmem:[#allocation118_spill] sm:$0xff] %v14499_v1  ;;  %v14507_v23 = vadd.f32 %v14368_v43, %v13820_v16  ;;  %vm4996_vm13 = vweird.f32 %v20231_v50  ;;  %v2375_v47 = vsel %vm14483_vm10, %v20224_v15, %v2371_v57  ;;  %v4994_v21 = vadd.f32 %v20231_v50, %v4993_v28  ;;  %v14520_v19 = vpop.permute.xlu2 %6606  ;;  %v20261_v43 = vld [vmem:[#allocation225_spill] sm:$0xff] }
 0x301   :  { %20259 = vst [vmem:[#allocation100_spill] sm:$0xff] %v14503_v14  ;;  %v4999_v58 = vand.u32 2147483647, %v20230_v4  ;;  %v4753_v44 = vmul.f32 %v20244_v29, %v4752_v46  ;;  %v14517_v56 = vmul.f32 %v14373_v33, %v2395_v41  ;;  %v5001_v12 = vand.u32 2147483648, %v20230_v4  ;;  %v20262_v62 = vld [vmem:[#allocation233_spill] sm:$0xff]  ;;  %vm14537_vm0 = vmor %vm4995_vm11, %vm4996_vm13 }
 0x302   :  { %20260 = vst [vmem:[#allocation267_spill] sm:$0xff] %v14507_v23  ;;  %v5022_v16 = vsub.f32 1.0, %v5021_v22  ;;  %v3403_v1 = vmul.f32 %v20262_v62, %v20261_v43  ;;  %v14524_v63 = vpop.eup %9053  ;;  %vm4755_vm14 = vweird.f32 %v20243_v40  ;;  %vm4756_vm15 = vweird.f32 %v20244_v29 }
 0x303   :  { %20263 = vst [vmem:[#allocation155_spill] sm:$0xff] %v14524_v63  ;;  %v4759_v15 = vand.u32 2147483647, %v20243_v40  ;;  %v4761_v57 = vand.u32 2147483648, %v20243_v40  ;;  %v9056_v33 = vpop.eup %9055  ;;  %v2380_v28 = vsel %vm14493_vm12, %v2379_v17, %v2375_v47  ;;  %9061 = vtanh.f32 %v14503_v14  ;;  %vm14566_vm2 = vmor %vm4755_vm14, %vm4756_vm15  ;;  %v20281_v63 = vld [vmem:[#allocation196_spill] sm:$0xff] }
 0x304   :  { %v3381_v42 = vand.u32 2147483647, %v20138_v2  ;;  %v3383_v22 = vand.u32 2147483648, %v20138_v2  ;;  %v9058_v41 = vpop.eup %9057  ;;  %9063 = vtanh.f32 %v14507_v23  ;;  %v4998_v4 = vsel %vm14537_vm0, %v20231_v50, %v4994_v21  ;;  %v20271_v2 = vld [vmem:[#allocation145_spill] sm:$0xff]  ;;  %v20295_v23 = vld [vmem:[#allocation80_spill] sm:$0xff] }
 0x305   :  { %6626 = vrot.lane.b32.xlu0 %v13806_v34, %s9213_s12  ;;  %4130 = vrot.lane.b32.xlu2 %v14377_v31, %s9212_s19  ;;  %vm5000_vm1 = vcmp.eq.f32.partialorder %v4999_v58, 8.507059e+37  ;;  %v4754_v0 = vadd.f32 %v20244_v29, %v4753_v44  ;;  %v14560_v31 = vpop.eup %9059  ;;  %v5002_v17 = vor.u32 1.1754944e-38, %v5001_v12  ;;  %v5023_v47 = vmul.f32 %v20254_v10, %v5022_v16  ;;  %v20270_v58 = vld [vmem:[#allocation272_spill] sm:$0xff]  ;;  %v6639_v16 = vpop.permute.xlu0 %6638 }
 0x306   :  { %v3404_v21 = vsub.f32 1.0, %v3403_v1  ;;  %v2398_v44 = vmul.f32 %v20271_v2, %v20270_v58  ;;  %v14574_v46 = vmul.f32 %v14289_v27, %v2380_v28  ;;  %vm14576_vm3 = vcmp.eq.f32.partialorder %v4759_v15, 8.507059e+37  ;;  %v20277_v28 = vld [vmem:[#allocation160_spill] sm:$0xff] }
 0x307   :  { %v4762_v12 = vor.u32 1.1754944e-38, %v4761_v57  ;;  %v3380_v40 = vsel %vm14556_vm6, %v20139_v48, %v14224_v8  ;;  %v5003_v1 = vsel %vm5000_vm1, %v5002_v17, %v4998_v4  ;;  %v14588_v14 = vmul.f32 %v14447_v26, %v13976_v30  ;;  %v20276_v8 = vld [vmem:[#allocation203_spill] sm:$0xff] }
 0x308   :  { %4128 = vrot.lane.b32.xlu1 %v14443_v6, %s9212_s19  ;;  %vm14590_vm4 = vcmp.eq.f32.partialorder %v3381_v42, 8.507059e+37  ;;  %v3384_v15 = vor.u32 1.1754944e-38, %v3383_v22  ;;  %v4758_v6 = vsel %vm14566_vm2, %v20244_v29, %v4754_v0  ;;  %vm5026_vm5 = vweird.f32 %v20254_v10  ;;  %v14605_v26 = vpop.permute.xlu2 %4112  ;;  %v20278_v17 = vld [vmem:[#allocation111_spill] sm:$0xff]  ;;  %v20279_v29 = vld [vmem:[#allocation132_spill] sm:$0xff] }
 0x309   :  { %v5029_v48 = vand.u32 2147483647, %v20253_v54  ;;  %v3433_v4 = vmul.f32 %v20277_v28, %v20276_v8  ;;  %v14603_v30 = vpop.eup %9061  ;;  %v5024_v42 = vadd.f32 %v20254_v10, %v5023_v47  ;;  %v3405_v22 = vmul.f32 %v20262_v62, %v3404_v21 }
 0x30a   :  { %v14597_v57 = vpop.permute.xlu1 %4268  ;;  %v2399_v34 = vsub.f32 1.0, %v2398_v44  ;;  %v4766_v0 = vmul.f32 %v20279_v29, %v20278_v17  ;;  %v14611_v50 = vpop.eup %9063  ;;  %v14613_v24 = vmul.f32 %v6639_v16, %v5003_v1  ;;  %vm5025_vm7 = vweird.f32 %v20253_v54 }
 0x30b   :  { %v5031_v59 = vand.u32 2147483648, %v20253_v54  ;;  %v2828_v13 = vmul.f32 %v20282_v37, %v20281_v63  ;;  %v4763_v47 = vsel %vm14576_vm3, %v4762_v12, %v4758_v6  ;;  %v14625_v21 = vsel %vm14590_vm4, %v3384_v15, %v3380_v40  ;;  %vm14632_vm8 = vmor %vm5025_vm7, %vm5026_vm5 }
 0x30c   :  { %20280 = vst [vmem:[#allocation140_spill] sm:$0xff] %v14613_v24  ;;  %v3411_v44 = vand.u32 2147483647, %v20261_v43  ;;  %v3413_v1 = vand.u32 2147483648, %v20261_v43  ;;  %vm14636_vm9 = vcmp.eq.f32.partialorder %v5029_v48, 8.507059e+37  ;;  %vm3408_vm10 = vweird.f32 %v20262_v62 }
 0x30d   :  { %4132 = vrot.lane.b32.xlu0 %v14455_v25, %s9212_s19  ;;  %4294 = vrot.lane.b32.xlu2 %v9056_v33, %s9213_s12  ;;  %v2406_v25 = vand.u32 2147483647, %v20270_v58  ;;  %v3434_v12 = vsub.f32 1.0, %v3433_v4  ;;  %v5028_v33 = vsel %vm14632_vm8, %v20254_v10, %v5024_v42  ;;  %v3406_v40 = vadd.f32 %v20262_v62, %v3405_v22 }
 0x30e   :  { %v2400_v16 = vmul.f32 %v20271_v2, %v2399_v34  ;;  %v4767_v27 = vsub.f32 1.0, %v4766_v0  ;;  %v5032_v15 = vor.u32 1.1754944e-38, %v5031_v59  ;;  %vm3407_vm11 = vweird.f32 %v20261_v43 }
 0x30f   :  { %vm2402_vm12 = vweird.f32 %v20270_v58  ;;  %v2829_v6 = vsub.f32 1.0, %v2828_v13  ;;  %v14651_v48 = vmul.f32 %v14520_v19, %v4763_v47  ;;  %vm14653_vm13 = vcmp.eq.f32.partialorder %v3411_v44, 8.507059e+37  ;;  %vm14664_vm15 = vmor %vm3407_vm11, %vm3408_vm10 }
 0x310   :  { %4292 = vrot.lane.b32.xlu1 %v9058_v41, %s9213_s12  ;;  %v3414_v10 = vor.u32 1.1754944e-38, %v3413_v1  ;;  %vm2403_vm14 = vweird.f32 %v20271_v2  ;;  %v14660_v59 = vsel %vm14636_vm9, %v5032_v15, %v5028_v33  ;;  %v2408_v13 = vand.u32 2147483648, %v20270_v58  ;;  %v14673_v22 = vpop.permute.xlu2 %6642  ;;  %v20297_v33 = vld [vmem:[#allocation218_spill] sm:$0xff] }
 0x311   :  { %v3435_v41 = vmul.f32 %v20277_v28, %v3434_v12  ;;  %v3441_v42 = vand.u32 2147483647, %v20276_v8  ;;  %v3410_v34 = vsel %vm14664_vm15, %v20262_v62, %v3406_v40  ;;  %v2401_v0 = vadd.f32 %v20271_v2, %v2400_v16  ;;  %vm14686_vm1 = vmor %vm2402_vm12, %vm2403_vm14  ;;  %v20296_v62 = vld [vmem:[#allocation83_spill] sm:$0xff] }
 0x312   :  { %v14669_v19 = vpop.permute.xlu1 %3978  ;;  %vm14679_vm0 = vcmp.eq.f32.partialorder %v2406_v25, 8.507059e+37  ;;  %v4768_v44 = vmul.f32 %v20279_v29, %v4767_v27  ;;  %vm3437_vm6 = vweird.f32 %v20276_v8  ;;  %v2830_v54 = vmul.f32 %v20282_v37, %v2829_v6  ;;  %v20298_v25 = vld [vmem:[#allocation99_spill] sm:$0xff] }
 0x313   :  { %v4796_v12 = vmul.f32 %v20296_v62, %v20295_v23  ;;  %v2858_v40 = vmul.f32 %v20298_v25, %v20297_v33  ;;  %vm3438_vm2 = vweird.f32 %v20277_v28  ;;  %v3443_v58 = vand.u32 2147483648, %v20276_v8 }
 0x314   :  { %vm4770_vm3 = vweird.f32 %v20278_v17  ;;  %vm4771_vm4 = vweird.f32 %v20279_v29  ;;  %v14706_v16 = vsel %vm14653_vm13, %v3414_v10, %v3410_v34  ;;  %v2409_v27 = vor.u32 1.1754944e-38, %v2408_v13  ;;  %vm14737_vm9 = vmor %vm3437_vm6, %vm3438_vm2 }
 0x315   :  { %4296 = vrot.lane.b32.xlu0 %v14560_v31, %s9213_s12  ;;  %6630 = vrot.lane.b32.xlu2 %v14072_v55, %s9213_s12  ;;  %v3436_v15 = vadd.f32 %v20277_v28, %v3435_v41  ;;  %vm14709_vm5 = vcmp.eq.f32.partialorder %v3441_v42, 8.507059e+37  ;;  %v2405_v55 = vsel %vm14686_vm1, %v20271_v2, %v2401_v0  ;;  %v4769_v43 = vadd.f32 %v20279_v29, %v4768_v44  ;;  %vm14723_vm7 = vmor %vm4770_vm3, %vm4771_vm4  ;;  %v20306_v0 = vld [vmem:[#allocation178_spill] sm:$0xff]  ;;  %v20307_v44 = vld [vmem:[#allocation69_spill] sm:$0xff] }
 0x316   :  { %v4774_v24 = vand.u32 2147483647, %v20278_v17  ;;  %v4776_v4 = vand.u32 2147483648, %v20278_v17  ;;  %v2831_v13 = vadd.f32 %v20282_v37, %v2830_v54  ;;  %vm2833_vm8 = vweird.f32 %v20282_v37 }
 0x317   :  { %v14713_v6 = vpop.permute.xlu0 %4272  ;;  %v4797_v41 = vsub.f32 1.0, %v4796_v12  ;;  %v2859_v42 = vsub.f32 1.0, %v2858_v40  ;;  %v14731_v2 = vadd.f32 %v14605_v26, %v14212_v11  ;;  %v3444_v17 = vor.u32 1.1754944e-38, %v3443_v58 }
 0x318   :  { %6628 = vrot.lane.b32.xlu1 %v13932_v32, %s9213_s12  ;;  %v2838_v34 = vand.u32 2147483648, %v20281_v63  ;;  %v5006_v1 = vmul.f32 %v20307_v44, %v20306_v0  ;;  %v4364_v54 = vmul.f32 %v14597_v57, %v14625_v21  ;;  %v3440_v11 = vsel %vm14737_vm9, %v20277_v28, %v3436_v15  ;;  %v14753_v40 = vpop.permute.xlu2 %4276  ;;  %v20331_v28 = vld [vmem:[#allocation121_spill] sm:$0xff] }
 0x319   :  { %20303 = vst [vmem:[#allocation64_spill] sm:$0xff] %v14731_v2  ;;  %vm2832_vm10 = vweird.f32 %v20281_v63  ;;  %v2836_v8 = vand.u32 2147483647, %v20281_v63  ;;  %v2410_v12 = vsel %vm14679_vm0, %v2409_v27, %v2405_v55  ;;  %v4773_v58 = vsel %vm14723_vm7, %v20279_v29, %v4769_v43  ;;  %v20312_v29 = vld [vmem:[#allocation238_spill] sm:$0xff] }
 0x31a   :  { %v4111_v26 = vpop.permute.xlu1 %4110  ;;  %vm14758_vm11 = vcmp.eq.f32.partialorder %v4774_v24, 8.507059e+37  ;;  %v4777_v21 = vor.u32 1.1754944e-38, %v4776_v4  ;;  %vm14764_vm12 = vmor %vm2832_vm10, %vm2833_vm8  ;;  %v4798_v47 = vmul.f32 %v20296_v62, %v4797_v41  ;;  %v2860_v27 = vmul.f32 %v20298_v25, %v2859_v42  ;;  %v20313_v24 = vld [vmem:[#allocation244_spill] sm:$0xff] }
 0x31b   :  { %v2835_v63 = vsel %vm14764_vm12, %v20282_v37, %v2831_v13  ;;  %v2888_v15 = vmul.f32 %v20313_v24, %v20312_v29  ;;  %9065 = vtanh.f32 %v14731_v2  ;;  %v14778_v55 = vsel %vm14709_vm5, %v3444_v17, %v3440_v11  ;;  %v20314_v17 = vld [vmem:[#allocation161_spill] sm:$0xff] }
 0x31c   :  { %v2839_v43 = vor.u32 1.1754944e-38, %v2838_v34  ;;  %v5007_v37 = vsub.f32 1.0, %v5006_v1  ;;  %vm2837_vm13 = vcmp.eq.f32.partialorder %v2836_v8, 8.507059e+37  ;;  %vm4800_vm14 = vweird.f32 %v20295_v23  ;;  %v20315_v34 = vld [vmem:[#allocation3_spill] sm:$0xff] }
 0x31d   :  { %4428 = vrot.lane.b32.xlu0 %v4364_v54, %s9212_s19  ;;  %4136 = vrot.lane.b32.xlu2 %v14517_v56, %s9212_s19  ;;  %vm4801_vm15 = vweird.f32 %v20296_v62  ;;  %v4804_v4 = vand.u32 2147483647, %v20295_v23  ;;  %v14788_v10 = vsel %vm14758_vm11, %v4777_v21, %v4773_v58  ;;  %v4806_v41 = vand.u32 2147483648, %v20295_v23  ;;  %v20318_v8 = vld [vmem:[#allocation191_spill] sm:$0xff]  ;;  %v20319_v58 = vld [vmem:[#allocation154_spill] sm:$0xff] }
 0x31e   :  { %v2840_v13 = vsel %vm2837_vm13, %v2839_v43, %v2835_v63  ;;  %vm2863_vm0 = vweird.f32 %v20298_v25  ;;  %v4799_v56 = vadd.f32 %v20296_v62, %v4798_v47  ;;  %v2861_v42 = vadd.f32 %v20298_v25, %v2860_v27  ;;  %vm14800_vm1 = vmor %vm4800_vm14, %vm4801_vm15 }
 0x31f   :  { %v14790_v31 = vpop.permute.xlu0 %6608  ;;  %v2889_v32 = vsub.f32 1.0, %v2888_v15  ;;  %v5036_v1 = vmul.f32 %v20315_v34, %v20314_v17  ;;  %vm2862_vm6 = vweird.f32 %v20297_v33  ;;  %v2868_v23 = vand.u32 2147483648, %v20297_v33  ;;  %v20322_v15 = vld [vmem:[#allocation13_spill] sm:$0xff] }
 0x320   :  { %4134 = vrot.lane.b32.xlu1 %v14574_v46, %s9212_s19  ;;  %v5008_v11 = vmul.f32 %v20307_v44, %v5007_v37  ;;  %v3418_v57 = vmul.f32 %v20319_v58, %v20318_v8  ;;  %v14811_v46 = vmul.f32 %v14673_v22, %v14660_v59  ;;  %v4043_v21 = vmul.f32 %v14669_v19, %v2410_v12  ;;  %v14824_v2 = vpop.permute.xlu2 %6612  ;;  %vm14828_vm3 = vmor %vm2862_vm6, %vm2863_vm0 }
 0x321   :  { %vm14814_vm2 = vcmp.eq.f32.partialorder %v4804_v4, 8.507059e+37  ;;  %v2866_v63 = vand.u32 2147483647, %v20297_v33  ;;  %v14821_v27 = vpop.eup %9065  ;;  %v3869_v43 = vmul.f32 %v2840_v13, %v20322_v15  ;;  %v4807_v37 = vor.u32 1.1754944e-38, %v4806_v41 }
 0x322   :  { %v14819_v47 = vpop.permute.xlu1 %6640  ;;  %vm5010_vm4 = vweird.f32 %v20306_v0  ;;  %v5014_v19 = vand.u32 2147483647, %v20306_v0  ;;  %v4803_v22 = vsel %vm14800_vm1, %v20296_v62, %v4799_v56  ;;  %v2865_v33 = vsel %vm14828_vm3, %v20298_v25, %v2861_v42 }
 0x323   :  { %v2890_v12 = vmul.f32 %v20313_v24, %v2889_v32  ;;  %v5037_v4 = vsub.f32 1.0, %v5036_v1  ;;  %v2869_v13 = vor.u32 1.1754944e-38, %v2868_v23  ;;  %v5009_v41 = vadd.f32 %v20307_v44, %v5008_v11 }
 0x324   :  { %vm5011_vm5 = vweird.f32 %v20307_v44  ;;  %v3419_v54 = vsub.f32 1.0, %v3418_v57  ;;  %v4366_v62 = vmul.f32 %v14713_v6, %v14706_v16  ;;  %vm2867_vm7 = vcmp.eq.f32.partialorder %v2866_v63, 8.507059e+37  ;;  %v20330_v57 = vld [vmem:[#allocation283_spill] sm:$0xff] }
 0x325   :  { %6632 = vrot.lane.b32.xlu0 %v14151_v51, %s9213_s12  ;;  %4300 = vrot.lane.b32.xlu2 %v14603_v30, %s9213_s12  ;;  %v5016_v25 = vand.u32 2147483648, %v20306_v0  ;;  %v2896_v56 = vand.u32 2147483647, %v20312_v29  ;;  %v14851_v42 = vadd.f32 %v4111_v26, %v3869_v43  ;;  %v4808_v51 = vsel %vm14814_vm2, %v4807_v37, %v4803_v22  ;;  %vm14858_vm8 = vmor %vm5010_vm4, %vm5011_vm5  ;;  %v20332_v37 = vld [vmem:[#allocation26_spill] sm:$0xff] }
 0x326   :  { %v2870_v32 = vsel %vm2867_vm7, %v2869_v13, %v2865_v33  ;;  %v2898_v23 = vand.u32 2147483648, %v20312_v29  ;;  %vm14862_vm9 = vcmp.eq.f32.partialorder %v5014_v19, 8.507059e+37  ;;  %v2891_v6 = vadd.f32 %v20313_v24, %v2890_v12 }
 0x327   :  { %20325 = vst [vmem:[#allocation200_spill] sm:$0xff] %v14851_v42  ;;  %v4115_v1 = vpop.permute.xlu0 %4114  ;;  %vm2893_vm10 = vweird.f32 %v20313_v24  ;;  %v5038_v26 = vmul.f32 %v20315_v34, %v5037_v4  ;;  %v5013_v0 = vsel %vm14858_vm8, %v20307_v44, %v5009_v41  ;;  %vm2892_vm11 = vweird.f32 %v20312_v29  ;;  %v20349_v44 = vld [vmem:[#allocation31_spill] sm:$0xff] }
 0x328   :  { %4298 = vrot.lane.b32.xlu1 %v14611_v50, %s9213_s12  ;;  %v3420_v11 = vmul.f32 %v20319_v58, %v3419_v54  ;;  %v5066_v63 = vmul.f32 %v20331_v28, %v20330_v57  ;;  %v14880_v43 = vmul.f32 %v14753_v40, %v14778_v55  ;;  %v3871_v59 = vmul.f32 %v2870_v32, %v20332_v37  ;;  %vm14888_vm13 = vmor %vm2892_vm11, %vm2893_vm10  ;;  %v14892_v33 = vpop.permute.xlu2 %4118  ;;  %v20338_v32 = vld [vmem:[#allocation241_spill] sm:$0xff] }
 0x329   :  { %v5017_v50 = vor.u32 1.1754944e-38, %v5016_v25  ;;  %vm14883_vm12 = vcmp.eq.f32.partialorder %v2896_v56, 8.507059e+37  ;;  %9067 = vtanh.f32 %v14851_v42  ;;  %v2899_v29 = vor.u32 1.1754944e-38, %v2898_v23  ;;  %v20337_v56 = vld [vmem:[#allocation234_spill] sm:$0xff]  ;;  %v20355_v23 = vld [vmem:[#allocation237_spill] sm:$0xff] }
 0x32a   :  { %v4275_v22 = vpop.permute.xlu1 %4274  ;;  %v5044_v40 = vand.u32 2147483647, %v20314_v17  ;;  %v5046_v55 = vand.u32 2147483648, %v20314_v17  ;;  %v2895_v4 = vsel %vm14888_vm13, %v20313_v24, %v2891_v6  ;;  %v5039_v13 = vadd.f32 %v20315_v34, %v5038_v26 }
 0x32b   :  { %v5018_v12 = vsel %vm14862_vm9, %v5017_v50, %v5013_v0  ;;  %vm5041_vm14 = vweird.f32 %v20315_v34  ;;  %vm5040_vm15 = vweird.f32 %v20314_v17  ;;  %v3421_v41 = vadd.f32 %v20319_v58, %v3420_v11  ;;  %v20347_v11 = vld [vmem:[#allocation211_spill] sm:$0xff] }
 0x32c   :  { %vm3423_vm0 = vweird.f32 %v20319_v58  ;;  %v5067_v54 = vsub.f32 1.0, %v5066_v63  ;;  %v14910_v25 = vmul.f32 %v14790_v31, %v14788_v10  ;;  %vm3422_vm1 = vweird.f32 %v20318_v8  ;;  %vm14918_vm6 = vmor %vm5040_vm15, %vm5041_vm14 }
 0x32d   :  { %4138 = vrot.lane.b32.xlu0 %v4043_v21, %s9212_s19  ;;  %4432 = vrot.lane.b32.xlu2 %v4366_v62, %s9212_s19  ;;  %v3428_v24 = vand.u32 2147483648, %v20318_v8  ;;  %v3448_v21 = vmul.f32 %v20338_v32, %v20337_v56  ;;  %v2900_v17 = vsel %vm14883_vm12, %v2899_v29, %v2895_v4  ;;  %vm14922_vm2 = vcmp.eq.f32.partialorder %v5044_v40, 8.507059e+37  ;;  %vm14940_vm3 = vmor %vm3422_vm1, %vm3423_vm0 }
 0x32e   :  { %v5047_v10 = vor.u32 1.1754944e-38, %v5046_v55  ;;  %v3426_v30 = vand.u32 2147483647, %v20318_v8  ;;  %v14930_v16 = vmul.f32 %v14824_v2, %v4808_v51  ;;  %v14933_v6 = vmul.f32 %v14819_v47, %v5018_v12  ;;  %v20346_v8 = vld [vmem:[#allocation57_spill] sm:$0xff] }
 0x32f   :  { %v14926_v31 = vpop.permute.xlu0 %6644  ;;  %v5043_v26 = vsel %vm14918_vm6, %v20315_v34, %v5039_v13  ;;  %v4781_v2 = vmul.f32 %v20347_v11, %v20346_v8  ;;  %v9068_v51 = vpop.eup %9067  ;;  %v3425_v47 = vsel %vm14940_vm3, %v20319_v58, %v3421_v41  ;;  %v5068_v63 = vmul.f32 %v20331_v28, %v5067_v54  ;;  %v20351_v13 = vld [vmem:[#allocation221_spill] sm:$0xff] }
 0x330   :  { %20343 = vst [vmem:[#allocation148_spill] sm:$0xff] %v14933_v6  ;;  %4430 = vrot.lane.b32.xlu1 %v14588_v14, %s9212_s19  ;;  %v5074_v34 = vand.u32 2147483647, %v20330_v57  ;;  %v5076_v50 = vand.u32 2147483648, %v20330_v57  ;;  %v14954_v19 = vadd.f32 %v4115_v1, %v3871_v59  ;;  %v3873_v29 = vmul.f32 %v2900_v17, %v20349_v44  ;;  %v14965_v58 = vpop.permute.xlu2 %6648  ;;  %v20350_v59 = vld [vmem:[#allocation212_spill] sm:$0xff]  ;;  %v20354_v17 = vld [vmem:[#allocation227_spill] sm:$0xff] }
 0x331   :  { %v3429_v40 = vor.u32 1.1754944e-38, %v3428_v24  ;;  %v3449_v14 = vsub.f32 1.0, %v3448_v21  ;;  %v14961_v12 = vsel %vm14922_vm2, %v5047_v10, %v5043_v26  ;;  %vm3427_vm4 = vcmp.eq.f32.partialorder %v3426_v30, 8.507059e+37 }
 0x332   :  { %20348 = vst [vmem:[#allocation106_spill] sm:$0xff] %v14954_v19  ;;  %v14957_v55 = vpop.permute.xlu1 %6610  ;;  %vm5070_vm5 = vweird.f32 %v20330_v57  ;;  %vm5071_vm7 = vweird.f32 %v20331_v28  ;;  %vm3452_vm8 = vweird.f32 %v20337_v56  ;;  %v4782_v1 = vsub.f32 1.0, %v4781_v2 }
 0x333   :  { %v3430_v4 = vsel %vm3427_vm4, %v3429_v40, %v3425_v47  ;;  %v3478_v41 = vmul.f32 %v20351_v13, %v20350_v59  ;;  %v5069_v54 = vadd.f32 %v20331_v28, %v5068_v63  ;;  %vm14971_vm9 = vcmp.eq.f32.partialorder %v5074_v34, 8.507059e+37  ;;  %vm14992_vm12 = vmor %vm5070_vm5, %vm5071_vm7  ;;  %v20359_v34 = vld [vmem:[#allocation279_spill] sm:$0xff] }
 0x334   :  { %v5077_v21 = vor.u32 1.1754944e-38, %v5076_v50  ;;  %v2873_v62 = vmul.f32 %v20355_v23, %v20354_v17  ;;  %9069 = vtanh.f32 %v14954_v19  ;;  %v3450_v10 = vmul.f32 %v20338_v32, %v3449_v14 }
 0x335   :  { %4302 = vrot.lane.b32.xlu0 %v9068_v51, %s9213_s12  ;;  %6636 = vrot.lane.b32.xlu2 %v14419_v3, %s9213_s12  ;;  %vm3453_vm10 = vweird.f32 %v20338_v32  ;;  %v3456_v30 = vand.u32 2147483647, %v20337_v56  ;;  %v4367_v26 = vmul.f32 %v4275_v22, %v3430_v4  ;;  %v3458_v0 = vand.u32 2147483648, %v20337_v56  ;;  %v20358_v22 = vld [vmem:[#allocation276_spill] sm:$0xff] }
 0x336   :  { %vm4785_vm11 = vweird.f32 %v20346_v8  ;;  %v2874_v51 = vsub.f32 1.0, %v2873_v62  ;;  %v4783_v47 = vmul.f32 %v20347_v11, %v4782_v1  ;;  %v3479_v63 = vsub.f32 1.0, %v3478_v41  ;;  %vm15022_vm0 = vmor %vm3452_vm8, %vm3453_vm10 }
 0x337   :  { %v14985_v2 = vpop.permute.xlu0 %4278  ;;  %v4811_v50 = vmul.f32 %v20359_v34, %v20358_v22  ;;  %v2883_v40 = vand.u32 2147483648, %v20354_v17  ;;  %v5073_v14 = vsel %vm14992_vm12, %v20331_v28, %v5069_v54  ;;  %vm2878_vm13 = vweird.f32 %v20355_v23 }
 0x338   :  { %6634 = vrot.lane.b32.xlu1 %v14291_v45, %s9213_s12  ;;  %v2875_v57 = vmul.f32 %v20355_v23, %v2874_v51  ;;  %v2881_v4 = vand.u32 2147483647, %v20354_v17  ;;  %v15009_v1 = vadd.f32 %v14892_v33, %v3873_v29  ;;  %v3451_v45 = vadd.f32 %v20338_v32, %v3450_v10  ;;  %v15027_v29 = vpop.permute.xlu2 %4282  ;;  %v20366_v51 = vld [vmem:[#allocation250_spill] sm:$0xff] }
 0x339   :  { %vm15012_vm14 = vcmp.eq.f32.partialorder %v3456_v30, 8.507059e+37  ;;  %vm4786_vm15 = vweird.f32 %v20347_v11  ;;  %v4789_v62 = vand.u32 2147483647, %v20346_v8  ;;  %v4791_v33 = vand.u32 2147483648, %v20346_v8  ;;  %v20365_v30 = vld [vmem:[#allocation175_spill] sm:$0xff] }
 0x33a   :  { %20360 = vst [vmem:[#allocation115_spill] sm:$0xff] %v15009_v1  ;;  %v4117_v28 = vpop.permute.xlu1 %4116  ;;  %v2876_v10 = vadd.f32 %v20355_v23, %v2875_v57  ;;  %vm2877_vm1 = vweird.f32 %v20354_v17  ;;  %v2903_v3 = vmul.f32 %v20366_v51, %v20365_v30  ;;  %v9070_v15 = vpop.eup %9069  ;;  %v4784_v44 = vadd.f32 %v20347_v11, %v4783_v47  ;;  %vm15043_vm2 = vmor %vm4785_vm11, %vm4786_vm15 }
 0x33b   :  { %v3480_v56 = vmul.f32 %v20351_v13, %v3479_v63  ;;  %v4812_v37 = vsub.f32 1.0, %v4811_v50  ;;  %vm2879_vm6 = vmor %vm2877_vm1, %vm2878_vm13  ;;  %v2884_v19 = vor.u32 1.1754944e-38, %v2883_v40  ;;  %v5078_v42 = vsel %vm14971_vm9, %v5077_v21, %v5073_v14 }
 0x33c   :  { %v3459_v6 = vor.u32 1.1754944e-38, %v3458_v0  ;;  %v2880_v47 = vsel %vm2879_vm6, %v20355_v23, %v2876_v10  ;;  %vm2882_vm3 = vcmp.eq.f32.partialorder %v2881_v4, 8.507059e+37  ;;  %9071 = vtanh.f32 %v15009_v1  ;;  %v20373_v4 = vld [vmem:[#allocation33_spill] sm:$0xff]  ;;  %v20378_v10 = vld [vmem:[#allocation171_spill] sm:$0xff] }
 0x33d   :  { %4434 = vrot.lane.b32.xlu0 %v4367_v26, %s9212_s19  ;;  %6660 = vrot.lane.b32.xlu2 %v13978_v61, %s9213_s12  ;;  %v3455_v24 = vsel %vm15022_vm0, %v20338_v32, %v3451_v45  ;;  %v2885_v21 = vsel %vm2882_vm3, %v2884_v19, %v2880_v47  ;;  %v2904_v8 = vsub.f32 1.0, %v2903_v3  ;;  %vm15055_vm4 = vcmp.eq.f32.partialorder %v4789_v62, 8.507059e+37  ;;  %v20371_v19 = vld [vmem:[#allocation16_spill] sm:$0xff]  ;;  %v20374_v45 = vld [vmem:[#allocation291_spill] sm:$0xff]  ;;  %v20379_v3 = vld [vmem:[#allocation134_spill] sm:$0xff] }
 0x33e   :  { %v4792_v63 = vor.u32 1.1754944e-38, %v4791_v33  ;;  %vm3483_vm5 = vweird.f32 %v20351_v13  ;;  %v3486_v23 = vand.u32 2147483647, %v20350_v59  ;;  %v4788_v61 = vsel %vm15043_vm2, %v20347_v11, %v4784_v44 }
 0x33f   :  { %v15061_v26 = vpop.permute.xlu0 %6614  ;;  %v3481_v50 = vadd.f32 %v20351_v13, %v3480_v56  ;;  %v4813_v32 = vmul.f32 %v20359_v34, %v4812_v37  ;;  %v3872_v40 = vmul.f32 %v2885_v21, %v20371_v19  ;;  %v15073_v14 = vmul.f32 %v14926_v31, %v14961_v12 }
 0x340   :  { %6658 = vrot.lane.b32.xlu1 %v13843_v5, %s9213_s12  ;;  %vm3482_vm7 = vweird.f32 %v20350_v59  ;;  %v3488_v57 = vand.u32 2147483648, %v20350_v59  ;;  %v4841_v11 = vmul.f32 %v20374_v45, %v20373_v4  ;;  %vm4815_vm8 = vweird.f32 %v20358_v22  ;;  %v15098_v54 = vpop.permute.xlu2 %6618 }
 0x341   :  { %20372 = vst [vmem:[#allocation300_spill] sm:$0xff] %v15073_v14  ;;  %vm4816_vm9 = vweird.f32 %v20359_v34  ;;  %v15081_v37 = vadd.f32 %v4117_v28, %v3872_v40  ;;  %v2905_v44 = vmul.f32 %v20366_v51, %v2904_v8  ;;  %v3460_v31 = vsel %vm15012_vm14, %v3459_v6, %v3455_v24  ;;  %vm15092_vm10 = vmor %vm3482_vm7, %vm3483_vm5 }
 0x342   :  { %v15084_v5 = vpop.permute.xlu1 %6646  ;;  %v4793_v12 = vsel %vm15055_vm4, %v4792_v63, %v4788_v61  ;;  %v4819_v62 = vand.u32 2147483647, %v20358_v22  ;;  %v4821_v28 = vand.u32 2147483648, %v20358_v22  ;;  %v15100_v33 = vpop.eup %9071  ;;  %v3485_v6 = vsel %vm15092_vm10, %v20351_v13, %v3481_v50  ;;  %vm15118_vm12 = vmor %vm4815_vm8, %vm4816_vm9 }
 0x343   :  { %20375 = vst [vmem:[#allocation306_spill] sm:$0xff] %v15081_v37  ;;  %vm3487_vm11 = vcmp.eq.f32.partialorder %v3486_v23, 8.507059e+37  ;;  %v4814_v41 = vadd.f32 %v20359_v34, %v4813_v32  ;;  %v5051_v56 = vmul.f32 %v20379_v3, %v20378_v10  ;;  %v15109_v17 = vmul.f32 %v14965_v58, %v5078_v42  ;;  %v20384_v58 = vld [vmem:[#allocation143_spill] sm:$0xff] }
 0x344   :  { %v15112_v47 = vmul.f32 %v14957_v55, %v4793_v12  ;;  %v3489_v24 = vor.u32 1.1754944e-38, %v3488_v57  ;;  %v4842_v13 = vsub.f32 1.0, %v4841_v11  ;;  %9073 = vtanh.f32 %v15081_v37  ;;  %v20383_v55 = vld [vmem:[#allocation256_spill] sm:$0xff]  ;;  %v20390_v57 = vld [vmem:[#allocation153_spill] sm:$0xff] }
 0x345   :  { %20380 = vst [vmem:[#allocation125_spill] sm:$0xff] %v15109_v17  ;;  %6656 = vrot.lane.b32.xlu0 %v13704_v53, %s9213_s12  ;;  %4306 = vrot.lane.b32.xlu2 %v9070_v15, %s9213_s12  ;;  %v2906_v42 = vadd.f32 %v20366_v51, %v2905_v44  ;;  %vm2908_vm13 = vweird.f32 %v20366_v51  ;;  %v2933_v8 = vmul.f32 %v20384_v58, %v20383_v55  ;;  %vm15132_vm14 = vcmp.eq.f32.partialorder %v4819_v62, 8.507059e+37 }
 0x346   :  { %v15130_v22 = vsel %vm3487_vm11, %v3489_v24, %v3485_v6  ;;  %v4822_v63 = vor.u32 1.1754944e-38, %v4821_v28  ;;  %v2913_v53 = vand.u32 2147483648, %v20365_v30  ;;  %v4818_v15 = vsel %vm15118_vm12, %v20359_v34, %v4814_v41  ;;  %v20389_v34 = vld [vmem:[#allocation202_spill] sm:$0xff]  ;;  %v20392_v6 = vld [vmem:[#allocation152_spill] sm:$0xff] }
 0x347   :  { %v4121_v23 = vpop.permute.xlu0 %4120  ;;  %vm2907_vm15 = vweird.f32 %v20365_v30  ;;  %v2911_v61 = vand.u32 2147483647, %v20365_v30  ;;  %v5052_v50 = vsub.f32 1.0, %v5051_v56  ;;  %v4369_v32 = vmul.f32 %v14985_v2, %v3460_v31  ;;  %v20391_v28 = vld [vmem:[#allocation290_spill] sm:$0xff] }
 0x348   :  { %4304 = vrot.lane.b32.xlu1 %v14821_v27, %s9213_s12  ;;  %vm4845_vm0 = vweird.f32 %v20373_v4  ;;  %vm4846_vm1 = vweird.f32 %v20374_v45  ;;  %vm15149_vm6 = vmor %vm2907_vm15, %vm2908_vm13  ;;  %v3463_v11 = vmul.f32 %v20390_v57, %v20389_v34  ;;  %v4843_v30 = vmul.f32 %v20374_v45, %v4842_v13  ;;  %v15164_v62 = vpop.permute.xlu2 %4124 }
 0x349   :  { %v4849_v44 = vand.u32 2147483647, %v20373_v4  ;;  %v2910_v27 = vsel %vm15149_vm6, %v20366_v51, %v2906_v42  ;;  %v2934_v2 = vsub.f32 1.0, %v2933_v8  ;;  %v15162_v12 = vsel %vm15132_vm14, %v4822_v63, %v4818_v15  ;;  %vm15201_vm12 = vmor %vm4845_vm0, %vm4846_vm1 }
 0x34a   :  { %v4281_v31 = vpop.permute.xlu1 %4280  ;;  %v2914_v59 = vor.u32 1.1754944e-38, %v2913_v53  ;;  %v5081_v41 = vmul.f32 %v20392_v6, %v20391_v28  ;;  %v3464_v56 = vsub.f32 1.0, %v3463_v11  ;;  %v9074_v24 = vpop.eup %9073  ;;  %v4851_v21 = vand.u32 2147483648, %v20373_v4 }
 0x34b   :  { %vm2912_vm2 = vcmp.eq.f32.partialorder %v2911_v61, 8.507059e+37  ;;  %v5053_v13 = vmul.f32 %v20379_v3, %v5052_v50  ;;  %v3473_v51 = vand.u32 2147483648, %v20389_v34  ;;  %vm3468_vm3 = vweird.f32 %v20390_v57 }
 0x34c   :  { %v2915_v42 = vsel %vm2912_vm2, %v2914_v59, %v2910_v27  ;;  %v3465_v8 = vmul.f32 %v20390_v57, %v3464_v56  ;;  %v3471_v0 = vand.u32 2147483647, %v20389_v34  ;;  %v4844_v63 = vadd.f32 %v20374_v45, %v4843_v30  ;;  %v20396_v27 = vld [vmem:[#allocation243_spill] sm:$0xff] }
 0x34d   :  { %4308 = vrot.lane.b32.xlu0 %v9074_v24, %s9213_s12  ;;  %4438 = vrot.lane.b32.xlu2 %v4369_v32, %s9212_s19  ;;  %vm15177_vm4 = vcmp.eq.f32.partialorder %v4849_v44, 8.507059e+37  ;;  %vm5055_vm5 = vweird.f32 %v20378_v10  ;;  %v2935_v15 = vmul.f32 %v20384_v58, %v2934_v2  ;;  %vm5056_vm7 = vweird.f32 %v20379_v3  ;;  %v20395_v32 = vld [vmem:[#allocation30_spill] sm:$0xff]  ;;  %v20397_v2 = vld [vmem:[#allocation247_spill] sm:$0xff] }
 0x34e   :  { %v5082_v61 = vsub.f32 1.0, %v5081_v41  ;;  %v3466_v40 = vadd.f32 %v20390_v57, %v3465_v8  ;;  %vm3467_vm8 = vweird.f32 %v20389_v34  ;;  %v3874_v11 = vmul.f32 %v2915_v42, %v20395_v32  ;;  %vm15220_vm13 = vmor %vm5055_vm5, %vm5056_vm7 }
 0x34f   :  { %v15184_v50 = vpop.permute.xlu0 %6650  ;;  %v5061_v30 = vand.u32 2147483648, %v20378_v10  ;;  %vm3469_vm9 = vmor %vm3467_vm8, %vm3468_vm3  ;;  %v3474_v44 = vor.u32 1.1754944e-38, %v3473_v51  ;;  %v3493_v59 = vmul.f32 %v20397_v2, %v20396_v27  ;;  %v5054_v41 = vadd.f32 %v20379_v3, %v5053_v13 }
 0x350   :  { %4436 = vrot.lane.b32.xlu1 %v14880_v43, %s9212_s19  ;;  %vm2938_vm10 = vweird.f32 %v20384_v58  ;;  %v3470_v56 = vsel %vm3469_vm9, %v20390_v57, %v3466_v40  ;;  %vm3472_vm11 = vcmp.eq.f32.partialorder %v3471_v0, 8.507059e+37  ;;  %v15205_v24 = vadd.f32 %v4121_v23, %v3874_v11  ;;  %v20401_v0 = vld [vmem:[#allocation195_spill] sm:$0xff]  ;;  %v20402_v40 = vld [vmem:[#allocation213_spill] sm:$0xff]  ;;  %v15214_v4 = vpop.permute.xlu2 %6654 }
 0x351   :  { %v2936_v43 = vadd.f32 %v20384_v58, %v2935_v15  ;;  %v2943_v51 = vand.u32 2147483648, %v20383_v55  ;;  %v3475_v13 = vsel %vm3472_vm11, %v3474_v44, %v3470_v56  ;;  %v5083_v57 = vmul.f32 %v20392_v6, %v5082_v61  ;;  %20403 = vst [vmem:[#allocation206_spill] sm:$0xff] %v15214_v4 }
 0x352   :  { %20400 = vst [vmem:[#allocation72_spill] sm:$0xff] %v15205_v24  ;;  %v15209_v42 = vpop.permute.xlu1 %6616  ;;  %v4370_v8 = vmul.f32 %v4281_v31, %v3475_v13  ;;  %v5111_v19 = vmul.f32 %v20402_v40, %v20401_v0  ;;  %v3494_v1 = vsub.f32 1.0, %v3493_v59  ;;  %v4852_v32 = vor.u32 1.1754944e-38, %v4851_v21 }
 0x353   :  { %v5059_v15 = vand.u32 2147483647, %v20378_v10  ;;  %vm2937_vm14 = vweird.f32 %v20383_v55  ;;  %v2941_v31 = vand.u32 2147483647, %v20383_v55  ;;  %v4848_v61 = vsel %vm15201_vm12, %v20374_v45, %v4844_v63 }
 0x354   :  { %v5058_v21 = vsel %vm15220_vm13, %v20379_v3, %v5054_v41  ;;  %v5062_v11 = vor.u32 1.1754944e-38, %v5061_v30  ;;  %vm15235_vm15 = vmor %vm2937_vm14, %vm2938_vm10  ;;  %vm5086_vm0 = vweird.f32 %v20392_v6  ;;  %9075 = vtanh.f32 %v15205_v24 }
 0x355   :  { %4440 = vrot.lane.b32.xlu0 %v4370_v8, %s9212_s19  ;;  %6666 = vrot.lane.b32.xlu2 %v14324_v35, %s9213_s12  ;;  %v2940_v45 = vsel %vm15235_vm15, %v20384_v58, %v2936_v43  ;;  %v5089_v10 = vand.u32 2147483647, %v20391_v28  ;;  %v5091_v3 = vand.u32 2147483648, %v20391_v28  ;;  %v2944_v55 = vor.u32 1.1754944e-38, %v2943_v51  ;;  %v20413_v43 = vld [vmem:[#allocation35_spill] sm:$0xff]  ;;  %v20415_v8 = vld [vmem:[#allocation98_spill] sm:$0xff] }
 0x356   :  { %v5084_v63 = vadd.f32 %v20392_v6, %v5083_v57  ;;  %v5112_v30 = vsub.f32 1.0, %v5111_v19  ;;  %v3495_v59 = vmul.f32 %v20397_v2, %v3494_v1  ;;  %v15253_v35 = vmul.f32 %v15027_v29, %v15130_v22  ;;  %v20414_v57 = vld [vmem:[#allocation282_spill] sm:$0xff] }
 0x357   :  { %v4285_v41 = vpop.permute.xlu0 %4284  ;;  %v15257_v56 = vmul.f32 %v15061_v26, %v15162_v12  ;;  %vm5060_vm1 = vcmp.eq.f32.partialorder %v5059_v15, 8.507059e+37  ;;  %vm2942_vm6 = vcmp.eq.f32.partialorder %v2941_v31, 8.507059e+37  ;;  %v4853_v58 = vsel %vm15177_vm4, %v4852_v32, %v4848_v61  ;;  %v20416_v15 = vld [vmem:[#allocation251_spill] sm:$0xff] }
 0x358   :  { %6664 = vrot.lane.b32.xlu1 %v14214_v18, %s9213_s12  ;;  %v5063_v19 = vsel %vm5060_vm1, %v5062_v11, %v5058_v21  ;;  %v2945_v34 = vsel %vm2942_vm6, %v2944_v55, %v2940_v45  ;;  %vm5085_vm2 = vweird.f32 %v20391_v28  ;;  %v15265_v1 = vmul.f32 %v15098_v54, %v4853_v58  ;;  %v15288_v53 = vpop.permute.xlu2 %4288  ;;  %v20417_v31 = vld [vmem:[#allocation91_spill] sm:$0xff]  ;;  %v20422_v45 = vld [vmem:[#allocation232_spill] sm:$0xff] }
 0x359   :  { %v15268_v29 = vmul.f32 %v15084_v5, %v5063_v19  ;;  %vm15272_vm3 = vmor %vm5085_vm2, %vm5086_vm0  ;;  %vm15276_vm5 = vcmp.eq.f32.partialorder %v5089_v10, 8.507059e+37  ;;  %v5092_v22 = vor.u32 1.1754944e-38, %v5091_v3  ;;  %v5113_v5 = vmul.f32 %v20402_v40, %v5112_v30 }
 0x35a   :  { %v15280_v12 = vpop.permute.xlu1 %4122  ;;  %v5088_v54 = vsel %vm15272_vm3, %v20392_v6, %v5084_v63  ;;  %v3496_v28 = vadd.f32 %v20397_v2, %v3495_v59  ;;  %vm3498_vm4 = vweird.f32 %v20397_v2  ;;  %v9076_v32 = vpop.eup %9075  ;;  %v3876_v51 = vmul.f32 %v2945_v34, %v20413_v43 }
 0x35b   :  { %20408 = vst [vmem:[#allocation225_spill] sm:$0xff] %v15268_v29  ;;  %vm5115_vm7 = vweird.f32 %v20401_v0  ;;  %v3503_v13 = vand.u32 2147483648, %v20396_v27  ;;  %v4826_v23 = vmul.f32 %v20415_v8, %v20414_v57  ;;  %vm5116_vm8 = vweird.f32 %v20402_v40 }
 0x35c   :  { %vm3497_vm9 = vweird.f32 %v20396_v27  ;;  %v3501_v6 = vand.u32 2147483647, %v20396_v27  ;;  %v2918_v61 = vmul.f32 %v20417_v31, %v20416_v15  ;;  %v15304_v21 = vadd.f32 %v15164_v62, %v3876_v51  ;;  %vm15340_vm13 = vmor %vm5115_vm7, %vm5116_vm8  ;;  %v20431_v27 = vld [vmem:[#allocation293_spill] sm:$0xff]  ;;  %v20439_v62 = vld [vmem:[#allocation172_spill] sm:$0xff] }
 0x35d   :  { %6662 = vrot.lane.b32.xlu0 %v14085_v52, %s9213_s12  ;;  %4312 = vrot.lane.b32.xlu2 %v9076_v32, %s9213_s12  ;;  %v5093_v11 = vsel %vm15276_vm5, %v5092_v22, %v5088_v54  ;;  %v5121_v44 = vand.u32 2147483648, %v20401_v0  ;;  %vm15311_vm10 = vmor %vm3497_vm9, %vm3498_vm4  ;;  %v20421_v52 = vld [vmem:[#allocation222_spill] sm:$0xff]  ;;  %v15318_v3 = vadd.f32 %v20402_v40, %v5113_v5  ;;  %v3504_v58 = vor.u32 1.1754944e-38, %v3503_v13 }
 0x35e   :  { %20418 = vst [vmem:[#allocation233_spill] sm:$0xff] %v15304_v21  ;;  %v3523_v10 = vmul.f32 %v20422_v45, %v20421_v52  ;;  %v3500_v55 = vsel %vm15311_vm10, %v20397_v2, %v3496_v28  ;;  %v2919_v30 = vsub.f32 1.0, %v2918_v61  ;;  %v15327_v59 = vmul.f32 %v15184_v50, %v5093_v11  ;;  %v20430_v61 = vld [vmem:[#allocation117_spill] sm:$0xff] }
 0x35f   :  { %20423 = vst [vmem:[#allocation272_spill] sm:$0xff] %v15318_v3  ;;  %v15324_v63 = vpop.permute.xlu0 %6620  ;;  %v4827_v19 = vsub.f32 1.0, %v4826_v23  ;;  %v2928_v34 = vand.u32 2147483648, %v20416_v15  ;;  %vm3502_vm11 = vcmp.eq.f32.partialorder %v3501_v6, 8.507059e+37  ;;  %vm2923_vm12 = vweird.f32 %v20417_v31  ;;  %v20429_v6 = vld [vmem:[#allocation120_spill] sm:$0xff] }
 0x360   :  { %20424 = vst [vmem:[#allocation145_spill] sm:$0xff] %v15327_v59  ;;  %4310 = vrot.lane.b32.xlu1 %v15100_v33, %s9213_s12  ;;  %v2920_v26 = vmul.f32 %v20417_v31, %v2919_v30  ;;  %v2926_v2 = vand.u32 2147483647, %v20416_v15  ;;  %9077 = vtanh.f32 %v15304_v21  ;;  %v15344_v18 = vor.u32 1.1754944e-38, %v5121_v44  ;;  %v15354_v51 = vpop.permute.xlu2 %6624  ;;  %v20443_v21 = vld [vmem:[#allocation305_spill] sm:$0xff] }
 0x361   :  { %v3505_v33 = vsel %vm3502_vm11, %v3504_v58, %v3500_v55  ;;  %v3524_v22 = vsub.f32 1.0, %v3523_v10  ;;  %vm2922_vm14 = vweird.f32 %v20416_v15  ;;  %v4828_v13 = vmul.f32 %v20415_v8, %v4827_v19  ;;  %v20432_v10 = vld [vmem:[#allocation61_spill] sm:$0xff] }
 0x362   :  { %20427 = vst [vmem:[#allocation203_spill] sm:$0xff] %v15344_v18  ;;  %v15346_v54 = vpop.permute.xlu1 %6652  ;;  %v4372_v28 = vmul.f32 %v4285_v41, %v3505_v33  ;;  %v2921_v32 = vadd.f32 %v20417_v31, %v2920_v26  ;;  %vm4830_vm15 = vweird.f32 %v20414_v57  ;;  %vm2924_vm0 = vmor %vm2922_vm14, %vm2923_vm12  ;;  %v2929_v23 = vor.u32 1.1754944e-38, %v2928_v34  ;;  %v20433_v34 = vld [vmem:[#allocation19_spill] sm:$0xff] }
 0x363   :  { %20428 = vst [vmem:[#allocation160_spill] sm:$0xff] %v15346_v54  ;;  %v2948_v11 = vmul.f32 %v20430_v61, %v20429_v6  ;;  %vm4831_vm1 = vweird.f32 %v20415_v8  ;;  %v4834_v41 = vand.u32 2147483647, %v20414_v57  ;;  %vm2927_vm6 = vcmp.eq.f32.partialorder %v2926_v2, 8.507059e+37  ;;  %v20457_v54 = vld [vmem:[#allocation97_spill] sm:$0xff] }
 0x364   :  { %v2925_v44 = vsel %vm2924_vm0, %v20417_v31, %v2921_v32  ;;  %v3525_v15 = vmul.f32 %v20422_v45, %v3524_v22  ;;  %v4856_v55 = vmul.f32 %v20432_v10, %v20431_v27  ;;  %v4836_v19 = vand.u32 2147483648, %v20414_v57  ;;  %vm15385_vm5 = vmor %vm4830_vm15, %vm4831_vm1 }
 0x365   :  { %4444 = vrot.lane.b32.xlu2 %v4372_v28, %s9212_s19  ;;  %v2930_v30 = vsel %vm2927_vm6, %v2929_v23, %v2925_v44  ;;  %v2949_v58 = vsub.f32 1.0, %v2948_v11  ;;  %vm3527_vm2 = vweird.f32 %v20421_v52  ;;  %v2958_v33 = vand.u32 2147483648, %v20429_v6 }
 0x366   :  { %v3875_v26 = vmul.f32 %v2930_v30, %v20433_v34  ;;  %v15373_v31 = vpop.eup %9077  ;;  %v4829_v2 = vadd.f32 %v20415_v8, %v4828_v13  ;;  %vm2953_vm3 = vweird.f32 %v20430_v61  ;;  %v2956_v28 = vand.u32 2147483647, %v20429_v6 }
 0x367   :  { %v4127_v5 = vpop.permute.xlu0 %4126  ;;  %v2950_v22 = vmul.f32 %v20430_v61, %v2949_v58  ;;  %vm15389_vm4 = vcmp.eq.f32.partialorder %v4834_v41, 8.507059e+37  ;;  %vm3528_vm7 = vweird.f32 %v20422_v45  ;;  %v3531_v13 = vand.u32 2147483647, %v20421_v52 }
 0x368   :  { %4442 = vrot.lane.b32.xlu1 %v15253_v35, %s9212_s19  ;;  %v15396_v11 = vadd.f32 %v15280_v12, %v3875_v26  ;;  %v3526_v35 = vadd.f32 %v20422_v45, %v3525_v15  ;;  %v4857_v44 = vsub.f32 1.0, %v4856_v55  ;;  %vm2952_vm8 = vweird.f32 %v20429_v6  ;;  %v20440_v12 = vld [vmem:[#allocation86_spill] sm:$0xff]  ;;  %v15409_v34 = vpop.permute.xlu2 %4130  ;;  %vm15419_vm11 = vmor %vm3527_vm2, %vm3528_vm7 }
 0x369   :  { %v2951_v57 = vadd.f32 %v20430_v61, %v2950_v22  ;;  %v3533_v41 = vand.u32 2147483648, %v20421_v52  ;;  %vm2954_vm9 = vmor %vm2952_vm8, %vm2953_vm3  ;;  %v2959_v58 = vor.u32 1.1754944e-38, %v2958_v33  ;;  %v2978_v26 = vmul.f32 %v20440_v12, %v20439_v62 }
 0x36a   :  { %20438 = vst [vmem:[#allocation111_spill] sm:$0xff] %v15396_v11  ;;  %v15401_v30 = vpop.permute.xlu1 %4286  ;;  %9079 = vtanh.f32 %v15396_v11  ;;  %v4833_v15 = vsel %vm15385_vm5, %v20415_v8, %v4829_v2  ;;  %v4837_v6 = vor.u32 1.1754944e-38, %v4836_v19  ;;  %vm2957_vm10 = vcmp.eq.f32.partialorder %v2956_v28, 8.507059e+37  ;;  %v20445_v2 = vld [vmem:[#allocation248_spill] sm:$0xff] }
 0x36b   :  { %v2955_v55 = vsel %vm2954_vm9, %v20430_v61, %v2951_v57  ;;  %v4866_v33 = vand.u32 2147483648, %v20431_v27  ;;  %v4886_v43 = vmul.f32 %v13690_v60, %v20443_v21  ;;  %v2979_v32 = vsub.f32 1.0, %v2978_v26  ;;  %v20444_v61 = vld [vmem:[#allocation34_spill] sm:$0xff]  ;;  %v20446_v28 = vld [vmem:[#allocation136_spill] sm:$0xff] }
 0x36c   :  { %v2960_v24 = vsel %vm2957_vm10, %v2959_v58, %v2955_v55  ;;  %v3530_v8 = vsel %vm15419_vm11, %v20422_v45, %v3526_v35  ;;  %v4858_v52 = vmul.f32 %v20432_v10, %v4857_v44  ;;  %v3538_v57 = vmul.f32 %v20446_v28, %v20445_v2 }
 0x36d   :  { %6768 = vrot.lane.b32.xlu2 %v14910_v25, %s9212_s19  ;;  %v3877_v19 = vmul.f32 %v2960_v24, %v20444_v61  ;;  %vm3532_vm12 = vcmp.eq.f32.partialorder %v3531_v13, 8.507059e+37  ;;  %v3534_v11 = vor.u32 1.1754944e-38, %v3533_v41  ;;  %vm4860_vm14 = vweird.f32 %v20431_v27 }
 0x36e   :  { %vm4861_vm15 = vweird.f32 %v20432_v10  ;;  %v4864_v25 = vand.u32 2147483647, %v20431_v27  ;;  %v2980_v45 = vmul.f32 %v20440_v12, %v2979_v32  ;;  %v3539_v35 = vsub.f32 1.0, %v3538_v57 }
 0x36f   :  { %v15437_v58 = vpop.permute.xlu0 %4290  ;;  %v15440_v26 = vadd.f32 %v4127_v5, %v3877_v19  ;;  %v15447_v13 = vsel %vm15389_vm4, %v4837_v6, %v4833_v15  ;;  %v15449_v44 = vsel %vm3532_vm12, %v3534_v11, %v3530_v8  ;;  %v15451_v41 = vor.u32 1.1754944e-38, %v4866_v33  ;;  %v20449_v5 = vld [vmem:[#allocation220_spill] sm:$0xff]  ;;  %vm15499_vm8 = vmor %vm4860_vm14, %vm4861_vm15 }
 0x370   :  { %6766 = vrot.lane.b32.xlu1 %v14651_v48, %s9212_s19  ;;  %v9080_v24 = vpop.eup %9079  ;;  %v4887_v55 = vsub.f32 1.0, %v4886_v43  ;;  %v15454_v22 = vadd.f32 %v20432_v10, %v4858_v52  ;;  %vm4890_vm0 = vweird.f32 %v20443_v21  ;;  %v20448_v48 = vld [vmem:[#allocation32_spill] sm:$0xff]  ;;  %vm4891_vm1 = vweird.f32 %v13690_v60  ;;  %v20451_v43 = vld [vmem:[#allocation299_spill] sm:$0xff]  ;;  %v15468_v8 = vpop.permute.xlu2 %4294 }
 0x371   :  { %20447 = vst [vmem:[#allocation132_spill] sm:$0xff] %v15440_v26  ;;  %9081 = vtanh.f32 %v15440_v26  ;;  %4314 = vrot.lane.b32.xlu0 %v9080_v24, %s9213_s12  ;;  %v3508_v32 = vmul.f32 %v20449_v5, %v20448_v48  ;;  %v4894_v11 = vand.u32 2147483647, %v20443_v21  ;;  %v20450_v15 = vld [vmem:[#allocation296_spill] sm:$0xff]  ;;  %v3540_v33 = vmul.f32 %v20446_v28, %v3539_v35 }
 0x372   :  { %v15461_v23 = vpop.permute.xlu1 %6622  ;;  %v5096_v6 = vmul.f32 %v20451_v43, %v20450_v15  ;;  %vm15470_vm6 = vcmp.eq.f32.partialorder %v4864_v25, 8.507059e+37  ;;  %v4896_v19 = vand.u32 2147483648, %v20443_v21  ;;  %v2981_v57 = vadd.f32 %v20440_v12, %v2980_v45 }
 0x373   :  { %vm2983_vm2 = vweird.f32 %v20440_v12  ;;  %v3509_v24 = vsub.f32 1.0, %v3508_v32  ;;  %v4888_v26 = vmul.f32 %v13690_v60, %v4887_v55  ;;  %vm2982_vm3 = vweird.f32 %v20439_v62  ;;  %v20456_v32 = vld [vmem:[#allocation230_spill] sm:$0xff] }
 0x374   :  { %v2988_v61 = vand.u32 2147483648, %v20439_v62  ;;  %v3518_v35 = vand.u32 2147483648, %v20448_v48  ;;  %v2986_v25 = vand.u32 2147483647, %v20439_v62  ;;  %vm3513_vm5 = vweird.f32 %v20449_v5  ;;  %vm15485_vm4 = vmor %vm2982_vm3, %vm2983_vm2 }
 0x375   :  { %v3510_v37 = vmul.f32 %v20449_v5, %v3509_v24  ;;  %v3516_v29 = vand.u32 2147483647, %v20448_v48  ;;  %v5097_v45 = vsub.f32 1.0, %v5096_v6  ;;  %v3541_v55 = vadd.f32 %v20446_v28, %v3540_v33  ;;  %vm15530_vm2 = vmor %vm4890_vm0, %vm4891_vm1  ;;  %v20467_v6 = vld [vmem:[#allocation189_spill] sm:$0xff] }
 0x376   :  { %vm3543_vm7 = vweird.f32 %v20446_v28  ;;  %v3568_v14 = vmul.f32 %v20457_v54, %v20456_v32  ;;  %v2985_v33 = vsel %vm15485_vm4, %v20440_v12, %v2981_v57  ;;  %v3548_v24 = vand.u32 2147483648, %v20445_v2 }
 0x377   :  { %v15493_v17 = vpop.permute.xlu0 %6626  ;;  %v9082_v62 = vpop.eup %9081  ;;  %v3511_v4 = vadd.f32 %v20449_v5, %v3510_v37  ;;  %vm3512_vm9 = vweird.f32 %v20448_v48  ;;  %v2989_v18 = vor.u32 1.1754944e-38, %v2988_v61  ;;  %vm3542_vm10 = vweird.f32 %v20445_v2 }
 0x378   :  { %4316 = vrot.lane.b32.xlu1 %v15373_v31, %s9213_s12  ;;  %v3546_v27 = vand.u32 2147483647, %v20445_v2  ;;  %vm3514_vm11 = vmor %vm3512_vm9, %vm3513_vm5  ;;  %v3519_v3 = vor.u32 1.1754944e-38, %v3518_v35  ;;  %4318 = vrot.lane.b32.xlu2 %v9082_v62, %s9213_s12  ;;  %v4889_v59 = vadd.f32 %v13690_v60, %v4888_v26  ;;  %vm2987_vm12 = vcmp.eq.f32.partialorder %v2986_v25, 8.507059e+37  ;;  %v15537_v35 = vpop.permute.xlu2 %6630  ;;  %v20466_v62 = vld [vmem:[#allocation137_spill] sm:$0xff] }
 0x379   :  { %vm15519_vm14 = vmor %vm3542_vm10, %vm3543_vm7  ;;  %v3515_v31 = vsel %vm3514_vm11, %v20449_v5, %v3511_v4  ;;  %vm3517_vm15 = vcmp.eq.f32.partialorder %v3516_v29, 8.507059e+37  ;;  %v2990_v2 = vsel %vm2987_vm12, %v2989_v18, %v2985_v33  ;;  %v3569_v57 = vsub.f32 1.0, %v3568_v14 }
 0x37a   :  { %v15524_v12 = vpop.permute.xlu1 %4128  ;;  %v3545_v26 = vsel %vm15519_vm14, %v20446_v28, %v3541_v55  ;;  %v3520_v48 = vsel %vm3517_vm15, %v3519_v3, %v3515_v31  ;;  %v4863_v4 = vsel %vm15499_vm8, %v20432_v10, %v15454_v22  ;;  %v5098_v29 = vmul.f32 %v20451_v43, %v5097_v45  ;;  %v20464_v10 = vld [vmem:[#allocation39_spill] sm:$0xff] }
 0x37b   :  { %v3549_v21 = vor.u32 1.1754944e-38, %v3548_v24  ;;  %v4373_v5 = vmul.f32 %v15401_v30, %v3520_v48  ;;  %v15547_v18 = vmul.f32 %v15209_v42, %v15447_v13  ;;  %v4374_v3 = vmul.f32 %v15288_v53, %v15449_v44 }
 0x37c   :  { %v4897_v14 = vor.u32 1.1754944e-38, %v4896_v19  ;;  %vm3547_vm0 = vcmp.eq.f32.partialorder %v3546_v27, 8.507059e+37  ;;  %v4893_v28 = vsel %vm15530_vm2, %v13690_v60, %v4889_v59  ;;  %vm4895_vm1 = vcmp.eq.f32.partialorder %v4894_v11, 8.507059e+37 }
 0x37d   :  { %v3879_v22 = vmul.f32 %v2990_v2, %v20464_v10  ;;  %v3550_v25 = vsel %vm3547_vm0, %v3549_v21, %v3545_v26  ;;  %4446 = vrot.lane.b32.xlu0 %v4373_v5, %s9212_s19  ;;  %v4868_v42 = vsel %vm15470_vm6, %v15451_v41, %v4863_v4  ;;  %v5106_v30 = vand.u32 2147483648, %v20450_v15  ;;  %v20475_v21 = vld [vmem:[#allocation262_spill] sm:$0xff] }
 0x37e   :  { %v4375_v53 = vmul.f32 %v15437_v58, %v3550_v25  ;;  %v3570_v13 = vmul.f32 %v20457_v54, %v3569_v57  ;;  %v15565_v60 = vadd.f32 %v20451_v43, %v5098_v29  ;;  %vm5101_vm3 = vweird.f32 %v20451_v43  ;;  %v20474_v29 = vld [vmem:[#allocation103_spill] sm:$0xff]  ;;  %v20477_v25 = vld [vmem:[#allocation65_spill] sm:$0xff] }
 0x37f   :  { %v15562_v44 = vpop.permute.xlu0 %4132  ;;  %v15569_v11 = vadd.f32 %v15409_v34, %v3879_v22  ;;  %v4901_v52 = vmul.f32 %v13862_v49, %v13786_v7  ;;  %v15575_v41 = vmul.f32 %v15324_v63, %v4868_v42  ;;  %v4898_v58 = vsel %vm4895_vm1, %v4897_v14, %v4893_v28  ;;  %v20476_v22 = vld [vmem:[#allocation204_spill] sm:$0xff]  ;;  %v20611_v63 = vld [vmem:[#allocation259_spill] sm:$0xff] }
 0x380   :  { %4448 = vrot.lane.b32.xlu1 %v4374_v3, %s9212_s19  ;;  %v3576_v19 = vand.u32 2147483647, %v20456_v32  ;;  %v3578_v45 = vand.u32 2147483648, %v20456_v32  ;;  %4450 = vrot.lane.b32.xlu2 %v4375_v53, %s9212_s19  ;;  %v15581_v55 = vmul.f32 %v15354_v51, %v4898_v58  ;;  %vm5100_vm6 = vweird.f32 %v20450_v15  ;;  %v15598_v51 = vpop.permute.xlu2 %4136  ;;  %v20478_v58 = vld [vmem:[#allocation48_spill] sm:$0xff] }
 0x381   :  { %20465 = vst [vmem:[#allocation196_spill] sm:$0xff] %v15569_v11  ;;  %v2993_v33 = vmul.f32 %v20467_v6, %v20466_v62  ;;  %vm15589_vm5 = vmor %vm5100_vm6, %vm5101_vm3  ;;  %v15593_v27 = vor.u32 1.1754944e-38, %v5106_v30  ;;  %v3571_v59 = vadd.f32 %v20457_v54, %v3570_v13  ;;  %vm3572_vm4 = vweird.f32 %v20456_v32 }
 0x382   :  { %v15587_v24 = vpop.permute.xlu1 %4292  ;;  %vm3573_vm7 = vweird.f32 %v20457_v54  ;;  %9083 = vtanh.f32 %v15569_v11  ;;  %v4902_v31 = vsub.f32 1.0, %v4901_v52  ;;  %vm15605_vm8 = vcmp.eq.f32.partialorder %v3576_v19, 8.507059e+37  ;;  %v20479_v19 = vld [vmem:[#allocation273_spill] sm:$0xff] }
 0x383   :  { %v2994_v61 = vsub.f32 1.0, %v2993_v33  ;;  %v3579_v26 = vor.u32 1.1754944e-38, %v3578_v45  ;;  %v3001_v32 = vand.u32 2147483647, %v20466_v62  ;;  %v3003_v48 = vand.u32 2147483648, %v20466_v62  ;;  %vm15611_vm9 = vmor %vm3572_vm4, %vm3573_vm7 }
 0x384   :  { %vm4905_vm10 = vweird.f32 %v13786_v7  ;;  %vm4906_vm11 = vweird.f32 %v13862_v49  ;;  %vm2998_vm12 = vweird.f32 %v20467_v6  ;;  %v2963_v5 = vmul.f32 %v20475_v21, %v20474_v29 }
 0x385   :  { %6668 = vrot.lane.b32.xlu0 %v14474_v9, %s9213_s12  ;;  %v2995_v4 = vmul.f32 %v20467_v6, %v2994_v61  ;;  %v3575_v3 = vsel %vm15611_vm9, %v20457_v54, %v3571_v59  ;;  %v4909_v14 = vand.u32 2147483647, %v13786_v7  ;;  %v4911_v28 = vand.u32 2147483648, %v13786_v7  ;;  %vm15684_vm9 = vmor %vm4905_vm10, %vm4906_vm11 }
 0x386   :  { %v4871_v42 = vmul.f32 %v20477_v25, %v20476_v22  ;;  %v4903_v9 = vmul.f32 %v13862_v49, %v4902_v31  ;;  %vm2997_vm14 = vweird.f32 %v20466_v62  ;;  %v2964_v13 = vsub.f32 1.0, %v2963_v5 }
 0x387   :  { %v15630_v30 = vpop.permute.xlu0 %4296  ;;  %v2996_v53 = vadd.f32 %v20467_v6, %v2995_v4  ;;  %vm2999_vm15 = vmor %vm2997_vm14, %vm2998_vm12  ;;  %vm3002_vm2 = vcmp.eq.f32.partialorder %v3001_v32, 8.507059e+37  ;;  %v3004_v54 = vor.u32 1.1754944e-38, %v3003_v48  ;;  %v2973_v52 = vand.u32 2147483648, %v20474_v29 }
 0x388   :  { %6772 = vrot.lane.b32.xlu1 %v14930_v16, %s9212_s19  ;;  %v3023_v45 = vmul.f32 %v20479_v19, %v20478_v58  ;;  %6774 = vrot.lane.b32.xlu2 %v15257_v56, %s9212_s19  ;;  %v9084_v33 = vpop.eup %9083  ;;  %v2965_v62 = vmul.f32 %v20475_v21, %v2964_v13  ;;  %vm2968_vm0 = vweird.f32 %v20475_v21  ;;  %v2971_v16 = vand.u32 2147483647, %v20474_v29  ;;  %v15652_v4 = vpop.permute.xlu2 %4300  ;;  %v20480_v56 = vld [vmem:[#allocation38_spill] sm:$0xff]  ;;  %v20482_v13 = vld [vmem:[#allocation107_spill] sm:$0xff] }
 0x389   :  { %v3000_v59 = vsel %vm2999_vm15, %v20467_v6, %v2996_v53  ;;  %v3580_v61 = vsel %vm15605_vm8, %v3579_v26, %v3575_v3  ;;  %v15650_v32 = vor.u32 1.1754944e-38, %v4911_v28  ;;  %vm2967_vm1 = vweird.f32 %v20474_v29  ;;  %v20481_v53 = vld [vmem:[#allocation253_spill] sm:$0xff] }
 0x38a   :  { %v15646_v31 = vpop.permute.xlu1 %6628  ;;  %v3005_v48 = vsel %vm3002_vm2, %v3004_v54, %v3000_v59  ;;  %v3024_v57 = vsub.f32 1.0, %v3023_v45  ;;  %v2966_v6 = vadd.f32 %v20475_v21, %v2965_v62  ;;  %v3583_v37 = vmul.f32 %v20482_v13, %v20481_v53  ;;  %vm2969_vm3 = vmor %vm2967_vm1, %vm2968_vm0 }
 0x38b   :  { %v3880_v5 = vmul.f32 %v3005_v48, %v20480_v56  ;;  %v4872_v34 = vsub.f32 1.0, %v4871_v42  ;;  %v4931_v2 = vmul.f32 %v14102_v20, %v14009_v36  ;;  %v2974_v26 = vor.u32 1.1754944e-38, %v2973_v52  ;;  %v20494_v42 = vld [vmem:[#allocation163_spill] sm:$0xff] }
 0x38c   :  { %v3025_v3 = vmul.f32 %v20479_v19, %v3024_v57  ;;  %v2970_v54 = vsel %vm2969_vm3, %v20475_v21, %v2966_v6  ;;  %vm2972_vm6 = vcmp.eq.f32.partialorder %v2971_v16, 8.507059e+37  ;;  %v3584_v45 = vsub.f32 1.0, %v3583_v37  ;;  %v20485_v37 = vld [vmem:[#allocation219_spill] sm:$0xff]  ;;  %v20486_v16 = vld [vmem:[#allocation228_spill] sm:$0xff] }
 0x38d   :  { %v15663_v28 = vadd.f32 %v15562_v44, %v3880_v5  ;;  %v15667_v29 = vadd.f32 %v13862_v49, %v4903_v9  ;;  %vm4875_vm4 = vweird.f32 %v20476_v22  ;;  %vm4876_vm7 = vweird.f32 %v20477_v25  ;;  %v20484_v44 = vld [vmem:[#allocation22_spill] sm:$0xff] }
 0x38e   :  { %v2975_v59 = vsel %vm2972_vm6, %v2974_v26, %v2970_v54  ;;  %vm3028_vm8 = vweird.f32 %v20479_v19  ;;  %v3026_v21 = vadd.f32 %v20479_v19, %v3025_v3  ;;  %v3553_v9 = vmul.f32 %v20486_v16, %v20485_v37 }
 0x38f   :  { %20483 = vst [vmem:[#allocation37_spill] sm:$0xff] %v15663_v28  ;;  %v4429_v52 = vpop.permute.xlu0 %4428  ;;  %9085 = vtanh.f32 %v15663_v28  ;;  %v3878_v62 = vmul.f32 %v2975_v59, %v20484_v44  ;;  %v4377_v48 = vmul.f32 %v15468_v8, %v3580_v61  ;;  %v4932_v5 = vsub.f32 1.0, %v4931_v2  ;;  %v20500_v28 = vld [vmem:[#allocation43_spill] sm:$0xff] }
 0x390   :  { %4322 = vrot.lane.b32.xlu1 %v9084_v33, %s9213_s12  ;;  %v3033_v6 = vand.u32 2147483648, %v20478_v58  ;;  %v3585_v26 = vmul.f32 %v20482_v13, %v3584_v45  ;;  %vm15690_vm12 = vcmp.eq.f32.partialorder %v4909_v14, 8.507059e+37  ;;  %vm3027_vm14 = vweird.f32 %v20478_v58  ;;  %v4433_v14 = vpop.permute.xlu2 %4432 }
 0x391   :  { %v15695_v33 = vadd.f32 %v15524_v12, %v3878_v62  ;;  %v3031_v7 = vand.u32 2147483647, %v20478_v58  ;;  %v3554_v8 = vsub.f32 1.0, %v3553_v9  ;;  %v4873_v2 = vmul.f32 %v20477_v25, %v4872_v34  ;;  %vm15707_vm15 = vmor %vm3027_vm14, %vm3028_vm8  ;;  %v20493_v9 = vld [vmem:[#allocation242_spill] sm:$0xff] }
 0x392   :  { %v15699_v61 = vpop.permute.xlu1 %4134  ;;  %v4881_v54 = vand.u32 2147483648, %v20476_v22  ;;  %vm4935_vm10 = vweird.f32 %v14009_v36  ;;  %vm4936_vm11 = vweird.f32 %v14102_v20  ;;  %v4908_v58 = vsel %vm15684_vm9, %v13862_v49, %v15667_v29  ;;  %vm15754_vm14 = vmor %vm4875_vm4, %vm4876_vm7 }
 0x393   :  { %9087 = vtanh.f32 %v15695_v33  ;;  %v3030_v34 = vsel %vm15707_vm15, %v20479_v19, %v3026_v21  ;;  %vm3588_vm2 = vweird.f32 %v20482_v13  ;;  %v3034_v45 = vor.u32 1.1754944e-38, %v3033_v6  ;;  %vm15771_vm4 = vmor %vm4935_vm10, %vm4936_vm11 }
 0x394   :  { %v3586_v59 = vadd.f32 %v20482_v13, %v3585_v26  ;;  %v3555_v62 = vmul.f32 %v20486_v16, %v3554_v8  ;;  %v3613_v11 = vmul.f32 %v20494_v42, %v20493_v9  ;;  %v4933_v57 = vmul.f32 %v14102_v20, %v4932_v5 }
 0x395   :  { %v9086_v44 = vpop.eup %9085  ;;  %v4939_v49 = vand.u32 2147483647, %v14009_v36  ;;  %vm3032_vm0 = vcmp.eq.f32.partialorder %v3031_v7, 8.507059e+37  ;;  %v3593_v29 = vand.u32 2147483648, %v20481_v53  ;;  %v15728_v19 = vadd.f32 %v20477_v25, %v4873_v2  ;;  %v20497_v2 = vld [vmem:[#allocation185_spill] sm:$0xff] }
 0x396   :  { %v3035_v21 = vsel %vm3032_vm0, %v3034_v45, %v3030_v34  ;;  %vm3587_vm1 = vweird.f32 %v20481_v53  ;;  %v3591_v6 = vand.u32 2147483647, %v20481_v53  ;;  %4324 = vrot.lane.b32.xlu2 %v9086_v44, %s9213_s12  ;;  %v4941_v8 = vand.u32 2147483648, %v14009_v36 }
 0x397   :  { %v15733_v26 = vpop.permute.xlu0 %6632  ;;  %vm15738_vm3 = vmor %vm3587_vm1, %vm3588_vm2  ;;  %vm3558_vm6 = vweird.f32 %v20486_v16  ;;  %vm19125_vm8 = vcmask 261120   ;;  %vm19124_vm9 = vcmask 523264   ;;  %v3556_v44 = vadd.f32 %v20486_v16, %v3555_v62 }
 0x398   :  { %4454 = vrot.lane.b32.xlu1 %v4377_v48, %s9212_s19  ;;  %v3590_v53 = vsel %vm15738_vm3, %v20482_v13, %v3586_v59  ;;  %v3614_v7 = vsub.f32 1.0, %v3613_v11  ;;  %v4525_v12 = vsel %vm19125_vm8, %v4429_v52, %v20497_v2  ;;  %v4934_v48 = vadd.f32 %v14102_v20, %v4933_v57  ;;  %v20503_v57 = vld [vmem:[#allocation180_spill] sm:$0xff] }
 0x399   :  { %v9088_v34 = vpop.eup %9087  ;;  %v3882_v5 = vmul.f32 %v3035_v21, %v20500_v28  ;;  %v3594_v13 = vor.u32 1.1754944e-38, %v3593_v29  ;;  %v3563_v59 = vand.u32 2147483648, %v20485_v37  ;;  %4558 = vst.msk [vmem:[%s18420_s4] sm:$0xff] %vm19124_vm9, %v4525_v12  ;;  %vm3592_vm7 = vcmp.eq.f32.partialorder %v3591_v6, 8.507059e+37  ;;  %v15780_v21 = vpop.permute.xlu2 %6636 }
 0x39a   :  { %v15765_v11 = vpop.permute.xlu1 %4298  ;;  %vm3557_vm15 = vweird.f32 %v20485_v37  ;;  %v3561_v62 = vand.u32 2147483647, %v20485_v37  ;;  %4320 = vrot.lane.b32.xlu0 %v9088_v34, %s9213_s12  ;;  %v4527_v29 = vsel %vm19125_vm8, %v4433_v14, %v20503_v57  ;;  %v20504_v2 = vand.u32 2147483647, %v20476_v22  ;;  %v20521_v34 = vld [vmem:[#allocation101_spill] sm:$0xff] }
 0x39b   :  { %v4882_v12 = vor.u32 1.1754944e-38, %v4881_v54  ;;  %v15789_v6 = vadd.f32 %v15598_v51, %v3882_v5  ;;  %v3595_v28 = vsel %vm3592_vm7, %v3594_v13, %v3590_v53  ;;  %vm15793_vm10 = vmor %vm3557_vm15, %vm3558_vm6  ;;  %4560 = vst.msk [vmem:[%s18420_s4 + $0x10] sm:$0xff] %vm19124_vm9, %v4527_v29  ;;  %v4913_v22 = vsel %vm15690_vm12, %v15650_v32, %v4908_v58  ;;  %v20512_v32 = vld [vmem:[#allocation268_spill] sm:$0xff] }
 0x39c   :  { %vm15784_vm2 = vcmp.eq.f32.partialorder %v20504_v2, 8.507059e+37  ;;  %v4378_v54 = vmul.f32 %v15630_v30, %v3595_v28  ;;  %v3560_v51 = vsel %vm15793_vm10, %v20486_v16, %v3556_v44  ;;  %v3615_v14 = vmul.f32 %v20494_v42, %v3614_v7  ;;  %v20513_v28 = vld [vmem:[#allocation90_spill] sm:$0xff]  ;;  %v20525_v2 = vld [vmem:[#allocation144_spill] sm:$0xff] }
 0x39d   :  { %20507 = vst [vmem:[#allocation80_spill] sm:$0xff] %v15789_v6  ;;  %v4878_v53 = vsel %vm15754_vm14, %v20477_v25, %v15728_v19  ;;  %vm15813_vm11 = vcmp.eq.f32.partialorder %v4939_v49, 8.507059e+37  ;;  %v4942_v5 = vor.u32 1.1754944e-38, %v4941_v8  ;;  %v3564_v3 = vor.u32 1.1754944e-38, %v3563_v59 }
 0x39e   :  { %v4938_v30 = vsel %vm15771_vm4, %v14102_v20, %v4934_v48  ;;  %vm3562_vm12 = vcmp.eq.f32.partialorder %v3561_v62, 8.507059e+37  ;;  %vm3617_vm0 = vweird.f32 %v20493_v9  ;;  %v3008_v16 = vmul.f32 %v20513_v28, %v20512_v32  ;;  %4456 = vrot.lane.b32.xlu2 %v4378_v54, %s9212_s19 }
 0x39f   :  { %v15824_v58 = vpop.permute.xlu0 %4138  ;;  %9089 = vtanh.f32 %v15789_v6  ;;  %v3565_v25 = vsel %vm3562_vm12, %v3564_v3, %v3560_v51  ;;  %v3621_v49 = vand.u32 2147483647, %v20493_v9  ;;  %v4916_v19 = vmul.f32 %v13965_v39, %v13878_v38 }
 0x3a0   :  { %6778 = vrot.lane.b32.xlu1 %v15265_v1, %s9212_s19  ;;  %v4376_v20 = vmul.f32 %v15587_v24, %v3565_v25  ;;  %v3616_v8 = vadd.f32 %v20494_v42, %v3615_v14  ;;  %vm3618_vm1 = vweird.f32 %v20494_v42  ;;  %v3009_v44 = vsub.f32 1.0, %v3008_v16 }
 0x3a1   :  { %v15836_v7 = vmul.f32 %v15493_v17, %v4913_v22  ;;  %v4883_v45 = vsel %vm15784_vm2, %v4882_v12, %v4878_v53  ;;  %v3623_v48 = vand.u32 2147483648, %v20493_v9  ;;  %v3018_v13 = vand.u32 2147483648, %v20512_v32  ;;  %v15850_v52 = vpop.permute.xlu2 %6660  ;;  %vm15862_vm6 = vmor %vm3617_vm0, %vm3618_vm1  ;;  %v20518_v12 = vld [vmem:[#allocation130_spill] sm:$0xff] }
 0x3a2   :  { %v15842_v59 = vpop.permute.xlu1 %4430  ;;  %v4943_v1 = vsel %vm15813_vm11, %v4942_v5, %v4938_v30  ;;  %4452 = vrot.lane.b32.xlu0 %v4376_v20, %s9212_s19  ;;  %v3010_v24 = vmul.f32 %v20513_v28, %v3009_v44  ;;  %vm3013_vm3 = vweird.f32 %v20513_v28  ;;  %v3016_v17 = vand.u32 2147483647, %v20512_v32  ;;  %v20520_v53 = vld [vmem:[#allocation274_spill] sm:$0xff]  ;;  %v20522_v20 = vld [vmem:[#allocation25_spill] sm:$0xff]  ;;  %v20523_v44 = vld [vmem:[#allocation44_spill] sm:$0xff] }
 0x3a3   :  { %v15853_v62 = vmul.f32 %v15461_v23, %v4883_v45  ;;  %v15856_v57 = vmul.f32 %v15537_v35, %v4943_v1  ;;  %vm15866_vm14 = vcmp.eq.f32.partialorder %v3621_v49, 8.507059e+37  ;;  %v4917_v36 = vsub.f32 1.0, %v4916_v19  ;;  %v20519_v35 = vld [vmem:[#allocation50_spill] sm:$0xff]  ;;  %v20524_v45 = vld [vmem:[#allocation240_spill] sm:$0xff] }
 0x3a4   :  { %v3620_v23 = vsel %vm15862_vm6, %v20494_v42, %v3616_v8  ;;  %v4946_v37 = vmul.f32 %v20519_v35, %v20518_v12  ;;  %v3011_v22 = vadd.f32 %v20513_v28, %v3010_v24  ;;  %vm3012_vm4 = vweird.f32 %v20512_v32  ;;  %v20531_v42 = vld [vmem:[#allocation151_spill] sm:$0xff] }
 0x3a5   :  { %v9090_v9 = vpop.eup %9089  ;;  %v3624_v54 = vor.u32 1.1754944e-38, %v3623_v48  ;;  %v4926_v51 = vand.u32 2147483648, %v13878_v38  ;;  %vm3014_vm7 = vmor %vm3012_vm4, %vm3013_vm3  ;;  %v3019_v14 = vor.u32 1.1754944e-38, %v3018_v13  ;;  %v3038_v5 = vmul.f32 %v20521_v34, %v20520_v53 }
 0x3a6   :  { %vm4920_vm15 = vweird.f32 %v13878_v38  ;;  %vm4921_vm2 = vweird.f32 %v13965_v39  ;;  %v3015_v3 = vsel %vm3014_vm7, %v20513_v28, %v3011_v22  ;;  %vm3017_vm10 = vcmp.eq.f32.partialorder %v3016_v17, 8.507059e+37  ;;  %6780 = vrot.lane.b32.xlu2 %v15575_v41, %s9212_s19 }
 0x3a7   :  { %v15888_v30 = vpop.permute.xlu0 %4302  ;;  %v3625_v32 = vsel %vm15866_vm14, %v3624_v54, %v3620_v23  ;;  %v4918_v16 = vmul.f32 %v13965_v39, %v4917_v36  ;;  %v3020_v25 = vsel %vm3017_vm10, %v3019_v14, %v3015_v3  ;;  %v3039_v49 = vsub.f32 1.0, %v3038_v5  ;;  %v20526_v36 = vld [vmem:[#allocation288_spill] sm:$0xff]  ;;  %vm15945_vm7 = vmor %vm4920_vm15, %vm4921_vm2 }
 0x3a8   :  { %4328 = vrot.lane.b32.xlu1 %v9090_v9, %s9213_s12  ;;  %v4947_v19 = vsub.f32 1.0, %v4946_v37  ;;  %v3881_v8 = vmul.f32 %v3020_v25, %v20522_v20  ;;  %v3048_v28 = vand.u32 2147483648, %v20520_v53  ;;  %v3598_v48 = vmul.f32 %v20524_v45, %v20523_v44 }
 0x3a9   :  { %v15898_v41 = vor.u32 1.1754944e-38, %v4926_v51  ;;  %v3040_v13 = vmul.f32 %v20521_v34, %v3039_v49  ;;  %vm3043_vm11 = vweird.f32 %v20521_v34  ;;  %v3046_v1 = vand.u32 2147483647, %v20520_v53  ;;  %v15913_v22 = vpop.permute.xlu2 %4306  ;;  %v20527_v51 = vld [vmem:[#allocation216_spill] sm:$0xff] }
 0x3aa   :  { %v15903_v24 = vpop.permute.xlu1 %6634  ;;  %v4380_v17 = vmul.f32 %v15652_v4, %v3625_v32  ;;  %v15907_v29 = vadd.f32 %v15699_v61, %v3881_v8  ;;  %v4976_v23 = vmul.f32 %v20526_v36, %v20525_v2  ;;  %6770 = vrot.lane.b32.xlu0 %v15112_v47, %s9212_s19  ;;  %v3599_v37 = vsub.f32 1.0, %v3598_v48  ;;  %v20528_v4 = vld [vmem:[#allocation177_spill] sm:$0xff] }
 0x3ab   :  { %v3041_v54 = vadd.f32 %v20521_v34, %v3040_v13  ;;  %vm3042_vm12 = vweird.f32 %v20520_v53  ;;  %v5156_v14 = vmul.f32 %v20528_v4, %v20527_v51  ;;  %v15921_v61 = vadd.f32 %v13965_v39, %v4918_v16 }
 0x3ac   :  { %v4948_v5 = vmul.f32 %v20519_v35, %v4947_v19  ;;  %9091 = vtanh.f32 %v15907_v29  ;;  %vm3044_vm0 = vmor %vm3042_vm12, %vm3043_vm11  ;;  %v3049_v47 = vor.u32 1.1754944e-38, %v3048_v28  ;;  %vm3047_vm1 = vcmp.eq.f32.partialorder %v3046_v1, 8.507059e+37  ;;  %v20529_v19 = vld [vmem:[#allocation42_spill] sm:$0xff] }
 0x3ad   :  { %v3045_v3 = vsel %vm3044_vm0, %v20521_v34, %v3041_v54  ;;  %v3600_v32 = vmul.f32 %v20524_v45, %v3599_v37  ;;  %v5157_v53 = vsub.f32 1.0, %v5156_v14  ;;  %v4977_v25 = vsub.f32 1.0, %v4976_v23  ;;  %v20530_v28 = vld [vmem:[#allocation82_spill] sm:$0xff] }
 0x3ae   :  { %v3050_v49 = vsel %vm3047_vm1, %v3049_v47, %v3045_v3  ;;  %v5164_v8 = vand.u32 2147483647, %v20527_v51  ;;  %v5166_v16 = vand.u32 2147483648, %v20527_v51  ;;  %vm5161_vm3 = vweird.f32 %v20528_v4 }
 0x3af   :  { %v4435_v48 = vpop.permute.xlu0 %4434  ;;  %v3883_v13 = vmul.f32 %v3050_v49, %v20529_v19  ;;  %v5158_v9 = vmul.f32 %v20528_v4, %v5157_v53  ;;  %v3628_v34 = vmul.f32 %v20531_v42, %v20530_v28  ;;  %vm3602_vm6 = vweird.f32 %v20523_v44 }
 0x3b0   :  { %4460 = vrot.lane.b32.xlu1 %v4380_v17, %s9212_s19  ;;  %vm3603_vm14 = vweird.f32 %v20524_v45  ;;  %v3606_v1 = vand.u32 2147483647, %v20523_v44  ;;  %vm5160_vm4 = vweird.f32 %v20527_v51  ;;  %v3601_v17 = vadd.f32 %v20524_v45, %v3600_v32 }
 0x3b1   :  { %v15950_v37 = vadd.f32 %v15824_v58, %v3883_v13  ;;  %v5159_v54 = vadd.f32 %v20528_v4, %v5158_v9  ;;  %v3629_v14 = vsub.f32 1.0, %v3628_v34  ;;  %v3608_v51 = vand.u32 2147483648, %v20523_v44  ;;  %vm15959_vm10 = vmor %vm5160_vm4, %vm5161_vm3  ;;  %v20537_v58 = vld [vmem:[#allocation94_spill] sm:$0xff]  ;;  %v4439_v13 = vpop.permute.xlu2 %4438 }
 0x3b2   :  { %v15954_v47 = vpop.permute.xlu1 %6658  ;;  %v9092_v3 = vpop.eup %9091  ;;  %vm5165_vm15 = vcmp.eq.f32.partialorder %v5164_v8, 8.507059e+37  ;;  %v5167_v49 = vor.u32 1.1754944e-38, %v5166_v16  ;;  %v4526_v32 = vsel %vm19125_vm8, %v15842_v59, %v20537_v58  ;;  %v20538_v8 = vld [vmem:[#allocation246_spill] sm:$0xff]  ;;  %v20539_v16 = vld [vmem:[#allocation169_spill] sm:$0xff]  ;;  %v15983_v53 = vadd.f32 %v20519_v35, %v4948_v5  ;;  %vm15990_vm2 = vmor %vm3602_vm6, %vm3603_vm14 }
 0x3b3   :  { %20534 = vst [vmem:[#allocation83_spill] sm:$0xff] %v15950_v37  ;;  %9093 = vtanh.f32 %v15950_v37  ;;  %v5163_v9 = vsel %vm15959_vm10, %v20528_v4, %v5159_v54  ;;  %4326 = vrot.lane.b32.xlu0 %v9092_v3, %s9213_s12  ;;  %v3630_v34 = vmul.f32 %v20531_v42, %v3629_v14  ;;  %v3658_v6 = vmul.f32 %v20539_v16, %v20538_v8  ;;  %v20542_v44 = vld [vmem:[#allocation314_spill] sm:$0xff] }
 0x3b4   :  { %4559 = vst.msk [vmem:[%s18420_s4 + $0x8] sm:$0xff] %vm19124_vm9, %v4526_v32  ;;  %v5168_v14 = vsel %vm5165_vm15, %v5167_v49, %v5163_v9  ;;  %v4978_v3 = vmul.f32 %v20526_v36, %v4977_v25  ;;  %v3605_v58 = vsel %vm15990_vm2, %v20524_v45, %v3601_v17  ;;  %v3609_v59 = vor.u32 1.1754944e-38, %v3608_v51 }
 0x3b5   :  { %v15999_v5 = vmul.f32 %v15850_v52, %v5168_v14  ;;  %v3659_v32 = vsub.f32 1.0, %v3658_v6  ;;  %v3631_v4 = vadd.f32 %v20531_v42, %v3630_v34  ;;  %vm3633_vm11 = vweird.f32 %v20531_v42  ;;  %v20546_v34 = vld [vmem:[#allocation205_spill] sm:$0xff] }
 0x3b6   :  { %v4528_v37 = vsel %vm19125_vm8, %v4435_v48, %v20542_v44  ;;  %vm3607_vm12 = vcmp.eq.f32.partialorder %v3606_v1, 8.507059e+37  ;;  %vm3632_vm0 = vweird.f32 %v20530_v28  ;;  %v3638_v25 = vand.u32 2147483648, %v20530_v28 }
 0x3b7   :  { %v16005_v20 = vpop.permute.xlu0 %6656  ;;  %v3660_v45 = vmul.f32 %v20539_v16, %v3659_v32  ;;  %4561 = vst.msk [vmem:[%s18420_s4 + $0x18] sm:$0xff] %vm19124_vm9, %v4528_v37  ;;  %v3610_v6 = vsel %vm3607_vm12, %v3609_v59, %v3605_v58  ;;  %v3636_v52 = vand.u32 2147483647, %v20530_v28  ;;  %vm3662_vm1 = vweird.f32 %v20538_v8  ;;  %vm16023_vm14 = vmor %vm3632_vm0, %vm3633_vm11  ;;  %v20547_v59 = vld [vmem:[#allocation312_spill] sm:$0xff] }
 0x3b8   :  { %6784 = vrot.lane.b32.xlu1 %v15581_v55, %s9212_s19  ;;  %vm3663_vm3 = vweird.f32 %v20539_v16  ;;  %vm4980_vm6 = vweird.f32 %v20525_v2  ;;  %v4379_v1 = vmul.f32 %v15765_v11, %v3610_v6  ;;  %v3668_v37 = vand.u32 2147483648, %v20538_v8  ;;  %v20545_v11 = vld [vmem:[#allocation124_spill] sm:$0xff] }
 0x3b9   :  { %v9094_v48 = vpop.eup %9093  ;;  %v3661_v55 = vadd.f32 %v20539_v16, %v3660_v45  ;;  %v3635_v51 = vsel %vm16023_vm14, %v20531_v42, %v3631_v4  ;;  %v3666_v49 = vand.u32 2147483647, %v20538_v8  ;;  %v4530_v9 = vsel %vm19125_vm8, %v4439_v13, %v20545_v11  ;;  %v16040_v14 = vpop.permute.xlu2 %6666  ;;  %vm16051_vm2 = vmor %vm3662_vm1, %vm3663_vm3 }
 0x3ba   :  { %v16029_v28 = vpop.permute.xlu1 %4304  ;;  %4330 = vrot.lane.b32.xlu2 %v9094_v48, %s9213_s12  ;;  %v5126_v54 = vmul.f32 %v20547_v59, %v20546_v34  ;;  %vm4951_vm10 = vweird.f32 %v20519_v35  ;;  %vm4981_vm15 = vweird.f32 %v20526_v36  ;;  %v4984_v42 = vand.u32 2147483647, %v20525_v2  ;;  %4563 = vst.msk [vmem:[%s18420_s4 + $0x28] sm:$0xff] %vm19124_vm9, %v4530_v9  ;;  %v20550_v48 = vld [vmem:[#allocation209_spill] sm:$0xff] }
 0x3bb   :  { %v4986_v4 = vand.u32 2147483648, %v20525_v2  ;;  %v3639_v58 = vor.u32 1.1754944e-38, %v3638_v25  ;;  %4458 = vrot.lane.b32.xlu0 %v4379_v1, %s9212_s19  ;;  %v16061_v32 = vadd.f32 %v20526_v36, %v4978_v3  ;;  %vm3637_vm11 = vcmp.eq.f32.partialorder %v3636_v52, 8.507059e+37  ;;  %v20551_v1 = vld [vmem:[#allocation318_spill] sm:$0xff] }
 0x3bc   :  { %v3665_v44 = vsel %vm16051_vm2, %v20539_v16, %v3661_v55  ;;  %v5127_v8 = vsub.f32 1.0, %v5126_v54  ;;  %v3669_v45 = vor.u32 1.1754944e-38, %v3668_v37  ;;  %v5136_v6 = vand.u32 2147483648, %v20546_v34  ;;  %v20557_v54 = vld [vmem:[#allocation109_spill] sm:$0xff] }
 0x3bd   :  { %v3640_v25 = vsel %vm3637_vm11, %v3639_v58, %v3635_v51  ;;  %v5141_v17 = vmul.f32 %v20551_v1, %v20550_v48  ;;  %v20552_v11 = vand.u32 2147483647, %v13878_v38  ;;  %vm3667_vm0 = vcmp.eq.f32.partialorder %v3666_v49, 8.507059e+37 }
 0x3be   :  { %v5128_v3 = vmul.f32 %v20547_v59, %v5127_v8  ;;  %vm5131_vm1 = vweird.f32 %v20547_v59  ;;  %v5134_v16 = vand.u32 2147483647, %v20546_v34  ;;  %vm16078_vm3 = vcmp.eq.f32.partialorder %v4984_v42, 8.507059e+37  ;;  %v20558_v42 = vld [vmem:[#allocation47_spill] sm:$0xff] }
 0x3bf   :  { %vm16071_vm12 = vcmp.eq.f32.partialorder %v20552_v11, 8.507059e+37  ;;  %v4381_v55 = vmul.f32 %v15888_v30, %v3640_v25  ;;  %v3670_v37 = vsel %vm3667_vm0, %v3669_v45, %v3665_v44  ;;  %vm5130_vm14 = vweird.f32 %v20546_v34  ;;  %v16091_v13 = vpop.permute.xlu0 %4308 }
 0x3c0   :  { %v5142_v38 = vsub.f32 1.0, %v5141_v17  ;;  %6790 = vrot.lane.b32.xlu1 %v15856_v57, %s9212_s19  ;;  %v5129_v51 = vadd.f32 %v20547_v59, %v5128_v3  ;;  %vm5145_vm2 = vweird.f32 %v20550_v48  ;;  %v5151_v49 = vand.u32 2147483648, %v20550_v48  ;;  %vm5132_vm0 = vmor %vm5130_vm14, %vm5131_vm1 }
 0x3c1   :  { %v5201_v58 = vmul.f32 %v20558_v42, %v20557_v54  ;;  %v20559_v30 = vand.u32 2147483647, %v20518_v12  ;;  %v5137_v34 = vor.u32 1.1754944e-38, %v5136_v6  ;;  %vm5146_vm9 = vweird.f32 %v20551_v1  ;;  %v16107_v11 = vpop.permute.xlu2 %4312  ;;  %vm16113_vm1 = vmor %vm4980_vm6, %vm4981_vm15  ;;  %v20572_v6 = vld [vmem:[#allocation286_spill] sm:$0xff] }
 0x3c2   :  { %v5143_v57 = vmul.f32 %v20551_v1, %v5142_v38  ;;  %v5149_v8 = vand.u32 2147483647, %v20550_v48  ;;  %v16102_v25 = vpop.permute.xlu1 %4436  ;;  %4462 = vrot.lane.b32.xlu2 %v4381_v55, %s9212_s19  ;;  %v5133_v45 = vsel %vm5132_vm0, %v20547_v59, %v5129_v51  ;;  %vm5135_vm8 = vcmp.eq.f32.partialorder %v5134_v16, 8.507059e+37  ;;  %v20564_v55 = vld [vmem:[#allocation258_spill] sm:$0xff]  ;;  %v20565_v38 = vld [vmem:[#allocation261_spill] sm:$0xff]  ;;  %vm5147_vm6 = vmor %vm5145_vm2, %vm5146_vm9 }
 0x3c3   :  { %vm16095_vm11 = vcmp.eq.f32.partialorder %v20559_v30, 8.507059e+37  ;;  %v5202_v17 = vsub.f32 1.0, %v5201_v58  ;;  %vm5206_vm4 = vweird.f32 %v20558_v42  ;;  %6776 = vrot.lane.b32.xlu0 %v15547_v18, %s9212_s19  ;;  %v5138_v3 = vsel %vm5135_vm8, %v5137_v34, %v5133_v45 }
 0x3c4   :  { %v5144_v59 = vadd.f32 %v20551_v1, %v5143_v57  ;;  %v5211_v16 = vand.u32 2147483648, %v20557_v54  ;;  %v3673_v51 = vmul.f32 %v20565_v38, %v20564_v55  ;;  %v16124_v58 = vmul.f32 %v16005_v20, %v5138_v3 }
 0x3c5   :  { %v5152_v2 = vor.u32 1.1754944e-38, %v5151_v49  ;;  %v5203_v30 = vmul.f32 %v20558_v42, %v5202_v17  ;;  %v5209_v18 = vand.u32 2147483647, %v20557_v54  ;;  %v4987_v34 = vor.u32 1.1754944e-38, %v4986_v4  ;;  %v20570_v17 = vld [vmem:[#allocation29_spill] sm:$0xff] }
 0x3c6   :  { %v4383_v57 = vmul.f32 %v15913_v22, %v3670_v37  ;;  %v5148_v45 = vsel %vm5147_vm6, %v20551_v1, %v5144_v59  ;;  %vm5150_vm8 = vcmp.eq.f32.partialorder %v5149_v8, 8.507059e+37  ;;  %vm20566_vm15 = vweird.f32 %v20518_v12  ;;  %v20569_v8 = vld [vmem:[#allocation239_spill] sm:$0xff]  ;;  %v20573_v59 = vld [vmem:[#allocation85_spill] sm:$0xff] }
 0x3c7   :  { %vm16138_vm14 = vmor %vm20566_vm15, %vm4951_vm10  ;;  %v4983_v48 = vsel %vm16113_vm1, %v20526_v36, %v16061_v32  ;;  %v5153_v49 = vsel %vm5150_vm8, %v5152_v2, %v5148_v45  ;;  %v5204_v4 = vadd.f32 %v20558_v42, %v5203_v30  ;;  %vm5205_vm9 = vweird.f32 %v20557_v54 }
 0x3c8   :  { %v16149_v22 = vmul.f32 %v15954_v47, %v5153_v49  ;;  %vm5207_vm2 = vmor %vm5205_vm9, %vm5206_vm4  ;;  %v5212_v1 = vor.u32 1.1754944e-38, %v5211_v16  ;;  %v3674_v37 = vsub.f32 1.0, %v3673_v51  ;;  %v3643_v3 = vmul.f32 %v20570_v17, %v20569_v8  ;;  %4466 = vrot.lane.b32.xlu1 %v4383_v57, %s9212_s19 }
 0x3c9   :  { %v20571_v36 = vand.u32 2147483648, %v20518_v12  ;;  %v4961_v2 = vmul.f32 %v20573_v59, %v20572_v6  ;;  %v5208_v54 = vsel %vm5207_vm2, %v20558_v42, %v5204_v4  ;;  %vm5210_vm10 = vcmp.eq.f32.partialorder %v5209_v18, 8.507059e+37  ;;  %v4441_v18 = vpop.permute.xlu0 %4440 }
 0x3ca   :  { %v20574_v47 = vsel %vm15945_vm7, %v13965_v39, %v15921_v61  ;;  %v4953_v12 = vsel %vm16138_vm14, %v20519_v35, %v15983_v53  ;;  %v5213_v51 = vsel %vm5210_vm10, %v5212_v1, %v5208_v54  ;;  %v3644_v30 = vsub.f32 1.0, %v3643_v3  ;;  %v16173_v57 = vpop.permute.xlu1 %6664  ;;  %6786 = vrot.lane.b32.xlu2 %v15836_v7, %s9212_s19  ;;  %v20576_v61 = vld [vmem:[#allocation257_spill] sm:$0xff]  ;;  %v4445_v35 = vpop.permute.xlu2 %4444 }
 0x3cb   :  { %v4957_v32 = vor.u32 1.1754944e-38, %v20571_v36  ;;  %v4928_v16 = vsel %vm16071_vm12, %v15898_v41, %v20574_v47  ;;  %v4988_v42 = vsel %vm16078_vm3, %v4987_v34, %v4983_v48  ;;  %v16178_v23 = vmul.f32 %v16040_v14, %v5213_v51  ;;  %v20575_v41 = vld [vmem:[#allocation252_spill] sm:$0xff]  ;;  %6782 = vrot.lane.b32.xlu0 %v15853_v62, %s9212_s19  ;;  %v20577_v48 = vld [vmem:[#allocation122_spill] sm:$0xff] }
 0x3cc   :  { %v3653_v39 = vand.u32 2147483648, %v20569_v8  ;;  %v3703_v9 = vmul.f32 %v20576_v61, %v20575_v41  ;;  %v3675_v53 = vmul.f32 %v20565_v38, %v3674_v37  ;;  %v3645_v52 = vmul.f32 %v20570_v17, %v3644_v30  ;;  %v20582_v37 = vld [vmem:[#allocation66_spill] sm:$0xff]  ;;  %v20587_v51 = vld [vmem:[#allocation128_spill] sm:$0xff] }
 0x3cd   :  { %vm3648_vm7 = vweird.f32 %v20570_v17  ;;  %v3651_v14 = vand.u32 2147483647, %v20569_v8  ;;  %v4958_v7 = vsel %vm16095_vm11, %v4957_v32, %v4953_v12  ;;  %v6717_v34 = vmul.f32 %v15780_v21, %v4988_v42  ;;  %v20580_v21 = vld [vmem:[#allocation63_spill] sm:$0xff]  ;;  %v20586_v12 = vld [vmem:[#allocation142_spill] sm:$0xff] }
 0x3ce   :  { %v4962_v45 = vsub.f32 1.0, %v4961_v2  ;;  %vm3678_vm4 = vweird.f32 %v20565_v38  ;;  %v3646_v20 = vadd.f32 %v20570_v17, %v3645_v52  ;;  %vm3647_vm12 = vweird.f32 %v20569_v8  ;;  %v20593_v52 = vld [vmem:[#allocation285_spill] sm:$0xff] }
 0x3cf   :  { %v3704_v62 = vsub.f32 1.0, %v3703_v9  ;;  %vm20578_vm3 = vcmask 261120   ;;  %v3681_v4 = vand.u32 2147483647, %v20564_v55  ;;  %vm3649_vm0 = vmor %vm3647_vm12, %vm3648_vm7  ;;  %v3654_v1 = vor.u32 1.1754944e-38, %v3653_v39 }
 0x3d0   :  { %v4531_v49 = vsel %vm20578_vm3, %v4441_v18, %v20577_v48  ;;  %vm20579_vm1 = vcmask 523264   ;;  %vm20581_vm11 = vmmov %vm20578_vm3  ;;  %v3676_v3 = vadd.f32 %v20565_v38, %v3675_v53  ;;  %v3683_v36 = vand.u32 2147483648, %v20564_v55  ;;  %6796 = vrot.lane.b32.xlu1 %v6717_v34, %s9212_s19 }
 0x3d1   :  { %4564 = vst.msk [vmem:[%s18420_s4 + $0x30] sm:$0xff] %vm20579_vm1, %v4531_v49  ;;  %v4529_v44 = vsel %vm20581_vm11, %v16102_v25, %v20580_v21  ;;  %vm20583_vm6 = vmmov %vm20578_vm3  ;;  %v3650_v32 = vsel %vm3649_vm0, %v20570_v17, %v3646_v20  ;;  %vm3652_vm8 = vcmp.eq.f32.partialorder %v3651_v14, 8.507059e+37  ;;  %v6713_v2 = vmul.f32 %v15646_v31, %v4928_v16  ;;  %v20594_v14 = vld [vmem:[#allocation89_spill] sm:$0xff] }
 0x3d2   :  { %v4533_v8 = vsel %vm20583_vm6, %v4445_v35, %v20582_v37  ;;  %vm20584_vm15 = vmmov %vm20579_vm1  ;;  %v6715_v25 = vmul.f32 %v15733_v26, %v4958_v7  ;;  %vm4965_vm14 = vweird.f32 %v20572_v6  ;;  %v3655_v54 = vsel %vm3652_vm8, %v3654_v1, %v3650_v32  ;;  %v16229_v31 = vpop.permute.xlu1 %4310  ;;  %v20600_v37 = vld [vmem:[#allocation74_spill] sm:$0xff] }
 0x3d3   :  { %4562 = vst.msk [vmem:[%s18420_s4 + $0x20] sm:$0xff] %vm20584_vm15, %v4529_v44  ;;  %vm20585_vm9 = vmmov %vm20579_vm1  ;;  %vm3677_vm2 = vweird.f32 %v20564_v55  ;;  %v4382_v17 = vmul.f32 %v16029_v28, %v3655_v54  ;;  %v3705_v47 = vmul.f32 %v20576_v61, %v3704_v62  ;;  %v5186_v30 = vmul.f32 %v20587_v51, %v20586_v12  ;;  %v16242_v28 = vpop.permute.xlu2 %6768  ;;  %v20599_v44 = vld [vmem:[#allocation36_spill] sm:$0xff]  ;;  %v20616_v1 = vld [vmem:[#allocation102_spill] sm:$0xff] }
 0x3d4   :  { %4566 = vst.msk [vmem:[%s18420_s4 + $0x40] sm:$0xff] %vm20585_vm9, %v4533_v8  ;;  %v4963_v26 = vmul.f32 %v20573_v59, %v4962_v45  ;;  %vm4966_vm10 = vweird.f32 %v20573_v59  ;;  %v4969_v16 = vand.u32 2147483647, %v20572_v6  ;;  %v4971_v42 = vand.u32 2147483648, %v20572_v6  ;;  %vm16237_vm7 = vmor %vm3677_vm2, %vm3678_vm4  ;;  %6792 = vrot.lane.b32.xlu2 %v6715_v25, %s9212_s19  ;;  %v20601_v8 = vld [vmem:[#allocation210_spill] sm:$0xff] }
 0x3d5   :  { %v20590_v39 = vand.u32 2147483647, %v20401_v0  ;;  %v3680_v18 = vsel %vm16237_vm7, %v20565_v38, %v3676_v3  ;;  %vm3682_vm3 = vcmp.eq.f32.partialorder %v3681_v4, 8.507059e+37  ;;  %v3684_v35 = vor.u32 1.1754944e-38, %v3683_v36  ;;  %4464 = vrot.lane.b32.xlu0 %v4382_v17, %s9212_s19  ;;  %vm16268_vm11 = vmor %vm4965_vm14, %vm4966_vm10  ;;  %v20602_v3 = vld [vmem:[#allocation77_spill] sm:$0xff] }
 0x3d6   :  { %v5187_v53 = vsub.f32 1.0, %v5186_v30  ;;  %vm3707_vm4 = vweird.f32 %v20575_v41  ;;  %vm3708_vm0 = vweird.f32 %v20576_v61  ;;  %v5171_v0 = vmul.f32 %v20594_v14, %v20593_v52 }
 0x3d7   :  { %vm16246_vm12 = vcmp.eq.f32.partialorder %v20590_v39, 8.507059e+37  ;;  %v5196_v7 = vand.u32 2147483648, %v20586_v12  ;;  %v3706_v34 = vadd.f32 %v20576_v61, %v3705_v47  ;;  %vm5191_vm1 = vweird.f32 %v20587_v51  ;;  %vm16274_vm6 = vmor %vm3707_vm4, %vm3708_vm0 }
 0x3d8   :  { %v5188_v45 = vmul.f32 %v20587_v51, %v5187_v53  ;;  %v5194_v38 = vand.u32 2147483647, %v20586_v12  ;;  %v4964_v20 = vadd.f32 %v20573_v59, %v4963_v26  ;;  %v3685_v48 = vsel %vm3682_vm3, %v3684_v35, %v3680_v18  ;;  %6802 = vrot.lane.b32.xlu1 %v14811_v46, %s9212_s19  ;;  %v20607_v18 = vld [vmem:[#allocation203_spill] sm:$0xff] }
 0x3d9   :  { %v3711_v49 = vand.u32 2147483647, %v20575_v41  ;;  %v3713_v4 = vand.u32 2147483648, %v20575_v41  ;;  %vm5190_vm8 = vweird.f32 %v20586_v12  ;;  %v5406_v6 = vmul.f32 %v20600_v37, %v20599_v44 }
 0x3da   :  { %v5189_v21 = vadd.f32 %v20587_v51, %v5188_v45  ;;  %v3688_v36 = vmul.f32 %v20602_v3, %v20601_v8  ;;  %v4972_v32 = vor.u32 1.1754944e-38, %v4971_v42  ;;  %v4384_v41 = vmul.f32 %v16091_v13, %v3685_v48  ;;  %vm5192_vm15 = vmor %vm5190_vm8, %vm5191_vm1  ;;  %v4443_v30 = vpop.permute.xlu1 %4442 }
 0x3db   :  { %v5172_v25 = vsub.f32 1.0, %v5171_v0  ;;  %v5197_v54 = vor.u32 1.1754944e-38, %v5196_v7  ;;  %v3710_v17 = vsel %vm16274_vm6, %v20576_v61, %v3706_v34  ;;  %vm5195_vm14 = vcmp.eq.f32.partialorder %v5194_v38, 8.507059e+37  ;;  %v16301_v55 = vpop.permute.xlu2 %4318  ;;  %v16333_v34 = vpop.permute.xlu0 %6662 }
 0x3dc   :  { %v5193_v47 = vsel %vm5192_vm15, %v20587_v51, %v5189_v21  ;;  %v3689_v12 = vsub.f32 1.0, %v3688_v36  ;;  %v4968_v46 = vsel %vm16268_vm11, %v20573_v59, %v4964_v20  ;;  %vm16296_vm9 = vcmp.eq.f32.partialorder %v4969_v16, 8.507059e+37  ;;  %4468 = vrot.lane.b32.xlu2 %v4384_v41, %s9212_s19  ;;  %v20605_v59 = vld [vmem:[#allocation272_spill] sm:$0xff] }
 0x3dd   :  { %v3714_v26 = vor.u32 1.1754944e-38, %v3713_v4  ;;  %v5198_v42 = vsel %vm5195_vm14, %v5197_v54, %v5193_v47  ;;  %vm3712_vm2 = vcmp.eq.f32.partialorder %v3711_v49, 8.507059e+37  ;;  %6788 = vrot.lane.b32.xlu0 %v6713_v2, %s9212_s19  ;;  %v5407_v51 = vsub.f32 1.0, %v5406_v6  ;;  %v20612_v20 = vld [vmem:[#allocation264_spill] sm:$0xff]  ;;  %v20615_v4 = vld [vmem:[#allocation201_spill] sm:$0xff] }
 0x3de   :  { %v16305_v61 = vmul.f32 %v16173_v57, %v5198_v42  ;;  %v3690_v39 = vmul.f32 %v20602_v3, %v3689_v12  ;;  %v20606_v16 = vsel %vm15340_vm13, %v20402_v40, %v20605_v59  ;;  %v20608_v53 = vand.u32 2147483647, %v20450_v15  ;;  %v20609_v57 = vld [vmem:[#allocation206_spill] sm:$0xff]  ;;  %v20618_v41 = vld [vmem:[#allocation324_spill] sm:$0xff] }
 0x3df   :  { %v5123_v35 = vsel %vm16246_vm12, %v20607_v18, %v20606_v16  ;;  %v3715_v0 = vsel %vm3712_vm2, %v3714_v26, %v3710_v17  ;;  %v5173_v2 = vmul.f32 %v20594_v14, %v5172_v25  ;;  %v20610_v50 = vsel %vm15589_vm5, %v20451_v43, %v15565_v60  ;;  %v20620_v17 = vld [vmem:[#allocation56_spill] sm:$0xff] }
 0x3e0   :  { %vm5105_vm10 = vcmp.eq.f32.partialorder %v20608_v53, 8.507059e+37  ;;  %v16320_v7 = vmul.f32 %v20609_v57, %v5123_v35  ;;  %v4973_v9 = vsel %vm16296_vm9, %v4972_v32, %v4968_v46  ;;  %v4386_v15 = vmul.f32 %v16107_v11, %v3715_v0  ;;  %v20617_v32 = vld [vmem:[#allocation140_spill] sm:$0xff] }
 0x3e1   :  { %v16328_v40 = vsel %vm5105_vm10, %v15593_v27, %v20610_v50  ;;  %v6716_v45 = vmul.f32 %v15903_v24, %v4973_v9  ;;  %v3691_v38 = vadd.f32 %v20602_v3, %v3690_v39  ;;  %vm3693_vm13 = vweird.f32 %v20602_v3  ;;  %v20621_v47 = vld [vmem:[#allocation96_spill] sm:$0xff]  ;;  %v20630_v9 = vld [vmem:[#allocation105_spill] sm:$0xff] }
 0x3e2   :  { %v3718_v62 = vmul.f32 %v20612_v20, %v20611_v63  ;;  %vm5175_vm5 = vweird.f32 %v20593_v52  ;;  %vm5176_vm7 = vweird.f32 %v20594_v14  ;;  %v5408_v43 = vmul.f32 %v20600_v37, %v5407_v51  ;;  %4472 = vrot.lane.b32.xlu1 %v4386_v15, %s9212_s19  ;;  %v16359_v36 = vpop.permute.xlu1 %6766  ;;  %v20631_v15 = vld [vmem:[#allocation49_spill] sm:$0xff] }
 0x3e3   :  { %v3698_v60 = vand.u32 2147483648, %v20601_v8  ;;  %v16346_v27 = vadd.f32 %v20594_v14, %v5173_v2  ;;  %v5179_v24 = vand.u32 2147483647, %v20593_v52  ;;  %vm3692_vm12 = vweird.f32 %v20601_v8  ;;  %v4451_v54 = vpop.permute.xlu2 %4450  ;;  %vm16375_vm11 = vmor %vm5175_vm5, %vm5176_vm7  ;;  %v4315_v53 = vpop.permute.xlu0 %4314 }
 0x3e4   :  { %v3696_v11 = vand.u32 2147483647, %v20601_v8  ;;  %v5181_v48 = vand.u32 2147483648, %v20593_v52  ;;  %vm5410_vm3 = vweird.f32 %v20599_v44  ;;  %vm16353_vm4 = vmor %vm3692_vm12, %vm3693_vm13  ;;  %v3748_v21 = vmul.f32 %v20616_v1, %v20615_v4  ;;  %6798 = vrot.lane.b32.xlu2 %v20617_v32, %s9212_s19 }
 0x3e5   :  { %v3719_v6 = vsub.f32 1.0, %v3718_v62  ;;  %vm5411_vm0 = vweird.f32 %v20600_v37  ;;  %v3695_v8 = vsel %vm16353_vm4, %v20602_v3, %v3691_v38  ;;  %vm20619_vm1 = vcmask 261120   ;;  %6794 = vrot.lane.b32.xlu0 %v6716_v45, %s9212_s19 }
 0x3e6   :  { %v4532_v25 = vsel %vm20619_vm1, %v4443_v30, %v20618_v41  ;;  %v5391_v12 = vmul.f32 %v20621_v47, %v20620_v17  ;;  %v5409_v13 = vadd.f32 %v20600_v37, %v5408_v43  ;;  %v5414_v26 = vand.u32 2147483647, %v20599_v44  ;;  %v20625_v30 = vld [vmem:[#allocation265_spill] sm:$0xff]  ;;  %vm20626_vm8 = vmmov %vm20619_vm1  ;;  %v20637_v41 = vld [vmem:[#allocation300_spill] sm:$0xff] }
 0x3e7   :  { %v3699_v3 = vor.u32 1.1754944e-38, %v3698_v60  ;;  %vm20624_vm6 = vcmask 523264   ;;  %v4536_v42 = vsel %vm20626_vm8, %v4451_v54, %v20625_v30  ;;  %v5178_v51 = vsel %vm16375_vm11, %v20594_v14, %v16346_v27  ;;  %vm16403_vm2 = vmor %vm5410_vm3, %vm5411_vm0  ;;  %v20634_v43 = vld [vmem:[#allocation125_spill] sm:$0xff]  ;;  %v20638_v54 = vld [vmem:[#allocation176_spill] sm:$0xff] }
 0x3e8   :  { %4565 = vst.msk [vmem:[%s18420_s4 + $0x38] sm:$0xff] %vm20624_vm6, %v4532_v25  ;;  %vm3697_vm15 = vcmp.eq.f32.partialorder %v3696_v11, 8.507059e+37  ;;  %v3720_v39 = vmul.f32 %v20612_v20, %v3719_v6  ;;  %vm20627_vm14 = vmmov %vm20624_vm6  ;;  %v5392_v59 = vsub.f32 1.0, %v5391_v12  ;;  %v5416_v16 = vand.u32 2147483648, %v20599_v44  ;;  %v20642_v30 = vld [vmem:[#allocation9_spill] sm:$0xff]  ;;  %v20654_v14 = vld [vmem:[#allocation148_spill] sm:$0xff] }
 0x3e9   :  { %4569 = vst.msk [vmem:[%s18420_s4 + $0x58] sm:$0xff] %vm20627_vm14, %v4536_v42  ;;  %v3700_v18 = vsel %vm3697_vm15, %v3699_v3, %v3695_v8  ;;  %v3749_v35 = vsub.f32 1.0, %v3748_v21  ;;  %vm5396_vm9 = vweird.f32 %v20621_v47  ;;  %v5399_v57 = vand.u32 2147483647, %v20620_v17 }
 0x3ea   :  { %v5393_v2 = vmul.f32 %v20621_v47, %v5392_v59  ;;  %v5401_v50 = vand.u32 2147483648, %v20620_v17  ;;  %v5451_v45 = vmul.f32 %v20631_v15, %v20630_v9  ;;  %v5413_v38 = vsel %vm16403_vm2, %v20600_v37, %v5409_v13  ;;  %6808 = vrot.lane.b32.xlu1 %v20634_v43, %s9212_s19  ;;  %v16435_v32 = vpop.permute.xlu1 %4316  ;;  %v20644_v59 = vld [vmem:[#allocation104_spill] sm:$0xff] }
 0x3eb   :  { %vm16415_vm10 = vcmp.eq.f32.partialorder %v5414_v26, 8.507059e+37  ;;  %v4385_v44 = vmul.f32 %v16229_v31, %v3700_v18  ;;  %vm3723_vm13 = vweird.f32 %v20612_v20  ;;  %v3721_v60 = vadd.f32 %v20612_v20, %v3720_v39  ;;  %v16441_v25 = vpop.permute.xlu2 %6774  ;;  %v20643_v39 = vld [vmem:[#allocation126_spill] sm:$0xff] }
 0x3ec   :  { %v5394_v11 = vadd.f32 %v20621_v47, %v5393_v2  ;;  %vm5395_vm5 = vweird.f32 %v20620_v17  ;;  %v5452_v49 = vsub.f32 1.0, %v5451_v45  ;;  %vm16426_vm7 = vcmp.eq.f32.partialorder %v5179_v24, 8.507059e+37  ;;  %6804 = vrot.lane.b32.xlu2 %v20637_v41, %s9212_s19  ;;  %v20639_v17 = vld [vmem:[#allocation155_spill] sm:$0xff] }
 0x3ed   :  { %v3750_v21 = vmul.f32 %v20616_v1, %v3749_v35  ;;  %vm3722_vm12 = vweird.f32 %v20611_v63  ;;  %v3728_v31 = vand.u32 2147483648, %v20611_v63  ;;  %vm5397_vm3 = vmor %vm5395_vm5, %vm5396_vm9  ;;  %v5402_v6 = vor.u32 1.1754944e-38, %v5401_v50  ;;  %4470 = vrot.lane.b32.xlu0 %v4385_v44, %s9212_s19 }
 0x3ee   :  { %v3726_v8 = vand.u32 2147483647, %v20611_v63  ;;  %v5398_v24 = vsel %vm5397_vm3, %v20621_v47, %v5394_v11  ;;  %vm5400_vm4 = vcmp.eq.f32.partialorder %v5399_v57, 8.507059e+37  ;;  %v5216_v12 = vmul.f32 %v20639_v17, %v20638_v54  ;;  %vm16449_vm1 = vmor %vm3722_vm12, %vm3723_vm13  ;;  %v20647_v11 = vld [vmem:[#allocation260_spill] sm:$0xff] }
 0x3ef   :  { %v5417_v13 = vor.u32 1.1754944e-38, %v5416_v16  ;;  %vm3752_vm0 = vweird.f32 %v20615_v4  ;;  %v5403_v26 = vsel %vm5400_vm4, %v5402_v6, %v5398_v24  ;;  %v5453_v47 = vmul.f32 %v20631_v15, %v5452_v49  ;;  %v4447_v44 = vpop.permute.xlu0 %4446 }
 0x3f0   :  { %vm3753_vm6 = vweird.f32 %v20616_v1  ;;  %v3725_v3 = vsel %vm16449_vm1, %v20612_v20, %v3721_v60  ;;  %v6542_v42 = vmul.f32 %v5403_v26, %v20642_v30  ;;  %v3733_v16 = vmul.f32 %v20644_v59, %v20643_v39  ;;  %v20657_v26 = vld [vmem:[#allocation70_spill] sm:$0xff] }
 0x3f1   :  { %v5418_v18 = vsel %vm16415_vm10, %v5417_v13, %v5413_v38  ;;  %v3751_v35 = vadd.f32 %v20616_v1, %v3750_v21  ;;  %v3756_v0 = vand.u32 2147483647, %v20615_v4  ;;  %v3729_v2 = vor.u32 1.1754944e-38, %v3728_v31  ;;  %vm16479_vm14 = vmor %vm3752_vm0, %vm3753_vm6  ;;  %v20649_v31 = vld [vmem:[#allocation12_spill] sm:$0xff] }
 0x3f2   :  { %v3758_v57 = vand.u32 2147483648, %v20615_v4  ;;  %vm3727_vm8 = vcmp.eq.f32.partialorder %v3726_v8, 8.507059e+37  ;;  %v16467_v50 = vadd.f32 %v16359_v36, %v6542_v42  ;;  %v5217_v20 = vsub.f32 1.0, %v5216_v12  ;;  %6814 = vrot.lane.b32.xlu1 %v16320_v7, %s9212_s19  ;;  %v20651_v4 = vld [vmem:[#allocation160_spill] sm:$0xff]  ;;  %v20655_v12 = vld [vmem:[#allocation173_spill] sm:$0xff] }
 0x3f3   :  { %v3730_v45 = vsel %vm3727_vm8, %v3729_v2, %v3725_v3  ;;  %v5454_v43 = vadd.f32 %v20631_v15, %v5453_v47  ;;  %vm5456_vm15 = vweird.f32 %v20631_v15  ;;  %v3734_v62 = vsub.f32 1.0, %v3733_v16  ;;  %v16515_v41 = vpop.permute.xlu2 %4324  ;;  %v20656_v13 = vld [vmem:[#allocation28_spill] sm:$0xff] }
 0x3f4   :  { %v5182_v38 = vor.u32 1.1754944e-38, %v5181_v48  ;;  %v4387_v60 = vmul.f32 %v4315_v53, %v3730_v45  ;;  %vm20648_vm9 = vcmask 261120   ;;  %v5461_v21 = vand.u32 2147483648, %v20630_v9  ;;  %v4449_v48 = vpop.permute.xlu1 %4448 }
 0x3f5   :  { %v4534_v49 = vsel %vm20648_vm9, %v4447_v44, %v20647_v11  ;;  %v6543_v6 = vmul.f32 %v5418_v18, %v20649_v31  ;;  %v3755_v52 = vsel %vm16479_vm14, %v20616_v1, %v3751_v35  ;;  %vm20650_vm2 = vcmask 523264   ;;  %6800 = vrot.lane.b32.xlu0 %v20654_v14, %s9212_s19  ;;  %vm20658_vm5 = vmmov %vm20648_vm9  ;;  %v20661_v18 = vld [vmem:[#allocation45_spill] sm:$0xff]  ;;  %v20664_v44 = vld [vmem:[#allocation4_spill] sm:$0xff] }
 0x3f6   :  { %4567 = vst.msk [vmem:[%s18420_s4 + $0x48] sm:$0xff] %vm20650_vm2, %v4534_v49  ;;  %vm5455_vm10 = vweird.f32 %v20630_v9  ;;  %v5459_v7 = vand.u32 2147483647, %v20630_v9  ;;  %v16498_v53 = vmul.f32 %v20651_v4, %v16328_v40  ;;  %v5183_v1 = vsel %vm16426_vm7, %v5182_v38, %v5178_v51  ;;  %4474 = vrot.lane.b32.xlu2 %v4387_v60, %s9212_s19  ;;  %vm20659_vm3 = vmmov %vm20650_vm2  ;;  %v20675_v4 = vld [vmem:[#allocation141_spill] sm:$0xff] }
 0x3f7   :  { %v3759_v8 = vor.u32 1.1754944e-38, %v3758_v57  ;;  %vm16510_vm13 = vmor %vm5455_vm10, %vm5456_vm15  ;;  %v5218_v40 = vmul.f32 %v20639_v17, %v5217_v20  ;;  %v16518_v46 = vadd.f32 %v16242_v28, %v6543_v6  ;;  %vm3757_vm11 = vcmp.eq.f32.partialorder %v3756_v0, 8.507059e+37  ;;  %v20662_v57 = vld [vmem:[#allocation183_spill] sm:$0xff]  ;;  %v20663_v20 = vld [vmem:[#allocation269_spill] sm:$0xff] }
 0x3f8   :  { %v5458_v27 = vsel %vm16510_vm13, %v20631_v15, %v5454_v43  ;;  %v3735_v51 = vmul.f32 %v20644_v59, %v3734_v62  ;;  %v5462_v24 = vor.u32 1.1754944e-38, %v5461_v21  ;;  %v3793_v63 = vmul.f32 %v20656_v13, %v20655_v12  ;;  %v20669_v21 = vld [vmem:[#allocation145_spill] sm:$0xff]  ;;  %vm20674_vm14 = vmmov %vm20658_vm5 }
 0x3f9   :  { %v3760_v37 = vsel %vm3757_vm11, %v3759_v8, %v3755_v52  ;;  %v4535_v47 = vsel %vm20658_vm5, %v4449_v48, %v20657_v26  ;;  %v16531_v28 = vmul.f32 %v16333_v34, %v5183_v1  ;;  %vm5460_vm7 = vcmp.eq.f32.partialorder %v5459_v7, 8.507059e+37  ;;  %v20673_v7 = vld [vmem:[#allocation271_spill] sm:$0xff]  ;;  %vm20677_vm9 = vmmov %vm20650_vm2 }
 0x3fa   :  { %v4389_v3 = vmul.f32 %v16301_v55, %v3760_v37  ;;  %vm5221_vm12 = vweird.f32 %v20639_v17  ;;  %4568 = vst.msk [vmem:[%s18420_s4 + $0x50] sm:$0xff] %vm20659_vm3, %v4535_v47  ;;  %v5463_v15 = vsel %vm5460_vm7, %v5462_v24, %v5458_v27  ;;  %v5219_v30 = vadd.f32 %v20639_v17, %v5218_v40  ;;  %v20660_v55 = vld [vmem:[#allocation76_spill] sm:$0xff]  ;;  %v20676_v1 = vld [vmem:[#allocation139_spill] sm:$0xff] }
 0x3fb   :  { %v5224_v42 = vand.u32 2147483647, %v20638_v54  ;;  %v5226_v16 = vand.u32 2147483648, %v20638_v54  ;;  %9095 = vtanh.f32 %v16518_v46  ;;  %v3736_v34 = vadd.f32 %v20644_v59, %v3735_v51  ;;  %v4457_v31 = vpop.permute.xlu2 %4456 }
 0x3fc   :  { %vm3738_vm4 = vweird.f32 %v20644_v59  ;;  %4478 = vrot.lane.b32.xlu1 %v4389_v3, %s9212_s19  ;;  %v5436_v35 = vmul.f32 %v20661_v18, %v20660_v55  ;;  %vm5220_vm0 = vweird.f32 %v20638_v54  ;;  %v3743_v0 = vand.u32 2147483648, %v20643_v39  ;;  %v16561_v54 = vpop.permute.xlu1 %6772  ;;  %v20678_v3 = vld [vmem:[#allocation263_spill] sm:$0xff] }
 0x3fd   :  { %v3794_v2 = vsub.f32 1.0, %v3793_v63  ;;  %v3763_v45 = vmul.f32 %v20663_v20, %v20662_v57  ;;  %v6546_v43 = vmul.f32 %v5463_v15, %v20664_v44  ;;  %vm16555_vm1 = vmor %vm5220_vm0, %vm5221_vm12  ;;  %vm3737_vm6 = vweird.f32 %v20643_v39  ;;  %v20679_v15 = vld [vmem:[#allocation266_spill] sm:$0xff] }
 0x3fe   :  { %v3741_v38 = vand.u32 2147483647, %v20643_v39  ;;  %v5437_v36 = vsub.f32 1.0, %v5436_v35  ;;  %9097 = vtanh.f32 %v16467_v50  ;;  %v5223_v60 = vsel %vm16555_vm1, %v20639_v17, %v5219_v30  ;;  %6810 = vrot.lane.b32.xlu2 %v20669_v21, %s9212_s19  ;;  %vm16575_vm15 = vmor %vm3737_vm6, %vm3738_vm4  ;;  %v20672_v17 = vld [vmem:[#allocation225_spill] sm:$0xff] }
 0x3ff   :  { %vm16567_vm8 = vcmp.eq.f32.partialorder %v5224_v42, 8.507059e+37  ;;  %v5227_v49 = vor.u32 1.1754944e-38, %v5226_v16  ;;  %v16580_v6 = vadd.f32 %v16441_v25, %v6546_v43  ;;  %6806 = vrot.lane.b32.xlu0 %v20672_v17, %s9212_s19  ;;  %v3740_v52 = vsel %vm16575_vm15, %v20644_v59, %v3736_v34  ;;  %v20686_v17 = vld [vmem:[#allocation87_spill] sm:$0xff] }
 0x400   :  { %v4539_v48 = vsel %vm20674_vm14, %v4457_v31, %v20673_v7  ;;  %v5496_v8 = vmul.f32 %v20676_v1, %v20675_v4  ;;  %v3744_v9 = vor.u32 1.1754944e-38, %v3743_v0  ;;  %v3795_v40 = vmul.f32 %v20656_v13, %v3794_v2 }
 0x401   :  { %4572 = vst.msk [vmem:[%s18420_s4 + $0x70] sm:$0xff] %vm20677_vm9, %v4539_v48  ;;  %v3764_v25 = vsub.f32 1.0, %v3763_v45  ;;  %v5438_v14 = vmul.f32 %v20661_v18, %v5437_v36  ;;  %v16597_v27 = vpop.eup %9095  ;;  %vm3742_vm2 = vcmp.eq.f32.partialorder %v3741_v38, 8.507059e+37  ;;  %v3801_v59 = vand.u32 2147483647, %v20655_v12  ;;  %v6669_v38 = vpop.permute.xlu0 %6668  ;;  %v20699_v45 = vld [vmem:[#allocation165_spill] sm:$0xff] }
 0x402   :  { %v3803_v51 = vand.u32 2147483648, %v20655_v12  ;;  %v5497_v37 = vsub.f32 1.0, %v5496_v8  ;;  %v5228_v24 = vsel %vm16567_vm8, %v5227_v49, %v5223_v60  ;;  %v3745_v63 = vsel %vm3742_vm2, %v3744_v9, %v3740_v52  ;;  %v20687_v52 = vld [vmem:[#allocation167_spill] sm:$0xff] }
 0x403   :  { %vm3797_vm10 = vweird.f32 %v20655_v12  ;;  %vm3798_vm13 = vweird.f32 %v20656_v13  ;;  %9099 = vtanh.f32 %v16580_v6  ;;  %v4388_v26 = vmul.f32 %v16435_v32, %v3745_v63  ;;  %v6781_v32 = vpop.permute.xlu2 %6780  ;;  %v20702_v12 = vld [vmem:[#allocation287_spill] sm:$0xff] }
 0x404   :  { %v5498_v47 = vmul.f32 %v20676_v1, %v5497_v37  ;;  %6820 = vrot.lane.b32.xlu1 %v15999_v5, %s9212_s19  ;;  %v3778_v30 = vmul.f32 %v20679_v15, %v20678_v3  ;;  %v16612_v42 = vpop.eup %9097  ;;  %v3796_v16 = vadd.f32 %v20656_v13, %v3795_v40  ;;  %v3765_v34 = vmul.f32 %v20663_v20, %v3764_v25  ;;  %v16624_v2 = vpop.permute.xlu1 %4322  ;;  %vm16630_vm12 = vmor %vm3797_vm10, %vm3798_vm13 }
 0x405   :  { %v5439_v35 = vadd.f32 %v20661_v18, %v5438_v14  ;;  %vm5441_vm11 = vweird.f32 %v20661_v18  ;;  %vm16618_vm5 = vcmp.eq.f32.partialorder %v3801_v59, 8.507059e+37  ;;  %v3804_v0 = vor.u32 1.1754944e-38, %v3803_v51  ;;  %v20694_v14 = vld [vmem:[#allocation51_spill] sm:$0xff]  ;;  %v20695_v59 = vld [vmem:[#allocation92_spill] sm:$0xff] }
 0x406   :  { %vm3767_vm7 = vweird.f32 %v20662_v57  ;;  %v5446_v5 = vand.u32 2147483648, %v20660_v55  ;;  %6816 = vrot.lane.b32.xlu2 %v16124_v58, %s9212_s19  ;;  %v3771_v44 = vand.u32 2147483647, %v20662_v57  ;;  %v3773_v43 = vand.u32 2147483648, %v20662_v57 }
 0x407   :  { %vm5440_vm3 = vweird.f32 %v20660_v55  ;;  %v5444_v62 = vand.u32 2147483647, %v20660_v55  ;;  %4476 = vrot.lane.b32.xlu0 %v4388_v26, %s9212_s19  ;;  %vm3768_vm4 = vweird.f32 %v20663_v20  ;;  %v5499_v58 = vadd.f32 %v20676_v1, %v5498_v47 }
 0x408   :  { %vm16644_vm0 = vmor %vm5440_vm3, %vm5441_vm11  ;;  %vm5501_vm1 = vweird.f32 %v20676_v1  ;;  %v3779_v36 = vsub.f32 1.0, %v3778_v30  ;;  %v3800_v55 = vsel %vm16630_vm12, %v20656_v13, %v3796_v16  ;;  %v3766_v60 = vadd.f32 %v20663_v20, %v3765_v34  ;;  %v20696_v30 = vld [vmem:[#allocation270_spill] sm:$0xff]  ;;  %v20697_v16 = vld [vmem:[#allocation129_spill] sm:$0xff] }
 0x409   :  { %v5443_v11 = vsel %vm16644_vm0, %v20661_v18, %v5439_v35  ;;  %v5506_v49 = vand.u32 2147483648, %v20675_v4  ;;  %v16658_v21 = vpop.eup %9099  ;;  %v5447_v39 = vor.u32 1.1754944e-38, %v5446_v5  ;;  %vm5500_vm6 = vweird.f32 %v20675_v4  ;;  %vm16680_vm9 = vmor %vm3767_vm7, %vm3768_vm4  ;;  %v20698_v35 = vld [vmem:[#allocation11_spill] sm:$0xff] }
 0x40a   :  { %v5504_v31 = vand.u32 2147483647, %v20675_v4  ;;  %v5421_v7 = vmul.f32 %v20687_v52, %v20686_v17  ;;  %v16664_v48 = vmul.f32 %v6669_v38, %v5228_v24  ;;  %vm16666_vm8 = vcmp.eq.f32.partialorder %v3771_v44, 8.507059e+37  ;;  %vm16672_vm14 = vmor %vm5500_vm6, %vm5501_vm1 }
 0x40b   :  { %v3774_v8 = vor.u32 1.1754944e-38, %v3773_v43  ;;  %vm5445_vm15 = vcmp.eq.f32.partialorder %v5444_v62, 8.507059e+37  ;;  %v5503_v40 = vsel %vm16672_vm14, %v20676_v1, %v5499_v58  ;;  %v3780_v25 = vmul.f32 %v20679_v15, %v3779_v36  ;;  %v20703_v58 = vld [vmem:[#allocation71_spill] sm:$0xff] }
 0x40c   :  { %v5448_v9 = vsel %vm5445_vm15, %v5447_v39, %v5443_v11  ;;  %v3838_v51 = vmul.f32 %v20695_v59, %v20694_v14  ;;  %6826 = vrot.lane.b32.xlu1 %v16178_v23, %s9212_s19  ;;  %v3805_v57 = vsel %vm16618_vm5, %v3804_v0, %v3800_v55  ;;  %v3770_v37 = vsel %vm16680_vm9, %v20663_v20, %v3766_v60  ;;  %v4455_v47 = vpop.permute.xlu1 %4454  ;;  %v4321_v62 = vpop.permute.xlu0 %4320  ;;  %v20704_v60 = vld [vmem:[#allocation14_spill] sm:$0xff] }
 0x40d   :  { %v5507_v24 = vor.u32 1.1754944e-38, %v5506_v49  ;;  %v5422_v63 = vsub.f32 1.0, %v5421_v7  ;;  %v4392_v26 = vmul.f32 %v16515_v41, %v3805_v57  ;;  %vm5505_vm2 = vcmp.eq.f32.partialorder %v5504_v31, 8.507059e+37 }
 0x40e   :  { %v3786_v1 = vand.u32 2147483647, %v20678_v3  ;;  %v3808_v34 = vmul.f32 %v20697_v16, %v20696_v30  ;;  %v6545_v23 = vmul.f32 %v5448_v9, %v20698_v35  ;;  %v3788_v0 = vand.u32 2147483648, %v20678_v3 }
 0x40f   :  { %v5508_v5 = vsel %vm5505_vm2, %v5507_v24, %v5503_v40  ;;  %vm20700_vm10 = vcmask 261120   ;;  %6812 = vrot.lane.b32.xlu0 %v16498_v53, %s9212_s19  ;;  %v3775_v41 = vsel %vm16666_vm8, %v3774_v8, %v3770_v37  ;;  %v3781_v44 = vadd.f32 %v20679_v15, %v3780_v25  ;;  %v20709_v25 = vld [vmem:[#allocation236_spill] sm:$0xff] }
 0x410   :  { %v4538_v20 = vsel %vm20700_vm10, %v4455_v47, %v20699_v45  ;;  %vm3783_vm13 = vweird.f32 %v20679_v15  ;;  %v3839_v43 = vsub.f32 1.0, %v3838_v51  ;;  %vm20701_vm11 = vcmask 523264   ;;  %v20710_v51 = vld [vmem:[#allocation316_spill] sm:$0xff]  ;;  %vm20716_vm9 = vmmov %vm20700_vm10 }
 0x411   :  { %4571 = vst.msk [vmem:[%s18420_s4 + $0x68] sm:$0xff] %vm20701_vm11, %v4538_v20  ;;  %v16716_v38 = vadd.f32 %v16561_v54, %v6545_v23  ;;  %vm3782_vm5 = vweird.f32 %v20678_v3  ;;  %v5423_v53 = vmul.f32 %v20687_v52, %v5422_v63  ;;  %v5481_v36 = vmul.f32 %v20703_v58, %v20702_v12  ;;  %v20715_v45 = vld [vmem:[#allocation168_spill] sm:$0xff]  ;;  %vm20719_vm2 = vmmov %vm20701_vm11  ;;  %v20742_v54 = vld [vmem:[#allocation310_spill] sm:$0xff] }
 0x412   :  { %v4390_v55 = vmul.f32 %v4321_v62, %v3775_v41  ;;  %v6549_v11 = vmul.f32 %v5508_v5, %v20704_v60  ;;  %v3848_v49 = vand.u32 2147483648, %v20694_v14  ;;  %v3809_v39 = vsub.f32 1.0, %v3808_v34  ;;  %vm16724_vm7 = vmor %vm3782_vm5, %vm3783_vm13 }
 0x413   :  { %vm16728_vm12 = vcmp.eq.f32.partialorder %v3786_v1, 8.507059e+37  ;;  %v3789_v3 = vor.u32 1.1754944e-38, %v3788_v0  ;;  %vm3842_vm3 = vweird.f32 %v20694_v14  ;;  %v5482_v7 = vsub.f32 1.0, %v5481_v36 }
 0x414   :  { %4480 = vrot.lane.b32.xlu2 %v4390_v55, %s9212_s19  ;;  %v16734_v13 = vadd.f32 %v6781_v32, %v6549_v11  ;;  %v3785_v8 = vsel %vm16724_vm7, %v20679_v15, %v3781_v44  ;;  %v3840_v18 = vmul.f32 %v20695_v59, %v3839_v43  ;;  %v3846_v4 = vand.u32 2147483647, %v20694_v14  ;;  %4484 = vrot.lane.b32.xlu1 %v4392_v26, %s9212_s19  ;;  %v16750_v24 = vpop.permute.xlu1 %6778  ;;  %v4453_v32 = vpop.permute.xlu0 %4452  ;;  %v20717_v44 = vld [vmem:[#allocation127_spill] sm:$0xff] }
 0x415   :  { %v5424_v9 = vadd.f32 %v20687_v52, %v5423_v53  ;;  %vm5426_vm4 = vweird.f32 %v20687_v52  ;;  %v5483_v40 = vmul.f32 %v20703_v58, %v5482_v7  ;;  %v5541_v57 = vmul.f32 %v20710_v51, %v20709_v25  ;;  %v16772_v0 = vpop.permute.xlu2 %4330  ;;  %v20718_v43 = vld [vmem:[#allocation123_spill] sm:$0xff] }
 0x416   :  { %9101 = vtanh.f32 %v16716_v38  ;;  %vm3843_vm0 = vweird.f32 %v20695_v59  ;;  %v3849_v15 = vor.u32 1.1754944e-38, %v3848_v49  ;;  %v3810_v37 = vmul.f32 %v20697_v16, %v3809_v39  ;;  %v20725_v49 = vld [vmem:[#allocation55_spill] sm:$0xff] }
 0x417   :  { %v3790_v63 = vsel %vm16728_vm12, %v3789_v3, %v3785_v8  ;;  %vm5425_vm1 = vweird.f32 %v20686_v17  ;;  %v5431_v26 = vand.u32 2147483648, %v20686_v17  ;;  %v5542_v1 = vsub.f32 1.0, %v5541_v57  ;;  %6818 = vrot.lane.b32.xlu0 %v16149_v22, %s9212_s19  ;;  %vm16794_vm10 = vmor %vm3842_vm3, %vm3843_vm0  ;;  %v20729_v57 = vld [vmem:[#allocation166_spill] sm:$0xff] }
 0x418   :  { %9103 = vtanh.f32 %v16734_v13  ;;  %v4391_v47 = vmul.f32 %v16624_v2, %v3790_v63  ;;  %v3841_v34 = vadd.f32 %v20695_v59, %v3840_v18  ;;  %vm16761_vm6 = vcmp.eq.f32.partialorder %v3846_v4, 8.507059e+37  ;;  %vm16767_vm8 = vmor %vm5425_vm1, %vm5426_vm4 }
 0x419   :  { %v5429_v5 = vand.u32 2147483647, %v20686_v17  ;;  %v5428_v22 = vsel %vm16767_vm8, %v20687_v52, %v5424_v9  ;;  %vm3813_vm15 = vweird.f32 %v20697_v16  ;;  %v5484_v2 = vadd.f32 %v20703_v58, %v5483_v40  ;;  %v20728_v40 = vld [vmem:[#allocation88_spill] sm:$0xff]  ;;  %vm20732_vm8 = vmmov %vm20716_vm9 }
 0x41a   :  { %vm5486_vm14 = vweird.f32 %v20703_v58  ;;  %v4537_v20 = vsel %vm20716_vm9, %v4453_v32, %v20715_v45  ;;  %v3811_v41 = vadd.f32 %v20697_v16, %v3810_v37  ;;  %v5491_v17 = vand.u32 2147483648, %v20702_v12 }
 0x41b   :  { %v3823_v62 = vmul.f32 %v20718_v43, %v20717_v44  ;;  %4570 = vst.msk [vmem:[%s18420_s4 + $0x60] sm:$0xff] %vm20719_vm2, %v4537_v20  ;;  %v5432_v53 = vor.u32 1.1754944e-38, %v5431_v26  ;;  %vm5485_vm13 = vweird.f32 %v20702_v12  ;;  %v5489_v36 = vand.u32 2147483647, %v20702_v12  ;;  %v20724_v12 = vld [vmem:[#allocation159_spill] sm:$0xff] }
 0x41c   :  { %v5543_v55 = vmul.f32 %v20710_v51, %v5542_v1  ;;  %v16801_v60 = vpop.eup %9101  ;;  %6822 = vrot.lane.b32.xlu2 %v16531_v28, %s9212_s19  ;;  %vm5430_vm11 = vcmp.eq.f32.partialorder %v5429_v5, 8.507059e+37  ;;  %vm3812_vm5 = vweird.f32 %v20696_v30  ;;  %v3818_v14 = vand.u32 2147483648, %v20696_v30  ;;  %vm16809_vm7 = vmor %vm5485_vm13, %vm5486_vm14  ;;  %6960 = vrot.lane.b32.xlu1 %v16597_v27, %s9213_s12  ;;  %v16836_v4 = vpop.permute.xlu1 %4328 }
 0x41d   :  { %v5586_v39 = vmul.f32 %v20725_v49, %v20724_v12  ;;  %v3845_v28 = vsel %vm16794_vm10, %v20695_v59, %v3841_v34  ;;  %v5433_v31 = vsel %vm5430_vm11, %v5432_v53, %v5428_v22  ;;  %vm16822_vm12 = vmor %vm3812_vm5, %vm3813_vm15  ;;  %v3816_v3 = vand.u32 2147483647, %v20696_v30  ;;  %v20730_v34 = vld [vmem:[#allocation8_spill] sm:$0xff]  ;;  %v6771_v5 = vpop.permute.xlu0 %6770  ;;  %v4463_v32 = vpop.permute.xlu2 %4462  ;;  %v20737_v53 = vld [vmem:[#allocation301_spill] sm:$0xff] }
 0x41e   :  { %v5488_v27 = vsel %vm16809_vm7, %v20703_v58, %v5484_v2  ;;  %v16830_v7 = vpop.eup %9103  ;;  %v3815_v8 = vsel %vm16822_vm12, %v20697_v16, %v3811_v41  ;;  %v5492_v59 = vor.u32 1.1754944e-38, %v5491_v17  ;;  %vm5546_vm3 = vweird.f32 %v20710_v51  ;;  %v20731_v22 = vld [vmem:[#allocation200_spill] sm:$0xff]  ;;  %vm20744_vm11 = vmmov %vm20732_vm8 }
 0x41f   :  { %v3824_v18 = vsub.f32 1.0, %v3823_v62  ;;  %vm5490_vm4 = vcmp.eq.f32.partialorder %v5489_v36, 8.507059e+37  ;;  %v5544_v9 = vadd.f32 %v20710_v51, %v5543_v55  ;;  %v5549_v30 = vand.u32 2147483647, %v20709_v25  ;;  %4482 = vrot.lane.b32.xlu0 %v4391_v47, %s9212_s19  ;;  %v20738_v36 = vld [vmem:[#allocation302_spill] sm:$0xff] }
 0x420   :  { %v5466_v58 = vmul.f32 %v20729_v57, %v20728_v40  ;;  %v3819_v37 = vor.u32 1.1754944e-38, %v3818_v14  ;;  %v5493_v63 = vsel %vm5490_vm4, %v5492_v59, %v5488_v27  ;;  %v5551_v16 = vand.u32 2147483648, %v20709_v25  ;;  %v20743_v27 = vld [vmem:[#allocation100_spill] sm:$0xff] }
 0x421   :  { %v5587_v26 = vsub.f32 1.0, %v5586_v39  ;;  %v3850_v1 = vsel %vm16761_vm6, %v3849_v15, %v3845_v28  ;;  %v6544_v23 = vmul.f32 %v5433_v31, %v20730_v34  ;;  %vm3817_vm0 = vcmp.eq.f32.partialorder %v3816_v3, 8.507059e+37  ;;  %vm20735_vm6 = vmmov %vm20719_vm2  ;;  %v20741_v31 = vld [vmem:[#allocation224_spill] sm:$0xff] }
 0x422   :  { %vm5545_vm1 = vweird.f32 %v20709_v25  ;;  %v4542_v2 = vsel %vm20732_vm8, %v4463_v32, %v20731_v22  ;;  %v3820_v45 = vsel %vm3817_vm0, %v3819_v37, %v3815_v8  ;;  %v3825_v35 = vmul.f32 %v20718_v43, %v3824_v18  ;;  %v20736_v25 = vld [vmem:[#allocation15_spill] sm:$0xff]  ;;  %vm20745_vm5 = vmmov %vm20735_vm6  ;;  %v20749_v22 = vld [vmem:[#allocation73_spill] sm:$0xff] }
 0x423   :  { %vm16852_vm15 = vmor %vm5545_vm1, %vm5546_vm3  ;;  %v3831_v15 = vand.u32 2147483647, %v20717_v44  ;;  %4575 = vst.msk [vmem:[%s18420_s4 + $0x88] sm:$0xff] %vm20735_vm6, %v4542_v2  ;;  %v6548_v20 = vmul.f32 %v5493_v63, %v20736_v25  ;;  %vm5550_vm14 = vcmp.eq.f32.partialorder %v5549_v30, 8.507059e+37  ;;  %v5467_v17 = vsub.f32 1.0, %v5466_v58  ;;  %v20746_v58 = vld [vmem:[#allocation17_spill] sm:$0xff] }
 0x424   :  { %v5548_v41 = vsel %vm16852_vm15, %v20710_v51, %v5544_v9  ;;  %6828 = vrot.lane.b32.xlu2 %v16664_v48, %s9212_s19  ;;  %v5552_v62 = vor.u32 1.1754944e-38, %v5551_v16  ;;  %vm3827_vm9 = vweird.f32 %v20717_v44  ;;  %v5588_v52 = vmul.f32 %v20725_v49, %v5587_v26  ;;  %6966 = vrot.lane.b32.xlu1 %v16658_v21, %s9213_s12  ;;  %v4461_v21 = vpop.permute.xlu1 %4460  ;;  %v20750_v2 = vld [vmem:[#allocation133_spill] sm:$0xff] }
 0x425   :  { %v5511_v55 = vmul.f32 %v20738_v36, %v20737_v53  ;;  %v4395_v14 = vmul.f32 %v16772_v0, %v3850_v1  ;;  %v16876_v51 = vadd.f32 %v16750_v24, %v6548_v20  ;;  %vm3828_vm2 = vweird.f32 %v20718_v43  ;;  %v6787_v63 = vpop.permute.xlu2 %6786  ;;  %v4327_v1 = vpop.permute.xlu0 %4326 }
 0x426   :  { %v3833_v48 = vand.u32 2147483648, %v20717_v44  ;;  %v5553_v11 = vsel %vm5550_vm14, %v5552_v62, %v5548_v41  ;;  %v3826_v39 = vadd.f32 %v20718_v43, %v3825_v35  ;;  %vm16881_vm10 = vcmp.eq.f32.partialorder %v3831_v15, 8.507059e+37  ;;  %vm16906_vm7 = vmor %vm3827_vm9, %vm3828_vm2 }
 0x427   :  { %v5526_v3 = vmul.f32 %v20742_v54, %v20741_v31  ;;  %vm5591_vm13 = vweird.f32 %v20725_v49  ;;  %v5594_v24 = vand.u32 2147483647, %v20724_v12  ;;  %v5468_v0 = vmul.f32 %v20729_v57, %v5467_v17  ;;  %6824 = vrot.lane.b32.xlu0 %v16305_v61, %s9212_s19  ;;  %v20767_v61 = vld [vmem:[#allocation20_spill] sm:$0xff] }
 0x428   :  { %v4541_v8 = vsel %vm20744_vm11, %v4461_v21, %v20743_v27  ;;  %v5589_v59 = vadd.f32 %v20725_v49, %v5588_v52  ;;  %v5596_v18 = vand.u32 2147483648, %v20724_v12  ;;  %v5512_v9 = vsub.f32 1.0, %v5511_v55  ;;  %v20759_v55 = vld [vmem:[#allocation156_spill] sm:$0xff]  ;;  %v20761_v27 = vld [vmem:[#allocation54_spill] sm:$0xff] }
 0x429   :  { %4574 = vst.msk [vmem:[%s18420_s4 + $0x80] sm:$0xff] %vm20745_vm5, %v4541_v8  ;;  %v5527_v30 = vsub.f32 1.0, %v5526_v3  ;;  %9105 = vtanh.f32 %v16876_v51  ;;  %v6552_v37 = vmul.f32 %v5553_v11, %v20746_v58  ;;  %v3834_v16 = vor.u32 1.1754944e-38, %v3833_v48  ;;  %v20762_v8 = vld [vmem:[#allocation278_spill] sm:$0xff] }
 0x42a   :  { %vm5590_vm12 = vweird.f32 %v20724_v12  ;;  %v16911_v26 = vadd.f32 %v6771_v5, %v6544_v23  ;;  %v3830_v34 = vsel %vm16906_vm7, %v20718_v43, %v3826_v39  ;;  %v5474_v32 = vand.u32 2147483647, %v20728_v40 }
 0x42b   :  { %v5631_v47 = vmul.f32 %v20750_v2, %v20749_v22  ;;  %v4393_v44 = vmul.f32 %v4327_v1, %v3820_v45  ;;  %vm16921_vm3 = vmor %vm5590_vm12, %vm5591_vm13  ;;  %vm16925_vm4 = vcmp.eq.f32.partialorder %v5594_v24, 8.507059e+37  ;;  %v5469_v23 = vadd.f32 %v20729_v57, %v5468_v0 }
 0x42c   :  { %vm5471_vm0 = vweird.f32 %v20729_v57  ;;  %v5593_v43 = vsel %vm16921_vm3, %v20725_v49, %v5589_v59  ;;  %v5597_v5 = vor.u32 1.1754944e-38, %v5596_v18  ;;  %v5513_v45 = vmul.f32 %v20738_v36, %v5512_v9  ;;  %4490 = vrot.lane.b32.xlu1 %v4395_v14, %s9212_s19  ;;  %v16952_v52 = vpop.permute.xlu1 %6784  ;;  %v20760_v14 = vld [vmem:[#allocation255_spill] sm:$0xff]  ;;  %vm20766_vm13 = vmmov %vm20744_vm11 }
 0x42d   :  { %v5528_v15 = vmul.f32 %v20742_v54, %v5527_v30  ;;  %4486 = vrot.lane.b32.xlu2 %v4393_v44, %s9212_s19  ;;  %v3835_v25 = vsel %vm16881_vm10, %v3834_v16, %v3830_v34  ;;  %vm5470_vm1 = vweird.f32 %v20728_v40  ;;  %v5476_v20 = vand.u32 2147483648, %v20728_v40  ;;  %v4459_v18 = vpop.permute.xlu0 %4458 }
 0x42e   :  { %v5632_v41 = vsub.f32 1.0, %v5631_v47  ;;  %9107 = vtanh.f32 %v16911_v26  ;;  %v4394_v49 = vmul.f32 %v16836_v4, %v3835_v25  ;;  %vm16944_vm8 = vmor %vm5470_vm1, %vm5471_vm0  ;;  %vm16948_vm15 = vcmp.eq.f32.partialorder %v5474_v32, 8.507059e+37  ;;  %v6793_v3 = vpop.permute.xlu2 %6792  ;;  %v20784_v32 = vld [vmem:[#allocation118_spill] sm:$0xff] }
 0x42f   :  { %v5571_v48 = vmul.f32 %v20760_v14, %v20759_v55  ;;  %v16956_v11 = vpop.eup %9105  ;;  %v5598_v40 = vsel %vm16925_vm4, %v5597_v5, %v5593_v43  ;;  %v5473_v4 = vsel %vm16944_vm8, %v20729_v57, %v5469_v23  ;;  %vm5515_vm6 = vweird.f32 %v20737_v53  ;;  %6958 = vrot.lane.b32.xlu0 %v16612_v42, %s9213_s12 }
 0x430   :  { %vm5516_vm14 = vweird.f32 %v20738_v36  ;;  %v16965_v39 = vadd.f32 %v6787_v63, %v6552_v37  ;;  %v5514_v28 = vadd.f32 %v20738_v36, %v5513_v45  ;;  %v5529_v21 = vadd.f32 %v20742_v54, %v5528_v15  ;;  %v20765_v37 = vld [vmem:[#allocation267_spill] sm:$0xff]  ;;  %v20770_v15 = vld [vmem:[#allocation5_spill] sm:$0xff] }
 0x431   :  { %vm5531_vm9 = vweird.f32 %v20742_v54  ;;  %v5477_v24 = vor.u32 1.1754944e-38, %v5476_v20  ;;  %v5536_v0 = vand.u32 2147483648, %v20741_v31  ;;  %v5633_v57 = vmul.f32 %v20750_v2, %v5632_v41  ;;  %vm16976_vm2 = vmor %vm5515_vm6, %vm5516_vm14 }
 0x432   :  { %v5676_v59 = vmul.f32 %v20762_v8, %v20761_v27  ;;  %v5521_v42 = vand.u32 2147483648, %v20737_v53  ;;  %vm5530_vm10 = vweird.f32 %v20741_v31  ;;  %v5534_v30 = vand.u32 2147483647, %v20741_v31  ;;  %vm20776_vm6 = vmmov %vm20766_vm13 }
 0x433   :  { %v5572_v58 = vsub.f32 1.0, %v5571_v48  ;;  %v4540_v63 = vsel %vm20766_vm13, %v4459_v18, %v20765_v37  ;;  %v6555_v16 = vmul.f32 %v5598_v40, %v20767_v61  ;;  %v5478_v1 = vsel %vm16948_vm15, %v5477_v24, %v5473_v4  ;;  %vm16991_vm11 = vmor %vm5530_vm10, %vm5531_vm9  ;;  %v20777_v24 = vld [vmem:[#allocation18_spill] sm:$0xff]  ;;  %v20780_v37 = vld [vmem:[#allocation164_spill] sm:$0xff] }
 0x434   :  { %v5519_v34 = vand.u32 2147483647, %v20737_v53  ;;  %v9108_v47 = vpop.eup %9107  ;;  %9109 = vtanh.f32 %v16965_v39  ;;  %4573 = vst.msk [vmem:[%s18420_s4 + $0x78] sm:$0xff] %vm20745_vm5, %v4540_v63  ;;  %v5518_v31 = vsel %vm16976_vm2, %v20738_v36, %v5514_v28  ;;  %v5533_v53 = vsel %vm16991_vm11, %v20742_v54, %v5529_v21  ;;  %6972 = vrot.lane.b32.xlu1 %v16830_v7, %s9213_s12  ;;  %v17014_v54 = vpop.permute.xlu1 %6790  ;;  %v20775_v21 = vld [vmem:[#allocation306_spill] sm:$0xff]  ;;  %vm20778_vm14 = vmmov %vm20745_vm5  ;;  %v20796_v61 = vld [vmem:[#allocation157_spill] sm:$0xff] }
 0x435   :  { %v5677_v44 = vsub.f32 1.0, %v5676_v59  ;;  %6962 = vrot.lane.b32.xlu2 %v9108_v47, %s9213_s12  ;;  %v5537_v35 = vor.u32 1.1754944e-38, %v5536_v0  ;;  %v5634_v12 = vadd.f32 %v20750_v2, %v5633_v57  ;;  %vm5636_vm7 = vweird.f32 %v20750_v2  ;;  %v6777_v28 = vpop.permute.xlu0 %6776  ;;  %vm20789_vm5 = vmmov %vm20776_vm6 }
 0x436   :  { %v5639_v23 = vand.u32 2147483647, %v20749_v22  ;;  %v5522_v43 = vor.u32 1.1754944e-38, %v5521_v42  ;;  %vm5535_vm12 = vcmp.eq.f32.partialorder %v5534_v30, 8.507059e+37  ;;  %v5641_v36 = vand.u32 2147483648, %v20749_v22  ;;  %v4469_v62 = vpop.permute.xlu2 %4468 }
 0x437   :  { %v5573_v5 = vmul.f32 %v20760_v14, %v5572_v58  ;;  %v17016_v45 = vadd.f32 %v6793_v3, %v6555_v16  ;;  %vm5520_vm3 = vcmp.eq.f32.partialorder %v5519_v34, 8.507059e+37  ;;  %v5538_v7 = vsel %vm5535_vm12, %v5537_v35, %v5533_v53  ;;  %4488 = vrot.lane.b32.xlu0 %v4394_v49, %s9212_s19  ;;  %v20774_v49 = vld [vmem:[#allocation323_spill] sm:$0xff]  ;;  %v20783_v34 = vld [vmem:[#allocation198_spill] sm:$0xff] }
 0x438   :  { %vm5635_vm4 = vweird.f32 %v20749_v22  ;;  %v6547_v25 = vmul.f32 %v5478_v1, %v20770_v15  ;;  %v5523_v20 = vsel %vm5520_vm3, %v5522_v43, %v5518_v31  ;;  %vm5575_vm1 = vweird.f32 %v20759_v55  ;;  %v20773_v22 = vld [vmem:[#allocation245_spill] sm:$0xff]  ;;  %v20779_v58 = vld [vmem:[#allocation75_spill] sm:$0xff]  ;;  %v20785_v35 = vld [vmem:[#allocation6_spill] sm:$0xff] }
 0x439   :  { %vm17021_vm0 = vmor %vm5635_vm4, %vm5636_vm7  ;;  %v5678_v17 = vmul.f32 %v20762_v8, %v5677_v44  ;;  %vm5640_vm8 = vcmp.eq.f32.partialorder %v5639_v23, 8.507059e+37  ;;  %vm5576_vm15 = vweird.f32 %v20760_v14  ;;  %v5556_v40 = vmul.f32 %v20774_v49, %v20773_v22 }
 0x43a   :  { %v5638_v48 = vsel %vm17021_vm0, %v20750_v2, %v5634_v12  ;;  %v9110_v4 = vpop.eup %9109  ;;  %v4545_v3 = vsel %vm20776_vm6, %v4469_v62, %v20775_v21  ;;  %v6551_v0 = vmul.f32 %v5538_v7, %v20777_v24  ;;  %v5642_v57 = vor.u32 1.1754944e-38, %v5641_v36  ;;  %vm17056_vm2 = vmor %vm5575_vm1, %vm5576_vm15 }
 0x43b   :  { %v5574_v59 = vadd.f32 %v20760_v14, %v5573_v5  ;;  %9111 = vtanh.f32 %v17016_v45  ;;  %v17038_v18 = vadd.f32 %v6777_v28, %v6547_v25  ;;  %4578 = vst.msk [vmem:[%s18420_s4 + $0xa0] sm:$0xff] %vm20778_vm14, %v4545_v3  ;;  %v5579_v2 = vand.u32 2147483647, %v20759_v55  ;;  %vm20791_vm7 = vmmov %vm20778_vm14 }
 0x43c   :  { %v5581_v9 = vand.u32 2147483648, %v20759_v55  ;;  %v5643_v42 = vsel %vm5640_vm8, %v5642_v57, %v5638_v48  ;;  %v5679_v30 = vadd.f32 %v20762_v8, %v5678_v17  ;;  %vm5681_vm9 = vweird.f32 %v20762_v8  ;;  %6978 = vrot.lane.b32.xlu1 %v9110_v4, %s9213_s12  ;;  %v4467_v44 = vpop.permute.xlu1 %4466  ;;  %v20793_v48 = vld [vmem:[#allocation186_spill] sm:$0xff]  ;;  %v20794_v57 = vld [vmem:[#allocation21_spill] sm:$0xff] }
 0x43d   :  { %v5601_v63 = vmul.f32 %v20780_v37, %v20779_v58  ;;  %9113 = vtanh.f32 %v17038_v18  ;;  %v5686_v16 = vand.u32 2147483648, %v20761_v27  ;;  %v5557_v1 = vsub.f32 1.0, %v5556_v40  ;;  %v6783_v4 = vpop.permute.xlu0 %6782 }
 0x43e   :  { %v5616_v47 = vmul.f32 %v20784_v32, %v20783_v34  ;;  %v17064_v31 = vadd.f32 %v16952_v52, %v6551_v0  ;;  %v5578_v53 = vsel %vm17056_vm2, %v20760_v14, %v5574_v59  ;;  %vm5680_vm10 = vweird.f32 %v20761_v27  ;;  %v20788_v52 = vld [vmem:[#allocation106_spill] sm:$0xff]  ;;  %v20790_v14 = vld [vmem:[#allocation23_spill] sm:$0xff]  ;;  %vm20807_vm2 = vmmov %vm20789_vm5 }
 0x43f   :  { %v5684_v55 = vand.u32 2147483647, %v20761_v27  ;;  %v6550_v12 = vmul.f32 %v5523_v20, %v20785_v35  ;;  %vm5580_vm13 = vcmp.eq.f32.partialorder %v5579_v2, 8.507059e+37  ;;  %v5582_v23 = vor.u32 1.1754944e-38, %v5581_v9  ;;  %vm17074_vm11 = vmor %vm5680_vm10, %vm5681_vm9  ;;  %6964 = vrot.lane.b32.xlu0 %v16801_v60, %s9213_s12  ;;  %v6799_v20 = vpop.permute.xlu2 %6798  ;;  %v20792_v60 = vld [vmem:[#allocation58_spill] sm:$0xff] }
 0x440   :  { %v4544_v36 = vsel %vm20789_vm5, %v4467_v44, %v20788_v52  ;;  %v6558_v5 = vmul.f32 %v5643_v42, %v20790_v14  ;;  %v5683_v27 = vsel %vm17074_vm11, %v20762_v8, %v5679_v30  ;;  %v5602_v7 = vsub.f32 1.0, %v5601_v63  ;;  %v20795_v63 = vld [vmem:[#allocation52_spill] sm:$0xff]  ;;  %v20811_v44 = vld [vmem:[#allocation7_spill] sm:$0xff] }
 0x441   :  { %4577 = vst.msk [vmem:[%s18420_s4 + $0x98] sm:$0xff] %vm20791_vm7, %v4544_v36  ;;  %v5617_v15 = vsub.f32 1.0, %v5616_v47  ;;  %v9112_v25 = vpop.eup %9111  ;;  %v5583_v41 = vsel %vm5580_vm13, %v5582_v23, %v5578_v53  ;;  %v5687_v17 = vor.u32 1.1754944e-38, %v5686_v16  ;;  %v5558_v62 = vmul.f32 %v20774_v49, %v5557_v1  ;;  %v20797_v47 = vld [vmem:[#allocation26_spill] sm:$0xff]  ;;  %vm20810_vm13 = vmmov %vm20791_vm7 }
 0x442   :  { %v5721_v40 = vmul.f32 %v20793_v48, %v20792_v60  ;;  %9115 = vtanh.f32 %v17064_v31  ;;  %v17094_v8 = vadd.f32 %v6799_v20, %v6558_v5  ;;  %vm5685_vm12 = vcmp.eq.f32.partialorder %v5684_v55, 8.507059e+37  ;;  %v20804_v20 = vld [vmem:[#allocation309_spill] sm:$0xff] }
 0x443   :  { %vm5561_vm3 = vweird.f32 %v20774_v49  ;;  %v9114_v28 = vpop.eup %9113  ;;  %v17097_v21 = vadd.f32 %v6783_v4, %v6550_v12  ;;  %v5688_v3 = vsel %vm5685_vm12, %v5687_v17, %v5683_v27  ;;  %v5564_v24 = vand.u32 2147483647, %v20773_v22  ;;  %v20823_v4 = vld [vmem:[#allocation295_spill] sm:$0xff] }
 0x444   :  { %v5618_v0 = vmul.f32 %v20784_v32, %v5617_v15  ;;  %6968 = vrot.lane.b32.xlu2 %v9114_v28, %s9213_s12  ;;  %9117 = vtanh.f32 %v17094_v8  ;;  %v6554_v59 = vmul.f32 %v5583_v41, %v20794_v57  ;;  %v5566_v2 = vand.u32 2147483648, %v20773_v22  ;;  %6984 = vrot.lane.b32.xlu1 %v9112_v25, %s9213_s12  ;;  %v17117_v55 = vpop.permute.xlu1 %6796  ;;  %v20805_v41 = vld [vmem:[#allocation112_spill] sm:$0xff]  ;;  %v20819_v25 = vld [vmem:[#allocation199_spill] sm:$0xff] }
 0x445   :  { %v5603_v9 = vmul.f32 %v20780_v37, %v5602_v7  ;;  %9119 = vtanh.f32 %v17097_v21  ;;  %v5559_v42 = vadd.f32 %v20774_v49, %v5558_v62  ;;  %v5722_v30 = vsub.f32 1.0, %v5721_v40  ;;  %v20806_v62 = vld [vmem:[#allocation64_spill] sm:$0xff] }
 0x446   :  { %v5661_v16 = vmul.f32 %v20796_v61, %v20795_v63  ;;  %v17112_v1 = vadd.f32 %v17014_v54, %v6554_v59  ;;  %v6561_v53 = vmul.f32 %v5688_v3, %v20797_v47  ;;  %vm5560_vm4 = vweird.f32 %v20773_v22 }
 0x447   :  { %vm5605_vm0 = vweird.f32 %v20779_v58  ;;  %vm17119_vm1 = vcmp.eq.f32.partialorder %v5564_v24, 8.507059e+37  ;;  %v5619_v35 = vadd.f32 %v20784_v32, %v5618_v0  ;;  %vm5621_vm8 = vweird.f32 %v20784_v32  ;;  %6970 = vrot.lane.b32.xlu0 %v16956_v11, %s9213_s12  ;;  %vm17129_vm15 = vmor %vm5560_vm4, %vm5561_vm3  ;;  %v6805_v36 = vpop.permute.xlu2 %6804  ;;  %v4465_v7 = vpop.permute.xlu0 %4464 }
 0x448   :  { %v5662_v12 = vsub.f32 1.0, %v5661_v16  ;;  %v9116_v23 = vpop.eup %9115  ;;  %v5567_v22 = vor.u32 1.1754944e-38, %v5566_v2  ;;  %v5604_v43 = vadd.f32 %v20780_v37, %v5603_v9  ;;  %vm5606_vm6 = vweird.f32 %v20780_v37 }
 0x449   :  { %v5626_v52 = vand.u32 2147483648, %v20783_v34  ;;  %v5563_v14 = vsel %vm17129_vm15, %v20774_v49, %v5559_v42  ;;  %vm5620_vm14 = vweird.f32 %v20783_v34  ;;  %v5624_v11 = vand.u32 2147483647, %v20783_v34  ;;  %vm17160_vm10 = vmor %vm5605_vm0, %vm5606_vm6 }
 0x44a   :  { %v5723_v5 = vmul.f32 %v20793_v48, %v5722_v30  ;;  %v9118_v27 = vpop.eup %9117  ;;  %9121 = vtanh.f32 %v17112_v1  ;;  %v17143_v15 = vadd.f32 %v6805_v36, %v6561_v53  ;;  %vm17147_vm9 = vmor %vm5620_vm14, %vm5621_vm8  ;;  %v5663_v49 = vmul.f32 %v20796_v61, %v5662_v12 }
 0x44b   :  { %v5766_v17 = vmul.f32 %v20805_v41, %v20804_v20  ;;  %v9120_v34 = vpop.eup %9119  ;;  %v4543_v40 = vsel %vm20807_vm2, %v4465_v7, %v20806_v62  ;;  %v5609_v28 = vand.u32 2147483647, %v20779_v58  ;;  %v5611_v3 = vand.u32 2147483648, %v20779_v58  ;;  %vm20818_vm8 = vmmov %vm20807_vm2 }
 0x44c   :  { %v5623_v24 = vsel %vm17147_vm9, %v20784_v32, %v5619_v35  ;;  %4576 = vst.msk [vmem:[%s18420_s4 + $0x90] sm:$0xff] %vm20810_vm13, %v4543_v40  ;;  %6974 = vrot.lane.b32.xlu2 %v9120_v34, %s9213_s12  ;;  %v5568_v0 = vsel %vm17119_vm1, %v5567_v22, %v5563_v14  ;;  %v5608_v57 = vsel %vm17160_vm10, %v20780_v37, %v5604_v43  ;;  %v5627_v59 = vor.u32 1.1754944e-38, %v5626_v52  ;;  %v17186_v42 = vpop.permute.xlu1 %6802  ;;  %v20814_v43 = vld [vmem:[#allocation24_spill] sm:$0xff]  ;;  %vm20821_vm15 = vmmov %vm20810_vm13 }
 0x44d   :  { %vm5726_vm11 = vweird.f32 %v20793_v48  ;;  %6990 = vrot.lane.b32.xlu1 %v9118_v27, %s9213_s12  ;;  %9123 = vtanh.f32 %v17143_v15  ;;  %vm5625_vm5 = vcmp.eq.f32.partialorder %v5624_v11, 8.507059e+37  ;;  %v5724_v58 = vadd.f32 %v20793_v48, %v5723_v5  ;;  %v20817_v5 = vld [vmem:[#allocation111_spill] sm:$0xff]  ;;  %vm20829_vm10 = vmmov %vm20818_vm8 }
 0x44e   :  { %v5731_v32 = vand.u32 2147483648, %v20792_v60  ;;  %v5628_v2 = vsel %vm5625_vm5, %v5627_v59, %v5623_v24  ;;  %v5664_v9 = vadd.f32 %v20796_v61, %v5663_v49  ;;  %vm5666_vm7 = vweird.f32 %v20796_v61  ;;  %v20820_v49 = vld [vmem:[#allocation131_spill] sm:$0xff]  ;;  %v20826_v59 = vld [vmem:[#allocation289_spill] sm:$0xff] }
 0x44f   :  { %v5767_v37 = vsub.f32 1.0, %v5766_v17  ;;  %v5612_v30 = vor.u32 1.1754944e-38, %v5611_v3  ;;  %vm5725_vm12 = vweird.f32 %v20792_v60  ;;  %v5729_v16 = vand.u32 2147483647, %v20792_v60  ;;  %6976 = vrot.lane.b32.xlu0 %v9116_v23, %s9213_s12  ;;  %v6789_v11 = vpop.permute.xlu0 %6788  ;;  %v20824_v3 = vld [vmem:[#allocation10_spill] sm:$0xff] }
 0x450   :  { %v5671_v47 = vand.u32 2147483648, %v20795_v63  ;;  %v9122_v53 = vpop.eup %9121  ;;  %v6553_v35 = vmul.f32 %v5568_v0, %v20811_v44  ;;  %vm5610_vm3 = vcmp.eq.f32.partialorder %v5609_v28, 8.507059e+37  ;;  %vm17195_vm4 = vmor %vm5725_vm12, %vm5726_vm11  ;;  %vm5665_vm0 = vweird.f32 %v20795_v63  ;;  %v4475_v22 = vpop.permute.xlu2 %4474  ;;  %v20830_v44 = vld [vmem:[#allocation27_spill] sm:$0xff] }
 0x451   :  { %v5669_v54 = vand.u32 2147483647, %v20795_v63  ;;  %v5613_v60 = vsel %vm5610_vm3, %v5612_v30, %v5608_v57  ;;  %v6557_v52 = vmul.f32 %v5628_v2, %v20814_v43  ;;  %v5728_v23 = vsel %vm17195_vm4, %v20793_v48, %v5724_v58  ;;  %vm17207_vm1 = vmor %vm5665_vm0, %vm5666_vm7  ;;  %v20825_v57 = vld [vmem:[#allocation59_spill] sm:$0xff]  ;;  %v20828_v30 = vld [vmem:[#allocation72_spill] sm:$0xff] }
 0x452   :  { %v5732_v36 = vor.u32 1.1754944e-38, %v5731_v32  ;;  %v4548_v27 = vsel %vm20818_vm8, %v4475_v22, %v20817_v5  ;;  %v5668_v63 = vsel %vm17207_vm1, %v20796_v61, %v5664_v9  ;;  %v5768_v7 = vmul.f32 %v20805_v41, %v5767_v37  ;;  %v20827_v9 = vld [vmem:[#allocation30_spill] sm:$0xff] }
 0x453   :  { %v5646_v48 = vmul.f32 %v20820_v49, %v20819_v25  ;;  %v9124_v17 = vpop.eup %9123  ;;  %v17219_v34 = vadd.f32 %v6789_v11, %v6553_v35  ;;  %4581 = vst.msk [vmem:[%s18420_s4 + $0xb8] sm:$0xff] %vm20821_vm15, %v4548_v27  ;;  %v17226_v62 = vadd.f32 %v17117_v55, %v6557_v52  ;;  %vm5730_vm6 = vcmp.eq.f32.partialorder %v5729_v16, 8.507059e+37  ;;  %v20834_v52 = vld [vmem:[#allocation179_spill] sm:$0xff] }
 0x454   :  { %v5672_v40 = vor.u32 1.1754944e-38, %v5671_v47  ;;  %9125 = vrcp.f32 %v20823_v4  ;;  %v5733_v61 = vsel %vm5730_vm6, %v5732_v36, %v5728_v23  ;;  %vm5670_vm14 = vcmp.eq.f32.partialorder %v5669_v54, 8.507059e+37  ;;  %v4473_v2 = vpop.permute.xlu1 %4472 }
 0x455   :  { %20822 = vst [vmem:[#allocation218_spill] sm:$0xff] %v17226_v62  ;;  %v5776_v28 = vand.u32 2147483648, %v20804_v20  ;;  %6996 = vrot.lane.b32.xlu1 %v9124_v17, %s9213_s12  ;;  %9127 = vtanh.f32 %v17219_v34  ;;  %v6556_v24 = vmul.f32 %v5613_v60, %v20824_v3  ;;  %v5706_v58 = vmul.f32 %v20826_v59, %v20825_v57 }
 0x456   :  { %v5673_v0 = vsel %vm5670_vm14, %v5672_v40, %v5668_v63  ;;  %v5769_v55 = vadd.f32 %v20805_v41, %v5768_v7  ;;  %vm5770_vm9 = vweird.f32 %v20804_v20  ;;  %vm5771_vm2 = vweird.f32 %v20805_v41  ;;  %vm20847_vm14 = vmmov %vm20829_vm10 }
 0x457   :  { %v5647_v32 = vsub.f32 1.0, %v5646_v48  ;;  %9129 = vtanh.f32 %v17226_v62  ;;  %v6564_v37 = vmul.f32 %v5733_v61, %v20827_v9  ;;  %v4547_v16 = vsel %vm20829_vm10, %v4473_v2, %v20828_v30  ;;  %6982 = vrot.lane.b32.xlu0 %v9122_v53, %s9213_s12  ;;  %vm17252_vm11 = vmor %vm5770_vm9, %vm5771_vm2  ;;  %v20833_v53 = vld [vmem:[#allocation60_spill] sm:$0xff]  ;;  %v6795_v5 = vpop.permute.xlu0 %6794  ;;  %v20837_v61 = vld [vmem:[#allocation182_spill] sm:$0xff] }
 0x458   :  { %v5707_v47 = vsub.f32 1.0, %v5706_v58  ;;  %v6560_v35 = vmul.f32 %v5673_v0, %v20830_v44  ;;  %v5774_v12 = vand.u32 2147483647, %v20804_v20  ;;  %v5777_v54 = vor.u32 1.1754944e-38, %v5776_v28  ;;  %4580 = vst.msk [vmem:[%s18420_s4 + $0xb0] sm:$0xff] %vm20810_vm13, %v4547_v16  ;;  %v6811_v60 = vpop.permute.xlu2 %6810  ;;  %v20838_v28 = vld [vmem:[#allocation114_spill] sm:$0xff]  ;;  %vm20848_vm2 = vmmov %vm20810_vm13 }
 0x459   :  { %v5716_v22 = vand.u32 2147483648, %v20825_v57  ;;  %v5691_v23 = vmul.f32 %v20834_v52, %v20833_v53  ;;  %vm5711_vm5 = vweird.f32 %v20826_v59  ;;  %v5714_v14 = vand.u32 2147483647, %v20825_v57  ;;  %v20840_v0 = vld [vmem:[#allocation192_spill] sm:$0xff]  ;;  %v20841_v44 = vld [vmem:[#allocation34_spill] sm:$0xff] }
 0x45a   :  { %v5708_v36 = vmul.f32 %v20826_v59, %v5707_v47  ;;  %v17261_v11 = vpop.eup %9125  ;;  %v17263_v27 = vadd.f32 %v6811_v60, %v6564_v37  ;;  %v17266_v20 = vadd.f32 %v17186_v42, %v6560_v35  ;;  %v5773_v63 = vsel %vm17252_vm11, %v20805_v41, %v5769_v55  ;;  %v20839_v42 = vld [vmem:[#allocation207_spill] sm:$0xff] }
 0x45b   :  { %v5648_v7 = vmul.f32 %v20820_v49, %v5647_v32  ;;  %v9128_v48 = vpop.eup %9127  ;;  %v17272_v17 = vadd.f32 %v6795_v5, %v6556_v24  ;;  %vm5710_vm7 = vweird.f32 %v20825_v57  ;;  %v5811_v3 = vmul.f32 %v20838_v28, %v20837_v61  ;;  %v20842_v60 = vld [vmem:[#allocation31_spill] sm:$0xff] }
 0x45c   :  { %20835 = vst [vmem:[#allocation99_spill] sm:$0xff] %v17263_v27  ;;  %v5709_v40 = vadd.f32 %v20826_v59, %v5708_v36  ;;  %6980 = vrot.lane.b32.xlu2 %v9128_v48, %s9213_s12  ;;  %9131 = vtanh.f32 %v17263_v27  ;;  %vm5775_vm12 = vcmp.eq.f32.partialorder %v5774_v12, 8.507059e+37  ;;  %vm5712_vm3 = vmor %vm5710_vm7, %vm5711_vm5  ;;  %v5717_v41 = vor.u32 1.1754944e-38, %v5716_v22  ;;  %v6809_v9 = vpop.permute.xlu1 %6808 }
 0x45d   :  { %20836 = vst [vmem:[#allocation178_spill] sm:$0xff] %v17272_v17  ;;  %v5751_v24 = vmul.f32 %v20840_v0, %v20839_v42  ;;  %v9130_v58 = vpop.eup %9129  ;;  %9133 = vtanh.f32 %v17272_v17  ;;  %v5778_v55 = vsel %vm5775_vm12, %v5777_v54, %v5773_v63  ;;  %vm5715_vm4 = vcmp.eq.f32.partialorder %v5714_v14, 8.507059e+37 }
 0x45e   :  { %v5713_v57 = vsel %vm5712_vm3, %v20826_v59, %v5709_v40  ;;  %vm5651_vm0 = vweird.f32 %v20820_v49  ;;  %v5692_v32 = vsub.f32 1.0, %v5691_v23  ;;  %9135 = vtanh.f32 %v17266_v20  ;;  %v20846_v40 = vld [vmem:[#allocation115_spill] sm:$0xff] }
 0x45f   :  { %v5718_v2 = vsel %vm5715_vm4, %v5717_v41, %v5713_v57  ;;  %v5752_v37 = vsub.f32 1.0, %v5751_v24  ;;  %v5649_v30 = vadd.f32 %v20820_v49, %v5648_v7  ;;  %v5656_v16 = vand.u32 2147483648, %v20819_v25  ;;  %6988 = vrot.lane.b32.xlu0 %v9130_v58, %s9213_s12  ;;  %v4471_v14 = vpop.permute.xlu0 %4470 }
 0x460   :  { %v5812_v47 = vsub.f32 1.0, %v5811_v3  ;;  %v6567_v35 = vmul.f32 %v5778_v55, %v20841_v44  ;;  %vm5756_vm1 = vweird.f32 %v20840_v0  ;;  %v5761_v12 = vand.u32 2147483648, %v20839_v42  ;;  %v6817_v54 = vpop.permute.xlu2 %6816 }
 0x461   :  { %v5753_v59 = vmul.f32 %v20840_v0, %v5752_v37  ;;  %vm5650_vm8 = vweird.f32 %v20819_v25  ;;  %v5654_v22 = vand.u32 2147483647, %v20819_v25  ;;  %v6563_v43 = vmul.f32 %v5718_v2, %v20842_v60 }
 0x462   :  { %v5759_v23 = vand.u32 2147483647, %v20839_v42  ;;  %v9132_v36 = vpop.eup %9131  ;;  %v17299_v5 = vadd.f32 %v6817_v54, %v6567_v35  ;;  %vm17303_vm15 = vmor %vm5650_vm8, %vm5651_vm0  ;;  %v5693_v7 = vmul.f32 %v20834_v52, %v5692_v32  ;;  %vm5755_vm6 = vweird.f32 %v20839_v42  ;;  %v20849_v32 = vld [vmem:[#allocation217_spill] sm:$0xff] }
 0x463   :  { %v5754_v48 = vadd.f32 %v20840_v0, %v5753_v59  ;;  %v9134_v25 = vpop.eup %9133  ;;  %v4546_v3 = vsel %vm20847_vm14, %v4471_v14, %v20846_v40  ;;  %v5653_v41 = vsel %vm17303_vm15, %v20820_v49, %v5649_v30  ;;  %7002 = vrot.lane.b32.xlu1 %v9132_v36, %s9213_s12  ;;  %v17316_v24 = vadd.f32 %v6809_v9, %v6563_v43  ;;  %vm5757_vm9 = vmor %vm5755_vm6, %vm5756_vm1  ;;  %v20850_v35 = vld [vmem:[#allocation149_spill] sm:$0xff]  ;;  %v20854_v36 = vld [vmem:[#allocation35_spill] sm:$0xff] }
 0x464   :  { %20843 = vst [vmem:[#allocation69_spill] sm:$0xff] %v17299_v5  ;;  %v5813_v58 = vmul.f32 %v20838_v28, %v5812_v47  ;;  %6986 = vrot.lane.b32.xlu2 %v9134_v25, %s9213_s12  ;;  %9137 = vtanh.f32 %v17299_v5  ;;  %v5657_v42 = vor.u32 1.1754944e-38, %v5656_v16  ;;  %v5762_v55 = vor.u32 1.1754944e-38, %v5761_v12  ;;  %v9136_v57 = vpop.eup %9135  ;;  %v6815_v47 = vpop.permute.xlu1 %6814  ;;  %v20857_v40 = vld [vmem:[#allocation298_spill] sm:$0xff]  ;;  %vm20863_vm8 = vmmov %vm20847_vm14 }
 0x465   :  { %4579 = vst.msk [vmem:[%s18420_s4 + $0xa8] sm:$0xff] %vm20848_vm2, %v4546_v3  ;;  %v5758_v49 = vsel %vm5757_vm9, %v20840_v0, %v5754_v48  ;;  %v17329_v2 = vadd.f32 1.0, %v20849_v32  ;;  %vm5655_vm10 = vcmp.eq.f32.partialorder %v5654_v22, 8.507059e+37  ;;  %vm5696_vm13 = vweird.f32 %v20834_v52  ;;  %v20851_v22 = vld [vmem:[#allocation13_spill] sm:$0xff]  ;;  %v20858_v3 = vld [vmem:[#allocation214_spill] sm:$0xff]  ;;  %vm20865_vm15 = vmmov %vm20863_vm8 }
 0x466   :  { %vm5760_vm11 = vcmp.eq.f32.partialorder %v5759_v23, 8.507059e+37  ;;  %v5658_v9 = vsel %vm5655_vm10, %v5657_v42, %v5653_v41  ;;  %v5694_v37 = vadd.f32 %v20834_v52, %v5693_v7  ;;  %v5856_v44 = vmul.f32 %v17261_v11, %v20823_v4  ;;  %vm20866_vm6 = vmmov %vm20848_vm2 }
 0x467   :  { %v5763_v30 = vsel %vm5760_vm11, %v5762_v55, %v5758_v49  ;;  %v5701_v16 = vand.u32 2147483648, %v20833_v53  ;;  %9139 = vtanh.f32 %v17316_v24  ;;  %v5814_v0 = vadd.f32 %v20838_v28, %v5813_v58  ;;  %6994 = vrot.lane.b32.xlu0 %v9136_v57, %s9213_s12  ;;  %v20860_v49 = vld [vmem:[#allocation67_spill] sm:$0xff] }
 0x468   :  { %vm5816_vm5 = vweird.f32 %v20838_v28  ;;  %v17340_v59 = vadd.f32 1.0, %v20850_v35  ;;  %vm5695_vm7 = vweird.f32 %v20833_v53  ;;  %v5699_v12 = vand.u32 2147483647, %v20833_v53  ;;  %v6801_v53 = vpop.permute.xlu0 %6800 }
 0x469   :  { %v5821_v54 = vand.u32 2147483648, %v20837_v61  ;;  %v6559_v60 = vmul.f32 %v5658_v9, %v20851_v22  ;;  %vm17349_vm12 = vmor %vm5695_vm7, %vm5696_vm13  ;;  %vm5815_vm3 = vweird.f32 %v20837_v61  ;;  %v5819_v23 = vand.u32 2147483647, %v20837_v61 }
 0x46a   :  { %v6566_v14 = vmul.f32 %v5763_v30, %v20854_v36  ;;  %v9138_v63 = vpop.eup %9137  ;;  %9141 = vrcp.f32 %v17329_v2  ;;  %v5698_v7 = vsel %vm17349_vm12, %v20834_v52, %v5694_v37  ;;  %vm17362_vm4 = vmor %vm5815_vm3, %vm5816_vm5  ;;  %v5857_v25 = vsub.f32 1.0, %v5856_v44  ;;  %v20861_v37 = vld [vmem:[#allocation321_spill] sm:$0xff]  ;;  %v20867_v36 = vld [vmem:[#allocation16_spill] sm:$0xff] }
 0x46b   :  { %v5736_v61 = vmul.f32 %v20858_v3, %v20857_v40  ;;  %v17368_v41 = vadd.f32 %v6801_v53, %v6559_v60  ;;  %v5702_v58 = vor.u32 1.1754944e-38, %v5701_v16  ;;  %v5818_v42 = vsel %vm17362_vm4, %v20838_v28, %v5814_v0  ;;  %7008 = vrot.lane.b32.xlu1 %v9138_v63, %s9213_s12  ;;  %v20862_v30 = vld [vmem:[#allocation93_spill] sm:$0xff] }
 0x46c   :  { %v17374_v52 = vadd.f32 %v6815_v47, %v6566_v14  ;;  %v17377_v55 = vadd.f32 1.0, %v20860_v49  ;;  %9143 = vrcp.f32 %v17340_v59  ;;  %vm5700_vm0 = vcmp.eq.f32.partialorder %v5699_v12, 8.507059e+37  ;;  %v20870_v49 = vld [vmem:[#allocation40_spill] sm:$0xff] }
 0x46d   :  { %v5822_v57 = vor.u32 1.1754944e-38, %v5821_v54  ;;  %v9140_v32 = vpop.eup %9139  ;;  %9145 = vtanh.f32 %v17368_v41  ;;  %v5703_v9 = vsel %vm5700_vm0, %v5702_v58, %v5698_v7  ;;  %vm5820_vm1 = vcmp.eq.f32.partialorder %v5819_v23, 8.507059e+37  ;;  %v20864_v54 = vld [vmem:[#allocation132_spill] sm:$0xff] }
 0x46e   :  { %20859 = vst [vmem:[#allocation238_spill] sm:$0xff] %v17374_v52  ;;  %v5796_v44 = vmul.f32 %v20862_v30, %v20861_v37  ;;  %v4481_v28 = vpop.permute.xlu2 %4480  ;;  %v5858_v47 = vmul.f32 %v17261_v11, %v5857_v25  ;;  %v5864_v0 = vand.u32 2147483647, %v20823_v4  ;;  %v5737_v35 = vsub.f32 1.0, %v5736_v61  ;;  %v4479_v22 = vpop.permute.xlu1 %4478 }
 0x46f   :  { %v5823_v16 = vsel %vm5820_vm1, %v5822_v57, %v5818_v42  ;;  %v4551_v12 = vsel %vm20863_vm8, %v4481_v28, %v15695_v33  ;;  %9147 = vtanh.f32 %v17374_v52  ;;  %v4550_v60 = vsel %vm20865_vm15, %v4479_v22, %v20864_v54  ;;  %7000 = vrot.lane.b32.xlu0 %v9140_v32, %s9213_s12  ;;  %v20871_v57 = vld [vmem:[#allocation319_spill] sm:$0xff] }
 0x470   :  { %v5797_v43 = vsub.f32 1.0, %v5796_v44  ;;  %v17390_v23 = vpop.eup %9141  ;;  %4584 = vst.msk [vmem:[%s18420_s4 + $0xd0] sm:$0xff] %vm20866_vm6, %v4551_v12  ;;  %v6562_v14 = vmul.f32 %v5703_v9, %v20867_v36  ;;  %vm5860_vm14 = vweird.f32 %v20823_v4  ;;  %v5866_v63 = vand.u32 2147483648, %v20823_v4 }
 0x471   :  { %v5806_v33 = vand.u32 2147483648, %v20861_v37  ;;  %vm5861_vm9 = vweird.f32 %v17261_v11  ;;  %4583 = vst.msk [vmem:[%s18420_s4 + $0xc8] sm:$0xff] %vm20848_vm2, %v4550_v60  ;;  %vm5801_vm10 = vweird.f32 %v20862_v30  ;;  %v5804_v7 = vand.u32 2147483647, %v20861_v37  ;;  %v6807_v25 = vpop.permute.xlu0 %6806 }
 0x472   :  { %v5798_v53 = vmul.f32 %v20862_v30, %v5797_v43  ;;  %v17409_v48 = vpop.eup %9143  ;;  %v6570_v61 = vmul.f32 %v5823_v16, %v20480_v56  ;;  %v5859_v58 = vadd.f32 %v17261_v11, %v5858_v47  ;;  %vm17413_vm13 = vcmp.eq.f32.partialorder %v5864_v0, 8.507059e+37  ;;  %vm17435_vm12 = vmor %vm5860_vm14, %vm5861_vm9 }
 0x473   :  { %v5781_v32 = vmul.f32 %v20871_v57, %v20870_v49  ;;  %v9146_v9 = vpop.eup %9145  ;;  %v17419_v44 = vadd.f32 %v6807_v25, %v6562_v14  ;;  %v5738_v28 = vmul.f32 %v20858_v3, %v5737_v35  ;;  %vm5800_vm11 = vweird.f32 %v20861_v37  ;;  %v20881_v37 = vld [vmem:[#allocation233_spill] sm:$0xff]  ;;  %vm20883_vm14 = vmmov %vm20848_vm2 }
 0x474   :  { %v5799_v22 = vadd.f32 %v20862_v30, %v5798_v53  ;;  %6992 = vrot.lane.b32.xlu2 %v9146_v9, %s9213_s12  ;;  %v5867_v56 = vor.u32 1.1754944e-38, %v5866_v63  ;;  %vm5740_vm5 = vweird.f32 %v20857_v40  ;;  %vm5802_vm7 = vmor %vm5800_vm11, %vm5801_vm10  ;;  %v5807_v16 = vor.u32 1.1754944e-38, %v5806_v33 }
 0x475   :  { %20872 = vst [vmem:[#allocation244_spill] sm:$0xff] %v17419_v44  ;;  %v5841_v47 = vmul.f32 %v17390_v23, %v17329_v2  ;;  %v9148_v0 = vpop.eup %9147  ;;  %9149 = vtanh.f32 %v17419_v44  ;;  %vm5741_vm3 = vweird.f32 %v20858_v3  ;;  %vm5805_vm4 = vcmp.eq.f32.partialorder %v5804_v7, 8.507059e+37 }
 0x476   :  { %v5803_v35 = vsel %vm5802_vm7, %v20862_v30, %v5799_v22  ;;  %v6823_v12 = vpop.permute.xlu2 %6822  ;;  %v5863_v54 = vsel %vm17435_vm12, %v17261_v11, %v5859_v58  ;;  %v5782_v60 = vsub.f32 1.0, %v5781_v32  ;;  %v6821_v36 = vpop.permute.xlu1 %6820  ;;  %v5739_v4 = vadd.f32 %v20858_v3, %v5738_v28  ;;  %v20877_v58 = vld [vmem:[#allocation79_spill] sm:$0xff]  ;;  %vm17466_vm1 = vmor %vm5740_vm5, %vm5741_vm3 }
 0x477   :  { %v5808_v43 = vsel %vm5805_vm4, %v5807_v16, %v5803_v35  ;;  %v5842_v14 = vsub.f32 1.0, %v5841_v47  ;;  %v17444_v63 = vadd.f32 %v6823_v12, %v6570_v61  ;;  %v5851_v53 = vand.u32 2147483648, %v17329_v2  ;;  %7006 = vrot.lane.b32.xlu0 %v9148_v0, %s9213_s12  ;;  %vm20901_vm3 = vmmov %vm20865_vm15 }
 0x478   :  { %v6569_v33 = vmul.f32 %v5808_v43, %v20464_v10  ;;  %v5746_v30 = vand.u32 2147483648, %v20857_v40  ;;  %vm5846_vm0 = vweird.f32 %v17390_v23  ;;  %v5849_v11 = vand.u32 2147483647, %v17329_v2  ;;  %v20878_v10 = vld [vmem:[#allocation147_spill] sm:$0xff] }
 0x479   :  { %20875 = vst [vmem:[#allocation161_spill] sm:$0xff] %v17444_v63  ;;  %v5843_v7 = vmul.f32 %v17390_v23, %v5842_v14  ;;  %9151 = vtanh.f32 %v17444_v63  ;;  %v5744_v25 = vand.u32 2147483647, %v20857_v40  ;;  %v6093_v32 = vmul.f32 %v20878_v10, %v20877_v58  ;;  %v4477_v9 = vpop.permute.xlu0 %4476  ;;  %v20928_v63 = vld [vmem:[#allocation187_spill] sm:$0xff] }
 0x47a   :  { %v17456_v61 = vadd.f32 %v6821_v36, %v6569_v33  ;;  %v5868_v28 = vsel %vm17413_vm13, %v5867_v56, %v5863_v54  ;;  %v5783_v16 = vmul.f32 %v20871_v57, %v5782_v60  ;;  %vm5845_vm8 = vweird.f32 %v17329_v2  ;;  %v20882_v56 = vld [vmem:[#allocation320_spill] sm:$0xff] }
 0x47b   :  { %v5844_v47 = vadd.f32 %v17390_v23, %v5843_v7  ;;  %v9150_v0 = vpop.eup %9149  ;;  %v4549_v35 = vsel %vm20865_vm15, %v4477_v9, %v20881_v37  ;;  %v5743_v42 = vsel %vm17466_vm1, %v20858_v3, %v5739_v4  ;;  %vm5847_vm6 = vmor %vm5845_vm8, %vm5846_vm0  ;;  %v5852_v40 = vor.u32 1.1754944e-38, %v5851_v53  ;;  %v20884_v4 = vld [vmem:[#allocation43_spill] sm:$0xff] }
 0x47c   :  { %20876 = vst [vmem:[#allocation3_spill] sm:$0xff] %v17456_v61  ;;  %9153 = vtanh.f32 %v17456_v61  ;;  %6998 = vrot.lane.b32.xlu2 %v9150_v0, %s9213_s12  ;;  %v5747_v2 = vor.u32 1.1754944e-38, %v5746_v30  ;;  %vm5850_vm9 = vcmp.eq.f32.partialorder %v5849_v11, 8.507059e+37  ;;  %v6573_v3 = vmul.f32 %v5868_v28, %v20529_v19  ;;  %v20885_v30 = vld [vmem:[#allocation315_spill] sm:$0xff]  ;;  %v20889_v28 = vld [vmem:[#allocation190_spill] sm:$0xff]  ;;  %vm20902_vm0 = vmmov %vm20901_vm3 }
 0x47d   :  { %9155 = vpow2.f32 %v20882_v56  ;;  %4582 = vst.msk [vmem:[%s18420_s4 + $0xc0] sm:$0xff] %vm20883_vm14, %v4549_v35  ;;  %v5848_v12 = vsel %vm5847_vm6, %v17390_v23, %v5844_v47  ;;  %vm5745_vm2 = vcmp.eq.f32.partialorder %v5744_v25, 8.507059e+37  ;;  %vm5786_vm10 = vweird.f32 %v20871_v57  ;;  %v20886_v23 = vld [vmem:[#allocation231_spill] sm:$0xff]  ;;  %v20888_v25 = vld [vmem:[#allocation208_spill] sm:$0xff]  ;;  %vm20904_vm1 = vmmov %vm20883_vm14 }
 0x47e   :  { %v5853_v54 = vsel %vm5850_vm9, %v5852_v40, %v5848_v12  ;;  %v6829_v60 = vpop.permute.xlu2 %6828  ;;  %v5748_v43 = vsel %vm5745_vm2, %v5747_v2, %v5743_v42  ;;  %v5784_v36 = vadd.f32 %v20871_v57, %v5783_v16  ;;  %v6094_v14 = vsub.f32 1.0, %v6093_v32  ;;  %v6827_v53 = vpop.permute.xlu1 %6826  ;;  %v20891_v0 = vld [vmem:[#allocation19_spill] sm:$0xff]  ;;  %vm20905_vm8 = vmmov %vm20904_vm1 }
 0x47f   :  { %v6572_v33 = vmul.f32 %v5853_v54, %v20884_v4  ;;  %v9152_v7 = vpop.eup %9151  ;;  %9157 = vrcp.f32 %v17377_v55  ;;  %v5930_v11 = vadd.f32 %v20886_v23, %v20885_v30  ;;  %v17495_v9 = vadd.f32 %v6829_v60, %v6573_v3  ;;  %v20895_v54 = vld [vmem:[#allocation113_spill] sm:$0xff]  ;;  %v20896_v60 = vld [vmem:[#allocation108_spill] sm:$0xff]  ;;  %v20897_v4 = vld [vmem:[#allocation194_spill] sm:$0xff] }
 0x480   :  { %v5791_v19 = vand.u32 2147483648, %v20870_v49  ;;  %v5915_v22 = vadd.f32 %v20889_v28, %v20888_v25  ;;  %7014 = vrot.lane.b32.xlu1 %v9152_v7, %s9213_s12  ;;  %vm5785_vm13 = vweird.f32 %v20870_v49  ;;  %v5789_v32 = vand.u32 2147483647, %v20870_v49 }
 0x481   :  { %20887 = vst [vmem:[#allocation191_spill] sm:$0xff] %v17495_v9  ;;  %v17503_v16 = vadd.f32 %v6827_v53, %v6572_v33  ;;  %9159 = vtanh.f32 %v17495_v9  ;;  %v6565_v37 = vmul.f32 %v5748_v43, %v20891_v0  ;;  %vm17509_vm11 = vmor %vm5785_vm13, %vm5786_vm10  ;;  %v6813_v40 = vpop.permute.xlu0 %6812  ;;  %v6095_v49 = vmul.f32 %v20878_v10, %v6094_v14  ;;  %v20899_v14 = vld [vmem:[#allocation215_spill] sm:$0xff]  ;;  %v20927_v9 = vld [vmem:[#allocation150_spill] sm:$0xff] }
 0x482   :  { %v9154_v47 = vpop.eup %9153  ;;  %v5788_v56 = vsel %vm17509_vm11, %v20871_v57, %v5784_v36  ;;  %v5792_v12 = vor.u32 1.1754944e-38, %v5791_v19  ;;  %v5826_v3 = vmul.f32 %v17409_v48, %v17340_v59  ;;  %v6078_v43 = vmul.f32 %v20896_v60, %v20895_v54  ;;  %v20898_v36 = vld [vmem:[#allocation254_spill] sm:$0xff] }
 0x483   :  { %20890 = vst [vmem:[#allocation154_spill] sm:$0xff] %v17503_v16  ;;  %v9156_v42 = vpop.eup %9155  ;;  %9161 = vtanh.f32 %v17503_v16  ;;  %7012 = vrot.lane.b32.xlu0 %v9154_v47, %s9213_s12  ;;  %v17519_v2 = vadd.f32 %v6813_v40, %v6565_v37  ;;  %v7950_v33 = vmul.f32 -1.442695, %v5930_v11  ;;  %v7935_v53 = vmul.f32 -1.442695, %v5915_v22  ;;  %v20900_v47 = vld [vmem:[#allocation37_spill] sm:$0xff] }
 0x484   :  { %9163 = vpow2.f32 %v20897_v4  ;;  %vm5790_vm5 = vcmp.eq.f32.partialorder %v5789_v32, 8.507059e+37  ;;  %v5916_v7 = vadd.f32 %v20899_v14, %v20898_v36  ;;  %v6079_v23 = vsub.f32 1.0, %v6078_v43  ;;  %v20908_v36 = vld [vmem:[#allocation138_spill] sm:$0xff]  ;;  %v20909_v14 = vld [vmem:[#allocation281_spill] sm:$0xff] }
 0x485   :  { %20894 = vst [vmem:[#allocation283_spill] sm:$0xff] %v17519_v2  ;;  %v17526_v57 = vpop.eup %9157  ;;  %9165 = vtanh.f32 %v17519_v2  ;;  %v5793_v30 = vsel %vm5790_vm5, %v5792_v12, %v5788_v56  ;;  %v6096_v19 = vadd.f32 %v20878_v10, %v6095_v49  ;;  %vm6097_vm7 = vweird.f32 %v20877_v58  ;;  %v20903_v56 = vld [vmem:[#allocation22_spill] sm:$0xff] }
 0x486   :  { %vm6098_vm12 = vweird.f32 %v20878_v10  ;;  %v6101_v25 = vand.u32 2147483647, %v20877_v58  ;;  %v4485_v11 = vpop.permute.xlu1 %4484  ;;  %v5827_v32 = vsub.f32 1.0, %v5826_v3  ;;  %v6080_v37 = vmul.f32 %v20896_v60, %v6079_v23 }
 0x487   :  { %v9160_v28 = vpop.eup %9159  ;;  %v4487_v22 = vpop.permute.xlu2 %4486  ;;  %v4553_v0 = vsel %vm20901_vm3, %v4485_v11, %v20900_v47  ;;  %vm6083_vm4 = vweird.f32 %v20896_v60  ;;  %v6568_v49 = vmul.f32 %v5793_v30, %v20903_v56  ;;  %v6103_v12 = vand.u32 2147483648, %v20877_v58  ;;  %vm17557_vm15 = vmor %vm6097_vm7, %vm6098_vm12  ;;  %v20911_v47 = vld [vmem:[#allocation2_spill] sm:$0xff] }
 0x488   :  { %v4554_v40 = vsel %vm20902_vm0, %v4487_v22, %v15907_v29  ;;  %7020 = vrot.lane.b32.xlu1 %v9160_v28, %s9213_s12  ;;  %4586 = vst.msk [vmem:[%s18420_s4 + $0xe0] sm:$0xff] %vm20904_vm1, %v4553_v0  ;;  %v6088_v3 = vand.u32 2147483648, %v20895_v54  ;;  %v6081_v43 = vadd.f32 %v20896_v60, %v6080_v37  ;;  %vm6082_vm6 = vweird.f32 %v20895_v54  ;;  %v20910_v22 = vld [vmem:[#allocation170_spill] sm:$0xff]  ;;  %vm20924_vm3 = vmmov %vm20902_vm0 }
 0x489   :  { %v9162_v35 = vpop.eup %9161  ;;  %4587 = vst.msk [vmem:[%s18420_s4 + $0xe8] sm:$0xff] %vm20905_vm8, %v4554_v40  ;;  %v6086_v4 = vand.u32 2147483647, %v20895_v54  ;;  %v6123_v30 = vmul.f32 %v20909_v14, %v20908_v36  ;;  %v17566_v11 = vadd.f32 1.0, %v9156_v42  ;;  %9167 = vpow2.f32 %v7935_v53  ;;  %v6819_v28 = vpop.permute.xlu0 %6818  ;;  %vm17576_vm14 = vmor %vm6082_vm6, %vm6083_vm4 }
 0x48a   :  { %v9164_v23 = vpop.eup %9163  ;;  %v6100_v58 = vsel %vm17557_vm15, %v20878_v10, %v6096_v19  ;;  %v6138_v0 = vmul.f32 %v20911_v47, %v20910_v22  ;;  %v17580_v42 = vadd.f32 %v6819_v28, %v6568_v49  ;;  %v5828_v53 = vmul.f32 %v17409_v48, %v5827_v32  ;;  %vm20929_vm4 = vmmov %vm20904_vm1 }
 0x48b   :  { %7018 = vrot.lane.b32.xlu0 %v9162_v35, %s9213_s12  ;;  %v9166_v37 = vpop.eup %9165  ;;  %v6085_v10 = vsel %vm17576_vm14, %v20896_v60, %v6081_v43  ;;  %v6124_v19 = vsub.f32 1.0, %v6123_v30  ;;  %9169 = vpow2.f32 %v7950_v33  ;;  %v7936_v40 = vmul.f32 -1.442695, %v5916_v7  ;;  %v20915_v30 = vld [vmem:[#allocation322_spill] sm:$0xff] }
 0x48c   :  { %20914 = vst [vmem:[#allocation121_spill] sm:$0xff] %v17580_v42  ;;  %7004 = vrot.lane.b32.xlu2 %v9166_v37, %s9213_s12  ;;  %v6104_v35 = vor.u32 1.1754944e-38, %v6103_v12  ;;  %v6089_v56 = vor.u32 1.1754944e-38, %v6088_v3  ;;  %9171 = vtanh.f32 %v17580_v42  ;;  %vm6102_vm9 = vcmp.eq.f32.partialorder %v6101_v25, 8.507059e+37  ;;  %v20930_v37 = vld [vmem:[#allocation110_spill] sm:$0xff] }
 0x48d   :  { %vm6087_vm2 = vcmp.eq.f32.partialorder %v6086_v4, 8.507059e+37  ;;  %v6125_v49 = vmul.f32 %v20909_v14, %v6124_v19  ;;  %vm5831_vm10 = vweird.f32 %v17409_v48  ;;  %v6139_v32 = vsub.f32 1.0, %v6138_v0 }
 0x48e   :  { %v6105_v29 = vsel %vm6102_vm9, %v6104_v35, %v6100_v58  ;;  %v6090_v28 = vsel %vm6087_vm2, %v6089_v56, %v6085_v10  ;;  %v6961_v54 = vpop.permute.xlu1 %6960  ;;  %v5829_v33 = vadd.f32 %v17409_v48, %v5828_v53  ;;  %vm6128_vm13 = vweird.f32 %v20909_v14  ;;  %v20916_v58 = vld [vmem:[#allocation62_spill] sm:$0xff] }
 0x48f   :  { %v6963_v60 = vpop.permute.xlu2 %6962  ;;  %v7055_v7 = vmul.f32 %v6961_v54, %v6090_v28  ;;  %v6126_v43 = vadd.f32 %v20909_v14, %v6125_v49  ;;  %v9168_v12 = vpop.eup %9167  ;;  %vm5830_vm11 = vweird.f32 %v17340_v59  ;;  %v5836_v25 = vand.u32 2147483648, %v17340_v59  ;;  %v20920_v28 = vld [vmem:[#allocation53_spill] sm:$0xff] }
 0x490   :  { %v7056_v3 = vmul.f32 %v6963_v60, %v6105_v29  ;;  %v6133_v4 = vand.u32 2147483648, %v20908_v36  ;;  %v5931_v0 = vadd.f32 %v20916_v58, %v20915_v30  ;;  %vm17600_vm5 = vmor %vm5830_vm11, %vm5831_vm10  ;;  %v5834_v53 = vand.u32 2147483647, %v17340_v59  ;;  %v20919_v29 = vld [vmem:[#allocation46_spill] sm:$0xff] }
 0x491   :  { %vm6127_vm7 = vweird.f32 %v20908_v36  ;;  %v6131_v10 = vand.u32 2147483647, %v20908_v36  ;;  %v9170_v19 = vpop.eup %9169  ;;  %v17607_v35 = vadd.f32 1.0, %v9164_v23  ;;  %9173 = vpow2.f32 %v7936_v40  ;;  %v4483_v56 = vpop.permute.xlu0 %4482  ;;  %v20923_v23 = vld [vmem:[#allocation196_spill] sm:$0xff]  ;;  %vm20942_vm11 = vmmov %vm20929_vm4 }
 0x492   :  { %7122 = vrot.lane.b32.xlu1 %v7056_v3, %s9212_s19  ;;  %v6140_v49 = vmul.f32 %v20911_v47, %v6139_v32  ;;  %v6063_v54 = vmul.f32 %v20920_v28, %v20919_v29  ;;  %vm17616_vm12 = vmor %vm6127_vm7, %vm6128_vm13  ;;  %v9172_v36 = vpop.eup %9171  ;;  %v4552_v40 = vsel %vm20924_vm3, %v4483_v56, %v20923_v23  ;;  %v5833_v60 = vsel %vm17600_vm5, %v17409_v48, %v5829_v33  ;;  %v20925_v32 = vld [vmem:[#allocation181_spill] sm:$0xff]  ;;  %v20926_v3 = vld [vmem:[#allocation304_spill] sm:$0xff] }
 0x493   :  { %7120 = vrot.lane.b32.xlu0 %v7055_v7, %s9212_s19  ;;  %v6183_v30 = vmul.f32 %v20926_v3, %v20925_v32  ;;  %v6130_v7 = vsel %vm17616_vm12, %v20909_v14, %v6126_v43  ;;  %v17630_v58 = vadd.f32 1.0, %v9168_v12  ;;  %v5917_v42 = vadd.f32 %v20928_v63, %v20927_v9  ;;  %4585 = vst.msk [vmem:[%s18420_s4 + $0xd8] sm:$0xff] %vm20929_vm4, %v4552_v40  ;;  %v20931_v56 = vld [vmem:[#allocation84_spill] sm:$0xff]  ;;  %vm20941_vm13 = vmmov %vm20924_vm3 }
 0x494   :  { %7010 = vrot.lane.b32.xlu2 %v9172_v36, %s9213_s12  ;;  %v5837_v48 = vor.u32 1.1754944e-38, %v5836_v25  ;;  %v6134_v33 = vor.u32 1.1754944e-38, %v6133_v4  ;;  %v5933_v23 = vadd.f32 %v20931_v56, %v20930_v37  ;;  %vm5835_vm0 = vcmp.eq.f32.partialorder %v5834_v53, 8.507059e+37 }
 0x495   :  { %vm6143_vm1 = vweird.f32 %v20911_v47  ;;  %vm6132_vm8 = vcmp.eq.f32.partialorder %v6131_v10, 8.507059e+37  ;;  %v6141_v43 = vadd.f32 %v20911_v47, %v6140_v49  ;;  %v6064_v63 = vsub.f32 1.0, %v6063_v54  ;;  %v20932_v54 = vld [vmem:[#allocation25_spill] sm:$0xff] }
 0x496   :  { %v5838_v14 = vsel %vm5835_vm0, %v5837_v48, %v5833_v60  ;;  %v6135_v9 = vsel %vm6132_vm8, %v6134_v33, %v6130_v7  ;;  %v6967_v12 = vpop.permute.xlu1 %6966  ;;  %9175 = vrcp.f32 %v17566_v11  ;;  %v6148_v59 = vand.u32 2147483648, %v20910_v22 }
 0x497   :  { %v6184_v36 = vsub.f32 1.0, %v6183_v30  ;;  %v7058_v25 = vmul.f32 %v6967_v12, %v6135_v9  ;;  %v9174_v4 = vpop.eup %9173  ;;  %9177 = vrcp.f32 %v17607_v35  ;;  %vm6142_vm15 = vweird.f32 %v20910_v22  ;;  %v20938_v9 = vld [vmem:[#allocation294_spill] sm:$0xff] }
 0x498   :  { %v6146_v53 = vand.u32 2147483647, %v20910_v22  ;;  %v17648_v10 = vadd.f32 1.0, %v9170_v19  ;;  %9179 = vrcp.f32 %v17630_v58  ;;  %v17651_v49 = vmul.f32 -1.442695, %v5931_v0  ;;  %vm17656_vm6 = vmor %vm6142_vm15, %vm6143_vm1  ;;  %v20939_v12 = vld [vmem:[#allocation226_spill] sm:$0xff] }
 0x499   :  { %v6571_v40 = vmul.f32 %v5838_v14, %v20932_v54  ;;  %v17660_v30 = vmul.f32 -1.442695, %v5917_v42  ;;  %v17662_v7 = vmul.f32 -1.442695, %v5933_v23  ;;  %v6825_v48 = vpop.permute.xlu0 %6824  ;;  %v6145_v22 = vsel %vm17656_vm6, %v20911_v47, %v6141_v43  ;;  %v20936_v42 = vld [vmem:[#allocation116_spill] sm:$0xff]  ;;  %v20937_v23 = vld [vmem:[#allocation277_spill] sm:$0xff] }
 0x49a   :  { %v6065_v0 = vmul.f32 %v20920_v28, %v6064_v63  ;;  %v17669_v19 = vadd.f32 1.0, %v9174_v4  ;;  %v6149_v37 = vor.u32 1.1754944e-38, %v6148_v59  ;;  %v6185_v56 = vmul.f32 %v20926_v3, %v6184_v36 }
 0x49b   :  { %7126 = vrot.lane.b32.xlu0 %v7058_v25, %s9212_s19  ;;  %v17671_v33 = vadd.f32 %v6825_v48, %v6571_v40  ;;  %vm6147_vm14 = vcmp.eq.f32.partialorder %v6146_v53, 8.507059e+37  ;;  %vm6067_vm9 = vweird.f32 %v20919_v29  ;;  %vm6068_vm2 = vweird.f32 %v20920_v28 }
 0x49c   :  { %v6108_v14 = vmul.f32 %v20937_v23, %v20936_v42  ;;  %v17678_v47 = vpop.eup %9175  ;;  %v6150_v43 = vsel %vm6147_vm14, %v6149_v37, %v6145_v22  ;;  %v6071_v63 = vand.u32 2147483647, %v20919_v29  ;;  %v6168_v59 = vmul.f32 %v20939_v12, %v20938_v9  ;;  %v20940_v37 = vld [vmem:[#allocation83_spill] sm:$0xff]  ;;  %vm17708_vm5 = vmor %vm6067_vm9, %vm6068_vm2 }
 0x49d   :  { %20935 = vst [vmem:[#allocation234_spill] sm:$0xff] %v17671_v33  ;;  %9181 = vtanh.f32 %v17671_v33  ;;  %v17684_v25 = vpop.eup %9177  ;;  %v6066_v4 = vadd.f32 %v20920_v28, %v6065_v0  ;;  %v6073_v53 = vand.u32 2147483648, %v20919_v29  ;;  %vm6188_vm10 = vweird.f32 %v20926_v3  ;;  %vm20956_vm2 = vmmov %vm20941_vm13 }
 0x49e   :  { %v6969_v36 = vpop.permute.xlu2 %6968  ;;  %v6191_v54 = vand.u32 2147483647, %v20925_v32  ;;  %v4491_v40 = vpop.permute.xlu1 %4490  ;;  %v6186_v22 = vadd.f32 %v20926_v3, %v6185_v56  ;;  %v6169_v16 = vsub.f32 1.0, %v6168_v59  ;;  %v6193_v2 = vand.u32 2147483648, %v20925_v32  ;;  %v20950_v56 = vld [vmem:[#allocation95_spill] sm:$0xff] }
 0x49f   :  { %v17690_v60 = vpop.eup %9179  ;;  %v7059_v48 = vmul.f32 %v6969_v36, %v6150_v43  ;;  %v4556_v33 = vsel %vm20941_vm13, %v4491_v40, %v20940_v37  ;;  %v6109_v61 = vsub.f32 1.0, %v6108_v14  ;;  %v6228_v0 = vmul.f32 %v17526_v57, %v17377_v55  ;;  %v20949_v37 = vld [vmem:[#allocation184_spill] sm:$0xff] }
 0x4a0   :  { %4589 = vst.msk [vmem:[%s18420_s4 + $0xf8] sm:$0xff] %vm20942_vm11, %v4556_v33  ;;  %v6178_v44 = vand.u32 2147483648, %v20938_v9  ;;  %vm6187_vm7 = vweird.f32 %v20925_v32  ;;  %v6170_v14 = vmul.f32 %v20939_v12, %v6169_v16  ;;  %vm6173_vm12 = vweird.f32 %v20939_v12 }
 0x4a1   :  { %7128 = vrot.lane.b32.xlu1 %v7059_v48, %s9212_s19  ;;  %v6176_v33 = vand.u32 2147483647, %v20938_v9  ;;  %9183 = vrcp.f32 %v17669_v19  ;;  %v6070_v43 = vsel %vm17708_vm5, %v20920_v28, %v6066_v4  ;;  %vm17720_vm3 = vcmp.eq.f32.partialorder %v6071_v63, 8.507059e+37  ;;  %v6959_v36 = vpop.permute.xlu0 %6958  ;;  %vm17726_vm4 = vmor %vm6187_vm7, %vm6188_vm10 }
 0x4a2   :  { %v6074_v59 = vor.u32 1.1754944e-38, %v6073_v53  ;;  %v6190_v40 = vsel %vm17726_vm4, %v20926_v3, %v6186_v22  ;;  %vm6192_vm0 = vcmp.eq.f32.partialorder %v6191_v54, 8.507059e+37  ;;  %v6171_v28 = vadd.f32 %v20939_v12, %v6170_v14  ;;  %v20951_v54 = vld [vmem:[#allocation158_spill] sm:$0xff]  ;;  %v20952_v22 = vld [vmem:[#allocation317_spill] sm:$0xff] }
 0x4a3   :  { %v9182_v32 = vpop.eup %9181  ;;  %vm6172_vm1 = vweird.f32 %v20938_v9  ;;  %v6194_v63 = vor.u32 1.1754944e-38, %v6193_v2  ;;  %v6110_v4 = vmul.f32 %v20937_v23, %v6109_v61  ;;  %v6229_v53 = vsub.f32 1.0, %v6228_v0 }
 0x4a4   :  { %7016 = vrot.lane.b32.xlu2 %v9182_v32, %s9213_s12  ;;  %vm6174_vm8 = vmor %vm6172_vm1, %vm6173_vm12  ;;  %v6179_v48 = vor.u32 1.1754944e-38, %v6178_v44  ;;  %v6153_v5 = vmul.f32 %v20950_v56, %v20949_v37  ;;  %vm6177_vm15 = vcmp.eq.f32.partialorder %v6176_v33, 8.507059e+37  ;;  %v6213_v14 = vmul.f32 %v20952_v22, %v20951_v54 }
 0x4a5   :  { %v6175_v3 = vsel %vm6174_vm8, %v20939_v12, %v6171_v28  ;;  %9185 = vpow2.f32 %v17660_v30  ;;  %v6075_v2 = vsel %vm17720_vm3, %v6074_v59, %v6070_v43  ;;  %v6195_v61 = vsel %vm6192_vm0, %v6194_v63, %v6190_v40  ;;  %v20953_v40 = vld [vmem:[#allocation223_spill] sm:$0xff]  ;;  %v20954_v28 = vld [vmem:[#allocation81_spill] sm:$0xff] }
 0x4a6   :  { %v6975_v9 = vpop.permute.xlu2 %6974  ;;  %v6180_v0 = vsel %vm6177_vm15, %v6179_v48, %v6175_v3  ;;  %v6973_v16 = vpop.permute.xlu1 %6972  ;;  %v6116_v44 = vand.u32 2147483647, %v20936_v42  ;;  %v6118_v52 = vand.u32 2147483648, %v20936_v42  ;;  %v6111_v33 = vadd.f32 %v20937_v23, %v6110_v4 }
 0x4a7   :  { %v7062_v32 = vmul.f32 %v6975_v9, %v6195_v61  ;;  %v7061_v17 = vmul.f32 %v6973_v16, %v6180_v0  ;;  %v17749_v12 = vpop.eup %9183  ;;  %vm6112_vm6 = vweird.f32 %v20936_v42  ;;  %vm6113_vm14 = vweird.f32 %v20937_v23  ;;  %v20955_v61 = vld [vmem:[#allocation80_spill] sm:$0xff] }
 0x4a8   :  { %v6214_v30 = vsub.f32 1.0, %v6213_v14  ;;  %v6230_v43 = vmul.f32 %v17526_v57, %v6229_v53  ;;  %v6154_v29 = vsub.f32 1.0, %v6153_v5  ;;  %v6223_v59 = vand.u32 2147483648, %v20951_v54  ;;  %vm17767_vm10 = vmor %vm6112_vm6, %vm6113_vm14 }
 0x4a9   :  { %7134 = vrot.lane.b32.xlu1 %v7062_v32, %s9212_s19  ;;  %7132 = vrot.lane.b32.xlu0 %v7061_v17, %s9212_s19  ;;  %v6303_v63 = vmul.f32 %v20954_v28, %v20953_v40  ;;  %v7054_v48 = vmul.f32 %v6959_v36, %v6075_v2  ;;  %v4489_v3 = vpop.permute.xlu0 %4488  ;;  %vm6218_vm9 = vweird.f32 %v20952_v22  ;;  %v6221_v14 = vand.u32 2147483647, %v20951_v54 }
 0x4aa   :  { %v6215_v4 = vmul.f32 %v20952_v22, %v6214_v30  ;;  %v4555_v9 = vsel %vm20956_vm2, %v4489_v3, %v20955_v61  ;;  %vm17771_vm13 = vcmp.eq.f32.partialorder %v6116_v44, 8.507059e+37  ;;  %v6119_v36 = vor.u32 1.1754944e-38, %v6118_v52  ;;  %v20962_v30 = vld [vmem:[#allocation311_spill] sm:$0xff] }
 0x4ab   :  { %v6161_v53 = vand.u32 2147483647, %v20949_v37  ;;  %v17776_v2 = vpop.eup %9185  ;;  %4588 = vst.msk [vmem:[%s18420_s4 + $0xf0] sm:$0xff] %vm20942_vm11, %v4555_v9  ;;  %v6115_v42 = vsel %vm17767_vm10, %v20937_v23, %v6111_v33  ;;  %vm6233_vm5 = vweird.f32 %v17526_v57  ;;  %vm6157_vm7 = vweird.f32 %v20949_v37  ;;  %v20961_v33 = vld [vmem:[#allocation307_spill] sm:$0xff] }
 0x4ac   :  { %7118 = vrot.lane.b32.xlu2 %v7054_v48, %s9212_s19  ;;  %v6216_v52 = vadd.f32 %v20952_v22, %v6215_v4  ;;  %vm6217_vm12 = vweird.f32 %v20951_v54  ;;  %v6231_v0 = vadd.f32 %v17526_v57, %v6230_v43  ;;  %v6224_v16 = vor.u32 1.1754944e-38, %v6223_v59 }
 0x4ad   :  { %vm6219_vm3 = vmor %vm6217_vm12, %vm6218_vm9  ;;  %v6258_v32 = vmul.f32 %v17690_v60, %v17630_v58  ;;  %v6304_v44 = vsub.f32 1.0, %v6303_v63  ;;  %v6155_v23 = vmul.f32 %v20950_v56, %v6154_v29  ;;  %v6198_v48 = vmul.f32 %v20962_v30, %v20961_v33 }
 0x4ae   :  { %v6220_v3 = vsel %vm6219_vm3, %v20952_v22, %v6216_v52  ;;  %vm6222_vm4 = vcmp.eq.f32.partialorder %v6221_v14, 8.507059e+37  ;;  %v6979_v4 = vpop.permute.xlu1 %6978  ;;  %vm6232_vm0 = vweird.f32 %v17377_v55  ;;  %v6238_v54 = vand.u32 2147483648, %v17377_v55 }
 0x4af   :  { %v6225_v43 = vsel %vm6222_vm4, %v6224_v16, %v6220_v3  ;;  %v6259_v61 = vsub.f32 1.0, %v6258_v32  ;;  %v6120_v59 = vsel %vm17771_vm13, %v6119_v36, %v6115_v42  ;;  %v6236_v63 = vand.u32 2147483647, %v17377_v55  ;;  %vm17807_vm1 = vmor %vm6232_vm0, %vm6233_vm5 }
 0x4b0   :  { %v7064_v9 = vmul.f32 %v6979_v4, %v6225_v43  ;;  %v6268_v29 = vand.u32 2147483648, %v17630_v58  ;;  %vm6263_vm8 = vweird.f32 %v17690_v60  ;;  %v6266_v17 = vand.u32 2147483647, %v17630_v58 }
 0x4b1   :  { %v6260_v14 = vmul.f32 %v17690_v60, %v6259_v61  ;;  %v6305_v5 = vmul.f32 %v20954_v28, %v6304_v44  ;;  %v6965_v36 = vpop.permute.xlu0 %6964  ;;  %v6235_v55 = vsel %vm17807_vm1, %v17526_v57, %v6231_v0  ;;  %v6156_v42 = vadd.f32 %v20950_v56, %v6155_v23  ;;  %v20965_v0 = vld [vmem:[#allocation188_spill] sm:$0xff]  ;;  %v20966_v23 = vld [vmem:[#allocation162_spill] sm:$0xff] }
 0x4b2   :  { %vm6158_vm15 = vweird.f32 %v20950_v56  ;;  %v6199_v52 = vsub.f32 1.0, %v6198_v48  ;;  %7138 = vrot.lane.b32.xlu0 %v7064_v9, %s9212_s19  ;;  %v7057_v16 = vmul.f32 %v6965_v36, %v6120_v59  ;;  %v6239_v32 = vor.u32 1.1754944e-38, %v6238_v54 }
 0x4b3   :  { %v6261_v3 = vadd.f32 %v17690_v60, %v6260_v14  ;;  %vm6262_vm6 = vweird.f32 %v17630_v58  ;;  %vm6237_vm14 = vcmp.eq.f32.partialorder %v6236_v63, 8.507059e+37  ;;  %v6163_v44 = vand.u32 2147483648, %v20949_v37  ;;  %vm17831_vm2 = vmor %vm6157_vm7, %vm6158_vm15 }
 0x4b4   :  { %vm6264_vm9 = vmor %vm6262_vm6, %vm6263_vm8  ;;  %v6269_v57 = vor.u32 1.1754944e-38, %v6268_v29  ;;  %v6348_v4 = vmul.f32 %v20966_v23, %v20965_v0  ;;  %7124 = vrot.lane.b32.xlu2 %v7057_v16, %s9212_s19  ;;  %v6240_v48 = vsel %vm6237_vm14, %v6239_v32, %v6235_v55  ;;  %vm6267_vm10 = vcmp.eq.f32.partialorder %v6266_v17, 8.507059e+37  ;;  %v20970_v55 = vld [vmem:[#allocation146_spill] sm:$0xff] }
 0x4b5   :  { %v6265_v58 = vsel %vm6264_vm9, %v17690_v60, %v6261_v3  ;;  %v6306_v43 = vadd.f32 %v20954_v28, %v6305_v5  ;;  %v6160_v59 = vsel %vm17831_vm2, %v20950_v56, %v6156_v42  ;;  %v6200_v63 = vmul.f32 %v20962_v30, %v6199_v52  ;;  %v20969_v5 = vld [vmem:[#allocation135_spill] sm:$0xff]  ;;  %v20971_v42 = vld [vmem:[#allocation197_spill] sm:$0xff] }
 0x4b6   :  { %v6981_v61 = vpop.permute.xlu2 %6980  ;;  %v6243_v9 = vmul.f32 %v17684_v25, %v17607_v35  ;;  %v6270_v29 = vsel %vm6267_vm10, %v6269_v57, %v6265_v58  ;;  %v6985_v22 = vpop.permute.xlu1 %6984  ;;  %vm6308_vm13 = vweird.f32 %v20954_v28  ;;  %v6349_v60 = vsub.f32 1.0, %v6348_v4  ;;  %v20972_v52 = vld [vmem:[#allocation229_spill] sm:$0xff] }
 0x4b7   :  { %v7065_v14 = vmul.f32 %v6981_v61, %v6240_v48  ;;  %v7067_v36 = vmul.f32 %v6985_v22, %v6270_v29  ;;  %9187 = vpow2.f32 %v17651_v49  ;;  %v6164_v17 = vor.u32 1.1754944e-38, %v6163_v44 }
 0x4b8   :  { %v6318_v16 = vmul.f32 %v20970_v55, %v20969_v5  ;;  %v6313_v56 = vand.u32 2147483648, %v20953_v40  ;;  %v5932_v32 = vadd.f32 %v20972_v52, %v20971_v42  ;;  %vm6162_vm11 = vcmp.eq.f32.partialorder %v6161_v53, 8.507059e+37 }
 0x4b9   :  { %7140 = vrot.lane.b32.xlu1 %v7065_v14, %s9212_s19  ;;  %vm6307_vm5 = vweird.f32 %v20953_v40  ;;  %v6311_v3 = vand.u32 2147483647, %v20953_v40  ;;  %9189 = vpow2.f32 %v17662_v7  ;;  %v6165_v49 = vsel %vm6162_vm11, %v6164_v17, %v6160_v59  ;;  %v6971_v44 = vpop.permute.xlu0 %6970 }
 0x4ba   :  { %v6201_v57 = vadd.f32 %v20962_v30, %v6200_v63  ;;  %vm6203_vm7 = vweird.f32 %v20962_v30  ;;  %7144 = vrot.lane.b32.xlu0 %v7067_v36, %s9212_s19  ;;  %vm17861_vm12 = vmor %vm6307_vm5, %vm6308_vm13  ;;  %v7060_v37 = vmul.f32 %v6971_v44, %v6165_v49  ;;  %v6244_v53 = vsub.f32 1.0, %v6243_v9  ;;  %v20979_v44 = vld [vmem:[#allocation292_spill] sm:$0xff] }
 0x4bb   :  { %v6310_v7 = vsel %vm17861_vm12, %v20954_v28, %v6306_v43  ;;  %v6350_v40 = vmul.f32 %v20966_v23, %v6349_v60  ;;  %vm6202_vm3 = vweird.f32 %v20961_v33  ;;  %v6208_v48 = vand.u32 2147483648, %v20961_v33 }
 0x4bc   :  { %v6319_v54 = vsub.f32 1.0, %v6318_v16  ;;  %v6314_v58 = vor.u32 1.1754944e-38, %v6313_v56  ;;  %9191 = vrcp.f32 %v17648_v10  ;;  %7130 = vrot.lane.b32.xlu2 %v7060_v37, %s9212_s19  ;;  %vm17873_vm4 = vmor %vm6202_vm3, %vm6203_vm7  ;;  %v6206_v59 = vand.u32 2147483647, %v20961_v33 }
 0x4bd   :  { %vm6312_vm0 = vcmp.eq.f32.partialorder %v6311_v3, 8.507059e+37  ;;  %v9188_v28 = vpop.eup %9187  ;;  %v17879_v43 = vadd.f32 1.0, %v17776_v2  ;;  %v6273_v63 = vmul.f32 %v17749_v12, %v17669_v19  ;;  %v6205_v9 = vsel %vm17873_vm4, %v20962_v30, %v6201_v57  ;;  %v20980_v57 = vld [vmem:[#allocation297_spill] sm:$0xff] }
 0x4be   :  { %v6315_v29 = vsel %vm6312_vm0, %v6314_v58, %v6310_v7  ;;  %v6245_v14 = vmul.f32 %v17684_v25, %v6244_v53  ;;  %v6351_v60 = vadd.f32 %v20966_v23, %v6350_v40  ;;  %vm6353_vm1 = vweird.f32 %v20966_v23 }
 0x4bf   :  { %v6991_v22 = vpop.permute.xlu1 %6990  ;;  %v9190_v33 = vpop.eup %9189  ;;  %v7952_v17 = vmul.f32 -1.442695, %v5932_v32  ;;  %v6209_v2 = vor.u32 1.1754944e-38, %v6208_v48  ;;  %v6320_v16 = vmul.f32 %v20970_v55, %v6319_v54  ;;  %v6358_v56 = vand.u32 2147483648, %v20965_v0 }
 0x4c0   :  { %v7070_v36 = vmul.f32 %v6991_v22, %v6315_v29  ;;  %v17891_v42 = vadd.f32 1.0, %v9188_v28  ;;  %vm6207_vm8 = vcmp.eq.f32.partialorder %v6206_v59, 8.507059e+37  ;;  %vm6352_vm15 = vweird.f32 %v20965_v0  ;;  %v17921_v28 = vpop.permute.xlu2 %6986 }
 0x4c1   :  { %v6356_v30 = vand.u32 2147483647, %v20965_v0  ;;  %9193 = vrcp.f32 %v17879_v43  ;;  %v6274_v52 = vsub.f32 1.0, %v6273_v63  ;;  %v6210_v3 = vsel %vm6207_vm8, %v6209_v2, %v6205_v9  ;;  %v6977_v49 = vpop.permute.xlu0 %6976  ;;  %vm17899_vm6 = vmor %vm6352_vm15, %vm6353_vm1 }
 0x4c2   :  { %7150 = vrot.lane.b32.xlu0 %v7070_v36, %s9212_s19  ;;  %v6393_v4 = vmul.f32 %v20980_v57, %v20979_v44  ;;  %v17905_v37 = vpop.eup %9191  ;;  %v7063_v53 = vmul.f32 %v6977_v49, %v6210_v3  ;;  %v6246_v0 = vadd.f32 %v17684_v25, %v6245_v14  ;;  %vm6248_vm14 = vweird.f32 %v17684_v25  ;;  %v20988_v3 = vld [vmem:[#allocation284_spill] sm:$0xff] }
 0x4c3   :  { %v6355_v7 = vsel %vm17899_vm6, %v20966_v23, %v6351_v60  ;;  %v6253_v40 = vand.u32 2147483648, %v17607_v35  ;;  %v6321_v48 = vadd.f32 %v20970_v55, %v6320_v16  ;;  %vm6323_vm9 = vweird.f32 %v20970_v55  ;;  %v20985_v60 = vld [vmem:[#allocation78_spill] sm:$0xff] }
 0x4c4   :  { %v6359_v54 = vor.u32 1.1754944e-38, %v6358_v56  ;;  %v17915_v58 = vadd.f32 1.0, %v9190_v33  ;;  %7136 = vrot.lane.b32.xlu2 %v7063_v53, %s9212_s19  ;;  %vm6247_vm2 = vweird.f32 %v17607_v35  ;;  %v6251_v61 = vand.u32 2147483647, %v17607_v35  ;;  %v20986_v33 = vld [vmem:[#allocation275_spill] sm:$0xff] }
 0x4c5   :  { %vm6357_vm10 = vcmp.eq.f32.partialorder %v6356_v30, 8.507059e+37  ;;  %v6275_v59 = vmul.f32 %v17749_v12, %v6274_v52  ;;  %vm17923_vm13 = vmor %vm6247_vm2, %vm6248_vm14  ;;  %vm6322_vm11 = vweird.f32 %v20969_v5  ;;  %v6394_v29 = vsub.f32 1.0, %v6393_v4  ;;  %v20987_v52 = vld [vmem:[#allocation280_spill] sm:$0xff] }
 0x4c6   :  { %v6360_v63 = vsel %vm6357_vm10, %v6359_v54, %v6355_v7  ;;  %v6250_v22 = vsel %vm17923_vm13, %v17684_v25, %v6246_v0  ;;  %vm17933_vm5 = vmor %vm6322_vm11, %vm6323_vm9  ;;  %v6328_v14 = vand.u32 2147483648, %v20969_v5  ;;  %v6333_v2 = vmul.f32 %v20986_v33, %v20985_v60 }
 0x4c7   :  { %v6997_v9 = vpop.permute.xlu1 %6996  ;;  %v17940_v16 = vpop.eup %9193  ;;  %v6254_v56 = vor.u32 1.1754944e-38, %v6253_v40  ;;  %v6325_v30 = vsel %vm17933_vm5, %v20970_v55, %v6321_v48  ;;  %v6326_v25 = vand.u32 2147483647, %v20969_v5  ;;  %v6363_v49 = vmul.f32 %v20988_v3, %v20987_v52  ;;  %v20989_v40 = vld [vmem:[#allocation313_spill] sm:$0xff]  ;;  %v20990_v5 = vld [vmem:[#allocation235_spill] sm:$0xff] }
 0x4c8   :  { %v7073_v36 = vmul.f32 %v6997_v9, %v6360_v63  ;;  %vm6278_vm7 = vweird.f32 %v17749_v12  ;;  %v6281_v32 = vand.u32 2147483647, %v17669_v19  ;;  %v6283_v4 = vand.u32 2147483648, %v17669_v19 }
 0x4c9   :  { %vm6252_vm12 = vcmp.eq.f32.partialorder %v6251_v61, 8.507059e+37  ;;  %v6276_v53 = vadd.f32 %v17749_v12, %v6275_v59  ;;  %v6983_v7 = vpop.permute.xlu0 %6982  ;;  %v6395_v55 = vmul.f32 %v20980_v57, %v6394_v29  ;;  %v6438_v48 = vmul.f32 %v20990_v5, %v20989_v40 }
 0x4ca   :  { %v6255_v0 = vsel %vm6252_vm12, %v6254_v56, %v6250_v22  ;;  %7156 = vrot.lane.b32.xlu0 %v7073_v36, %s9212_s19  ;;  %9195 = vrcp.f32 %v17891_v42  ;;  %v6329_v23 = vor.u32 1.1754944e-38, %v6328_v14  ;;  %v6334_v63 = vsub.f32 1.0, %v6333_v2 }
 0x4cb   :  { %v7066_v54 = vmul.f32 %v6983_v7, %v6255_v0  ;;  %9197 = vpow2.f32 %v7952_v17  ;;  %vm6277_vm3 = vweird.f32 %v17669_v19  ;;  %vm6327_vm4 = vcmp.eq.f32.partialorder %v6326_v25, 8.507059e+37  ;;  %v20995_v25 = vld [vmem:[#allocation41_spill] sm:$0xff] }
 0x4cc   :  { %v6364_v61 = vsub.f32 1.0, %v6363_v49  ;;  %9199 = vrcp.f32 %v17915_v58  ;;  %vm17961_vm0 = vmor %vm6277_vm3, %vm6278_vm7  ;;  %vm17965_vm1 = vcmp.eq.f32.partialorder %v6281_v32, 8.507059e+37  ;;  %v6284_v29 = vor.u32 1.1754944e-38, %v6283_v4  ;;  %v20996_v49 = vld [vmem:[#allocation174_spill] sm:$0xff] }
 0x4cd   :  { %7142 = vrot.lane.b32.xlu2 %v7066_v54, %s9212_s19  ;;  %v6330_v17 = vsel %vm6327_vm4, %v6329_v23, %v6325_v30  ;;  %v6280_v19 = vsel %vm17961_vm0, %v17749_v12, %v6276_v53  ;;  %v6396_v35 = vadd.f32 %v20980_v57, %v6395_v55  ;;  %vm6398_vm8 = vweird.f32 %v20980_v57 }
 0x4ce   :  { %v6993_v22 = vpop.permute.xlu2 %6992  ;;  %v6439_v14 = vsub.f32 1.0, %v6438_v48  ;;  %v6335_v2 = vmul.f32 %v20986_v33, %v6334_v63  ;;  %v6403_v56 = vand.u32 2147483648, %v20979_v44  ;;  %v6378_v32 = vmul.f32 %v20996_v49, %v20995_v25  ;;  %v20999_v63 = vld [vmem:[#allocation119_spill] sm:$0xff] }
 0x4cf   :  { %v7071_v36 = vmul.f32 %v6993_v22, %v6330_v17  ;;  %v6365_v30 = vmul.f32 %v20988_v3, %v6364_v61  ;;  %v6371_v4 = vand.u32 2147483647, %v20987_v52  ;;  %vm6397_vm15 = vweird.f32 %v20979_v44  ;;  %v21000_v61 = vld [vmem:[#allocation193_spill] sm:$0xff] }
 0x4d0   :  { %v6401_v12 = vand.u32 2147483647, %v20979_v44  ;;  %v17983_v53 = vpop.eup %9195  ;;  %v6285_v0 = vsel %vm17965_vm1, %v6284_v29, %v6280_v19  ;;  %vm6367_vm6 = vweird.f32 %v20987_v52  ;;  %vm6368_vm14 = vweird.f32 %v20988_v3  ;;  %vm17994_vm9 = vmor %vm6397_vm15, %vm6398_vm8 }
 0x4d1   :  { %7152 = vrot.lane.b32.xlu1 %v7071_v36, %s9212_s19  ;;  %v6288_v7 = vmul.f32 %v17940_v16, %v17879_v43  ;;  %v17998_v44 = vpop.eup %9197  ;;  %v6373_v48 = vand.u32 2147483648, %v20987_v52  ;;  %v18001_v54 = vpop.permute.xlu0 %6988  ;;  %v6400_v23 = vsel %vm17994_vm9, %v20980_v57, %v6396_v35  ;;  %v6408_v59 = vmul.f32 %v21000_v61, %v20999_v63  ;;  %vm18037_vm12 = vmor %vm6367_vm6, %vm6368_vm14 }
 0x4d2   :  { %v6440_v9 = vmul.f32 %v20990_v5, %v6439_v14  ;;  %v18009_v29 = vpop.eup %9199  ;;  %v6336_v17 = vadd.f32 %v20986_v33, %v6335_v2  ;;  %vm6338_vm2 = vweird.f32 %v20986_v33  ;;  %v6404_v19 = vor.u32 1.1754944e-38, %v6403_v56 }
 0x4d3   :  { %v6379_v22 = vsub.f32 1.0, %v6378_v32  ;;  %v6366_v36 = vadd.f32 %v20988_v3, %v6365_v30  ;;  %vm18014_vm10 = vcmp.eq.f32.partialorder %v6371_v4, 8.507059e+37  ;;  %v6343_v57 = vand.u32 2147483648, %v20985_v60 }
 0x4d4   :  { %vm6402_vm13 = vcmp.eq.f32.partialorder %v6401_v12, 8.507059e+37  ;;  %v6289_v35 = vsub.f32 1.0, %v6288_v7  ;;  %vm6337_vm11 = vweird.f32 %v20985_v60  ;;  %v6341_v14 = vand.u32 2147483647, %v20985_v60 }
 0x4d5   :  { %v6405_v55 = vsel %vm6402_vm13, %v6404_v19, %v6400_v23  ;;  %v7003_v2 = vpop.permute.xlu1 %7002  ;;  %vm18021_vm5 = vmor %vm6337_vm11, %vm6338_vm2  ;;  %v6409_v32 = vsub.f32 1.0, %v6408_v59  ;;  %v6441_v30 = vadd.f32 %v20990_v5, %v6440_v9  ;;  %vm6443_vm7 = vweird.f32 %v20990_v5 }
 0x4d6   :  { %v7076_v56 = vmul.f32 %v7003_v2, %v6405_v55  ;;  %v7068_v4 = vmul.f32 %v17921_v28, %v6285_v0  ;;  %v6340_v12 = vsel %vm18021_vm5, %v20986_v33, %v6336_v17  ;;  %v6448_v60 = vand.u32 2147483648, %v20989_v40  ;;  %v6999_v55 = vpop.permute.xlu2 %6998 }
 0x4d7   :  { %v6380_v7 = vmul.f32 %v20996_v49, %v6379_v22  ;;  %v6374_v59 = vor.u32 1.1754944e-38, %v6373_v48  ;;  %v6344_v9 = vor.u32 1.1754944e-38, %v6343_v57  ;;  %vm6442_vm3 = vweird.f32 %v20989_v40  ;;  %v21009_v22 = vld [vmem:[#allocation68_spill] sm:$0xff] }
 0x4d8   :  { %7162 = vrot.lane.b32.xlu0 %v7076_v56, %s9212_s19  ;;  %v6446_v62 = vand.u32 2147483647, %v20989_v40  ;;  %v6370_v28 = vsel %vm18037_vm12, %v20988_v3, %v6366_v36  ;;  %v6290_v33 = vmul.f32 %v17940_v16, %v6289_v35  ;;  %vm6292_vm4 = vweird.f32 %v17879_v43  ;;  %vm18052_vm1 = vmor %vm6442_vm3, %vm6443_vm7  ;;  %v21010_v36 = vld [vmem:[#allocation249_spill] sm:$0xff] }
 0x4d9   :  { %7146 = vrot.lane.b32.xlu1 %v7068_v4, %s9212_s19  ;;  %vm6342_vm0 = vcmp.eq.f32.partialorder %v6341_v14, 8.507059e+37  ;;  %v6995_v48 = vpop.permute.xlu0 %6994  ;;  %v6410_v40 = vmul.f32 %v21000_v61, %v6409_v32  ;;  %v6445_v3 = vsel %vm18052_vm1, %v20990_v5, %v6441_v30  ;;  %vm6383_vm8 = vweird.f32 %v20996_v49 }
 0x4da   :  { %v6345_v0 = vsel %vm6342_vm0, %v6344_v9, %v6340_v12  ;;  %v6449_v19 = vor.u32 1.1754944e-38, %v6448_v60  ;;  %v6453_v57 = vmul.f32 %v21010_v36, %v21009_v22  ;;  %v6381_v35 = vadd.f32 %v20996_v49, %v6380_v7  ;;  %v21014_v9 = vld [vmem:[#allocation308_spill] sm:$0xff] }
 0x4db   :  { %v7072_v17 = vmul.f32 %v6995_v48, %v6345_v0  ;;  %v6375_v14 = vsel %vm18014_vm10, %v6374_v59, %v6370_v28  ;;  %vm6293_vm15 = vweird.f32 %v17940_v16  ;;  %vm6447_vm6 = vcmp.eq.f32.partialorder %v6446_v62, 8.507059e+37  ;;  %v21013_v59 = vld [vmem:[#allocation303_spill] sm:$0xff] }
 0x4dc   :  { %v6388_v2 = vand.u32 2147483648, %v20995_v25  ;;  %v6450_v5 = vsel %vm6447_vm6, %v6449_v19, %v6445_v3  ;;  %vm6382_vm14 = vweird.f32 %v20995_v25  ;;  %v6386_v32 = vand.u32 2147483647, %v20995_v25  ;;  %vm18095_vm10 = vmor %vm6292_vm4, %vm6293_vm15 }
 0x4dd   :  { %7154 = vrot.lane.b32.xlu2 %v7072_v17, %s9212_s19  ;;  %v7009_v56 = vpop.permute.xlu1 %7008  ;;  %v6483_v30 = vmul.f32 %v17905_v37, %v17648_v10  ;;  %v6291_v27 = vadd.f32 %v17940_v16, %v6290_v33  ;;  %v6411_v4 = vadd.f32 %v21000_v61, %v6410_v40  ;;  %vm6413_vm9 = vweird.f32 %v21000_v61  ;;  %vm18078_vm2 = vmor %vm6382_vm14, %vm6383_vm8 }
 0x4de   :  { %v7079_v12 = vmul.f32 %v7009_v56, %v6450_v5  ;;  %v7074_v7 = vmul.f32 %v6999_v55, %v6375_v14  ;;  %v6454_v23 = vsub.f32 1.0, %v6453_v57  ;;  %v6385_v25 = vsel %vm18078_vm2, %v20996_v49, %v6381_v35 }
 0x4df   :  { %v6423_v62 = vmul.f32 %v21014_v9, %v21013_v59  ;;  %v6296_v28 = vand.u32 2147483647, %v17879_v43  ;;  %v6298_v33 = vand.u32 2147483648, %v17879_v43  ;;  %v6418_v52 = vand.u32 2147483648, %v20999_v63 }
 0x4e0   :  { %7168 = vrot.lane.b32.xlu0 %v7079_v12, %s9212_s19  ;;  %v6389_v0 = vor.u32 1.1754944e-38, %v6388_v2  ;;  %vm6412_vm13 = vweird.f32 %v20999_v63  ;;  %v6416_v49 = vand.u32 2147483647, %v20999_v63  ;;  %vm6387_vm11 = vcmp.eq.f32.partialorder %v6386_v32, 8.507059e+37 }
 0x4e1   :  { %7158 = vrot.lane.b32.xlu1 %v7074_v7, %s9212_s19  ;;  %v6484_v40 = vsub.f32 1.0, %v6483_v30  ;;  %v18103_v3 = vadd.f32 1.0, %v17998_v44  ;;  %v6295_v17 = vsel %vm18095_vm10, %v17940_v16, %v6291_v27  ;;  %vm18110_vm5 = vmor %vm6412_vm13, %vm6413_vm9  ;;  %v7001_v57 = vpop.permute.xlu0 %7000  ;;  %v6455_v35 = vmul.f32 %v21010_v36, %v6454_v23 }
 0x4e2   :  { %v6390_v19 = vsel %vm6387_vm11, %v6389_v0, %v6385_v25  ;;  %v6415_v63 = vsel %vm18110_vm5, %v21000_v61, %v6411_v4  ;;  %v6424_v14 = vsub.f32 1.0, %v6423_v62  ;;  %v6299_v55 = vor.u32 1.1754944e-38, %v6298_v33 }
 0x4e3   :  { %v7075_v44 = vmul.f32 %v7001_v57, %v6390_v19  ;;  %v6419_v2 = vor.u32 1.1754944e-38, %v6418_v52  ;;  %vm6297_vm7 = vcmp.eq.f32.partialorder %v6296_v28, 8.507059e+37  ;;  %vm6417_vm12 = vcmp.eq.f32.partialorder %v6416_v49, 8.507059e+37 }
 0x4e4   :  { %v6485_v16 = vmul.f32 %v17905_v37, %v6484_v40  ;;  %v6528_v5 = vmul.f32 %v18009_v29, %v17915_v58  ;;  %9201 = vrcp.f32 %v18103_v3  ;;  %v6300_v56 = vsel %vm6297_vm7, %v6299_v55, %v6295_v17 }
 0x4e5   :  { %7160 = vrot.lane.b32.xlu2 %v7075_v44, %s9212_s19  ;;  %v6420_v32 = vsel %vm6417_vm12, %v6419_v2, %v6415_v63  ;;  %vm6457_vm3 = vweird.f32 %v21009_v22  ;;  %v6456_v27 = vadd.f32 %v21010_v36, %v6455_v35  ;;  %vm6458_vm4 = vweird.f32 %v21010_v36 }
 0x4e6   :  { %v7005_v61 = vpop.permute.xlu2 %7004  ;;  %v6425_v4 = vmul.f32 %v21014_v9, %v6424_v14  ;;  %v6461_v12 = vand.u32 2147483647, %v21009_v22  ;;  %v6463_v60 = vand.u32 2147483648, %v21009_v22  ;;  %v6431_v7 = vand.u32 2147483647, %v21013_v59  ;;  %vm18136_vm8 = vmor %vm6457_vm3, %vm6458_vm4 }
 0x4e7   :  { %v7077_v30 = vmul.f32 %v7005_v61, %v6420_v32  ;;  %v6468_v23 = vmul.f32 %v17678_v47, %v17566_v11  ;;  %v6486_v25 = vadd.f32 %v17905_v37, %v6485_v16  ;;  %vm6487_vm0 = vweird.f32 %v17648_v10 }
 0x4e8   :  { %vm6488_vm1 = vweird.f32 %v17905_v37  ;;  %v6529_v62 = vsub.f32 1.0, %v6528_v5  ;;  %v6491_v22 = vand.u32 2147483647, %v17648_v10  ;;  %v6493_v33 = vand.u32 2147483648, %v17648_v10 }
 0x4e9   :  { %7164 = vrot.lane.b32.xlu1 %v7077_v30, %s9212_s19  ;;  %v6498_v52 = vmul.f32 %v17983_v53, %v17891_v42  ;;  %v6469_v0 = vsub.f32 1.0, %v6468_v23  ;;  %v7069_v48 = vmul.f32 %v18001_v54, %v6300_v56  ;;  %v6460_v49 = vsel %vm18136_vm8, %v21010_v36, %v6456_v27  ;;  %vm18154_vm14 = vmor %vm6487_vm0, %vm6488_vm1  ;;  %v7007_v57 = vpop.permute.xlu0 %7006 }
 0x4ea   :  { %v6426_v40 = vadd.f32 %v21014_v9, %v6425_v4  ;;  %vm6428_vm15 = vweird.f32 %v21014_v9  ;;  %v18150_v17 = vpop.eup %9201  ;;  %vm6462_vm6 = vcmp.eq.f32.partialorder %v6461_v12, 8.507059e+37  ;;  %v6464_v43 = vor.u32 1.1754944e-38, %v6463_v60 }
 0x4eb   :  { %v6433_v54 = vand.u32 2147483648, %v21013_v59  ;;  %v6490_v36 = vsel %vm18154_vm14, %v17905_v37, %v6486_v25  ;;  %vm6427_vm9 = vweird.f32 %v21013_v59  ;;  %v6530_v63 = vmul.f32 %v18009_v29, %v6529_v62 }
 0x4ec   :  { %v6470_v35 = vmul.f32 %v17678_v47, %v6469_v0  ;;  %v6465_v10 = vsel %vm6462_vm6, %v6464_v43, %v6460_v49  ;;  %v6494_v14 = vor.u32 1.1754944e-38, %v6493_v33  ;;  %vm18168_vm2 = vmor %vm6427_vm9, %vm6428_vm15  ;;  %v6499_v2 = vsub.f32 1.0, %v6498_v52 }
 0x4ed   :  { %7148 = vrot.lane.b32.xlu2 %v7069_v48, %s9212_s19  ;;  %vm6492_vm10 = vcmp.eq.f32.partialorder %v6491_v22, 8.507059e+37  ;;  %v6430_v37 = vsel %vm18168_vm2, %v21014_v9, %v6426_v40  ;;  %vm6432_vm13 = vcmp.eq.f32.partialorder %v6431_v7, 8.507059e+37  ;;  %v6434_v5 = vor.u32 1.1754944e-38, %v6433_v54 }
 0x4ee   :  { %v7011_v44 = vpop.permute.xlu2 %7010  ;;  %v6495_v59 = vsel %vm6492_vm10, %v6494_v14, %v6490_v36  ;;  %vm6533_vm11 = vweird.f32 %v18009_v29  ;;  %v6536_v56 = vand.u32 2147483647, %v17915_v58  ;;  %v6531_v32 = vadd.f32 %v18009_v29, %v6530_v63 }
 0x4ef   :  { %v7080_v16 = vmul.f32 %v7011_v44, %v6465_v10  ;;  %v6471_v61 = vadd.f32 %v17678_v47, %v6470_v35  ;;  %vm6473_vm5 = vweird.f32 %v17678_v47  ;;  %v6513_v30 = vmul.f32 %v18150_v17, %v18103_v3 }
 0x4f0   :  { %v6435_v9 = vsel %vm6432_vm13, %v6434_v5, %v6430_v37  ;;  %v6500_v4 = vmul.f32 %v17983_v53, %v6499_v2  ;;  %vm6472_vm7 = vweird.f32 %v17566_v11  ;;  %v6478_v12 = vand.u32 2147483648, %v17566_v11 }
 0x4f1   :  { %7170 = vrot.lane.b32.xlu1 %v7080_v16, %s9212_s19  ;;  %v7078_v7 = vmul.f32 %v7007_v57, %v6435_v9  ;;  %v6476_v23 = vand.u32 2147483647, %v17566_v11  ;;  %v6514_v25 = vsub.f32 1.0, %v6513_v30  ;;  %v6538_v62 = vand.u32 2147483648, %v17915_v58  ;;  %vm18188_vm12 = vmor %vm6472_vm7, %vm6473_vm5 }
 0x4f2   :  { %v7015_v27 = vpop.permute.xlu1 %7014  ;;  %vm6532_vm3 = vweird.f32 %v17915_v58  ;;  %v6475_v33 = vsel %vm18188_vm12, %v17678_v47, %v6471_v61  ;;  %vm6537_vm0 = vcmp.eq.f32.partialorder %v6536_v56, 8.507059e+37  ;;  %v6479_v0 = vor.u32 1.1754944e-38, %v6478_v12 }
 0x4f3   :  { %v7082_v60 = vmul.f32 %v7015_v27, %v6495_v59  ;;  %v6515_v11 = vmul.f32 %v18150_v17, %v6514_v25  ;;  %vm18201_vm4 = vmor %vm6532_vm3, %vm6533_vm11  ;;  %v6501_v48 = vadd.f32 %v17983_v53, %v6500_v4  ;;  %vm6503_vm1 = vweird.f32 %v17983_v53 }
 0x4f4   :  { %v6535_v58 = vsel %vm18201_vm4, %v18009_v29, %v6531_v32  ;;  %vm6477_vm8 = vcmp.eq.f32.partialorder %v6476_v23, 8.507059e+37  ;;  %v6539_v47 = vor.u32 1.1754944e-38, %v6538_v62  ;;  %vm6502_vm15 = vweird.f32 %v17891_v42 }
 0x4f5   :  { %v7013_v22 = vpop.permute.xlu0 %7012  ;;  %7174 = vrot.lane.b32.xlu0 %v7082_v60, %s9212_s19  ;;  %7166 = vrot.lane.b32.xlu2 %v7078_v7, %s9212_s19  ;;  %v6508_v49 = vand.u32 2147483648, %v17891_v42  ;;  %v6480_v40 = vsel %vm6477_vm8, %v6479_v0, %v6475_v33  ;;  %v6506_v43 = vand.u32 2147483647, %v17891_v42  ;;  %v6516_v54 = vadd.f32 %v18150_v17, %v6515_v11  ;;  %vm6504_vm14 = vmor %vm6502_vm15, %vm6503_vm1 }
 0x4f6   :  { %v7081_v19 = vmul.f32 %v7013_v22, %v6480_v40  ;;  %vm6518_vm6 = vweird.f32 %v18150_v17  ;;  %v6540_v57 = vsel %vm6537_vm0, %v6539_v47, %v6535_v58  ;;  %v6523_v36 = vand.u32 2147483648, %v18103_v3  ;;  %v21065_v58 = vld [vmem:[#allocation218_spill] sm:$0xff] }
 0x4f7   :  { %v6505_v35 = vsel %vm6504_vm14, %v17983_v53, %v6501_v48  ;;  %vm6517_vm9 = vweird.f32 %v18103_v3  ;;  %v6521_v10 = vand.u32 2147483647, %v18103_v3  ;;  %v6509_v44 = vor.u32 1.1754944e-38, %v6508_v49  ;;  %v21066_v49 = vld [vmem:[#allocation99_spill] sm:$0xff] }
 0x4f8   :  { %vm6519_vm2 = vmor %vm6517_vm9, %vm6518_vm6  ;;  %vm6507_vm10 = vcmp.eq.f32.partialorder %v6506_v43, 8.507059e+37  ;;  %v6524_v16 = vor.u32 1.1754944e-38, %v6523_v36  ;;  %vm21029_vm11 = vcmask 261120   ;;  %vm21031_vm7 = vcmask 523264  }
 0x4f9   :  { %v6520_v14 = vsel %vm6519_vm2, %v18150_v17, %v6516_v54  ;;  %v6510_v55 = vsel %vm6507_vm10, %v6509_v44, %v6505_v35  ;;  %vm6522_vm13 = vcmp.eq.f32.partialorder %v6521_v10, 8.507059e+37  ;;  %vm21030_vm5 = vmmov %vm21029_vm11  ;;  %v21072_v54 = vld [vmem:[#allocation238_spill] sm:$0xff]  ;;  %v21077_v10 = vld [vmem:[#allocation244_spill] sm:$0xff] }
 0x4fa   :  { %v7021_v29 = vpop.permute.xlu1 %7020  ;;  %v6525_v53 = vsel %vm6522_vm13, %v6524_v16, %v6520_v14  ;;  %vm21032_vm12 = vmmov %vm21030_vm5  ;;  %v21081_v14 = vld [vmem:[#allocation3_spill] sm:$0xff] }
 0x4fb   :  { %v7085_v63 = vmul.f32 %v7021_v29, %v6540_v57  ;;  %vm21033_vm3 = vmmov %vm21031_vm7  ;;  %v21084_v16 = vld [vmem:[#allocation283_spill] sm:$0xff] }
 0x4fc   :  { %vm21034_vm4 = vmmov %vm21033_vm3 }
 0x4fd   :  { %v7019_v42 = vpop.permute.xlu0 %7018  ;;  %7180 = vrot.lane.b32.xlu0 %v7085_v63, %s9212_s19  ;;  %7172 = vrot.lane.b32.xlu2 %v7081_v19, %s9212_s19  ;;  %vm21035_vm0 = vmmov %vm21030_vm5  ;;  %v21075_v63 = vld [vmem:[#allocation69_spill] sm:$0xff] }
 0x4fe   :  { %v7017_v2 = vpop.permute.xlu2 %7016  ;;  %v7084_v59 = vmul.f32 %v7019_v42, %v6525_v53  ;;  %vm21036_vm1 = vmmov %vm21033_vm3 }
 0x4ff   :  { %v7083_v37 = vmul.f32 %v7017_v2, %v6510_v55  ;;  %vm21037_vm8 = vmmov %vm21035_vm0 }
 0x500   :  { %vm21038_vm15 = vmmov %vm21036_vm1 }
 0x501   :  { %7176 = vrot.lane.b32.xlu1 %v7083_v37, %s9212_s19  ;;  %vm21039_vm6 = vmmov %vm21035_vm0 }
 0x502   :  { %vm21040_vm14 = vmmov %vm21036_vm1 }
 0x503   :  { %vm21041_vm9 = vmmov %vm21035_vm0 }
 0x504   :  { %v7123_v3 = vpop.permute.xlu1 %7122  ;;  %vm21042_vm2 = vmmov %vm21036_vm1 }
 0x505   :  { %v7121_v5 = vpop.permute.xlu0 %7120  ;;  %v7216_v56 = vsel %vm21029_vm11, %v7123_v3, %v16911_v26  ;;  %7178 = vrot.lane.b32.xlu2 %v7084_v59, %s9212_s19  ;;  %vm21043_vm10 = vmmov %vm21035_vm0  ;;  %v21087_v59 = vld [vmem:[#allocation154_spill] sm:$0xff] }
 0x506   :  { %v7215_v32 = vsel %vm21030_vm5, %v7121_v5, %v16518_v46  ;;  %7248 = vst.msk [vmem:[%s18420_s4 + $0x110] sm:$0xff] %vm21031_vm7, %v7216_v56  ;;  %v7119_v17 = vpop.permute.xlu2 %7118  ;;  %vm21044_vm13 = vmmov %vm21035_vm0  ;;  %v21088_v56 = vld [vmem:[#allocation121_spill] sm:$0xff] }
 0x507   :  { %v7214_v61 = vsel %vm21032_vm12, %v7119_v17, %v16467_v50  ;;  %7247 = vst.msk [vmem:[%s18420_s4 + $0x108] sm:$0xff] %vm21033_vm3, %v7215_v32  ;;  %vm21045_vm11 = vmmov %vm21036_vm1 }
 0x508   :  { %7246 = vst.msk [vmem:[%s18420_s4 + $0x100] sm:$0xff] %vm21034_vm4, %v7214_v61  ;;  %vm21046_vm5 = vmmov %vm21036_vm1  ;;  %v21091_v61 = vld [vmem:[#allocation161_spill] sm:$0xff] }
 0x509   :  { %vm21047_vm7 = vmmov %vm21035_vm0 }
 0x50a   :  { %vm21048_vm12 = vmmov %vm21036_vm1 }
 0x50b   :  { %vm21049_vm3 = vmmov %vm21035_vm0 }
 0x50c   :  { %vm21050_vm4 = vmmov %vm21036_vm1 }
 0x50d   :  { %v7127_v46 = vpop.permute.xlu0 %7126 }
 0x50e   :  { %v7218_v26 = vsel %vm21035_vm0, %v7127_v46, %v16580_v6  ;;  %v7125_v50 = vpop.permute.xlu2 %7124 }
 0x50f   :  { %7250 = vst.msk [vmem:[%s18420_s4 + $0x120] sm:$0xff] %vm21036_vm1, %v7218_v26  ;;  %v7217_v30 = vsel %vm21037_vm8, %v7125_v50, %v16716_v38  ;;  %vm21051_vm8 = vmmov %vm21035_vm0  ;;  %v21094_v50 = vld [vmem:[#allocation191_spill] sm:$0xff] }
 0x510   :  { %7249 = vst.msk [vmem:[%s18420_s4 + $0x118] sm:$0xff] %vm21038_vm15, %v7217_v30  ;;  %vm21052_vm15 = vmmov %vm21036_vm1 }
 0x513   :  { %v7129_v27 = vpop.permute.xlu1 %7128 }
 0x514   :  { %v7219_v9 = vsel %vm21039_vm6, %v7129_v27, %v17038_v18  ;;  %vm21053_vm6 = vmmov %vm21035_vm0 }
 0x515   :  { %7251 = vst.msk [vmem:[%s18420_s4 + $0x128] sm:$0xff] %vm21040_vm14, %v7219_v9  ;;  %vm21054_vm14 = vmmov %vm21036_vm1  ;;  %v21097_v9 = vld [vmem:[#allocation234_spill] sm:$0xff] }
 0x516   :  { %v7131_v6 = vpop.permute.xlu2 %7130 }
 0x517   :  { %v7220_v4 = vsel %vm21041_vm9, %v7131_v6, %v16876_v51  ;;  %vm21055_vm9 = vmmov %vm21035_vm0 }
 0x518   :  { %7252 = vst.msk [vmem:[%s18420_s4 + $0x130] sm:$0xff] %vm21042_vm2, %v7220_v4  ;;  %vm21056_vm2 = vmmov %vm21036_vm1 }
 0x51b   :  { %v7135_v38 = vpop.permute.xlu1 %7134  ;;  %v7133_v12 = vpop.permute.xlu0 %7132 }
 0x51c   :  { %v7222_v60 = vsel %vm21043_vm10, %v7135_v38, %v17097_v21  ;;  %v7221_v18 = vsel %vm21044_vm13, %v7133_v12, %v16734_v13  ;;  %vm21057_vm10 = vmmov %vm21035_vm0 }
 0x51d   :  { %7254 = vst.msk [vmem:[%s18420_s4 + $0x140] sm:$0xff] %vm21045_vm11, %v7222_v60  ;;  %vm21058_vm13 = vmmov %vm21036_vm1 }
 0x51e   :  { %7253 = vst.msk [vmem:[%s18420_s4 + $0x138] sm:$0xff] %vm21046_vm5, %v7221_v18  ;;  %v7137_v51 = vpop.permute.xlu2 %7136  ;;  %vm21059_vm11 = vmmov %vm21035_vm0 }
 0x51f   :  { %v7223_v7 = vsel %vm21047_vm7, %v7137_v51, %v17064_v31  ;;  %vm21060_vm5 = vmmov %vm21036_vm1 }
 0x520   :  { %7255 = vst.msk [vmem:[%s18420_s4 + $0x148] sm:$0xff] %vm21048_vm12, %v7223_v7  ;;  %vm21061_vm7 = vmmov %vm21035_vm0 }
 0x521   :  { %vm21062_vm12 = vmmov %vm21036_vm1 }
 0x524   :  { %v7139_v13 = vpop.permute.xlu0 %7138 }
 0x525   :  { %v7224_v21 = vsel %vm21049_vm3, %v7139_v13, %v16965_v39  ;;  %vm21063_vm3 = vmmov %vm21035_vm0 }
 0x526   :  { %7256 = vst.msk [vmem:[%s18420_s4 + $0x150] sm:$0xff] %vm21050_vm4, %v7224_v21  ;;  %vm21064_vm4 = vmmov %vm21036_vm1 }
 0x527   :  { %v7143_v23 = vpop.permute.xlu2 %7142 }
 0x528   :  { %v7226_v25 = vsel %vm21035_vm0, %v7143_v23, %v17112_v1 }
 0x529   :  { %7258 = vst.msk [vmem:[%s18420_s4 + $0x160] sm:$0xff] %vm21036_vm1, %v7226_v25 }
 0x52b   :  { %v7141_v31 = vpop.permute.xlu1 %7140 }
 0x52c   :  { %v7225_v62 = vsel %vm21051_vm8, %v7141_v31, %v17219_v34  ;;  %v7145_v28 = vpop.permute.xlu0 %7144  ;;  %vm21067_vm8 = vmmov %vm21035_vm0 }
 0x52d   :  { %7257 = vst.msk [vmem:[%s18420_s4 + $0x158] sm:$0xff] %vm21052_vm15, %v7225_v62  ;;  %v7227_v39 = vsel %vm21053_vm6, %v7145_v28, %v17016_v45  ;;  %vm21069_vm15 = vmmov %vm21035_vm0 }
 0x52e   :  { %7259 = vst.msk [vmem:[%s18420_s4 + $0x168] sm:$0xff] %vm21054_vm14, %v7227_v39  ;;  %vm21070_vm6 = vmmov %vm21036_vm1 }
 0x52f   :  { %vm21071_vm14 = vmmov %vm21036_vm1 }
 0x534   :  { %v7151_v1 = vpop.permute.xlu0 %7150 }
 0x535   :  { %v7230_v22 = vsel %vm21055_vm9, %v7151_v1, %v17094_v8  ;;  %vm21073_vm9 = vmmov %vm21035_vm0 }
 0x536   :  { %7262 = vst.msk [vmem:[%s18420_s4 + $0x180] sm:$0xff] %vm21056_vm2, %v7230_v22  ;;  %vm21074_vm2 = vmmov %vm21036_vm1 }
 0x537   :  { %v7155_v34 = vpop.permute.xlu2 %7154 }
 0x538   :  { %v7232_v33 = vsel %vm21057_vm10, %v7155_v34, %v17266_v20  ;;  %vm21076_vm10 = vmmov %vm21035_vm0 }
 0x539   :  { %7264 = vst.msk [vmem:[%s18420_s4 + $0x190] sm:$0xff] %vm21058_vm13, %v7232_v33  ;;  %vm21078_vm13 = vmmov %vm21035_vm0 }
 0x53c   :  { %v7157_v45 = vpop.permute.xlu0 %7156 }
 0x53d   :  { %v7233_v11 = vsel %vm21059_vm11, %v7157_v45, %v17143_v15  ;;  %vm21079_vm11 = vmmov %vm21036_vm1 }
 0x53e   :  { %7265 = vst.msk [vmem:[%s18420_s4 + $0x198] sm:$0xff] %vm21060_vm5, %v7233_v11  ;;  %vm21080_vm5 = vmmov %vm21036_vm1 }
 0x53f   :  { %v7161_v8 = vpop.permute.xlu2 %7160 }
 0x540   :  { %v7235_v52 = vsel %vm21061_vm7, %v7161_v8, %v17316_v24  ;;  %vm21082_vm7 = vmmov %vm21035_vm0 }
 0x541   :  { %7267 = vst.msk [vmem:[%s18420_s4 + $0x1a8] sm:$0xff] %vm21062_vm12, %v7235_v52  ;;  %vm21083_vm12 = vmmov %vm21036_vm1 }
 0x543   :  { %v7153_v20 = vpop.permute.xlu1 %7152 }
 0x544   :  { %v7231_v0 = vsel %vm21063_vm3, %v7153_v20, %v17368_v41  ;;  %v21068_v41 = vld [vmem:[#allocation178_spill] sm:$0xff]  ;;  %vm21085_vm3 = vmmov %vm21035_vm0 }
 0x545   :  { %7263 = vst.msk [vmem:[%s18420_s4 + $0x188] sm:$0xff] %vm21064_vm4, %v7231_v0  ;;  %vm21086_vm4 = vmmov %vm21036_vm1 }
 0x547   :  { %v7149_v15 = vpop.permute.xlu2 %7148 }
 0x548   :  { %v7229_v48 = vsel %vm21035_vm0, %v7149_v15, %v21065_v58 }
 0x549   :  { %7261 = vst.msk [vmem:[%s18420_s4 + $0x178] sm:$0xff] %vm21036_vm1, %v7229_v48 }
 0x54a   :  { %v7163_v24 = vpop.permute.xlu0 %7162 }
 0x54b   :  { %v7147_v47 = vpop.permute.xlu1 %7146  ;;  %v7236_v40 = vsel %vm21067_vm8, %v7163_v24, %v21066_v49  ;;  %vm21089_vm8 = vmmov %vm21035_vm0 }
 0x54c   :  { %v7228_v43 = vsel %vm21069_vm15, %v7147_v47, %v21068_v41  ;;  %7268 = vst.msk [vmem:[%s18420_s4 + $0x1b0] sm:$0xff] %vm21070_vm6, %v7236_v40  ;;  %vm21090_vm15 = vmmov %vm21036_vm1 }
 0x54d   :  { %7260 = vst.msk [vmem:[%s18420_s4 + $0x170] sm:$0xff] %vm21071_vm14, %v7228_v43  ;;  %vm21092_vm6 = vmmov %vm21035_vm0 }
 0x54e   :  { %vm21093_vm14 = vmmov %vm21036_vm1 }
 0x54f   :  { %v7167_v19 = vpop.permute.xlu2 %7166 }
 0x550   :  { %v7238_v57 = vsel %vm21073_vm9, %v7167_v19, %v21072_v54  ;;  %vm21095_vm9 = vmmov %vm21035_vm0 }
 0x551   :  { %7270 = vst.msk [vmem:[%s18420_s4 + $0x1c0] sm:$0xff] %vm21074_vm2, %v7238_v57  ;;  %vm21096_vm2 = vmmov %vm21036_vm1 }
 0x552   :  { %v7169_v29 = vpop.permute.xlu0 %7168 }
 0x553   :  { %v7159_v36 = vpop.permute.xlu1 %7158  ;;  %v7239_v35 = vsel %vm21076_vm10, %v7169_v29, %v21075_v63  ;;  %vm21098_vm10 = vmmov %vm21035_vm0 }
 0x554   :  { %v7234_v44 = vsel %vm21078_vm13, %v7159_v36, %v21077_v10  ;;  %7271 = vst.msk [vmem:[%s18420_s4 + $0x1c8] sm:$0xff] %vm21079_vm11, %v7239_v35  ;;  %vm21099_vm13 = vmmov %vm21036_vm1 }
 0x555   :  { %7266 = vst.msk [vmem:[%s18420_s4 + $0x1a0] sm:$0xff] %vm21080_vm5, %v7234_v44 }
 0x557   :  { %v7173_v42 = vpop.permute.xlu2 %7172 }
 0x558   :  { %v7241_v55 = vsel %vm21082_vm7, %v7173_v42, %v21081_v14 }
 0x559   :  { %7273 = vst.msk [vmem:[%s18420_s4 + $0x1d8] sm:$0xff] %vm21083_vm12, %v7241_v55 }
 0x55b   :  { %v7165_v2 = vpop.permute.xlu1 %7164 }
 0x55c   :  { %v7237_v37 = vsel %vm21085_vm3, %v7165_v2, %v21084_v16 }
 0x55d   :  { %7269 = vst.msk [vmem:[%s18420_s4 + $0x1b8] sm:$0xff] %vm21086_vm4, %v7237_v37 }
 0x55f   :  { %v7179_v53 = vpop.permute.xlu2 %7178 }
 0x560   :  { %v7244_v3 = vsel %vm21035_vm0, %v7179_v53, %v21087_v59 }
 0x561   :  { %7276 = vst.msk [vmem:[%s18420_s4 + $0x1f0] sm:$0xff] %vm21036_vm1, %v7244_v3 }
 0x563   :  { %v7171_v5 = vpop.permute.xlu1 %7170 }
 0x564   :  { %v7240_v32 = vsel %vm21089_vm8, %v7171_v5, %v21088_v56 }
 0x565   :  { %7272 = vst.msk [vmem:[%s18420_s4 + $0x1d0] sm:$0xff] %vm21090_vm15, %v7240_v32 }
 0x567   :  { %v7175_v17 = vpop.permute.xlu0 %7174 }
 0x568   :  { %v7242_v46 = vsel %vm21092_vm6, %v7175_v17, %v21091_v61 }
 0x569   :  { %7274 = vst.msk [vmem:[%s18420_s4 + $0x1e0] sm:$0xff] %vm21093_vm14, %v7242_v46 }
 0x56f   :  { %v7181_v26 = vpop.permute.xlu0 %7180 }
 0x570   :  { %v7245_v30 = vsel %vm21095_vm9, %v7181_v26, %v21094_v50 }
 0x571   :  { %7277 = vst.msk [vmem:[%s18420_s4 + $0x1f8] sm:$0xff] %vm21096_vm2, %v7245_v30 }
 0x573   :  { %v7177_v27 = vpop.permute.xlu1 %7176 }
 0x574   :  { %v7243_v6 = vsel %vm21098_vm10, %v7177_v27, %v21097_v9 }
 0x575   :  { %7275 = vst.msk [vmem:[%s18420_s4 + $0x1e8] sm:$0xff] %vm21099_vm13, %v7243_v6 }

</bundles_post_ra>
